<compile_context>
chip_gen: v7x
topology: tpu7x:2x2x1
jax: 0.10.0
libtpu: 0.0.40
codegen_flags: <defaults>
</compile_context>

<pallas_src>
import functools

import jax
import jax.numpy as jnp
from jax.experimental import pallas as pl
from jax.experimental.pallas import tpu as pltpu


def _round_up(x, m):
    return (x + m - 1) // m * m


def _lstm_encoder_kernel(x_ref, len_ref, w_ref, b_ref, out_ref,
                         h_state, c_state, xh_scratch, bias_bcast,
                         *, num_layers, hidden, hidden_pad, time_block, residual):
    """One grid step == one (batch_block, time_block); recurrence runs inside."""
    L, H, Hp, TB = num_layers, hidden, hidden_pad, time_block
    t_blk = pl.program_id(1)                       # time-block index (inner, arbitrary)

    @pl.when(t_blk == 0)
    def _():
        # nn.LSTM default zero initial states, reset per batch block.
        h_state[...] = jnp.zeros_like(h_state)
        c_state[...] = jnp.zeros_like(c_state)
        # Pre-broadcast the per-layer bias once (JAX does not CSE broadcasts).
        bias_bcast[...] = jnp.broadcast_to(b_ref[...], bias_bcast.shape).astype(
            bias_bcast.dtype)

    lens = len_ref[...]                            # (BB, 1) int32, VMEM resident
    t0 = t_blk * TB

    def step(s, carry):
        t = t0 + s
        # pack_padded mask, hoisted: one (BB, Hp) broadcast per timestep.
        valid = jnp.broadcast_to(lens > t, h_state.shape[1:])
        x_t = x_ref[s]                             # (BB, Cp) current timestep input
        inp = x_t.astype(jnp.float32)

        for l in range(L):                         # static unroll over layers
            h_prev = h_state[l]                    # (BB, Hp) f32
            c_prev = c_state[l]                    # (BB, Hp) f32

            # Fused gate matmul: [x_t, h] @ [W_ih^T ; W_hh^T] -> (BB, 4Hp).
            # Both scratch writes are at lane-aligned offsets (0 and Hp).
            xh_scratch[:, 0:Hp] = inp.astype(xh_scratch.dtype)
            xh_scratch[:, Hp:2 * Hp] = h_prev.astype(xh_scratch.dtype)
            gates = jnp.dot(xh_scratch[...], w_ref[l],
                            preferred_element_type=jnp.float32) + bias_bcast[l]

            # Lane-aligned gate tiles (each gate owns [k*Hp, (k+1)*Hp)).
            i_g = jax.nn.sigmoid(gates[:, 0 * Hp:1 * Hp])
            f_g = jax.nn.sigmoid(gates[:, 1 * Hp:2 * Hp])
            g_g = jnp.tanh(gates[:, 2 * Hp:3 * Hp])
            o_g = jax.nn.sigmoid(gates[:, 3 * Hp:4 * Hp])

            c_cand = f_g * c_prev + i_g * g_g
            h_cand = o_g * jnp.tanh(c_cand)

            # pack_padded_sequence: frozen state / zero output past length.
            c_state[l] = jnp.where(valid, c_cand, c_prev)
            h_state[l] = jnp.where(valid, h_cand, h_prev)
            inp = jnp.where(valid, h_cand, 0.0)
            # TODO(synk): training-mode dropout between layers (eval: identity).

        y = inp[:, 0:H]                            # no-op slice when H % 128 == 0
        if residual:
            # Fused residual: x_t already in VMEM, saves an HBM pass.
            y = y + x_t[:, 0:H].astype(jnp.float32)
        out_ref[s] = y.astype(out_ref.dtype)
        return carry

    jax.lax.fori_loop(0, TB, step, 0, unroll=True)


def prepare_lstm_params(w_ih, w_hh, b_ih, b_hh, *, weight_dtype=jnp.bfloat16):
    """One-time parameter prep (hoisted out of the per-call path).

    w_ih/w_hh: (L, 4H, H) PyTorch nn.LSTM layout (requires insz == hsz).
    b_ih/b_hh: (L, 4H).
    Returns:
      w_comb: (L, 2*Hp, 4*Hp) fused, lane-padded weight in `weight_dtype`
              (gate k lives in output lanes [k*Hp, k*Hp+H)).
      b_comb: (L, 1, 4*Hp) fused, lane-padded f32 bias.
    """
    L, four_h, H = w_hh.shape
    assert four_h == 4 * H and w_ih.shape == (L, four_h, H), "kernel assumes insz == hsz"
    Hp = _round_up(H, 128)

    def pack(w):                                   # (L,4H,H) -> (L,Hp,4Hp), lane padded
        w = w.reshape(L, 4, H, H)                  # (layer, gate, out_unit, in_feature)
        w = jnp.transpose(w, (0, 3, 1, 2))         # (layer, in_feature, gate, out_unit)
        w = jnp.pad(w, ((0, 0), (0, Hp - H), (0, 0), (0, Hp - H)))
        return w.reshape(L, Hp, 4 * Hp)

    w_comb = jnp.concatenate([pack(w_ih), pack(w_hh)], axis=1).astype(weight_dtype)
    b = (b_ih + b_hh).astype(jnp.float32).reshape(L, 4, H)
    b_comb = jnp.pad(b, ((0, 0), (0, 0), (0, Hp - H))).reshape(L, 1, 4 * Hp)
    return w_comb, b_comb


def lstm_encoder(tbc, lengths, w_comb, b_comb, *, residual=False,
                 time_block=32, batch_block=None,
                 vmem_limit_bytes=64 * 1024 * 1024):
    """Forward of LSTMEncoder (eval mode). tbc: (T, B, C) time-major."""
    T, B, C = tbc.shape
    L, two_hp, four_hp = w_comb.shape
    Hp = four_hp // 4
    assert two_hp == 2 * Hp
    H = C                                          # kernel assumes insz == hsz
    assert _round_up(H, 128) == Hp, "w_comb packed for a different hidden size"

    TB = max(1, min(time_block, T))
    T_pad = ((T + TB - 1) // TB) * TB
    BB = B if batch_block is None else batch_block
    assert B % BB == 0 and (BB == B or BB % 8 == 0)
    n_b, n_t = B // BB, T_pad // TB

    # Zero-pad time to a multiple of TB and channels to the 128-lane boundary.
    # (Elided by XLA when T % TB == 0 and C % 128 == 0; padded timesteps are
    #  past every length so they produce zero output and are sliced off below.)
    x_p = jnp.pad(tbc, ((0, T_pad - T), (0, 0), (0, Hp - C)))
    len_col = lengths.reshape(B, 1).astype(jnp.int32)

    kernel = functools.partial(
        _lstm_encoder_kernel, num_layers=L, hidden=H, hidden_pad=Hp,
        time_block=TB, residual=residual)

    resident = dict(pipeline_mode=pl.Buffered(buffer_count=1))  # constants: no double-buffer

    out = pl.pallas_call(
        kernel,
        out_shape=jax.ShapeDtypeStruct((T_pad, B, H), tbc.dtype),
        grid_spec=pltpu.PrefetchScalarGridSpec(
            num_scalar_prefetch=0,
            grid=(n_b, n_t),                                       # (batch blocks, time blocks)
            in_specs=[
                pl.BlockSpec((TB, BB, Hp), lambda b, t: (t, b, 0)),            # x slab (streamed)
                pl.BlockSpec((BB, 1), lambda b, t: (b, 0), **resident),        # lengths (resident)
                pl.BlockSpec((L, 2 * Hp, 4 * Hp), lambda b, t: (0, 0, 0),
                             **resident),                                      # fused weights
                pl.BlockSpec((L, 1, 4 * Hp), lambda b, t: (0, 0, 0),
                             **resident),                                      # fused bias
            ],
            out_specs=pl.BlockSpec((TB, BB, H), lambda b, t: (t, b, 0)),       # y slab (streamed)
            scratch_shapes=[
                pltpu.VMEM((L, BB, Hp), jnp.float32),      # h state (persists over time)
                pltpu.VMEM((L, BB, Hp), jnp.float32),      # c state (persists over time)
                pltpu.VMEM((BB, 2 * Hp), w_comb.dtype),    # fused [x, h] matmul input
                pltpu.VMEM((L, BB, 4 * Hp), jnp.float32),  # pre-broadcast bias
            ],
        ),
        compiler_params=pltpu.CompilerParams(
            dimension_semantics=("parallel", "arbitrary"),   # batch parallel, time sequential
            vmem_limit_bytes=vmem_limit_bytes),
    )(x_p, len_col, w_comb, b_comb)

    return out if T_pad == T else out[:T]


def _reference(tbc, lengths, w_ih, w_hh, b_ih, b_hh, residual=False):
    """Pure-JAX reference mirroring nn.LSTM + pack/pad_packed_sequence (eval)."""
    T, B, C = tbc.shape
    L, four_h, _ = w_hh.shape
    H = four_h // 4
    h = [jnp.zeros((B, H), jnp.float32) for _ in range(L)]
    c = [jnp.zeros((B, H), jnp.float32) for _ in range(L)]
    outs = []
    for t in range(T):
        valid = (lengths > t)[:, None]
        inp = tbc[t].astype(jnp.float32)
        for l in range(L):
            gates = (inp @ w_ih[l].T.astype(jnp.float32)
                     + h[l] @ w_hh[l].T.astype(jnp.float32)
                     + b_ih[l].astype(jnp.float32) + b_hh[l].astype(jnp.float32))
            i_g = jax.nn.sigmoid(gates[:, 0 * H:1 * H])
            f_g = jax.nn.sigmoid(gates[:, 1 * H:2 * H])
            g_g = jnp.tanh(gates[:, 2 * H:3 * H])
            o_g = jax.nn.sigmoid(gates[:, 3 * H:4 * H])
            c_cand = f_g * c[l] + i_g * g_g
            h_cand = o_g * jnp.tanh(c_cand)
            c[l] = jnp.where(valid, c_cand, c[l])
            h[l] = jnp.where(valid, h_cand, h[l])
            inp = jnp.where(valid, h_cand, 0.0)
        outs.append(inp)
    out = jnp.stack(outs).astype(tbc.dtype)
    return out + tbc if residual else out


if __name__ == "__main__":
    T, B, H, L = 8, 8, 32, 2     # seq len, batch, rnn_size (== insz), num layers

    key = jax.random.PRNGKey(0)
    k1, k2, k3, k4, k5 = jax.random.split(key, 5)
    scale = 1.0 / jnp.sqrt(H)
    tbc = jax.random.normal(k1, (T, B, H), dtype=jnp.float32)
    lengths = jnp.array([8, 8, 7, 6, 5, 4, 3, 2], dtype=jnp.int32)  # sorted desc
    w_ih = jax.random.uniform(k2, (L, 4 * H, H), minval=-scale, maxval=scale,
                              dtype=jnp.float32)
    w_hh = jax.random.uniform(k3, (L, 4 * H, H), minval=-scale, maxval=scale,
                              dtype=jnp.float32)
    b_ih = jax.random.uniform(k4, (L, 4 * H), minval=-scale, maxval=scale,
                              dtype=jnp.float32)
    b_hh = jax.random.uniform(k5, (L, 4 * H), minval=-scale, maxval=scale,
                              dtype=jnp.float32)

    out_r = _reference(tbc, lengths, w_ih, w_hh, b_ih, b_hh, residual=False)
    out_res_r = _reference(tbc, lengths, w_ih, w_hh, b_ih, b_hh, residual=True)

    # f32 resident weights: tight check of gate math, masking, residual fusion.
    w32, b32 = prepare_lstm_params(w_ih, w_hh, b_ih, b_hh, weight_dtype=jnp.float32)
    out = lstm_encoder(tbc, lengths, w32, b32, residual=False)
    out_res = lstm_encoder(tbc, lengths, w32, b32, residual=True)
    jax.block_until_ready((out, out_res))
    assert jnp.allclose(out, out_r, atol=1e-5, rtol=1e-5)
    assert jnp.allclose(out_res, out_res_r, atol=1e-5, rtol=1e-5)

    # bf16 resident weights (native MXU rate on v6e/v7x, half the VMEM); f32
    # accumulation and f32 gate/state math are kept, so only matmul inputs lose
    # precision -> looser tolerance.
    wbf, bbf = prepare_lstm_params(w_ih, w_hh, b_ih, b_hh, weight_dtype=jnp.bfloat16)
    out_bf = lstm_encoder(tbc, lengths, wbf, bbf, residual=False)
    jax.block_until_ready(out_bf)
    assert jnp.allclose(out_bf, out_r, atol=5e-2, rtol=5e-2)

    print("KERNEL_OK")
</pallas_src>

<mosaic_0001>
module attributes {stable_mosaic.version = 11 : i64} {
  func.func @_lstm_encoder_kernel(%arg0: i32, %arg1: i32, %arg2: memref<8x8x128xf32, #tpu.memory_space<vmem>>, %arg3: memref<8x1xi32, #tpu.memory_space<vmem>>, %arg4: memref<2x256x512xf32, #tpu.memory_space<vmem>>, %arg5: memref<2x1x512xf32, #tpu.memory_space<vmem>>, %arg6: memref<8x8x32xf32, #tpu.memory_space<vmem>>, %arg7: memref<2x8x128xf32, #tpu.memory_space<vmem>>, %arg8: memref<2x8x128xf32, #tpu.memory_space<vmem>>, %arg9: memref<8x256xf32, #tpu.memory_space<vmem>>, %arg10: memref<2x8x512xf32, #tpu.memory_space<vmem>>) attributes {dimension_semantics = [#tpu.dimension_semantics<parallel>, #tpu.dimension_semantics<arbitrary>], iteration_bounds = array<i64: 1, 1>, scalar_prefetch = 0 : i64, scratch_operands = 4 : i64, tpu.core_type = #tpu.core_type<tc>, window_params = [{transform_indices = @transform_0, window_bounds = array<i64: 8, 8, 128>}, {pipeline_mode = #tpu.pipeline_mode<synchronous>, transform_indices = @transform_1, window_bounds = array<i64: 8, 1>}, {pipeline_mode = #tpu.pipeline_mode<synchronous>, transform_indices = @transform_2, window_bounds = array<i64: 2, 256, 512>}, {pipeline_mode = #tpu.pipeline_mode<synchronous>, transform_indices = @transform_3, window_bounds = array<i64: 2, 1, 512>}, {transform_indices = @transform_4, window_bounds = array<i64: 8, 8, 32>}]} {
    %c0_i32 = arith.constant 0 : i32
    %0 = arith.cmpi eq, %arg1, %c0_i32 : i32
    %1 = arith.extui %0 : i1 to i32
    %c0_i32_0 = arith.constant 0 : i32
    %2 = arith.cmpi ne, %1, %c0_i32_0 : i32
    scf.if %2 {
      %cst_497 = arith.constant 0.000000e+00 : f32
      %877 = vector.broadcast %cst_497 : f32 to vector<2x8x128xf32>
      %c0_498 = arith.constant 0 : index
      %c0_499 = arith.constant 0 : index
      %c0_500 = arith.constant 0 : index
      %878 = vector.load %arg7[%c0_498, %c0_499, %c0_500] : memref<2x8x128xf32, #tpu.memory_space<vmem>>, vector<2x8x128xf32>
      tpu.vector_store %arg7[%c0_498, %c0_499, %c0_500], %877 {strides = array<i32>} : memref<2x8x128xf32, #tpu.memory_space<vmem>>, vector<2x8x128xf32>,
      %cst_501 = arith.constant 0.000000e+00 : f32
      %879 = vector.broadcast %cst_501 : f32 to vector<2x8x128xf32>
      %c0_502 = arith.constant 0 : index
      %c0_503 = arith.constant 0 : index
      %c0_504 = arith.constant 0 : index
      %880 = vector.load %arg8[%c0_502, %c0_503, %c0_504] : memref<2x8x128xf32, #tpu.memory_space<vmem>>, vector<2x8x128xf32>
      tpu.vector_store %arg8[%c0_502, %c0_503, %c0_504], %879 {strides = array<i32>} : memref<2x8x128xf32, #tpu.memory_space<vmem>>, vector<2x8x128xf32>,
      %c0_505 = arith.constant 0 : index
      %c0_506 = arith.constant 0 : index
      %c0_507 = arith.constant 0 : index
      %881 = vector.load %arg5[%c0_505, %c0_506, %c0_507] : memref<2x1x512xf32, #tpu.memory_space<vmem>>, vector<2x1x512xf32>
      %882 = vector.shape_cast %881 : vector<2x1x512xf32> to vector<2x1x512xf32>
      %883 = vector.broadcast %882 : vector<2x1x512xf32> to vector<2x8x512xf32>
      %c0_508 = arith.constant 0 : index
      %c0_509 = arith.constant 0 : index
      %c0_510 = arith.constant 0 : index
      %884 = vector.load %arg10[%c0_508, %c0_509, %c0_510] : memref<2x8x512xf32, #tpu.memory_space<vmem>>, vector<2x8x512xf32>
      tpu.vector_store %arg10[%c0_508, %c0_509, %c0_510], %883 {strides = array<i32>} : memref<2x8x512xf32, #tpu.memory_space<vmem>>, vector<2x8x512xf32>,
    } else {
    }
    %c0 = arith.constant 0 : index
    %c0_1 = arith.constant 0 : index
    %3 = vector.load %arg3[%c0, %c0_1] : memref<8x1xi32, #tpu.memory_space<vmem>>, vector<8x1xi32>
    %c8_i32 = arith.constant 8 : i32
    %4 = arith.muli %arg1, %c8_i32 : i32
    %c0_i32_2 = arith.constant 0 : i32
    %5 = arith.addi %4, %c0_i32_2 : i32
    %6 = vector.broadcast %5 : i32 to vector<8x1xi32>
    %7 = arith.cmpi sgt, %3, %6 : vector<8x1xi32>
    %8 = vector.shape_cast %7 : vector<8x1xi1> to vector<8x1xi1>
    %9 = vector.broadcast %8 : vector<8x1xi1> to vector<8x128xi1>
    %10 = arith.index_cast %c0_i32_2 : i32 to index
    %c0_3 = arith.constant 0 : index
    %c0_4 = arith.constant 0 : index
    %11 = vector.load %arg2[%10, %c0_3, %c0_4] : memref<8x8x128xf32, #tpu.memory_space<vmem>>, vector<1x8x128xf32>
    %12 = vector.shape_cast %11 : vector<1x8x128xf32> to vector<8x128xf32>
    %c0_5 = arith.constant 0 : index
    %c0_6 = arith.constant 0 : index
    %c0_7 = arith.constant 0 : index
    %13 = vector.load %arg7[%c0_5, %c0_6, %c0_7] : memref<2x8x128xf32, #tpu.memory_space<vmem>>, vector<1x8x128xf32>
    %14 = vector.shape_cast %13 : vector<1x8x128xf32> to vector<8x128xf32>
    %c0_8 = arith.constant 0 : index
    %c0_9 = arith.constant 0 : index
    %c0_10 = arith.constant 0 : index
    %15 = vector.load %arg8[%c0_8, %c0_9, %c0_10] : memref<2x8x128xf32, #tpu.memory_space<vmem>>, vector<1x8x128xf32>
    %16 = vector.shape_cast %15 : vector<1x8x128xf32> to vector<8x128xf32>
    %c0_11 = arith.constant 0 : index
    %c0_12 = arith.constant 0 : index
    %17 = vector.load %arg9[%c0_11, %c0_12] : memref<8x256xf32, #tpu.memory_space<vmem>>, vector<8x128xf32>
    tpu.vector_store %arg9[%c0_11, %c0_12], %12 {strides = array<i32>} : memref<8x256xf32, #tpu.memory_space<vmem>>, vector<8x128xf32>,
    %c0_13 = arith.constant 0 : index
    %c128 = arith.constant 128 : index
    %18 = vector.load %arg9[%c0_13, %c128] : memref<8x256xf32, #tpu.memory_space<vmem>>, vector<8x128xf32>
    tpu.vector_store %arg9[%c0_13, %c128], %14 {strides = array<i32>} : memref<8x256xf32, #tpu.memory_space<vmem>>, vector<8x128xf32>,
    %c0_14 = arith.constant 0 : index
    %c0_15 = arith.constant 0 : index
    %19 = vector.load %arg9[%c0_14, %c0_15] : memref<8x256xf32, #tpu.memory_space<vmem>>, vector<8x256xf32>
    %c0_16 = arith.constant 0 : index
    %c0_17 = arith.constant 0 : index
    %c0_18 = arith.constant 0 : index
    %20 = vector.load %arg4[%c0_16, %c0_17, %c0_18] : memref<2x256x512xf32, #tpu.memory_space<vmem>>, vector<1x256x512xf32>
    %21 = vector.shape_cast %20 : vector<1x256x512xf32> to vector<256x512xf32>
    %cst = arith.constant dense<0.000000e+00> : vector<8x512xf32>
    %22 = tpu.matmul %19, %21, %cst {dimension_numbers = #tpu.dot_dimension_numbers<[1], [0], [0], [1], [0, 0, 1, 1], [], []>} : vector<8x256xf32>, vector<256x512xf32>, vector<8x512xf32> -> vector<8x512xf32>
    %c0_19 = arith.constant 0 : index
    %c0_20 = arith.constant 0 : index
    %c0_21 = arith.constant 0 : index
    %23 = vector.load %arg10[%c0_19, %c0_20, %c0_21] : memref<2x8x512xf32, #tpu.memory_space<vmem>>, vector<1x8x512xf32>
    %24 = vector.shape_cast %23 : vector<1x8x512xf32> to vector<8x512xf32>
    %25 = arith.addf %22, %24 : vector<8x512xf32>
    %26 = vector.extract_strided_slice %25 {offsets = [0, 0], sizes = [8, 128], strides = [1, 1]} : vector<8x512xf32> to vector<8x128xf32>
    %27 = arith.negf %26 : vector<8x128xf32>
    %28 = math.exp %27 : vector<8x128xf32>
    %cst_22 = arith.constant 1.000000e+00 : f32
    %29 = vector.broadcast %cst_22 : f32 to vector<8x128xf32>
    %30 = arith.addf %29, %28 : vector<8x128xf32>
    %31 = arith.divf %29, %30 : vector<8x128xf32>
    %32 = vector.extract_strided_slice %25 {offsets = [0, 128], sizes = [8, 128], strides = [1, 1]} : vector<8x512xf32> to vector<8x128xf32>
    %33 = arith.negf %32 : vector<8x128xf32>
    %34 = math.exp %33 : vector<8x128xf32>
    %cst_23 = arith.constant 1.000000e+00 : f32
    %35 = vector.broadcast %cst_23 : f32 to vector<8x128xf32>
    %36 = arith.addf %35, %34 : vector<8x128xf32>
    %37 = arith.divf %35, %36 : vector<8x128xf32>
    %38 = vector.extract_strided_slice %25 {offsets = [0, 256], sizes = [8, 128], strides = [1, 1]} : vector<8x512xf32> to vector<8x128xf32>
    %39 = math.tanh %38 : vector<8x128xf32>
    %40 = vector.extract_strided_slice %25 {offsets = [0, 384], sizes = [8, 128], strides = [1, 1]} : vector<8x512xf32> to vector<8x128xf32>
    %41 = arith.negf %40 : vector<8x128xf32>
    %42 = math.exp %41 : vector<8x128xf32>
    %cst_24 = arith.constant 1.000000e+00 : f32
    %43 = vector.broadcast %cst_24 : f32 to vector<8x128xf32>
    %44 = arith.addf %43, %42 : vector<8x128xf32>
    %45 = arith.divf %43, %44 : vector<8x128xf32>
    %46 = arith.mulf %37, %16 : vector<8x128xf32>
    %47 = arith.mulf %31, %39 : vector<8x128xf32>
    %48 = arith.addf %46, %47 : vector<8x128xf32>
    %49 = math.tanh %48 : vector<8x128xf32>
    %50 = arith.mulf %45, %49 : vector<8x128xf32>
    %51 = arith.select %9, %48, %16 : vector<8x128xi1>, vector<8x128xf32>
    %c0_25 = arith.constant 0 : index
    %c0_26 = arith.constant 0 : index
    %c0_27 = arith.constant 0 : index
    %52 = vector.load %arg8[%c0_25, %c0_26, %c0_27] : memref<2x8x128xf32, #tpu.memory_space<vmem>>, vector<1x8x128xf32>
    %53 = vector.shape_cast %52 : vector<1x8x128xf32> to vector<8x128xf32>
    %54 = vector.shape_cast %51 : vector<8x128xf32> to vector<1x8x128xf32>
    tpu.vector_store %arg8[%c0_25, %c0_26, %c0_27], %54 {strides = array<i32>} : memref<2x8x128xf32, #tpu.memory_space<vmem>>, vector<1x8x128xf32>,
    %55 = arith.select %9, %50, %14 : vector<8x128xi1>, vector<8x128xf32>
    %c0_28 = arith.constant 0 : index
    %c0_29 = arith.constant 0 : index
    %c0_30 = arith.constant 0 : index
    %56 = vector.load %arg7[%c0_28, %c0_29, %c0_30] : memref<2x8x128xf32, #tpu.memory_space<vmem>>, vector<1x8x128xf32>
    %57 = vector.shape_cast %56 : vector<1x8x128xf32> to vector<8x128xf32>
    %58 = vector.shape_cast %55 : vector<8x128xf32> to vector<1x8x128xf32>
    tpu.vector_store %arg7[%c0_28, %c0_29, %c0_30], %58 {strides = array<i32>} : memref<2x8x128xf32, #tpu.memory_space<vmem>>, vector<1x8x128xf32>,
    %cst_31 = arith.constant 0.000000e+00 : f32
    %59 = vector.broadcast %cst_31 : f32 to vector<8x128xf32>
    %60 = arith.select %9, %50, %59 : vector<8x128xi1>, vector<8x128xf32>
    %c1 = arith.constant 1 : index
    %c0_32 = arith.constant 0 : index
    %c0_33 = arith.constant 0 : index
    %61 = vector.load %arg7[%c1, %c0_32, %c0_33] : memref<2x8x128xf32, #tpu.memory_space<vmem>>, vector<1x8x128xf32>
    %62 = vector.shape_cast %61 : vector<1x8x128xf32> to vector<8x128xf32>
    %c1_34 = arith.constant 1 : index
    %c0_35 = arith.constant 0 : index
    %c0_36 = arith.constant 0 : index
    %63 = vector.load %arg8[%c1_34, %c0_35, %c0_36] : memref<2x8x128xf32, #tpu.memory_space<vmem>>, vector<1x8x128xf32>
    %64 = vector.shape_cast %63 : vector<1x8x128xf32> to vector<8x128xf32>
    %c0_37 = arith.constant 0 : index
    %c0_38 = arith.constant 0 : index
    %65 = vector.load %arg9[%c0_37, %c0_38] : memref<8x256xf32, #tpu.memory_space<vmem>>, vector<8x128xf32>
    tpu.vector_store %arg9[%c0_37, %c0_38], %60 {strides = array<i32>} : memref<8x256xf32, #tpu.memory_space<vmem>>, vector<8x128xf32>,
    %c0_39 = arith.constant 0 : index
    %c128_40 = arith.constant 128 : index
    %66 = vector.load %arg9[%c0_39, %c128_40] : memref<8x256xf32, #tpu.memory_space<vmem>>, vector<8x128xf32>
    tpu.vector_store %arg9[%c0_39, %c128_40], %62 {strides = array<i32>} : memref<8x256xf32, #tpu.memory_space<vmem>>, vector<8x128xf32>,
    %c0_41 = arith.constant 0 : index
    %c0_42 = arith.constant 0 : index
    %67 = vector.load %arg9[%c0_41, %c0_42] : memref<8x256xf32, #tpu.memory_space<vmem>>, vector<8x256xf32>
    %c1_43 = arith.constant 1 : index
    %c0_44 = arith.constant 0 : index
    %c0_45 = arith.constant 0 : index
    %68 = vector.load %arg4[%c1_43, %c0_44, %c0_45] : memref<2x256x512xf32, #tpu.memory_space<vmem>>, vector<1x256x512xf32>
    %69 = vector.shape_cast %68 : vector<1x256x512xf32> to vector<256x512xf32>
    %cst_46 = arith.constant dense<0.000000e+00> : vector<8x512xf32>
    %70 = tpu.matmul %67, %69, %cst_46 {dimension_numbers = #tpu.dot_dimension_numbers<[1], [0], [0], [1], [0, 0, 1, 1], [], []>} : vector<8x256xf32>, vector<256x512xf32>, vector<8x512xf32> -> vector<8x512xf32>
    %c1_47 = arith.constant 1 : index
    %c0_48 = arith.constant 0 : index
    %c0_49 = arith.constant 0 : index
    %71 = vector.load %arg10[%c1_47, %c0_48, %c0_49] : memref<2x8x512xf32, #tpu.memory_space<vmem>>, vector<1x8x512xf32>
    %72 = vector.shape_cast %71 : vector<1x8x512xf32> to vector<8x512xf32>
    %73 = arith.addf %70, %72 : vector<8x512xf32>
    %74 = vector.extract_strided_slice %73 {offsets = [0, 0], sizes = [8, 128], strides = [1, 1]} : vector<8x512xf32> to vector<8x128xf32>
    %75 = arith.negf %74 : vector<8x128xf32>
    %76 = math.exp %75 : vector<8x128xf32>
    %cst_50 = arith.constant 1.000000e+00 : f32
    %77 = vector.broadcast %cst_50 : f32 to vector<8x128xf32>
    %78 = arith.addf %77, %76 : vector<8x128xf32>
    %79 = arith.divf %77, %78 : vector<8x128xf32>
    %80 = vector.extract_strided_slice %73 {offsets = [0, 128], sizes = [8, 128], strides = [1, 1]} : vector<8x512xf32> to vector<8x128xf32>
    %81 = arith.negf %80 : vector<8x128xf32>
    %82 = math.exp %81 : vector<8x128xf32>
    %cst_51 = arith.constant 1.000000e+00 : f32
    %83 = vector.broadcast %cst_51 : f32 to vector<8x128xf32>
    %84 = arith.addf %83, %82 : vector<8x128xf32>
    %85 = arith.divf %83, %84 : vector<8x128xf32>
    %86 = vector.extract_strided_slice %73 {offsets = [0, 256], sizes = [8, 128], strides = [1, 1]} : vector<8x512xf32> to vector<8x128xf32>
    %87 = math.tanh %86 : vector<8x128xf32>
    %88 = vector.extract_strided_slice %73 {offsets = [0, 384], sizes = [8, 128], strides = [1, 1]} : vector<8x512xf32> to vector<8x128xf32>
    %89 = arith.negf %88 : vector<8x128xf32>
    %90 = math.exp %89 : vector<8x128xf32>
    %cst_52 = arith.constant 1.000000e+00 : f32
    %91 = vector.broadcast %cst_52 : f32 to vector<8x128xf32>
    %92 = arith.addf %91, %90 : vector<8x128xf32>
    %93 = arith.divf %91, %92 : vector<8x128xf32>
    %94 = arith.mulf %85, %64 : vector<8x128xf32>
    %95 = arith.mulf %79, %87 : vector<8x128xf32>
    %96 = arith.addf %94, %95 : vector<8x128xf32>
    %97 = math.tanh %96 : vector<8x128xf32>
    %98 = arith.mulf %93, %97 : vector<8x128xf32>
    %99 = arith.select %9, %96, %64 : vector<8x128xi1>, vector<8x128xf32>
    %c1_53 = arith.constant 1 : index
    %c0_54 = arith.constant 0 : index
    %c0_55 = arith.constant 0 : index
    %100 = vector.load %arg8[%c1_53, %c0_54, %c0_55] : memref<2x8x128xf32, #tpu.memory_space<vmem>>, vector<1x8x128xf32>
    %101 = vector.shape_cast %100 : vector<1x8x128xf32> to vector<8x128xf32>
    %102 = vector.shape_cast %99 : vector<8x128xf32> to vector<1x8x128xf32>
    tpu.vector_store %arg8[%c1_53, %c0_54, %c0_55], %102 {strides = array<i32>} : memref<2x8x128xf32, #tpu.memory_space<vmem>>, vector<1x8x128xf32>,
    %103 = arith.select %9, %98, %62 : vector<8x128xi1>, vector<8x128xf32>
    %c1_56 = arith.constant 1 : index
    %c0_57 = arith.constant 0 : index
    %c0_58 = arith.constant 0 : index
    %104 = vector.load %arg7[%c1_56, %c0_57, %c0_58] : memref<2x8x128xf32, #tpu.memory_space<vmem>>, vector<1x8x128xf32>
    %105 = vector.shape_cast %104 : vector<1x8x128xf32> to vector<8x128xf32>
    %106 = vector.shape_cast %103 : vector<8x128xf32> to vector<1x8x128xf32>
    tpu.vector_store %arg7[%c1_56, %c0_57, %c0_58], %106 {strides = array<i32>} : memref<2x8x128xf32, #tpu.memory_space<vmem>>, vector<1x8x128xf32>,
    %cst_59 = arith.constant 0.000000e+00 : f32
    %107 = vector.broadcast %cst_59 : f32 to vector<8x128xf32>
    %108 = arith.select %9, %98, %107 : vector<8x128xi1>, vector<8x128xf32>
    %109 = vector.extract_strided_slice %108 {offsets = [0, 0], sizes = [8, 32], strides = [1, 1]} : vector<8x128xf32> to vector<8x32xf32>
    %110 = arith.index_cast %c0_i32_2 : i32 to index
    %c0_60 = arith.constant 0 : index
    %c0_61 = arith.constant 0 : index
    %111 = vector.load %arg6[%110, %c0_60, %c0_61] : memref<8x8x32xf32, #tpu.memory_space<vmem>>, vector<1x8x32xf32>
    %112 = vector.shape_cast %111 : vector<1x8x32xf32> to vector<8x32xf32>
    %113 = vector.shape_cast %109 : vector<8x32xf32> to vector<1x8x32xf32>
    tpu.vector_store %arg6[%110, %c0_60, %c0_61], %113 {strides = array<i32>} : memref<8x8x32xf32, #tpu.memory_space<vmem>>, vector<1x8x32xf32>,
    %c1_i32 = arith.constant 1 : i32
    %114 = arith.addi %4, %c1_i32 : i32
    %115 = vector.broadcast %114 : i32 to vector<8x1xi32>
    %116 = arith.cmpi sgt, %3, %115 : vector<8x1xi32>
    %117 = vector.shape_cast %116 : vector<8x1xi1> to vector<8x1xi1>
    %118 = vector.broadcast %117 : vector<8x1xi1> to vector<8x128xi1>
    %119 = arith.index_cast %c1_i32 : i32 to index
    %c0_62 = arith.constant 0 : index
    %c0_63 = arith.constant 0 : index
    %120 = vector.load %arg2[%119, %c0_62, %c0_63] : memref<8x8x128xf32, #tpu.memory_space<vmem>>, vector<1x8x128xf32>
    %121 = vector.shape_cast %120 : vector<1x8x128xf32> to vector<8x128xf32>
    %c0_64 = arith.constant 0 : index
    %c0_65 = arith.constant 0 : index
    %c0_66 = arith.constant 0 : index
    %122 = vector.load %arg7[%c0_64, %c0_65, %c0_66] : memref<2x8x128xf32, #tpu.memory_space<vmem>>, vector<1x8x128xf32>
    %123 = vector.shape_cast %122 : vector<1x8x128xf32> to vector<8x128xf32>
    %c0_67 = arith.constant 0 : index
    %c0_68 = arith.constant 0 : index
    %c0_69 = arith.constant 0 : index
    %124 = vector.load %arg8[%c0_67, %c0_68, %c0_69] : memref<2x8x128xf32, #tpu.memory_space<vmem>>, vector<1x8x128xf32>
    %125 = vector.shape_cast %124 : vector<1x8x128xf32> to vector<8x128xf32>
    %c0_70 = arith.constant 0 : index
    %c0_71 = arith.constant 0 : index
    %126 = vector.load %arg9[%c0_70, %c0_71] : memref<8x256xf32, #tpu.memory_space<vmem>>, vector<8x128xf32>
    tpu.vector_store %arg9[%c0_70, %c0_71], %121 {strides = array<i32>} : memref<8x256xf32, #tpu.memory_space<vmem>>, vector<8x128xf32>,
    %c0_72 = arith.constant 0 : index
    %c128_73 = arith.constant 128 : index
    %127 = vector.load %arg9[%c0_72, %c128_73] : memref<8x256xf32, #tpu.memory_space<vmem>>, vector<8x128xf32>
    tpu.vector_store %arg9[%c0_72, %c128_73], %123 {strides = array<i32>} : memref<8x256xf32, #tpu.memory_space<vmem>>, vector<8x128xf32>,
    %c0_74 = arith.constant 0 : index
    %c0_75 = arith.constant 0 : index
    %128 = vector.load %arg9[%c0_74, %c0_75] : memref<8x256xf32, #tpu.memory_space<vmem>>, vector<8x256xf32>
    %c0_76 = arith.constant 0 : index
    %c0_77 = arith.constant 0 : index
    %c0_78 = arith.constant 0 : index
    %129 = vector.load %arg4[%c0_76, %c0_77, %c0_78] : memref<2x256x512xf32, #tpu.memory_space<vmem>>, vector<1x256x512xf32>
    %130 = vector.shape_cast %129 : vector<1x256x512xf32> to vector<256x512xf32>
    %cst_79 = arith.constant dense<0.000000e+00> : vector<8x512xf32>
    %131 = tpu.matmul %128, %130, %cst_79 {dimension_numbers = #tpu.dot_dimension_numbers<[1], [0], [0], [1], [0, 0, 1, 1], [], []>} : vector<8x256xf32>, vector<256x512xf32>, vector<8x512xf32> -> vector<8x512xf32>
    %c0_80 = arith.constant 0 : index
    %c0_81 = arith.constant 0 : index
    %c0_82 = arith.constant 0 : index
    %132 = vector.load %arg10[%c0_80, %c0_81, %c0_82] : memref<2x8x512xf32, #tpu.memory_space<vmem>>, vector<1x8x512xf32>
    %133 = vector.shape_cast %132 : vector<1x8x512xf32> to vector<8x512xf32>
    %134 = arith.addf %131, %133 : vector<8x512xf32>
    %135 = vector.extract_strided_slice %134 {offsets = [0, 0], sizes = [8, 128], strides = [1, 1]} : vector<8x512xf32> to vector<8x128xf32>
    %136 = arith.negf %135 : vector<8x128xf32>
    %137 = math.exp %136 : vector<8x128xf32>
    %cst_83 = arith.constant 1.000000e+00 : f32
    %138 = vector.broadcast %cst_83 : f32 to vector<8x128xf32>
    %139 = arith.addf %138, %137 : vector<8x128xf32>
    %140 = arith.divf %138, %139 : vector<8x128xf32>
    %141 = vector.extract_strided_slice %134 {offsets = [0, 128], sizes = [8, 128], strides = [1, 1]} : vector<8x512xf32> to vector<8x128xf32>
    %142 = arith.negf %141 : vector<8x128xf32>
    %143 = math.exp %142 : vector<8x128xf32>
    %cst_84 = arith.constant 1.000000e+00 : f32
    %144 = vector.broadcast %cst_84 : f32 to vector<8x128xf32>
    %145 = arith.addf %144, %143 : vector<8x128xf32>
    %146 = arith.divf %144, %145 : vector<8x128xf32>
    %147 = vector.extract_strided_slice %134 {offsets = [0, 256], sizes = [8, 128], strides = [1, 1]} : vector<8x512xf32> to vector<8x128xf32>
    %148 = math.tanh %147 : vector<8x128xf32>
    %149 = vector.extract_strided_slice %134 {offsets = [0, 384], sizes = [8, 128], strides = [1, 1]} : vector<8x512xf32> to vector<8x128xf32>
    %150 = arith.negf %149 : vector<8x128xf32>
    %151 = math.exp %150 : vector<8x128xf32>
    %cst_85 = arith.constant 1.000000e+00 : f32
    %152 = vector.broadcast %cst_85 : f32 to vector<8x128xf32>
    %153 = arith.addf %152, %151 : vector<8x128xf32>
    %154 = arith.divf %152, %153 : vector<8x128xf32>
    %155 = arith.mulf %146, %125 : vector<8x128xf32>
    %156 = arith.mulf %140, %148 : vector<8x128xf32>
    %157 = arith.addf %155, %156 : vector<8x128xf32>
    %158 = math.tanh %157 : vector<8x128xf32>
    %159 = arith.mulf %154, %158 : vector<8x128xf32>
    %160 = arith.select %118, %157, %125 : vector<8x128xi1>, vector<8x128xf32>
    %c0_86 = arith.constant 0 : index
    %c0_87 = arith.constant 0 : index
    %c0_88 = arith.constant 0 : index
    %161 = vector.load %arg8[%c0_86, %c0_87, %c0_88] : memref<2x8x128xf32, #tpu.memory_space<vmem>>, vector<1x8x128xf32>
    %162 = vector.shape_cast %161 : vector<1x8x128xf32> to vector<8x128xf32>
    %163 = vector.shape_cast %160 : vector<8x128xf32> to vector<1x8x128xf32>
    tpu.vector_store %arg8[%c0_86, %c0_87, %c0_88], %163 {strides = array<i32>} : memref<2x8x128xf32, #tpu.memory_space<vmem>>, vector<1x8x128xf32>,
    %164 = arith.select %118, %159, %123 : vector<8x128xi1>, vector<8x128xf32>
    %c0_89 = arith.constant 0 : index
    %c0_90 = arith.constant 0 : index
    %c0_91 = arith.constant 0 : index
    %165 = vector.load %arg7[%c0_89, %c0_90, %c0_91] : memref<2x8x128xf32, #tpu.memory_space<vmem>>, vector<1x8x128xf32>
    %166 = vector.shape_cast %165 : vector<1x8x128xf32> to vector<8x128xf32>
    %167 = vector.shape_cast %164 : vector<8x128xf32> to vector<1x8x128xf32>
    tpu.vector_store %arg7[%c0_89, %c0_90, %c0_91], %167 {strides = array<i32>} : memref<2x8x128xf32, #tpu.memory_space<vmem>>, vector<1x8x128xf32>,
    %cst_92 = arith.constant 0.000000e+00 : f32
    %168 = vector.broadcast %cst_92 : f32 to vector<8x128xf32>
    %169 = arith.select %118, %159, %168 : vector<8x128xi1>, vector<8x128xf32>
    %c1_93 = arith.constant 1 : index
    %c0_94 = arith.constant 0 : index
    %c0_95 = arith.constant 0 : index
    %170 = vector.load %arg7[%c1_93, %c0_94, %c0_95] : memref<2x8x128xf32, #tpu.memory_space<vmem>>, vector<1x8x128xf32>
    %171 = vector.shape_cast %170 : vector<1x8x128xf32> to vector<8x128xf32>
    %c1_96 = arith.constant 1 : index
    %c0_97 = arith.constant 0 : index
    %c0_98 = arith.constant 0 : index
    %172 = vector.load %arg8[%c1_96, %c0_97, %c0_98] : memref<2x8x128xf32, #tpu.memory_space<vmem>>, vector<1x8x128xf32>
    %173 = vector.shape_cast %172 : vector<1x8x128xf32> to vector<8x128xf32>
    %c0_99 = arith.constant 0 : index
    %c0_100 = arith.constant 0 : index
    %174 = vector.load %arg9[%c0_99, %c0_100] : memref<8x256xf32, #tpu.memory_space<vmem>>, vector<8x128xf32>
    tpu.vector_store %arg9[%c0_99, %c0_100], %169 {strides = array<i32>} : memref<8x256xf32, #tpu.memory_space<vmem>>, vector<8x128xf32>,
    %c0_101 = arith.constant 0 : index
    %c128_102 = arith.constant 128 : index
    %175 = vector.load %arg9[%c0_101, %c128_102] : memref<8x256xf32, #tpu.memory_space<vmem>>, vector<8x128xf32>
    tpu.vector_store %arg9[%c0_101, %c128_102], %171 {strides = array<i32>} : memref<8x256xf32, #tpu.memory_space<vmem>>, vector<8x128xf32>,
    %c0_103 = arith.constant 0 : index
    %c0_104 = arith.constant 0 : index
    %176 = vector.load %arg9[%c0_103, %c0_104] : memref<8x256xf32, #tpu.memory_space<vmem>>, vector<8x256xf32>
    %c1_105 = arith.constant 1 : index
    %c0_106 = arith.constant 0 : index
    %c0_107 = arith.constant 0 : index
    %177 = vector.load %arg4[%c1_105, %c0_106, %c0_107] : memref<2x256x512xf32, #tpu.memory_space<vmem>>, vector<1x256x512xf32>
    %178 = vector.shape_cast %177 : vector<1x256x512xf32> to vector<256x512xf32>
    %cst_108 = arith.constant dense<0.000000e+00> : vector<8x512xf32>
    %179 = tpu.matmul %176, %178, %cst_108 {dimension_numbers = #tpu.dot_dimension_numbers<[1], [0], [0], [1], [0, 0, 1, 1], [], []>} : vector<8x256xf32>, vector<256x512xf32>, vector<8x512xf32> -> vector<8x512xf32>
    %c1_109 = arith.constant 1 : index
    %c0_110 = arith.constant 0 : index
    %c0_111 = arith.constant 0 : index
    %180 = vector.load %arg10[%c1_109, %c0_110, %c0_111] : memref<2x8x512xf32, #tpu.memory_space<vmem>>, vector<1x8x512xf32>
    %181 = vector.shape_cast %180 : vector<1x8x512xf32> to vector<8x512xf32>
    %182 = arith.addf %179, %181 : vector<8x512xf32>
    %183 = vector.extract_strided_slice %182 {offsets = [0, 0], sizes = [8, 128], strides = [1, 1]} : vector<8x512xf32> to vector<8x128xf32>
    %184 = arith.negf %183 : vector<8x128xf32>
    %185 = math.exp %184 : vector<8x128xf32>
    %cst_112 = arith.constant 1.000000e+00 : f32
    %186 = vector.broadcast %cst_112 : f32 to vector<8x128xf32>
    %187 = arith.addf %186, %185 : vector<8x128xf32>
    %188 = arith.divf %186, %187 : vector<8x128xf32>
    %189 = vector.extract_strided_slice %182 {offsets = [0, 128], sizes = [8, 128], strides = [1, 1]} : vector<8x512xf32> to vector<8x128xf32>
    %190 = arith.negf %189 : vector<8x128xf32>
    %191 = math.exp %190 : vector<8x128xf32>
    %cst_113 = arith.constant 1.000000e+00 : f32
    %192 = vector.broadcast %cst_113 : f32 to vector<8x128xf32>
    %193 = arith.addf %192, %191 : vector<8x128xf32>
    %194 = arith.divf %192, %193 : vector<8x128xf32>
    %195 = vector.extract_strided_slice %182 {offsets = [0, 256], sizes = [8, 128], strides = [1, 1]} : vector<8x512xf32> to vector<8x128xf32>
    %196 = math.tanh %195 : vector<8x128xf32>
    %197 = vector.extract_strided_slice %182 {offsets = [0, 384], sizes = [8, 128], strides = [1, 1]} : vector<8x512xf32> to vector<8x128xf32>
    %198 = arith.negf %197 : vector<8x128xf32>
    %199 = math.exp %198 : vector<8x128xf32>
    %cst_114 = arith.constant 1.000000e+00 : f32
    %200 = vector.broadcast %cst_114 : f32 to vector<8x128xf32>
    %201 = arith.addf %200, %199 : vector<8x128xf32>
    %202 = arith.divf %200, %201 : vector<8x128xf32>
    %203 = arith.mulf %194, %173 : vector<8x128xf32>
    %204 = arith.mulf %188, %196 : vector<8x128xf32>
    %205 = arith.addf %203, %204 : vector<8x128xf32>
    %206 = math.tanh %205 : vector<8x128xf32>
    %207 = arith.mulf %202, %206 : vector<8x128xf32>
    %208 = arith.select %118, %205, %173 : vector<8x128xi1>, vector<8x128xf32>
    %c1_115 = arith.constant 1 : index
    %c0_116 = arith.constant 0 : index
    %c0_117 = arith.constant 0 : index
    %209 = vector.load %arg8[%c1_115, %c0_116, %c0_117] : memref<2x8x128xf32, #tpu.memory_space<vmem>>, vector<1x8x128xf32>
    %210 = vector.shape_cast %209 : vector<1x8x128xf32> to vector<8x128xf32>
    %211 = vector.shape_cast %208 : vector<8x128xf32> to vector<1x8x128xf32>
    tpu.vector_store %arg8[%c1_115, %c0_116, %c0_117], %211 {strides = array<i32>} : memref<2x8x128xf32, #tpu.memory_space<vmem>>, vector<1x8x128xf32>,
    %212 = arith.select %118, %207, %171 : vector<8x128xi1>, vector<8x128xf32>
    %c1_118 = arith.constant 1 : index
    %c0_119 = arith.constant 0 : index
    %c0_120 = arith.constant 0 : index
    %213 = vector.load %arg7[%c1_118, %c0_119, %c0_120] : memref<2x8x128xf32, #tpu.memory_space<vmem>>, vector<1x8x128xf32>
    %214 = vector.shape_cast %213 : vector<1x8x128xf32> to vector<8x128xf32>
    %215 = vector.shape_cast %212 : vector<8x128xf32> to vector<1x8x128xf32>
    tpu.vector_store %arg7[%c1_118, %c0_119, %c0_120], %215 {strides = array<i32>} : memref<2x8x128xf32, #tpu.memory_space<vmem>>, vector<1x8x128xf32>,
    %cst_121 = arith.constant 0.000000e+00 : f32
    %216 = vector.broadcast %cst_121 : f32 to vector<8x128xf32>
    %217 = arith.select %118, %207, %216 : vector<8x128xi1>, vector<8x128xf32>
    %218 = vector.extract_strided_slice %217 {offsets = [0, 0], sizes = [8, 32], strides = [1, 1]} : vector<8x128xf32> to vector<8x32xf32>
    %219 = arith.index_cast %c1_i32 : i32 to index
    %c0_122 = arith.constant 0 : index
    %c0_123 = arith.constant 0 : index
    %220 = vector.load %arg6[%219, %c0_122, %c0_123] : memref<8x8x32xf32, #tpu.memory_space<vmem>>, vector<1x8x32xf32>
    %221 = vector.shape_cast %220 : vector<1x8x32xf32> to vector<8x32xf32>
    %222 = vector.shape_cast %218 : vector<8x32xf32> to vector<1x8x32xf32>
    tpu.vector_store %arg6[%219, %c0_122, %c0_123], %222 {strides = array<i32>} : memref<8x8x32xf32, #tpu.memory_space<vmem>>, vector<1x8x32xf32>,
    %c2_i32 = arith.constant 2 : i32
    %223 = arith.addi %4, %c2_i32 : i32
    %224 = vector.broadcast %223 : i32 to vector<8x1xi32>
    %225 = arith.cmpi sgt, %3, %224 : vector<8x1xi32>
    %226 = vector.shape_cast %225 : vector<8x1xi1> to vector<8x1xi1>
    %227 = vector.broadcast %226 : vector<8x1xi1> to vector<8x128xi1>
    %228 = arith.index_cast %c2_i32 : i32 to index
    %c0_124 = arith.constant 0 : index
    %c0_125 = arith.constant 0 : index
    %229 = vector.load %arg2[%228, %c0_124, %c0_125] : memref<8x8x128xf32, #tpu.memory_space<vmem>>, vector<1x8x128xf32>
    %230 = vector.shape_cast %229 : vector<1x8x128xf32> to vector<8x128xf32>
    %c0_126 = arith.constant 0 : index
    %c0_127 = arith.constant 0 : index
    %c0_128 = arith.constant 0 : index
    %231 = vector.load %arg7[%c0_126, %c0_127, %c0_128] : memref<2x8x128xf32, #tpu.memory_space<vmem>>, vector<1x8x128xf32>
    %232 = vector.shape_cast %231 : vector<1x8x128xf32> to vector<8x128xf32>
    %c0_129 = arith.constant 0 : index
    %c0_130 = arith.constant 0 : index
    %c0_131 = arith.constant 0 : index
    %233 = vector.load %arg8[%c0_129, %c0_130, %c0_131] : memref<2x8x128xf32, #tpu.memory_space<vmem>>, vector<1x8x128xf32>
    %234 = vector.shape_cast %233 : vector<1x8x128xf32> to vector<8x128xf32>
    %c0_132 = arith.constant 0 : index
    %c0_133 = arith.constant 0 : index
    %235 = vector.load %arg9[%c0_132, %c0_133] : memref<8x256xf32, #tpu.memory_space<vmem>>, vector<8x128xf32>
    tpu.vector_store %arg9[%c0_132, %c0_133], %230 {strides = array<i32>} : memref<8x256xf32, #tpu.memory_space<vmem>>, vector<8x128xf32>,
    %c0_134 = arith.constant 0 : index
    %c128_135 = arith.constant 128 : index
    %236 = vector.load %arg9[%c0_134, %c128_135] : memref<8x256xf32, #tpu.memory_space<vmem>>, vector<8x128xf32>
    tpu.vector_store %arg9[%c0_134, %c128_135], %232 {strides = array<i32>} : memref<8x256xf32, #tpu.memory_space<vmem>>, vector<8x128xf32>,
    %c0_136 = arith.constant 0 : index
    %c0_137 = arith.constant 0 : index
    %237 = vector.load %arg9[%c0_136, %c0_137] : memref<8x256xf32, #tpu.memory_space<vmem>>, vector<8x256xf32>
    %c0_138 = arith.constant 0 : index
    %c0_139 = arith.constant 0 : index
    %c0_140 = arith.constant 0 : index
    %238 = vector.load %arg4[%c0_138, %c0_139, %c0_140] : memref<2x256x512xf32, #tpu.memory_space<vmem>>, vector<1x256x512xf32>
    %239 = vector.shape_cast %238 : vector<1x256x512xf32> to vector<256x512xf32>
    %cst_141 = arith.constant dense<0.000000e+00> : vector<8x512xf32>
    %240 = tpu.matmul %237, %239, %cst_141 {dimension_numbers = #tpu.dot_dimension_numbers<[1], [0], [0], [1], [0, 0, 1, 1], [], []>} : vector<8x256xf32>, vector<256x512xf32>, vector<8x512xf32> -> vector<8x512xf32>
    %c0_142 = arith.constant 0 : index
    %c0_143 = arith.constant 0 : index
    %c0_144 = arith.constant 0 : index
    %241 = vector.load %arg10[%c0_142, %c0_143, %c0_144] : memref<2x8x512xf32, #tpu.memory_space<vmem>>, vector<1x8x512xf32>
    %242 = vector.shape_cast %241 : vector<1x8x512xf32> to vector<8x512xf32>
    %243 = arith.addf %240, %242 : vector<8x512xf32>
    %244 = vector.extract_strided_slice %243 {offsets = [0, 0], sizes = [8, 128], strides = [1, 1]} : vector<8x512xf32> to vector<8x128xf32>
    %245 = arith.negf %244 : vector<8x128xf32>
    %246 = math.exp %245 : vector<8x128xf32>
    %cst_145 = arith.constant 1.000000e+00 : f32
    %247 = vector.broadcast %cst_145 : f32 to vector<8x128xf32>
    %248 = arith.addf %247, %246 : vector<8x128xf32>
    %249 = arith.divf %247, %248 : vector<8x128xf32>
    %250 = vector.extract_strided_slice %243 {offsets = [0, 128], sizes = [8, 128], strides = [1, 1]} : vector<8x512xf32> to vector<8x128xf32>
    %251 = arith.negf %250 : vector<8x128xf32>
    %252 = math.exp %251 : vector<8x128xf32>
    %cst_146 = arith.constant 1.000000e+00 : f32
    %253 = vector.broadcast %cst_146 : f32 to vector<8x128xf32>
    %254 = arith.addf %253, %252 : vector<8x128xf32>
    %255 = arith.divf %253, %254 : vector<8x128xf32>
    %256 = vector.extract_strided_slice %243 {offsets = [0, 256], sizes = [8, 128], strides = [1, 1]} : vector<8x512xf32> to vector<8x128xf32>
    %257 = math.tanh %256 : vector<8x128xf32>
    %258 = vector.extract_strided_slice %243 {offsets = [0, 384], sizes = [8, 128], strides = [1, 1]} : vector<8x512xf32> to vector<8x128xf32>
    %259 = arith.negf %258 : vector<8x128xf32>
    %260 = math.exp %259 : vector<8x128xf32>
    %cst_147 = arith.constant 1.000000e+00 : f32
    %261 = vector.broadcast %cst_147 : f32 to vector<8x128xf32>
    %262 = arith.addf %261, %260 : vector<8x128xf32>
    %263 = arith.divf %261, %262 : vector<8x128xf32>
    %264 = arith.mulf %255, %234 : vector<8x128xf32>
    %265 = arith.mulf %249, %257 : vector<8x128xf32>
    %266 = arith.addf %264, %265 : vector<8x128xf32>
    %267 = math.tanh %266 : vector<8x128xf32>
    %268 = arith.mulf %263, %267 : vector<8x128xf32>
    %269 = arith.select %227, %266, %234 : vector<8x128xi1>, vector<8x128xf32>
    %c0_148 = arith.constant 0 : index
    %c0_149 = arith.constant 0 : index
    %c0_150 = arith.constant 0 : index
    %270 = vector.load %arg8[%c0_148, %c0_149, %c0_150] : memref<2x8x128xf32, #tpu.memory_space<vmem>>, vector<1x8x128xf32>
    %271 = vector.shape_cast %270 : vector<1x8x128xf32> to vector<8x128xf32>
    %272 = vector.shape_cast %269 : vector<8x128xf32> to vector<1x8x128xf32>
    tpu.vector_store %arg8[%c0_148, %c0_149, %c0_150], %272 {strides = array<i32>} : memref<2x8x128xf32, #tpu.memory_space<vmem>>, vector<1x8x128xf32>,
    %273 = arith.select %227, %268, %232 : vector<8x128xi1>, vector<8x128xf32>
    %c0_151 = arith.constant 0 : index
    %c0_152 = arith.constant 0 : index
    %c0_153 = arith.constant 0 : index
    %274 = vector.load %arg7[%c0_151, %c0_152, %c0_153] : memref<2x8x128xf32, #tpu.memory_space<vmem>>, vector<1x8x128xf32>
    %275 = vector.shape_cast %274 : vector<1x8x128xf32> to vector<8x128xf32>
    %276 = vector.shape_cast %273 : vector<8x128xf32> to vector<1x8x128xf32>
    tpu.vector_store %arg7[%c0_151, %c0_152, %c0_153], %276 {strides = array<i32>} : memref<2x8x128xf32, #tpu.memory_space<vmem>>, vector<1x8x128xf32>,
    %cst_154 = arith.constant 0.000000e+00 : f32
    %277 = vector.broadcast %cst_154 : f32 to vector<8x128xf32>
    %278 = arith.select %227, %268, %277 : vector<8x128xi1>, vector<8x128xf32>
    %c1_155 = arith.constant 1 : index
    %c0_156 = arith.constant 0 : index
    %c0_157 = arith.constant 0 : index
    %279 = vector.load %arg7[%c1_155, %c0_156, %c0_157] : memref<2x8x128xf32, #tpu.memory_space<vmem>>, vector<1x8x128xf32>
    %280 = vector.shape_cast %279 : vector<1x8x128xf32> to vector<8x128xf32>
    %c1_158 = arith.constant 1 : index
    %c0_159 = arith.constant 0 : index
    %c0_160 = arith.constant 0 : index
    %281 = vector.load %arg8[%c1_158, %c0_159, %c0_160] : memref<2x8x128xf32, #tpu.memory_space<vmem>>, vector<1x8x128xf32>
    %282 = vector.shape_cast %281 : vector<1x8x128xf32> to vector<8x128xf32>
    %c0_161 = arith.constant 0 : index
    %c0_162 = arith.constant 0 : index
    %283 = vector.load %arg9[%c0_161, %c0_162] : memref<8x256xf32, #tpu.memory_space<vmem>>, vector<8x128xf32>
    tpu.vector_store %arg9[%c0_161, %c0_162], %278 {strides = array<i32>} : memref<8x256xf32, #tpu.memory_space<vmem>>, vector<8x128xf32>,
    %c0_163 = arith.constant 0 : index
    %c128_164 = arith.constant 128 : index
    %284 = vector.load %arg9[%c0_163, %c128_164] : memref<8x256xf32, #tpu.memory_space<vmem>>, vector<8x128xf32>
    tpu.vector_store %arg9[%c0_163, %c128_164], %280 {strides = array<i32>} : memref<8x256xf32, #tpu.memory_space<vmem>>, vector<8x128xf32>,
    %c0_165 = arith.constant 0 : index
    %c0_166 = arith.constant 0 : index
    %285 = vector.load %arg9[%c0_165, %c0_166] : memref<8x256xf32, #tpu.memory_space<vmem>>, vector<8x256xf32>
    %c1_167 = arith.constant 1 : index
    %c0_168 = arith.constant 0 : index
    %c0_169 = arith.constant 0 : index
    %286 = vector.load %arg4[%c1_167, %c0_168, %c0_169] : memref<2x256x512xf32, #tpu.memory_space<vmem>>, vector<1x256x512xf32>
    %287 = vector.shape_cast %286 : vector<1x256x512xf32> to vector<256x512xf32>
    %cst_170 = arith.constant dense<0.000000e+00> : vector<8x512xf32>
    %288 = tpu.matmul %285, %287, %cst_170 {dimension_numbers = #tpu.dot_dimension_numbers<[1], [0], [0], [1], [0, 0, 1, 1], [], []>} : vector<8x256xf32>, vector<256x512xf32>, vector<8x512xf32> -> vector<8x512xf32>
    %c1_171 = arith.constant 1 : index
    %c0_172 = arith.constant 0 : index
    %c0_173 = arith.constant 0 : index
    %289 = vector.load %arg10[%c1_171, %c0_172, %c0_173] : memref<2x8x512xf32, #tpu.memory_space<vmem>>, vector<1x8x512xf32>
    %290 = vector.shape_cast %289 : vector<1x8x512xf32> to vector<8x512xf32>
    %291 = arith.addf %288, %290 : vector<8x512xf32>
    %292 = vector.extract_strided_slice %291 {offsets = [0, 0], sizes = [8, 128], strides = [1, 1]} : vector<8x512xf32> to vector<8x128xf32>
    %293 = arith.negf %292 : vector<8x128xf32>
    %294 = math.exp %293 : vector<8x128xf32>
    %cst_174 = arith.constant 1.000000e+00 : f32
    %295 = vector.broadcast %cst_174 : f32 to vector<8x128xf32>
    %296 = arith.addf %295, %294 : vector<8x128xf32>
    %297 = arith.divf %295, %296 : vector<8x128xf32>
    %298 = vector.extract_strided_slice %291 {offsets = [0, 128], sizes = [8, 128], strides = [1, 1]} : vector<8x512xf32> to vector<8x128xf32>
    %299 = arith.negf %298 : vector<8x128xf32>
    %300 = math.exp %299 : vector<8x128xf32>
    %cst_175 = arith.constant 1.000000e+00 : f32
    %301 = vector.broadcast %cst_175 : f32 to vector<8x128xf32>
    %302 = arith.addf %301, %300 : vector<8x128xf32>
    %303 = arith.divf %301, %302 : vector<8x128xf32>
    %304 = vector.extract_strided_slice %291 {offsets = [0, 256], sizes = [8, 128], strides = [1, 1]} : vector<8x512xf32> to vector<8x128xf32>
    %305 = math.tanh %304 : vector<8x128xf32>
    %306 = vector.extract_strided_slice %291 {offsets = [0, 384], sizes = [8, 128], strides = [1, 1]} : vector<8x512xf32> to vector<8x128xf32>
    %307 = arith.negf %306 : vector<8x128xf32>
    %308 = math.exp %307 : vector<8x128xf32>
    %cst_176 = arith.constant 1.000000e+00 : f32
    %309 = vector.broadcast %cst_176 : f32 to vector<8x128xf32>
    %310 = arith.addf %309, %308 : vector<8x128xf32>
    %311 = arith.divf %309, %310 : vector<8x128xf32>
    %312 = arith.mulf %303, %282 : vector<8x128xf32>
    %313 = arith.mulf %297, %305 : vector<8x128xf32>
    %314 = arith.addf %312, %313 : vector<8x128xf32>
    %315 = math.tanh %314 : vector<8x128xf32>
    %316 = arith.mulf %311, %315 : vector<8x128xf32>
    %317 = arith.select %227, %314, %282 : vector<8x128xi1>, vector<8x128xf32>
    %c1_177 = arith.constant 1 : index
    %c0_178 = arith.constant 0 : index
    %c0_179 = arith.constant 0 : index
    %318 = vector.load %arg8[%c1_177, %c0_178, %c0_179] : memref<2x8x128xf32, #tpu.memory_space<vmem>>, vector<1x8x128xf32>
    %319 = vector.shape_cast %318 : vector<1x8x128xf32> to vector<8x128xf32>
    %320 = vector.shape_cast %317 : vector<8x128xf32> to vector<1x8x128xf32>
    tpu.vector_store %arg8[%c1_177, %c0_178, %c0_179], %320 {strides = array<i32>} : memref<2x8x128xf32, #tpu.memory_space<vmem>>, vector<1x8x128xf32>,
    %321 = arith.select %227, %316, %280 : vector<8x128xi1>, vector<8x128xf32>
    %c1_180 = arith.constant 1 : index
    %c0_181 = arith.constant 0 : index
    %c0_182 = arith.constant 0 : index
    %322 = vector.load %arg7[%c1_180, %c0_181, %c0_182] : memref<2x8x128xf32, #tpu.memory_space<vmem>>, vector<1x8x128xf32>
    %323 = vector.shape_cast %322 : vector<1x8x128xf32> to vector<8x128xf32>
    %324 = vector.shape_cast %321 : vector<8x128xf32> to vector<1x8x128xf32>
    tpu.vector_store %arg7[%c1_180, %c0_181, %c0_182], %324 {strides = array<i32>} : memref<2x8x128xf32, #tpu.memory_space<vmem>>, vector<1x8x128xf32>,
    %cst_183 = arith.constant 0.000000e+00 : f32
    %325 = vector.broadcast %cst_183 : f32 to vector<8x128xf32>
    %326 = arith.select %227, %316, %325 : vector<8x128xi1>, vector<8x128xf32>
    %327 = vector.extract_strided_slice %326 {offsets = [0, 0], sizes = [8, 32], strides = [1, 1]} : vector<8x128xf32> to vector<8x32xf32>
    %328 = arith.index_cast %c2_i32 : i32 to index
    %c0_184 = arith.constant 0 : index
    %c0_185 = arith.constant 0 : index
    %329 = vector.load %arg6[%328, %c0_184, %c0_185] : memref<8x8x32xf32, #tpu.memory_space<vmem>>, vector<1x8x32xf32>
    %330 = vector.shape_cast %329 : vector<1x8x32xf32> to vector<8x32xf32>
    %331 = vector.shape_cast %327 : vector<8x32xf32> to vector<1x8x32xf32>
    tpu.vector_store %arg6[%328, %c0_184, %c0_185], %331 {strides = array<i32>} : memref<8x8x32xf32, #tpu.memory_space<vmem>>, vector<1x8x32xf32>,
    %c3_i32 = arith.constant 3 : i32
    %332 = arith.addi %4, %c3_i32 : i32
    %333 = vector.broadcast %332 : i32 to vector<8x1xi32>
    %334 = arith.cmpi sgt, %3, %333 : vector<8x1xi32>
    %335 = vector.shape_cast %334 : vector<8x1xi1> to vector<8x1xi1>
    %336 = vector.broadcast %335 : vector<8x1xi1> to vector<8x128xi1>
    %337 = arith.index_cast %c3_i32 : i32 to index
    %c0_186 = arith.constant 0 : index
    %c0_187 = arith.constant 0 : index
    %338 = vector.load %arg2[%337, %c0_186, %c0_187] : memref<8x8x128xf32, #tpu.memory_space<vmem>>, vector<1x8x128xf32>
    %339 = vector.shape_cast %338 : vector<1x8x128xf32> to vector<8x128xf32>
    %c0_188 = arith.constant 0 : index
    %c0_189 = arith.constant 0 : index
    %c0_190 = arith.constant 0 : index
    %340 = vector.load %arg7[%c0_188, %c0_189, %c0_190] : memref<2x8x128xf32, #tpu.memory_space<vmem>>, vector<1x8x128xf32>
    %341 = vector.shape_cast %340 : vector<1x8x128xf32> to vector<8x128xf32>
    %c0_191 = arith.constant 0 : index
    %c0_192 = arith.constant 0 : index
    %c0_193 = arith.constant 0 : index
    %342 = vector.load %arg8[%c0_191, %c0_192, %c0_193] : memref<2x8x128xf32, #tpu.memory_space<vmem>>, vector<1x8x128xf32>
    %343 = vector.shape_cast %342 : vector<1x8x128xf32> to vector<8x128xf32>
    %c0_194 = arith.constant 0 : index
    %c0_195 = arith.constant 0 : index
    %344 = vector.load %arg9[%c0_194, %c0_195] : memref<8x256xf32, #tpu.memory_space<vmem>>, vector<8x128xf32>
    tpu.vector_store %arg9[%c0_194, %c0_195], %339 {strides = array<i32>} : memref<8x256xf32, #tpu.memory_space<vmem>>, vector<8x128xf32>,
    %c0_196 = arith.constant 0 : index
    %c128_197 = arith.constant 128 : index
    %345 = vector.load %arg9[%c0_196, %c128_197] : memref<8x256xf32, #tpu.memory_space<vmem>>, vector<8x128xf32>
    tpu.vector_store %arg9[%c0_196, %c128_197], %341 {strides = array<i32>} : memref<8x256xf32, #tpu.memory_space<vmem>>, vector<8x128xf32>,
    %c0_198 = arith.constant 0 : index
    %c0_199 = arith.constant 0 : index
    %346 = vector.load %arg9[%c0_198, %c0_199] : memref<8x256xf32, #tpu.memory_space<vmem>>, vector<8x256xf32>
    %c0_200 = arith.constant 0 : index
    %c0_201 = arith.constant 0 : index
    %c0_202 = arith.constant 0 : index
    %347 = vector.load %arg4[%c0_200, %c0_201, %c0_202] : memref<2x256x512xf32, #tpu.memory_space<vmem>>, vector<1x256x512xf32>
    %348 = vector.shape_cast %347 : vector<1x256x512xf32> to vector<256x512xf32>
    %cst_203 = arith.constant dense<0.000000e+00> : vector<8x512xf32>
    %349 = tpu.matmul %346, %348, %cst_203 {dimension_numbers = #tpu.dot_dimension_numbers<[1], [0], [0], [1], [0, 0, 1, 1], [], []>} : vector<8x256xf32>, vector<256x512xf32>, vector<8x512xf32> -> vector<8x512xf32>
    %c0_204 = arith.constant 0 : index
    %c0_205 = arith.constant 0 : index
    %c0_206 = arith.constant 0 : index
    %350 = vector.load %arg10[%c0_204, %c0_205, %c0_206] : memref<2x8x512xf32, #tpu.memory_space<vmem>>, vector<1x8x512xf32>
    %351 = vector.shape_cast %350 : vector<1x8x512xf32> to vector<8x512xf32>
    %352 = arith.addf %349, %351 : vector<8x512xf32>
    %353 = vector.extract_strided_slice %352 {offsets = [0, 0], sizes = [8, 128], strides = [1, 1]} : vector<8x512xf32> to vector<8x128xf32>
    %354 = arith.negf %353 : vector<8x128xf32>
    %355 = math.exp %354 : vector<8x128xf32>
    %cst_207 = arith.constant 1.000000e+00 : f32
    %356 = vector.broadcast %cst_207 : f32 to vector<8x128xf32>
    %357 = arith.addf %356, %355 : vector<8x128xf32>
    %358 = arith.divf %356, %357 : vector<8x128xf32>
    %359 = vector.extract_strided_slice %352 {offsets = [0, 128], sizes = [8, 128], strides = [1, 1]} : vector<8x512xf32> to vector<8x128xf32>
    %360 = arith.negf %359 : vector<8x128xf32>
    %361 = math.exp %360 : vector<8x128xf32>
    %cst_208 = arith.constant 1.000000e+00 : f32
    %362 = vector.broadcast %cst_208 : f32 to vector<8x128xf32>
    %363 = arith.addf %362, %361 : vector<8x128xf32>
    %364 = arith.divf %362, %363 : vector<8x128xf32>
    %365 = vector.extract_strided_slice %352 {offsets = [0, 256], sizes = [8, 128], strides = [1, 1]} : vector<8x512xf32> to vector<8x128xf32>
    %366 = math.tanh %365 : vector<8x128xf32>
    %367 = vector.extract_strided_slice %352 {offsets = [0, 384], sizes = [8, 128], strides = [1, 1]} : vector<8x512xf32> to vector<8x128xf32>
    %368 = arith.negf %367 : vector<8x128xf32>
    %369 = math.exp %368 : vector<8x128xf32>
    %cst_209 = arith.constant 1.000000e+00 : f32
    %370 = vector.broadcast %cst_209 : f32 to vector<8x128xf32>
    %371 = arith.addf %370, %369 : vector<8x128xf32>
    %372 = arith.divf %370, %371 : vector<8x128xf32>
    %373 = arith.mulf %364, %343 : vector<8x128xf32>
    %374 = arith.mulf %358, %366 : vector<8x128xf32>
    %375 = arith.addf %373, %374 : vector<8x128xf32>
    %376 = math.tanh %375 : vector<8x128xf32>
    %377 = arith.mulf %372, %376 : vector<8x128xf32>
    %378 = arith.select %336, %375, %343 : vector<8x128xi1>, vector<8x128xf32>
    %c0_210 = arith.constant 0 : index
    %c0_211 = arith.constant 0 : index
    %c0_212 = arith.constant 0 : index
    %379 = vector.load %arg8[%c0_210, %c0_211, %c0_212] : memref<2x8x128xf32, #tpu.memory_space<vmem>>, vector<1x8x128xf32>
    %380 = vector.shape_cast %379 : vector<1x8x128xf32> to vector<8x128xf32>
    %381 = vector.shape_cast %378 : vector<8x128xf32> to vector<1x8x128xf32>
    tpu.vector_store %arg8[%c0_210, %c0_211, %c0_212], %381 {strides = array<i32>} : memref<2x8x128xf32, #tpu.memory_space<vmem>>, vector<1x8x128xf32>,
    %382 = arith.select %336, %377, %341 : vector<8x128xi1>, vector<8x128xf32>
    %c0_213 = arith.constant 0 : index
    %c0_214 = arith.constant 0 : index
    %c0_215 = arith.constant 0 : index
    %383 = vector.load %arg7[%c0_213, %c0_214, %c0_215] : memref<2x8x128xf32, #tpu.memory_space<vmem>>, vector<1x8x128xf32>
    %384 = vector.shape_cast %383 : vector<1x8x128xf32> to vector<8x128xf32>
    %385 = vector.shape_cast %382 : vector<8x128xf32> to vector<1x8x128xf32>
    tpu.vector_store %arg7[%c0_213, %c0_214, %c0_215], %385 {strides = array<i32>} : memref<2x8x128xf32, #tpu.memory_space<vmem>>, vector<1x8x128xf32>,
    %cst_216 = arith.constant 0.000000e+00 : f32
    %386 = vector.broadcast %cst_216 : f32 to vector<8x128xf32>
    %387 = arith.select %336, %377, %386 : vector<8x128xi1>, vector<8x128xf32>
    %c1_217 = arith.constant 1 : index
    %c0_218 = arith.constant 0 : index
    %c0_219 = arith.constant 0 : index
    %388 = vector.load %arg7[%c1_217, %c0_218, %c0_219] : memref<2x8x128xf32, #tpu.memory_space<vmem>>, vector<1x8x128xf32>
    %389 = vector.shape_cast %388 : vector<1x8x128xf32> to vector<8x128xf32>
    %c1_220 = arith.constant 1 : index
    %c0_221 = arith.constant 0 : index
    %c0_222 = arith.constant 0 : index
    %390 = vector.load %arg8[%c1_220, %c0_221, %c0_222] : memref<2x8x128xf32, #tpu.memory_space<vmem>>, vector<1x8x128xf32>
    %391 = vector.shape_cast %390 : vector<1x8x128xf32> to vector<8x128xf32>
    %c0_223 = arith.constant 0 : index
    %c0_224 = arith.constant 0 : index
    %392 = vector.load %arg9[%c0_223, %c0_224] : memref<8x256xf32, #tpu.memory_space<vmem>>, vector<8x128xf32>
    tpu.vector_store %arg9[%c0_223, %c0_224], %387 {strides = array<i32>} : memref<8x256xf32, #tpu.memory_space<vmem>>, vector<8x128xf32>,
    %c0_225 = arith.constant 0 : index
    %c128_226 = arith.constant 128 : index
    %393 = vector.load %arg9[%c0_225, %c128_226] : memref<8x256xf32, #tpu.memory_space<vmem>>, vector<8x128xf32>
    tpu.vector_store %arg9[%c0_225, %c128_226], %389 {strides = array<i32>} : memref<8x256xf32, #tpu.memory_space<vmem>>, vector<8x128xf32>,
    %c0_227 = arith.constant 0 : index
    %c0_228 = arith.constant 0 : index
    %394 = vector.load %arg9[%c0_227, %c0_228] : memref<8x256xf32, #tpu.memory_space<vmem>>, vector<8x256xf32>
    %c1_229 = arith.constant 1 : index
    %c0_230 = arith.constant 0 : index
    %c0_231 = arith.constant 0 : index
    %395 = vector.load %arg4[%c1_229, %c0_230, %c0_231] : memref<2x256x512xf32, #tpu.memory_space<vmem>>, vector<1x256x512xf32>
    %396 = vector.shape_cast %395 : vector<1x256x512xf32> to vector<256x512xf32>
    %cst_232 = arith.constant dense<0.000000e+00> : vector<8x512xf32>
    %397 = tpu.matmul %394, %396, %cst_232 {dimension_numbers = #tpu.dot_dimension_numbers<[1], [0], [0], [1], [0, 0, 1, 1], [], []>} : vector<8x256xf32>, vector<256x512xf32>, vector<8x512xf32> -> vector<8x512xf32>
    %c1_233 = arith.constant 1 : index
    %c0_234 = arith.constant 0 : index
    %c0_235 = arith.constant 0 : index
    %398 = vector.load %arg10[%c1_233, %c0_234, %c0_235] : memref<2x8x512xf32, #tpu.memory_space<vmem>>, vector<1x8x512xf32>
    %399 = vector.shape_cast %398 : vector<1x8x512xf32> to vector<8x512xf32>
    %400 = arith.addf %397, %399 : vector<8x512xf32>
    %401 = vector.extract_strided_slice %400 {offsets = [0, 0], sizes = [8, 128], strides = [1, 1]} : vector<8x512xf32> to vector<8x128xf32>
    %402 = arith.negf %401 : vector<8x128xf32>
    %403 = math.exp %402 : vector<8x128xf32>
    %cst_236 = arith.constant 1.000000e+00 : f32
    %404 = vector.broadcast %cst_236 : f32 to vector<8x128xf32>
    %405 = arith.addf %404, %403 : vector<8x128xf32>
    %406 = arith.divf %404, %405 : vector<8x128xf32>
    %407 = vector.extract_strided_slice %400 {offsets = [0, 128], sizes = [8, 128], strides = [1, 1]} : vector<8x512xf32> to vector<8x128xf32>
    %408 = arith.negf %407 : vector<8x128xf32>
    %409 = math.exp %408 : vector<8x128xf32>
    %cst_237 = arith.constant 1.000000e+00 : f32
    %410 = vector.broadcast %cst_237 : f32 to vector<8x128xf32>
    %411 = arith.addf %410, %409 : vector<8x128xf32>
    %412 = arith.divf %410, %411 : vector<8x128xf32>
    %413 = vector.extract_strided_slice %400 {offsets = [0, 256], sizes = [8, 128], strides = [1, 1]} : vector<8x512xf32> to vector<8x128xf32>
    %414 = math.tanh %413 : vector<8x128xf32>
    %415 = vector.extract_strided_slice %400 {offsets = [0, 384], sizes = [8, 128], strides = [1, 1]} : vector<8x512xf32> to vector<8x128xf32>
    %416 = arith.negf %415 : vector<8x128xf32>
    %417 = math.exp %416 : vector<8x128xf32>
    %cst_238 = arith.constant 1.000000e+00 : f32
    %418 = vector.broadcast %cst_238 : f32 to vector<8x128xf32>
    %419 = arith.addf %418, %417 : vector<8x128xf32>
    %420 = arith.divf %418, %419 : vector<8x128xf32>
    %421 = arith.mulf %412, %391 : vector<8x128xf32>
    %422 = arith.mulf %406, %414 : vector<8x128xf32>
    %423 = arith.addf %421, %422 : vector<8x128xf32>
    %424 = math.tanh %423 : vector<8x128xf32>
    %425 = arith.mulf %420, %424 : vector<8x128xf32>
    %426 = arith.select %336, %423, %391 : vector<8x128xi1>, vector<8x128xf32>
    %c1_239 = arith.constant 1 : index
    %c0_240 = arith.constant 0 : index
    %c0_241 = arith.constant 0 : index
    %427 = vector.load %arg8[%c1_239, %c0_240, %c0_241] : memref<2x8x128xf32, #tpu.memory_space<vmem>>, vector<1x8x128xf32>
    %428 = vector.shape_cast %427 : vector<1x8x128xf32> to vector<8x128xf32>
    %429 = vector.shape_cast %426 : vector<8x128xf32> to vector<1x8x128xf32>
    tpu.vector_store %arg8[%c1_239, %c0_240, %c0_241], %429 {strides = array<i32>} : memref<2x8x128xf32, #tpu.memory_space<vmem>>, vector<1x8x128xf32>,
    %430 = arith.select %336, %425, %389 : vector<8x128xi1>, vector<8x128xf32>
    %c1_242 = arith.constant 1 : index
    %c0_243 = arith.constant 0 : index
    %c0_244 = arith.constant 0 : index
    %431 = vector.load %arg7[%c1_242, %c0_243, %c0_244] : memref<2x8x128xf32, #tpu.memory_space<vmem>>, vector<1x8x128xf32>
    %432 = vector.shape_cast %431 : vector<1x8x128xf32> to vector<8x128xf32>
    %433 = vector.shape_cast %430 : vector<8x128xf32> to vector<1x8x128xf32>
    tpu.vector_store %arg7[%c1_242, %c0_243, %c0_244], %433 {strides = array<i32>} : memref<2x8x128xf32, #tpu.memory_space<vmem>>, vector<1x8x128xf32>,
    %cst_245 = arith.constant 0.000000e+00 : f32
    %434 = vector.broadcast %cst_245 : f32 to vector<8x128xf32>
    %435 = arith.select %336, %425, %434 : vector<8x128xi1>, vector<8x128xf32>
    %436 = vector.extract_strided_slice %435 {offsets = [0, 0], sizes = [8, 32], strides = [1, 1]} : vector<8x128xf32> to vector<8x32xf32>
    %437 = arith.index_cast %c3_i32 : i32 to index
    %c0_246 = arith.constant 0 : index
    %c0_247 = arith.constant 0 : index
    %438 = vector.load %arg6[%437, %c0_246, %c0_247] : memref<8x8x32xf32, #tpu.memory_space<vmem>>, vector<1x8x32xf32>
    %439 = vector.shape_cast %438 : vector<1x8x32xf32> to vector<8x32xf32>
    %440 = vector.shape_cast %436 : vector<8x32xf32> to vector<1x8x32xf32>
    tpu.vector_store %arg6[%437, %c0_246, %c0_247], %440 {strides = array<i32>} : memref<8x8x32xf32, #tpu.memory_space<vmem>>, vector<1x8x32xf32>,
    %c4_i32 = arith.constant 4 : i32
    %441 = arith.addi %4, %c4_i32 : i32
    %442 = vector.broadcast %441 : i32 to vector<8x1xi32>
    %443 = arith.cmpi sgt, %3, %442 : vector<8x1xi32>
    %444 = vector.shape_cast %443 : vector<8x1xi1> to vector<8x1xi1>
    %445 = vector.broadcast %444 : vector<8x1xi1> to vector<8x128xi1>
    %446 = arith.index_cast %c4_i32 : i32 to index
    %c0_248 = arith.constant 0 : index
    %c0_249 = arith.constant 0 : index
    %447 = vector.load %arg2[%446, %c0_248, %c0_249] : memref<8x8x128xf32, #tpu.memory_space<vmem>>, vector<1x8x128xf32>
    %448 = vector.shape_cast %447 : vector<1x8x128xf32> to vector<8x128xf32>
    %c0_250 = arith.constant 0 : index
    %c0_251 = arith.constant 0 : index
    %c0_252 = arith.constant 0 : index
    %449 = vector.load %arg7[%c0_250, %c0_251, %c0_252] : memref<2x8x128xf32, #tpu.memory_space<vmem>>, vector<1x8x128xf32>
    %450 = vector.shape_cast %449 : vector<1x8x128xf32> to vector<8x128xf32>
    %c0_253 = arith.constant 0 : index
    %c0_254 = arith.constant 0 : index
    %c0_255 = arith.constant 0 : index
    %451 = vector.load %arg8[%c0_253, %c0_254, %c0_255] : memref<2x8x128xf32, #tpu.memory_space<vmem>>, vector<1x8x128xf32>
    %452 = vector.shape_cast %451 : vector<1x8x128xf32> to vector<8x128xf32>
    %c0_256 = arith.constant 0 : index
    %c0_257 = arith.constant 0 : index
    %453 = vector.load %arg9[%c0_256, %c0_257] : memref<8x256xf32, #tpu.memory_space<vmem>>, vector<8x128xf32>
    tpu.vector_store %arg9[%c0_256, %c0_257], %448 {strides = array<i32>} : memref<8x256xf32, #tpu.memory_space<vmem>>, vector<8x128xf32>,
    %c0_258 = arith.constant 0 : index
    %c128_259 = arith.constant 128 : index
    %454 = vector.load %arg9[%c0_258, %c128_259] : memref<8x256xf32, #tpu.memory_space<vmem>>, vector<8x128xf32>
    tpu.vector_store %arg9[%c0_258, %c128_259], %450 {strides = array<i32>} : memref<8x256xf32, #tpu.memory_space<vmem>>, vector<8x128xf32>,
    %c0_260 = arith.constant 0 : index
    %c0_261 = arith.constant 0 : index
    %455 = vector.load %arg9[%c0_260, %c0_261] : memref<8x256xf32, #tpu.memory_space<vmem>>, vector<8x256xf32>
    %c0_262 = arith.constant 0 : index
    %c0_263 = arith.constant 0 : index
    %c0_264 = arith.constant 0 : index
    %456 = vector.load %arg4[%c0_262, %c0_263, %c0_264] : memref<2x256x512xf32, #tpu.memory_space<vmem>>, vector<1x256x512xf32>
    %457 = vector.shape_cast %456 : vector<1x256x512xf32> to vector<256x512xf32>
    %cst_265 = arith.constant dense<0.000000e+00> : vector<8x512xf32>
    %458 = tpu.matmul %455, %457, %cst_265 {dimension_numbers = #tpu.dot_dimension_numbers<[1], [0], [0], [1], [0, 0, 1, 1], [], []>} : vector<8x256xf32>, vector<256x512xf32>, vector<8x512xf32> -> vector<8x512xf32>
    %c0_266 = arith.constant 0 : index
    %c0_267 = arith.constant 0 : index
    %c0_268 = arith.constant 0 : index
    %459 = vector.load %arg10[%c0_266, %c0_267, %c0_268] : memref<2x8x512xf32, #tpu.memory_space<vmem>>, vector<1x8x512xf32>
    %460 = vector.shape_cast %459 : vector<1x8x512xf32> to vector<8x512xf32>
    %461 = arith.addf %458, %460 : vector<8x512xf32>
    %462 = vector.extract_strided_slice %461 {offsets = [0, 0], sizes = [8, 128], strides = [1, 1]} : vector<8x512xf32> to vector<8x128xf32>
    %463 = arith.negf %462 : vector<8x128xf32>
    %464 = math.exp %463 : vector<8x128xf32>
    %cst_269 = arith.constant 1.000000e+00 : f32
    %465 = vector.broadcast %cst_269 : f32 to vector<8x128xf32>
    %466 = arith.addf %465, %464 : vector<8x128xf32>
    %467 = arith.divf %465, %466 : vector<8x128xf32>
    %468 = vector.extract_strided_slice %461 {offsets = [0, 128], sizes = [8, 128], strides = [1, 1]} : vector<8x512xf32> to vector<8x128xf32>
    %469 = arith.negf %468 : vector<8x128xf32>
    %470 = math.exp %469 : vector<8x128xf32>
    %cst_270 = arith.constant 1.000000e+00 : f32
    %471 = vector.broadcast %cst_270 : f32 to vector<8x128xf32>
    %472 = arith.addf %471, %470 : vector<8x128xf32>
    %473 = arith.divf %471, %472 : vector<8x128xf32>
    %474 = vector.extract_strided_slice %461 {offsets = [0, 256], sizes = [8, 128], strides = [1, 1]} : vector<8x512xf32> to vector<8x128xf32>
    %475 = math.tanh %474 : vector<8x128xf32>
    %476 = vector.extract_strided_slice %461 {offsets = [0, 384], sizes = [8, 128], strides = [1, 1]} : vector<8x512xf32> to vector<8x128xf32>
    %477 = arith.negf %476 : vector<8x128xf32>
    %478 = math.exp %477 : vector<8x128xf32>
    %cst_271 = arith.constant 1.000000e+00 : f32
    %479 = vector.broadcast %cst_271 : f32 to vector<8x128xf32>
    %480 = arith.addf %479, %478 : vector<8x128xf32>
    %481 = arith.divf %479, %480 : vector<8x128xf32>
    %482 = arith.mulf %473, %452 : vector<8x128xf32>
    %483 = arith.mulf %467, %475 : vector<8x128xf32>
    %484 = arith.addf %482, %483 : vector<8x128xf32>
    %485 = math.tanh %484 : vector<8x128xf32>
    %486 = arith.mulf %481, %485 : vector<8x128xf32>
    %487 = arith.select %445, %484, %452 : vector<8x128xi1>, vector<8x128xf32>
    %c0_272 = arith.constant 0 : index
    %c0_273 = arith.constant 0 : index
    %c0_274 = arith.constant 0 : index
    %488 = vector.load %arg8[%c0_272, %c0_273, %c0_274] : memref<2x8x128xf32, #tpu.memory_space<vmem>>, vector<1x8x128xf32>
    %489 = vector.shape_cast %488 : vector<1x8x128xf32> to vector<8x128xf32>
    %490 = vector.shape_cast %487 : vector<8x128xf32> to vector<1x8x128xf32>
    tpu.vector_store %arg8[%c0_272, %c0_273, %c0_274], %490 {strides = array<i32>} : memref<2x8x128xf32, #tpu.memory_space<vmem>>, vector<1x8x128xf32>,
    %491 = arith.select %445, %486, %450 : vector<8x128xi1>, vector<8x128xf32>
    %c0_275 = arith.constant 0 : index
    %c0_276 = arith.constant 0 : index
    %c0_277 = arith.constant 0 : index
    %492 = vector.load %arg7[%c0_275, %c0_276, %c0_277] : memref<2x8x128xf32, #tpu.memory_space<vmem>>, vector<1x8x128xf32>
    %493 = vector.shape_cast %492 : vector<1x8x128xf32> to vector<8x128xf32>
    %494 = vector.shape_cast %491 : vector<8x128xf32> to vector<1x8x128xf32>
    tpu.vector_store %arg7[%c0_275, %c0_276, %c0_277], %494 {strides = array<i32>} : memref<2x8x128xf32, #tpu.memory_space<vmem>>, vector<1x8x128xf32>,
    %cst_278 = arith.constant 0.000000e+00 : f32
    %495 = vector.broadcast %cst_278 : f32 to vector<8x128xf32>
    %496 = arith.select %445, %486, %495 : vector<8x128xi1>, vector<8x128xf32>
    %c1_279 = arith.constant 1 : index
    %c0_280 = arith.constant 0 : index
    %c0_281 = arith.constant 0 : index
    %497 = vector.load %arg7[%c1_279, %c0_280, %c0_281] : memref<2x8x128xf32, #tpu.memory_space<vmem>>, vector<1x8x128xf32>
    %498 = vector.shape_cast %497 : vector<1x8x128xf32> to vector<8x128xf32>
    %c1_282 = arith.constant 1 : index
    %c0_283 = arith.constant 0 : index
    %c0_284 = arith.constant 0 : index
    %499 = vector.load %arg8[%c1_282, %c0_283, %c0_284] : memref<2x8x128xf32, #tpu.memory_space<vmem>>, vector<1x8x128xf32>
    %500 = vector.shape_cast %499 : vector<1x8x128xf32> to vector<8x128xf32>
    %c0_285 = arith.constant 0 : index
    %c0_286 = arith.constant 0 : index
    %501 = vector.load %arg9[%c0_285, %c0_286] : memref<8x256xf32, #tpu.memory_space<vmem>>, vector<8x128xf32>
    tpu.vector_store %arg9[%c0_285, %c0_286], %496 {strides = array<i32>} : memref<8x256xf32, #tpu.memory_space<vmem>>, vector<8x128xf32>,
    %c0_287 = arith.constant 0 : index
    %c128_288 = arith.constant 128 : index
    %502 = vector.load %arg9[%c0_287, %c128_288] : memref<8x256xf32, #tpu.memory_space<vmem>>, vector<8x128xf32>
    tpu.vector_store %arg9[%c0_287, %c128_288], %498 {strides = array<i32>} : memref<8x256xf32, #tpu.memory_space<vmem>>, vector<8x128xf32>,
    %c0_289 = arith.constant 0 : index
    %c0_290 = arith.constant 0 : index
    %503 = vector.load %arg9[%c0_289, %c0_290] : memref<8x256xf32, #tpu.memory_space<vmem>>, vector<8x256xf32>
    %c1_291 = arith.constant 1 : index
    %c0_292 = arith.constant 0 : index
    %c0_293 = arith.constant 0 : index
    %504 = vector.load %arg4[%c1_291, %c0_292, %c0_293] : memref<2x256x512xf32, #tpu.memory_space<vmem>>, vector<1x256x512xf32>
    %505 = vector.shape_cast %504 : vector<1x256x512xf32> to vector<256x512xf32>
    %cst_294 = arith.constant dense<0.000000e+00> : vector<8x512xf32>
    %506 = tpu.matmul %503, %505, %cst_294 {dimension_numbers = #tpu.dot_dimension_numbers<[1], [0], [0], [1], [0, 0, 1, 1], [], []>} : vector<8x256xf32>, vector<256x512xf32>, vector<8x512xf32> -> vector<8x512xf32>
    %c1_295 = arith.constant 1 : index
    %c0_296 = arith.constant 0 : index
    %c0_297 = arith.constant 0 : index
    %507 = vector.load %arg10[%c1_295, %c0_296, %c0_297] : memref<2x8x512xf32, #tpu.memory_space<vmem>>, vector<1x8x512xf32>
    %508 = vector.shape_cast %507 : vector<1x8x512xf32> to vector<8x512xf32>
    %509 = arith.addf %506, %508 : vector<8x512xf32>
    %510 = vector.extract_strided_slice %509 {offsets = [0, 0], sizes = [8, 128], strides = [1, 1]} : vector<8x512xf32> to vector<8x128xf32>
    %511 = arith.negf %510 : vector<8x128xf32>
    %512 = math.exp %511 : vector<8x128xf32>
    %cst_298 = arith.constant 1.000000e+00 : f32
    %513 = vector.broadcast %cst_298 : f32 to vector<8x128xf32>
    %514 = arith.addf %513, %512 : vector<8x128xf32>
    %515 = arith.divf %513, %514 : vector<8x128xf32>
    %516 = vector.extract_strided_slice %509 {offsets = [0, 128], sizes = [8, 128], strides = [1, 1]} : vector<8x512xf32> to vector<8x128xf32>
    %517 = arith.negf %516 : vector<8x128xf32>
    %518 = math.exp %517 : vector<8x128xf32>
    %cst_299 = arith.constant 1.000000e+00 : f32
    %519 = vector.broadcast %cst_299 : f32 to vector<8x128xf32>
    %520 = arith.addf %519, %518 : vector<8x128xf32>
    %521 = arith.divf %519, %520 : vector<8x128xf32>
    %522 = vector.extract_strided_slice %509 {offsets = [0, 256], sizes = [8, 128], strides = [1, 1]} : vector<8x512xf32> to vector<8x128xf32>
    %523 = math.tanh %522 : vector<8x128xf32>
    %524 = vector.extract_strided_slice %509 {offsets = [0, 384], sizes = [8, 128], strides = [1, 1]} : vector<8x512xf32> to vector<8x128xf32>
    %525 = arith.negf %524 : vector<8x128xf32>
    %526 = math.exp %525 : vector<8x128xf32>
    %cst_300 = arith.constant 1.000000e+00 : f32
    %527 = vector.broadcast %cst_300 : f32 to vector<8x128xf32>
    %528 = arith.addf %527, %526 : vector<8x128xf32>
    %529 = arith.divf %527, %528 : vector<8x128xf32>
    %530 = arith.mulf %521, %500 : vector<8x128xf32>
    %531 = arith.mulf %515, %523 : vector<8x128xf32>
    %532 = arith.addf %530, %531 : vector<8x128xf32>
    %533 = math.tanh %532 : vector<8x128xf32>
    %534 = arith.mulf %529, %533 : vector<8x128xf32>
    %535 = arith.select %445, %532, %500 : vector<8x128xi1>, vector<8x128xf32>
    %c1_301 = arith.constant 1 : index
    %c0_302 = arith.constant 0 : index
    %c0_303 = arith.constant 0 : index
    %536 = vector.load %arg8[%c1_301, %c0_302, %c0_303] : memref<2x8x128xf32, #tpu.memory_space<vmem>>, vector<1x8x128xf32>
    %537 = vector.shape_cast %536 : vector<1x8x128xf32> to vector<8x128xf32>
    %538 = vector.shape_cast %535 : vector<8x128xf32> to vector<1x8x128xf32>
    tpu.vector_store %arg8[%c1_301, %c0_302, %c0_303], %538 {strides = array<i32>} : memref<2x8x128xf32, #tpu.memory_space<vmem>>, vector<1x8x128xf32>,
    %539 = arith.select %445, %534, %498 : vector<8x128xi1>, vector<8x128xf32>
    %c1_304 = arith.constant 1 : index
    %c0_305 = arith.constant 0 : index
    %c0_306 = arith.constant 0 : index
    %540 = vector.load %arg7[%c1_304, %c0_305, %c0_306] : memref<2x8x128xf32, #tpu.memory_space<vmem>>, vector<1x8x128xf32>
    %541 = vector.shape_cast %540 : vector<1x8x128xf32> to vector<8x128xf32>
    %542 = vector.shape_cast %539 : vector<8x128xf32> to vector<1x8x128xf32>
    tpu.vector_store %arg7[%c1_304, %c0_305, %c0_306], %542 {strides = array<i32>} : memref<2x8x128xf32, #tpu.memory_space<vmem>>, vector<1x8x128xf32>,
    %cst_307 = arith.constant 0.000000e+00 : f32
    %543 = vector.broadcast %cst_307 : f32 to vector<8x128xf32>
    %544 = arith.select %445, %534, %543 : vector<8x128xi1>, vector<8x128xf32>
    %545 = vector.extract_strided_slice %544 {offsets = [0, 0], sizes = [8, 32], strides = [1, 1]} : vector<8x128xf32> to vector<8x32xf32>
    %546 = arith.index_cast %c4_i32 : i32 to index
    %c0_308 = arith.constant 0 : index
    %c0_309 = arith.constant 0 : index
    %547 = vector.load %arg6[%546, %c0_308, %c0_309] : memref<8x8x32xf32, #tpu.memory_space<vmem>>, vector<1x8x32xf32>
    %548 = vector.shape_cast %547 : vector<1x8x32xf32> to vector<8x32xf32>
    %549 = vector.shape_cast %545 : vector<8x32xf32> to vector<1x8x32xf32>
    tpu.vector_store %arg6[%546, %c0_308, %c0_309], %549 {strides = array<i32>} : memref<8x8x32xf32, #tpu.memory_space<vmem>>, vector<1x8x32xf32>,
    %c5_i32 = arith.constant 5 : i32
    %550 = arith.addi %4, %c5_i32 : i32
    %551 = vector.broadcast %550 : i32 to vector<8x1xi32>
    %552 = arith.cmpi sgt, %3, %551 : vector<8x1xi32>
    %553 = vector.shape_cast %552 : vector<8x1xi1> to vector<8x1xi1>
    %554 = vector.broadcast %553 : vector<8x1xi1> to vector<8x128xi1>
    %555 = arith.index_cast %c5_i32 : i32 to index
    %c0_310 = arith.constant 0 : index
    %c0_311 = arith.constant 0 : index
    %556 = vector.load %arg2[%555, %c0_310, %c0_311] : memref<8x8x128xf32, #tpu.memory_space<vmem>>, vector<1x8x128xf32>
    %557 = vector.shape_cast %556 : vector<1x8x128xf32> to vector<8x128xf32>
    %c0_312 = arith.constant 0 : index
    %c0_313 = arith.constant 0 : index
    %c0_314 = arith.constant 0 : index
    %558 = vector.load %arg7[%c0_312, %c0_313, %c0_314] : memref<2x8x128xf32, #tpu.memory_space<vmem>>, vector<1x8x128xf32>
    %559 = vector.shape_cast %558 : vector<1x8x128xf32> to vector<8x128xf32>
    %c0_315 = arith.constant 0 : index
    %c0_316 = arith.constant 0 : index
    %c0_317 = arith.constant 0 : index
    %560 = vector.load %arg8[%c0_315, %c0_316, %c0_317] : memref<2x8x128xf32, #tpu.memory_space<vmem>>, vector<1x8x128xf32>
    %561 = vector.shape_cast %560 : vector<1x8x128xf32> to vector<8x128xf32>
    %c0_318 = arith.constant 0 : index
    %c0_319 = arith.constant 0 : index
    %562 = vector.load %arg9[%c0_318, %c0_319] : memref<8x256xf32, #tpu.memory_space<vmem>>, vector<8x128xf32>
    tpu.vector_store %arg9[%c0_318, %c0_319], %557 {strides = array<i32>} : memref<8x256xf32, #tpu.memory_space<vmem>>, vector<8x128xf32>,
    %c0_320 = arith.constant 0 : index
    %c128_321 = arith.constant 128 : index
    %563 = vector.load %arg9[%c0_320, %c128_321] : memref<8x256xf32, #tpu.memory_space<vmem>>, vector<8x128xf32>
    tpu.vector_store %arg9[%c0_320, %c128_321], %559 {strides = array<i32>} : memref<8x256xf32, #tpu.memory_space<vmem>>, vector<8x128xf32>,
    %c0_322 = arith.constant 0 : index
    %c0_323 = arith.constant 0 : index
    %564 = vector.load %arg9[%c0_322, %c0_323] : memref<8x256xf32, #tpu.memory_space<vmem>>, vector<8x256xf32>
    %c0_324 = arith.constant 0 : index
    %c0_325 = arith.constant 0 : index
    %c0_326 = arith.constant 0 : index
    %565 = vector.load %arg4[%c0_324, %c0_325, %c0_326] : memref<2x256x512xf32, #tpu.memory_space<vmem>>, vector<1x256x512xf32>
    %566 = vector.shape_cast %565 : vector<1x256x512xf32> to vector<256x512xf32>
    %cst_327 = arith.constant dense<0.000000e+00> : vector<8x512xf32>
    %567 = tpu.matmul %564, %566, %cst_327 {dimension_numbers = #tpu.dot_dimension_numbers<[1], [0], [0], [1], [0, 0, 1, 1], [], []>} : vector<8x256xf32>, vector<256x512xf32>, vector<8x512xf32> -> vector<8x512xf32>
    %c0_328 = arith.constant 0 : index
    %c0_329 = arith.constant 0 : index
    %c0_330 = arith.constant 0 : index
    %568 = vector.load %arg10[%c0_328, %c0_329, %c0_330] : memref<2x8x512xf32, #tpu.memory_space<vmem>>, vector<1x8x512xf32>
    %569 = vector.shape_cast %568 : vector<1x8x512xf32> to vector<8x512xf32>
    %570 = arith.addf %567, %569 : vector<8x512xf32>
    %571 = vector.extract_strided_slice %570 {offsets = [0, 0], sizes = [8, 128], strides = [1, 1]} : vector<8x512xf32> to vector<8x128xf32>
    %572 = arith.negf %571 : vector<8x128xf32>
    %573 = math.exp %572 : vector<8x128xf32>
    %cst_331 = arith.constant 1.000000e+00 : f32
    %574 = vector.broadcast %cst_331 : f32 to vector<8x128xf32>
    %575 = arith.addf %574, %573 : vector<8x128xf32>
    %576 = arith.divf %574, %575 : vector<8x128xf32>
    %577 = vector.extract_strided_slice %570 {offsets = [0, 128], sizes = [8, 128], strides = [1, 1]} : vector<8x512xf32> to vector<8x128xf32>
    %578 = arith.negf %577 : vector<8x128xf32>
    %579 = math.exp %578 : vector<8x128xf32>
    %cst_332 = arith.constant 1.000000e+00 : f32
    %580 = vector.broadcast %cst_332 : f32 to vector<8x128xf32>
    %581 = arith.addf %580, %579 : vector<8x128xf32>
    %582 = arith.divf %580, %581 : vector<8x128xf32>
    %583 = vector.extract_strided_slice %570 {offsets = [0, 256], sizes = [8, 128], strides = [1, 1]} : vector<8x512xf32> to vector<8x128xf32>
    %584 = math.tanh %583 : vector<8x128xf32>
    %585 = vector.extract_strided_slice %570 {offsets = [0, 384], sizes = [8, 128], strides = [1, 1]} : vector<8x512xf32> to vector<8x128xf32>
    %586 = arith.negf %585 : vector<8x128xf32>
    %587 = math.exp %586 : vector<8x128xf32>
    %cst_333 = arith.constant 1.000000e+00 : f32
    %588 = vector.broadcast %cst_333 : f32 to vector<8x128xf32>
    %589 = arith.addf %588, %587 : vector<8x128xf32>
    %590 = arith.divf %588, %589 : vector<8x128xf32>
    %591 = arith.mulf %582, %561 : vector<8x128xf32>
    %592 = arith.mulf %576, %584 : vector<8x128xf32>
    %593 = arith.addf %591, %592 : vector<8x128xf32>
    %594 = math.tanh %593 : vector<8x128xf32>
    %595 = arith.mulf %590, %594 : vector<8x128xf32>
    %596 = arith.select %554, %593, %561 : vector<8x128xi1>, vector<8x128xf32>
    %c0_334 = arith.constant 0 : index
    %c0_335 = arith.constant 0 : index
    %c0_336 = arith.constant 0 : index
    %597 = vector.load %arg8[%c0_334, %c0_335, %c0_336] : memref<2x8x128xf32, #tpu.memory_space<vmem>>, vector<1x8x128xf32>
    %598 = vector.shape_cast %597 : vector<1x8x128xf32> to vector<8x128xf32>
    %599 = vector.shape_cast %596 : vector<8x128xf32> to vector<1x8x128xf32>
    tpu.vector_store %arg8[%c0_334, %c0_335, %c0_336], %599 {strides = array<i32>} : memref<2x8x128xf32, #tpu.memory_space<vmem>>, vector<1x8x128xf32>,
    %600 = arith.select %554, %595, %559 : vector<8x128xi1>, vector<8x128xf32>
    %c0_337 = arith.constant 0 : index
    %c0_338 = arith.constant 0 : index
    %c0_339 = arith.constant 0 : index
    %601 = vector.load %arg7[%c0_337, %c0_338, %c0_339] : memref<2x8x128xf32, #tpu.memory_space<vmem>>, vector<1x8x128xf32>
    %602 = vector.shape_cast %601 : vector<1x8x128xf32> to vector<8x128xf32>
    %603 = vector.shape_cast %600 : vector<8x128xf32> to vector<1x8x128xf32>
    tpu.vector_store %arg7[%c0_337, %c0_338, %c0_339], %603 {strides = array<i32>} : memref<2x8x128xf32, #tpu.memory_space<vmem>>, vector<1x8x128xf32>,
    %cst_340 = arith.constant 0.000000e+00 : f32
    %604 = vector.broadcast %cst_340 : f32 to vector<8x128xf32>
    %605 = arith.select %554, %595, %604 : vector<8x128xi1>, vector<8x128xf32>
    %c1_341 = arith.constant 1 : index
    %c0_342 = arith.constant 0 : index
    %c0_343 = arith.constant 0 : index
    %606 = vector.load %arg7[%c1_341, %c0_342, %c0_343] : memref<2x8x128xf32, #tpu.memory_space<vmem>>, vector<1x8x128xf32>
    %607 = vector.shape_cast %606 : vector<1x8x128xf32> to vector<8x128xf32>
    %c1_344 = arith.constant 1 : index
    %c0_345 = arith.constant 0 : index
    %c0_346 = arith.constant 0 : index
    %608 = vector.load %arg8[%c1_344, %c0_345, %c0_346] : memref<2x8x128xf32, #tpu.memory_space<vmem>>, vector<1x8x128xf32>
    %609 = vector.shape_cast %608 : vector<1x8x128xf32> to vector<8x128xf32>
    %c0_347 = arith.constant 0 : index
    %c0_348 = arith.constant 0 : index
    %610 = vector.load %arg9[%c0_347, %c0_348] : memref<8x256xf32, #tpu.memory_space<vmem>>, vector<8x128xf32>
    tpu.vector_store %arg9[%c0_347, %c0_348], %605 {strides = array<i32>} : memref<8x256xf32, #tpu.memory_space<vmem>>, vector<8x128xf32>,
    %c0_349 = arith.constant 0 : index
    %c128_350 = arith.constant 128 : index
    %611 = vector.load %arg9[%c0_349, %c128_350] : memref<8x256xf32, #tpu.memory_space<vmem>>, vector<8x128xf32>
    tpu.vector_store %arg9[%c0_349, %c128_350], %607 {strides = array<i32>} : memref<8x256xf32, #tpu.memory_space<vmem>>, vector<8x128xf32>,
    %c0_351 = arith.constant 0 : index
    %c0_352 = arith.constant 0 : index
    %612 = vector.load %arg9[%c0_351, %c0_352] : memref<8x256xf32, #tpu.memory_space<vmem>>, vector<8x256xf32>
    %c1_353 = arith.constant 1 : index
    %c0_354 = arith.constant 0 : index
    %c0_355 = arith.constant 0 : index
    %613 = vector.load %arg4[%c1_353, %c0_354, %c0_355] : memref<2x256x512xf32, #tpu.memory_space<vmem>>, vector<1x256x512xf32>
    %614 = vector.shape_cast %613 : vector<1x256x512xf32> to vector<256x512xf32>
    %cst_356 = arith.constant dense<0.000000e+00> : vector<8x512xf32>
    %615 = tpu.matmul %612, %614, %cst_356 {dimension_numbers = #tpu.dot_dimension_numbers<[1], [0], [0], [1], [0, 0, 1, 1], [], []>} : vector<8x256xf32>, vector<256x512xf32>, vector<8x512xf32> -> vector<8x512xf32>
    %c1_357 = arith.constant 1 : index
    %c0_358 = arith.constant 0 : index
    %c0_359 = arith.constant 0 : index
    %616 = vector.load %arg10[%c1_357, %c0_358, %c0_359] : memref<2x8x512xf32, #tpu.memory_space<vmem>>, vector<1x8x512xf32>
    %617 = vector.shape_cast %616 : vector<1x8x512xf32> to vector<8x512xf32>
    %618 = arith.addf %615, %617 : vector<8x512xf32>
    %619 = vector.extract_strided_slice %618 {offsets = [0, 0], sizes = [8, 128], strides = [1, 1]} : vector<8x512xf32> to vector<8x128xf32>
    %620 = arith.negf %619 : vector<8x128xf32>
    %621 = math.exp %620 : vector<8x128xf32>
    %cst_360 = arith.constant 1.000000e+00 : f32
    %622 = vector.broadcast %cst_360 : f32 to vector<8x128xf32>
    %623 = arith.addf %622, %621 : vector<8x128xf32>
    %624 = arith.divf %622, %623 : vector<8x128xf32>
    %625 = vector.extract_strided_slice %618 {offsets = [0, 128], sizes = [8, 128], strides = [1, 1]} : vector<8x512xf32> to vector<8x128xf32>
    %626 = arith.negf %625 : vector<8x128xf32>
    %627 = math.exp %626 : vector<8x128xf32>
    %cst_361 = arith.constant 1.000000e+00 : f32
    %628 = vector.broadcast %cst_361 : f32 to vector<8x128xf32>
    %629 = arith.addf %628, %627 : vector<8x128xf32>
    %630 = arith.divf %628, %629 : vector<8x128xf32>
    %631 = vector.extract_strided_slice %618 {offsets = [0, 256], sizes = [8, 128], strides = [1, 1]} : vector<8x512xf32> to vector<8x128xf32>
    %632 = math.tanh %631 : vector<8x128xf32>
    %633 = vector.extract_strided_slice %618 {offsets = [0, 384], sizes = [8, 128], strides = [1, 1]} : vector<8x512xf32> to vector<8x128xf32>
    %634 = arith.negf %633 : vector<8x128xf32>
    %635 = math.exp %634 : vector<8x128xf32>
    %cst_362 = arith.constant 1.000000e+00 : f32
    %636 = vector.broadcast %cst_362 : f32 to vector<8x128xf32>
    %637 = arith.addf %636, %635 : vector<8x128xf32>
    %638 = arith.divf %636, %637 : vector<8x128xf32>
    %639 = arith.mulf %630, %609 : vector<8x128xf32>
    %640 = arith.mulf %624, %632 : vector<8x128xf32>
    %641 = arith.addf %639, %640 : vector<8x128xf32>
    %642 = math.tanh %641 : vector<8x128xf32>
    %643 = arith.mulf %638, %642 : vector<8x128xf32>
    %644 = arith.select %554, %641, %609 : vector<8x128xi1>, vector<8x128xf32>
    %c1_363 = arith.constant 1 : index
    %c0_364 = arith.constant 0 : index
    %c0_365 = arith.constant 0 : index
    %645 = vector.load %arg8[%c1_363, %c0_364, %c0_365] : memref<2x8x128xf32, #tpu.memory_space<vmem>>, vector<1x8x128xf32>
    %646 = vector.shape_cast %645 : vector<1x8x128xf32> to vector<8x128xf32>
    %647 = vector.shape_cast %644 : vector<8x128xf32> to vector<1x8x128xf32>
    tpu.vector_store %arg8[%c1_363, %c0_364, %c0_365], %647 {strides = array<i32>} : memref<2x8x128xf32, #tpu.memory_space<vmem>>, vector<1x8x128xf32>,
    %648 = arith.select %554, %643, %607 : vector<8x128xi1>, vector<8x128xf32>
    %c1_366 = arith.constant 1 : index
    %c0_367 = arith.constant 0 : index
    %c0_368 = arith.constant 0 : index
    %649 = vector.load %arg7[%c1_366, %c0_367, %c0_368] : memref<2x8x128xf32, #tpu.memory_space<vmem>>, vector<1x8x128xf32>
    %650 = vector.shape_cast %649 : vector<1x8x128xf32> to vector<8x128xf32>
    %651 = vector.shape_cast %648 : vector<8x128xf32> to vector<1x8x128xf32>
    tpu.vector_store %arg7[%c1_366, %c0_367, %c0_368], %651 {strides = array<i32>} : memref<2x8x128xf32, #tpu.memory_space<vmem>>, vector<1x8x128xf32>,
    %cst_369 = arith.constant 0.000000e+00 : f32
    %652 = vector.broadcast %cst_369 : f32 to vector<8x128xf32>
    %653 = arith.select %554, %643, %652 : vector<8x128xi1>, vector<8x128xf32>
    %654 = vector.extract_strided_slice %653 {offsets = [0, 0], sizes = [8, 32], strides = [1, 1]} : vector<8x128xf32> to vector<8x32xf32>
    %655 = arith.index_cast %c5_i32 : i32 to index
    %c0_370 = arith.constant 0 : index
    %c0_371 = arith.constant 0 : index
    %656 = vector.load %arg6[%655, %c0_370, %c0_371] : memref<8x8x32xf32, #tpu.memory_space<vmem>>, vector<1x8x32xf32>
    %657 = vector.shape_cast %656 : vector<1x8x32xf32> to vector<8x32xf32>
    %658 = vector.shape_cast %654 : vector<8x32xf32> to vector<1x8x32xf32>
    tpu.vector_store %arg6[%655, %c0_370, %c0_371], %658 {strides = array<i32>} : memref<8x8x32xf32, #tpu.memory_space<vmem>>, vector<1x8x32xf32>,
    %c6_i32 = arith.constant 6 : i32
    %659 = arith.addi %4, %c6_i32 : i32
    %660 = vector.broadcast %659 : i32 to vector<8x1xi32>
    %661 = arith.cmpi sgt, %3, %660 : vector<8x1xi32>
    %662 = vector.shape_cast %661 : vector<8x1xi1> to vector<8x1xi1>
    %663 = vector.broadcast %662 : vector<8x1xi1> to vector<8x128xi1>
    %664 = arith.index_cast %c6_i32 : i32 to index
    %c0_372 = arith.constant 0 : index
    %c0_373 = arith.constant 0 : index
    %665 = vector.load %arg2[%664, %c0_372, %c0_373] : memref<8x8x128xf32, #tpu.memory_space<vmem>>, vector<1x8x128xf32>
    %666 = vector.shape_cast %665 : vector<1x8x128xf32> to vector<8x128xf32>
    %c0_374 = arith.constant 0 : index
    %c0_375 = arith.constant 0 : index
    %c0_376 = arith.constant 0 : index
    %667 = vector.load %arg7[%c0_374, %c0_375, %c0_376] : memref<2x8x128xf32, #tpu.memory_space<vmem>>, vector<1x8x128xf32>
    %668 = vector.shape_cast %667 : vector<1x8x128xf32> to vector<8x128xf32>
    %c0_377 = arith.constant 0 : index
    %c0_378 = arith.constant 0 : index
    %c0_379 = arith.constant 0 : index
    %669 = vector.load %arg8[%c0_377, %c0_378, %c0_379] : memref<2x8x128xf32, #tpu.memory_space<vmem>>, vector<1x8x128xf32>
    %670 = vector.shape_cast %669 : vector<1x8x128xf32> to vector<8x128xf32>
    %c0_380 = arith.constant 0 : index
    %c0_381 = arith.constant 0 : index
    %671 = vector.load %arg9[%c0_380, %c0_381] : memref<8x256xf32, #tpu.memory_space<vmem>>, vector<8x128xf32>
    tpu.vector_store %arg9[%c0_380, %c0_381], %666 {strides = array<i32>} : memref<8x256xf32, #tpu.memory_space<vmem>>, vector<8x128xf32>,
    %c0_382 = arith.constant 0 : index
    %c128_383 = arith.constant 128 : index
    %672 = vector.load %arg9[%c0_382, %c128_383] : memref<8x256xf32, #tpu.memory_space<vmem>>, vector<8x128xf32>
    tpu.vector_store %arg9[%c0_382, %c128_383], %668 {strides = array<i32>} : memref<8x256xf32, #tpu.memory_space<vmem>>, vector<8x128xf32>,
    %c0_384 = arith.constant 0 : index
    %c0_385 = arith.constant 0 : index
    %673 = vector.load %arg9[%c0_384, %c0_385] : memref<8x256xf32, #tpu.memory_space<vmem>>, vector<8x256xf32>
    %c0_386 = arith.constant 0 : index
    %c0_387 = arith.constant 0 : index
    %c0_388 = arith.constant 0 : index
    %674 = vector.load %arg4[%c0_386, %c0_387, %c0_388] : memref<2x256x512xf32, #tpu.memory_space<vmem>>, vector<1x256x512xf32>
    %675 = vector.shape_cast %674 : vector<1x256x512xf32> to vector<256x512xf32>
    %cst_389 = arith.constant dense<0.000000e+00> : vector<8x512xf32>
    %676 = tpu.matmul %673, %675, %cst_389 {dimension_numbers = #tpu.dot_dimension_numbers<[1], [0], [0], [1], [0, 0, 1, 1], [], []>} : vector<8x256xf32>, vector<256x512xf32>, vector<8x512xf32> -> vector<8x512xf32>
    %c0_390 = arith.constant 0 : index
    %c0_391 = arith.constant 0 : index
    %c0_392 = arith.constant 0 : index
    %677 = vector.load %arg10[%c0_390, %c0_391, %c0_392] : memref<2x8x512xf32, #tpu.memory_space<vmem>>, vector<1x8x512xf32>
    %678 = vector.shape_cast %677 : vector<1x8x512xf32> to vector<8x512xf32>
    %679 = arith.addf %676, %678 : vector<8x512xf32>
    %680 = vector.extract_strided_slice %679 {offsets = [0, 0], sizes = [8, 128], strides = [1, 1]} : vector<8x512xf32> to vector<8x128xf32>
    %681 = arith.negf %680 : vector<8x128xf32>
    %682 = math.exp %681 : vector<8x128xf32>
    %cst_393 = arith.constant 1.000000e+00 : f32
    %683 = vector.broadcast %cst_393 : f32 to vector<8x128xf32>
    %684 = arith.addf %683, %682 : vector<8x128xf32>
    %685 = arith.divf %683, %684 : vector<8x128xf32>
    %686 = vector.extract_strided_slice %679 {offsets = [0, 128], sizes = [8, 128], strides = [1, 1]} : vector<8x512xf32> to vector<8x128xf32>
    %687 = arith.negf %686 : vector<8x128xf32>
    %688 = math.exp %687 : vector<8x128xf32>
    %cst_394 = arith.constant 1.000000e+00 : f32
    %689 = vector.broadcast %cst_394 : f32 to vector<8x128xf32>
    %690 = arith.addf %689, %688 : vector<8x128xf32>
    %691 = arith.divf %689, %690 : vector<8x128xf32>
    %692 = vector.extract_strided_slice %679 {offsets = [0, 256], sizes = [8, 128], strides = [1, 1]} : vector<8x512xf32> to vector<8x128xf32>
    %693 = math.tanh %692 : vector<8x128xf32>
    %694 = vector.extract_strided_slice %679 {offsets = [0, 384], sizes = [8, 128], strides = [1, 1]} : vector<8x512xf32> to vector<8x128xf32>
    %695 = arith.negf %694 : vector<8x128xf32>
    %696 = math.exp %695 : vector<8x128xf32>
    %cst_395 = arith.constant 1.000000e+00 : f32
    %697 = vector.broadcast %cst_395 : f32 to vector<8x128xf32>
    %698 = arith.addf %697, %696 : vector<8x128xf32>
    %699 = arith.divf %697, %698 : vector<8x128xf32>
    %700 = arith.mulf %691, %670 : vector<8x128xf32>
    %701 = arith.mulf %685, %693 : vector<8x128xf32>
    %702 = arith.addf %700, %701 : vector<8x128xf32>
    %703 = math.tanh %702 : vector<8x128xf32>
    %704 = arith.mulf %699, %703 : vector<8x128xf32>
    %705 = arith.select %663, %702, %670 : vector<8x128xi1>, vector<8x128xf32>
    %c0_396 = arith.constant 0 : index
    %c0_397 = arith.constant 0 : index
    %c0_398 = arith.constant 0 : index
    %706 = vector.load %arg8[%c0_396, %c0_397, %c0_398] : memref<2x8x128xf32, #tpu.memory_space<vmem>>, vector<1x8x128xf32>
    %707 = vector.shape_cast %706 : vector<1x8x128xf32> to vector<8x128xf32>
    %708 = vector.shape_cast %705 : vector<8x128xf32> to vector<1x8x128xf32>
    tpu.vector_store %arg8[%c0_396, %c0_397, %c0_398], %708 {strides = array<i32>} : memref<2x8x128xf32, #tpu.memory_space<vmem>>, vector<1x8x128xf32>,
    %709 = arith.select %663, %704, %668 : vector<8x128xi1>, vector<8x128xf32>
    %c0_399 = arith.constant 0 : index
    %c0_400 = arith.constant 0 : index
    %c0_401 = arith.constant 0 : index
    %710 = vector.load %arg7[%c0_399, %c0_400, %c0_401] : memref<2x8x128xf32, #tpu.memory_space<vmem>>, vector<1x8x128xf32>
    %711 = vector.shape_cast %710 : vector<1x8x128xf32> to vector<8x128xf32>
    %712 = vector.shape_cast %709 : vector<8x128xf32> to vector<1x8x128xf32>
    tpu.vector_store %arg7[%c0_399, %c0_400, %c0_401], %712 {strides = array<i32>} : memref<2x8x128xf32, #tpu.memory_space<vmem>>, vector<1x8x128xf32>,
    %cst_402 = arith.constant 0.000000e+00 : f32
    %713 = vector.broadcast %cst_402 : f32 to vector<8x128xf32>
    %714 = arith.select %663, %704, %713 : vector<8x128xi1>, vector<8x128xf32>
    %c1_403 = arith.constant 1 : index
    %c0_404 = arith.constant 0 : index
    %c0_405 = arith.constant 0 : index
    %715 = vector.load %arg7[%c1_403, %c0_404, %c0_405] : memref<2x8x128xf32, #tpu.memory_space<vmem>>, vector<1x8x128xf32>
    %716 = vector.shape_cast %715 : vector<1x8x128xf32> to vector<8x128xf32>
    %c1_406 = arith.constant 1 : index
    %c0_407 = arith.constant 0 : index
    %c0_408 = arith.constant 0 : index
    %717 = vector.load %arg8[%c1_406, %c0_407, %c0_408] : memref<2x8x128xf32, #tpu.memory_space<vmem>>, vector<1x8x128xf32>
    %718 = vector.shape_cast %717 : vector<1x8x128xf32> to vector<8x128xf32>
    %c0_409 = arith.constant 0 : index
    %c0_410 = arith.constant 0 : index
    %719 = vector.load %arg9[%c0_409, %c0_410] : memref<8x256xf32, #tpu.memory_space<vmem>>, vector<8x128xf32>
    tpu.vector_store %arg9[%c0_409, %c0_410], %714 {strides = array<i32>} : memref<8x256xf32, #tpu.memory_space<vmem>>, vector<8x128xf32>,
    %c0_411 = arith.constant 0 : index
    %c128_412 = arith.constant 128 : index
    %720 = vector.load %arg9[%c0_411, %c128_412] : memref<8x256xf32, #tpu.memory_space<vmem>>, vector<8x128xf32>
    tpu.vector_store %arg9[%c0_411, %c128_412], %716 {strides = array<i32>} : memref<8x256xf32, #tpu.memory_space<vmem>>, vector<8x128xf32>,
    %c0_413 = arith.constant 0 : index
    %c0_414 = arith.constant 0 : index
    %721 = vector.load %arg9[%c0_413, %c0_414] : memref<8x256xf32, #tpu.memory_space<vmem>>, vector<8x256xf32>
    %c1_415 = arith.constant 1 : index
    %c0_416 = arith.constant 0 : index
    %c0_417 = arith.constant 0 : index
    %722 = vector.load %arg4[%c1_415, %c0_416, %c0_417] : memref<2x256x512xf32, #tpu.memory_space<vmem>>, vector<1x256x512xf32>
    %723 = vector.shape_cast %722 : vector<1x256x512xf32> to vector<256x512xf32>
    %cst_418 = arith.constant dense<0.000000e+00> : vector<8x512xf32>
    %724 = tpu.matmul %721, %723, %cst_418 {dimension_numbers = #tpu.dot_dimension_numbers<[1], [0], [0], [1], [0, 0, 1, 1], [], []>} : vector<8x256xf32>, vector<256x512xf32>, vector<8x512xf32> -> vector<8x512xf32>
    %c1_419 = arith.constant 1 : index
    %c0_420 = arith.constant 0 : index
    %c0_421 = arith.constant 0 : index
    %725 = vector.load %arg10[%c1_419, %c0_420, %c0_421] : memref<2x8x512xf32, #tpu.memory_space<vmem>>, vector<1x8x512xf32>
    %726 = vector.shape_cast %725 : vector<1x8x512xf32> to vector<8x512xf32>
    %727 = arith.addf %724, %726 : vector<8x512xf32>
    %728 = vector.extract_strided_slice %727 {offsets = [0, 0], sizes = [8, 128], strides = [1, 1]} : vector<8x512xf32> to vector<8x128xf32>
    %729 = arith.negf %728 : vector<8x128xf32>
    %730 = math.exp %729 : vector<8x128xf32>
    %cst_422 = arith.constant 1.000000e+00 : f32
    %731 = vector.broadcast %cst_422 : f32 to vector<8x128xf32>
    %732 = arith.addf %731, %730 : vector<8x128xf32>
    %733 = arith.divf %731, %732 : vector<8x128xf32>
    %734 = vector.extract_strided_slice %727 {offsets = [0, 128], sizes = [8, 128], strides = [1, 1]} : vector<8x512xf32> to vector<8x128xf32>
    %735 = arith.negf %734 : vector<8x128xf32>
    %736 = math.exp %735 : vector<8x128xf32>
    %cst_423 = arith.constant 1.000000e+00 : f32
    %737 = vector.broadcast %cst_423 : f32 to vector<8x128xf32>
    %738 = arith.addf %737, %736 : vector<8x128xf32>
    %739 = arith.divf %737, %738 : vector<8x128xf32>
    %740 = vector.extract_strided_slice %727 {offsets = [0, 256], sizes = [8, 128], strides = [1, 1]} : vector<8x512xf32> to vector<8x128xf32>
    %741 = math.tanh %740 : vector<8x128xf32>
    %742 = vector.extract_strided_slice %727 {offsets = [0, 384], sizes = [8, 128], strides = [1, 1]} : vector<8x512xf32> to vector<8x128xf32>
    %743 = arith.negf %742 : vector<8x128xf32>
    %744 = math.exp %743 : vector<8x128xf32>
    %cst_424 = arith.constant 1.000000e+00 : f32
    %745 = vector.broadcast %cst_424 : f32 to vector<8x128xf32>
    %746 = arith.addf %745, %744 : vector<8x128xf32>
    %747 = arith.divf %745, %746 : vector<8x128xf32>
    %748 = arith.mulf %739, %718 : vector<8x128xf32>
    %749 = arith.mulf %733, %741 : vector<8x128xf32>
    %750 = arith.addf %748, %749 : vector<8x128xf32>
    %751 = math.tanh %750 : vector<8x128xf32>
    %752 = arith.mulf %747, %751 : vector<8x128xf32>
    %753 = arith.select %663, %750, %718 : vector<8x128xi1>, vector<8x128xf32>
    %c1_425 = arith.constant 1 : index
    %c0_426 = arith.constant 0 : index
    %c0_427 = arith.constant 0 : index
    %754 = vector.load %arg8[%c1_425, %c0_426, %c0_427] : memref<2x8x128xf32, #tpu.memory_space<vmem>>, vector<1x8x128xf32>
    %755 = vector.shape_cast %754 : vector<1x8x128xf32> to vector<8x128xf32>
    %756 = vector.shape_cast %753 : vector<8x128xf32> to vector<1x8x128xf32>
    tpu.vector_store %arg8[%c1_425, %c0_426, %c0_427], %756 {strides = array<i32>} : memref<2x8x128xf32, #tpu.memory_space<vmem>>, vector<1x8x128xf32>,
    %757 = arith.select %663, %752, %716 : vector<8x128xi1>, vector<8x128xf32>
    %c1_428 = arith.constant 1 : index
    %c0_429 = arith.constant 0 : index
    %c0_430 = arith.constant 0 : index
    %758 = vector.load %arg7[%c1_428, %c0_429, %c0_430] : memref<2x8x128xf32, #tpu.memory_space<vmem>>, vector<1x8x128xf32>
    %759 = vector.shape_cast %758 : vector<1x8x128xf32> to vector<8x128xf32>
    %760 = vector.shape_cast %757 : vector<8x128xf32> to vector<1x8x128xf32>
    tpu.vector_store %arg7[%c1_428, %c0_429, %c0_430], %760 {strides = array<i32>} : memref<2x8x128xf32, #tpu.memory_space<vmem>>, vector<1x8x128xf32>,
    %cst_431 = arith.constant 0.000000e+00 : f32
    %761 = vector.broadcast %cst_431 : f32 to vector<8x128xf32>
    %762 = arith.select %663, %752, %761 : vector<8x128xi1>, vector<8x128xf32>
    %763 = vector.extract_strided_slice %762 {offsets = [0, 0], sizes = [8, 32], strides = [1, 1]} : vector<8x128xf32> to vector<8x32xf32>
    %764 = arith.index_cast %c6_i32 : i32 to index
    %c0_432 = arith.constant 0 : index
    %c0_433 = arith.constant 0 : index
    %765 = vector.load %arg6[%764, %c0_432, %c0_433] : memref<8x8x32xf32, #tpu.memory_space<vmem>>, vector<1x8x32xf32>
    %766 = vector.shape_cast %765 : vector<1x8x32xf32> to vector<8x32xf32>
    %767 = vector.shape_cast %763 : vector<8x32xf32> to vector<1x8x32xf32>
    tpu.vector_store %arg6[%764, %c0_432, %c0_433], %767 {strides = array<i32>} : memref<8x8x32xf32, #tpu.memory_space<vmem>>, vector<1x8x32xf32>,
    %c7_i32 = arith.constant 7 : i32
    %768 = arith.addi %4, %c7_i32 : i32
    %769 = vector.broadcast %768 : i32 to vector<8x1xi32>
    %770 = arith.cmpi sgt, %3, %769 : vector<8x1xi32>
    %771 = vector.shape_cast %770 : vector<8x1xi1> to vector<8x1xi1>
    %772 = vector.broadcast %771 : vector<8x1xi1> to vector<8x128xi1>
    %773 = arith.index_cast %c7_i32 : i32 to index
    %c0_434 = arith.constant 0 : index
    %c0_435 = arith.constant 0 : index
    %774 = vector.load %arg2[%773, %c0_434, %c0_435] : memref<8x8x128xf32, #tpu.memory_space<vmem>>, vector<1x8x128xf32>
    %775 = vector.shape_cast %774 : vector<1x8x128xf32> to vector<8x128xf32>
    %c0_436 = arith.constant 0 : index
    %c0_437 = arith.constant 0 : index
    %c0_438 = arith.constant 0 : index
    %776 = vector.load %arg7[%c0_436, %c0_437, %c0_438] : memref<2x8x128xf32, #tpu.memory_space<vmem>>, vector<1x8x128xf32>
    %777 = vector.shape_cast %776 : vector<1x8x128xf32> to vector<8x128xf32>
    %c0_439 = arith.constant 0 : index
    %c0_440 = arith.constant 0 : index
    %c0_441 = arith.constant 0 : index
    %778 = vector.load %arg8[%c0_439, %c0_440, %c0_441] : memref<2x8x128xf32, #tpu.memory_space<vmem>>, vector<1x8x128xf32>
    %779 = vector.shape_cast %778 : vector<1x8x128xf32> to vector<8x128xf32>
    %c0_442 = arith.constant 0 : index
    %c0_443 = arith.constant 0 : index
    %780 = vector.load %arg9[%c0_442, %c0_443] : memref<8x256xf32, #tpu.memory_space<vmem>>, vector<8x128xf32>
    tpu.vector_store %arg9[%c0_442, %c0_443], %775 {strides = array<i32>} : memref<8x256xf32, #tpu.memory_space<vmem>>, vector<8x128xf32>,
    %c0_444 = arith.constant 0 : index
    %c128_445 = arith.constant 128 : index
    %781 = vector.load %arg9[%c0_444, %c128_445] : memref<8x256xf32, #tpu.memory_space<vmem>>, vector<8x128xf32>
    tpu.vector_store %arg9[%c0_444, %c128_445], %777 {strides = array<i32>} : memref<8x256xf32, #tpu.memory_space<vmem>>, vector<8x128xf32>,
    %c0_446 = arith.constant 0 : index
    %c0_447 = arith.constant 0 : index
    %782 = vector.load %arg9[%c0_446, %c0_447] : memref<8x256xf32, #tpu.memory_space<vmem>>, vector<8x256xf32>
    %c0_448 = arith.constant 0 : index
    %c0_449 = arith.constant 0 : index
    %c0_450 = arith.constant 0 : index
    %783 = vector.load %arg4[%c0_448, %c0_449, %c0_450] : memref<2x256x512xf32, #tpu.memory_space<vmem>>, vector<1x256x512xf32>
    %784 = vector.shape_cast %783 : vector<1x256x512xf32> to vector<256x512xf32>
    %cst_451 = arith.constant dense<0.000000e+00> : vector<8x512xf32>
    %785 = tpu.matmul %782, %784, %cst_451 {dimension_numbers = #tpu.dot_dimension_numbers<[1], [0], [0], [1], [0, 0, 1, 1], [], []>} : vector<8x256xf32>, vector<256x512xf32>, vector<8x512xf32> -> vector<8x512xf32>
    %c0_452 = arith.constant 0 : index
    %c0_453 = arith.constant 0 : index
    %c0_454 = arith.constant 0 : index
    %786 = vector.load %arg10[%c0_452, %c0_453, %c0_454] : memref<2x8x512xf32, #tpu.memory_space<vmem>>, vector<1x8x512xf32>
    %787 = vector.shape_cast %786 : vector<1x8x512xf32> to vector<8x512xf32>
    %788 = arith.addf %785, %787 : vector<8x512xf32>
    %789 = vector.extract_strided_slice %788 {offsets = [0, 0], sizes = [8, 128], strides = [1, 1]} : vector<8x512xf32> to vector<8x128xf32>
    %790 = arith.negf %789 : vector<8x128xf32>
    %791 = math.exp %790 : vector<8x128xf32>
    %cst_455 = arith.constant 1.000000e+00 : f32
    %792 = vector.broadcast %cst_455 : f32 to vector<8x128xf32>
    %793 = arith.addf %792, %791 : vector<8x128xf32>
    %794 = arith.divf %792, %793 : vector<8x128xf32>
    %795 = vector.extract_strided_slice %788 {offsets = [0, 128], sizes = [8, 128], strides = [1, 1]} : vector<8x512xf32> to vector<8x128xf32>
    %796 = arith.negf %795 : vector<8x128xf32>
    %797 = math.exp %796 : vector<8x128xf32>
    %cst_456 = arith.constant 1.000000e+00 : f32
    %798 = vector.broadcast %cst_456 : f32 to vector<8x128xf32>
    %799 = arith.addf %798, %797 : vector<8x128xf32>
    %800 = arith.divf %798, %799 : vector<8x128xf32>
    %801 = vector.extract_strided_slice %788 {offsets = [0, 256], sizes = [8, 128], strides = [1, 1]} : vector<8x512xf32> to vector<8x128xf32>
    %802 = math.tanh %801 : vector<8x128xf32>
    %803 = vector.extract_strided_slice %788 {offsets = [0, 384], sizes = [8, 128], strides = [1, 1]} : vector<8x512xf32> to vector<8x128xf32>
    %804 = arith.negf %803 : vector<8x128xf32>
    %805 = math.exp %804 : vector<8x128xf32>
    %cst_457 = arith.constant 1.000000e+00 : f32
    %806 = vector.broadcast %cst_457 : f32 to vector<8x128xf32>
    %807 = arith.addf %806, %805 : vector<8x128xf32>
    %808 = arith.divf %806, %807 : vector<8x128xf32>
    %809 = arith.mulf %800, %779 : vector<8x128xf32>
    %810 = arith.mulf %794, %802 : vector<8x128xf32>
    %811 = arith.addf %809, %810 : vector<8x128xf32>
    %812 = math.tanh %811 : vector<8x128xf32>
    %813 = arith.mulf %808, %812 : vector<8x128xf32>
    %814 = arith.select %772, %811, %779 : vector<8x128xi1>, vector<8x128xf32>
    %c0_458 = arith.constant 0 : index
    %c0_459 = arith.constant 0 : index
    %c0_460 = arith.constant 0 : index
    %815 = vector.load %arg8[%c0_458, %c0_459, %c0_460] : memref<2x8x128xf32, #tpu.memory_space<vmem>>, vector<1x8x128xf32>
    %816 = vector.shape_cast %815 : vector<1x8x128xf32> to vector<8x128xf32>
    %817 = vector.shape_cast %814 : vector<8x128xf32> to vector<1x8x128xf32>
    tpu.vector_store %arg8[%c0_458, %c0_459, %c0_460], %817 {strides = array<i32>} : memref<2x8x128xf32, #tpu.memory_space<vmem>>, vector<1x8x128xf32>,
    %818 = arith.select %772, %813, %777 : vector<8x128xi1>, vector<8x128xf32>
    %c0_461 = arith.constant 0 : index
    %c0_462 = arith.constant 0 : index
    %c0_463 = arith.constant 0 : index
    %819 = vector.load %arg7[%c0_461, %c0_462, %c0_463] : memref<2x8x128xf32, #tpu.memory_space<vmem>>, vector<1x8x128xf32>
    %820 = vector.shape_cast %819 : vector<1x8x128xf32> to vector<8x128xf32>
    %821 = vector.shape_cast %818 : vector<8x128xf32> to vector<1x8x128xf32>
    tpu.vector_store %arg7[%c0_461, %c0_462, %c0_463], %821 {strides = array<i32>} : memref<2x8x128xf32, #tpu.memory_space<vmem>>, vector<1x8x128xf32>,
    %cst_464 = arith.constant 0.000000e+00 : f32
    %822 = vector.broadcast %cst_464 : f32 to vector<8x128xf32>
    %823 = arith.select %772, %813, %822 : vector<8x128xi1>, vector<8x128xf32>
    %c1_465 = arith.constant 1 : index
    %c0_466 = arith.constant 0 : index
    %c0_467 = arith.constant 0 : index
    %824 = vector.load %arg7[%c1_465, %c0_466, %c0_467] : memref<2x8x128xf32, #tpu.memory_space<vmem>>, vector<1x8x128xf32>
    %825 = vector.shape_cast %824 : vector<1x8x128xf32> to vector<8x128xf32>
    %c1_468 = arith.constant 1 : index
    %c0_469 = arith.constant 0 : index
    %c0_470 = arith.constant 0 : index
    %826 = vector.load %arg8[%c1_468, %c0_469, %c0_470] : memref<2x8x128xf32, #tpu.memory_space<vmem>>, vector<1x8x128xf32>
    %827 = vector.shape_cast %826 : vector<1x8x128xf32> to vector<8x128xf32>
    %c0_471 = arith.constant 0 : index
    %c0_472 = arith.constant 0 : index
    %828 = vector.load %arg9[%c0_471, %c0_472] : memref<8x256xf32, #tpu.memory_space<vmem>>, vector<8x128xf32>
    tpu.vector_store %arg9[%c0_471, %c0_472], %823 {strides = array<i32>} : memref<8x256xf32, #tpu.memory_space<vmem>>, vector<8x128xf32>,
    %c0_473 = arith.constant 0 : index
    %c128_474 = arith.constant 128 : index
    %829 = vector.load %arg9[%c0_473, %c128_474] : memref<8x256xf32, #tpu.memory_space<vmem>>, vector<8x128xf32>
    tpu.vector_store %arg9[%c0_473, %c128_474], %825 {strides = array<i32>} : memref<8x256xf32, #tpu.memory_space<vmem>>, vector<8x128xf32>,
    %c0_475 = arith.constant 0 : index
    %c0_476 = arith.constant 0 : index
    %830 = vector.load %arg9[%c0_475, %c0_476] : memref<8x256xf32, #tpu.memory_space<vmem>>, vector<8x256xf32>
    %c1_477 = arith.constant 1 : index
    %c0_478 = arith.constant 0 : index
    %c0_479 = arith.constant 0 : index
    %831 = vector.load %arg4[%c1_477, %c0_478, %c0_479] : memref<2x256x512xf32, #tpu.memory_space<vmem>>, vector<1x256x512xf32>
    %832 = vector.shape_cast %831 : vector<1x256x512xf32> to vector<256x512xf32>
    %cst_480 = arith.constant dense<0.000000e+00> : vector<8x512xf32>
    %833 = tpu.matmul %830, %832, %cst_480 {dimension_numbers = #tpu.dot_dimension_numbers<[1], [0], [0], [1], [0, 0, 1, 1], [], []>} : vector<8x256xf32>, vector<256x512xf32>, vector<8x512xf32> -> vector<8x512xf32>
    %c1_481 = arith.constant 1 : index
    %c0_482 = arith.constant 0 : index
    %c0_483 = arith.constant 0 : index
    %834 = vector.load %arg10[%c1_481, %c0_482, %c0_483] : memref<2x8x512xf32, #tpu.memory_space<vmem>>, vector<1x8x512xf32>
    %835 = vector.shape_cast %834 : vector<1x8x512xf32> to vector<8x512xf32>
    %836 = arith.addf %833, %835 : vector<8x512xf32>
    %837 = vector.extract_strided_slice %836 {offsets = [0, 0], sizes = [8, 128], strides = [1, 1]} : vector<8x512xf32> to vector<8x128xf32>
    %838 = arith.negf %837 : vector<8x128xf32>
    %839 = math.exp %838 : vector<8x128xf32>
    %cst_484 = arith.constant 1.000000e+00 : f32
    %840 = vector.broadcast %cst_484 : f32 to vector<8x128xf32>
    %841 = arith.addf %840, %839 : vector<8x128xf32>
    %842 = arith.divf %840, %841 : vector<8x128xf32>
    %843 = vector.extract_strided_slice %836 {offsets = [0, 128], sizes = [8, 128], strides = [1, 1]} : vector<8x512xf32> to vector<8x128xf32>
    %844 = arith.negf %843 : vector<8x128xf32>
    %845 = math.exp %844 : vector<8x128xf32>
    %cst_485 = arith.constant 1.000000e+00 : f32
    %846 = vector.broadcast %cst_485 : f32 to vector<8x128xf32>
    %847 = arith.addf %846, %845 : vector<8x128xf32>
    %848 = arith.divf %846, %847 : vector<8x128xf32>
    %849 = vector.extract_strided_slice %836 {offsets = [0, 256], sizes = [8, 128], strides = [1, 1]} : vector<8x512xf32> to vector<8x128xf32>
    %850 = math.tanh %849 : vector<8x128xf32>
    %851 = vector.extract_strided_slice %836 {offsets = [0, 384], sizes = [8, 128], strides = [1, 1]} : vector<8x512xf32> to vector<8x128xf32>
    %852 = arith.negf %851 : vector<8x128xf32>
    %853 = math.exp %852 : vector<8x128xf32>
    %cst_486 = arith.constant 1.000000e+00 : f32
    %854 = vector.broadcast %cst_486 : f32 to vector<8x128xf32>
    %855 = arith.addf %854, %853 : vector<8x128xf32>
    %856 = arith.divf %854, %855 : vector<8x128xf32>
    %857 = arith.mulf %848, %827 : vector<8x128xf32>
    %858 = arith.mulf %842, %850 : vector<8x128xf32>
    %859 = arith.addf %857, %858 : vector<8x128xf32>
    %860 = math.tanh %859 : vector<8x128xf32>
    %861 = arith.mulf %856, %860 : vector<8x128xf32>
    %862 = arith.select %772, %859, %827 : vector<8x128xi1>, vector<8x128xf32>
    %c1_487 = arith.constant 1 : index
    %c0_488 = arith.constant 0 : index
    %c0_489 = arith.constant 0 : index
    %863 = vector.load %arg8[%c1_487, %c0_488, %c0_489] : memref<2x8x128xf32, #tpu.memory_space<vmem>>, vector<1x8x128xf32>
    %864 = vector.shape_cast %863 : vector<1x8x128xf32> to vector<8x128xf32>
    %865 = vector.shape_cast %862 : vector<8x128xf32> to vector<1x8x128xf32>
    tpu.vector_store %arg8[%c1_487, %c0_488, %c0_489], %865 {strides = array<i32>} : memref<2x8x128xf32, #tpu.memory_space<vmem>>, vector<1x8x128xf32>,
    %866 = arith.select %772, %861, %825 : vector<8x128xi1>, vector<8x128xf32>
    %c1_490 = arith.constant 1 : index
    %c0_491 = arith.constant 0 : index
    %c0_492 = arith.constant 0 : index
    %867 = vector.load %arg7[%c1_490, %c0_491, %c0_492] : memref<2x8x128xf32, #tpu.memory_space<vmem>>, vector<1x8x128xf32>
    %868 = vector.shape_cast %867 : vector<1x8x128xf32> to vector<8x128xf32>
    %869 = vector.shape_cast %866 : vector<8x128xf32> to vector<1x8x128xf32>
    tpu.vector_store %arg7[%c1_490, %c0_491, %c0_492], %869 {strides = array<i32>} : memref<2x8x128xf32, #tpu.memory_space<vmem>>, vector<1x8x128xf32>,
    %cst_493 = arith.constant 0.000000e+00 : f32
    %870 = vector.broadcast %cst_493 : f32 to vector<8x128xf32>
    %871 = arith.select %772, %861, %870 : vector<8x128xi1>, vector<8x128xf32>
    %872 = vector.extract_strided_slice %871 {offsets = [0, 0], sizes = [8, 32], strides = [1, 1]} : vector<8x128xf32> to vector<8x32xf32>
    %873 = arith.index_cast %c7_i32 : i32 to index
    %c0_494 = arith.constant 0 : index
    %c0_495 = arith.constant 0 : index
    %874 = vector.load %arg6[%873, %c0_494, %c0_495] : memref<8x8x32xf32, #tpu.memory_space<vmem>>, vector<1x8x32xf32>
    %875 = vector.shape_cast %874 : vector<1x8x32xf32> to vector<8x32xf32>
    %876 = vector.shape_cast %872 : vector<8x32xf32> to vector<1x8x32xf32>
    tpu.vector_store %arg6[%873, %c0_494, %c0_495], %876 {strides = array<i32>} : memref<8x8x32xf32, #tpu.memory_space<vmem>>, vector<1x8x32xf32>,
    %c8_i32_496 = arith.constant 8 : i32
    return
  }
  func.func @transform_0(%arg0: i32, %arg1: i32) -> (i32, i32, i32) {
    %c0_i32 = arith.constant 0 : i32
    %c0_i32_0 = arith.constant 0 : i32
    return %arg1, %arg0, %c0_i32 : i32, i32, i32
  }
  func.func @transform_1(%arg0: i32, %arg1: i32) -> (i32, i32) {
    %c0_i32 = arith.constant 0 : i32
    %c0_i32_0 = arith.constant 0 : i32
    return %arg0, %c0_i32 : i32, i32
  }
  func.func @transform_2(%arg0: i32, %arg1: i32) -> (i32, i32, i32) {
    %c0_i32 = arith.constant 0 : i32
    %c0_i32_0 = arith.constant 0 : i32
    %c0_i32_1 = arith.constant 0 : i32
    %c0_i32_2 = arith.constant 0 : i32
    return %c0_i32, %c0_i32_0, %c0_i32_1 : i32, i32, i32
  }
  func.func @transform_3(%arg0: i32, %arg1: i32) -> (i32, i32, i32) {
    %c0_i32 = arith.constant 0 : i32
    %c0_i32_0 = arith.constant 0 : i32
    %c0_i32_1 = arith.constant 0 : i32
    %c0_i32_2 = arith.constant 0 : i32
    return %c0_i32, %c0_i32_0, %c0_i32_1 : i32, i32, i32
  }
  func.func @transform_4(%arg0: i32, %arg1: i32) -> (i32, i32, i32) {
    %c0_i32 = arith.constant 0 : i32
    %c0_i32_0 = arith.constant 0 : i32
    return %arg1, %arg0, %c0_i32 : i32, i32, i32
  }
}

</mosaic_0001>

<bundles_post_ra>
// kernel: tpu_custom_call.1
= control target key start
LH: loop header
LB: loop body
LE: loop exit
PB: predicated region body
PF: predicated region fallthrough
CT: control target
= control target key end

     0   :  { %9 = vsyncpa [#allocation7], 0  ;;  %s8181_s0 = inlined_call_operand.hbm [shape: f32[8,8,128], index: 0, kind: input, shape index: {}]   ;;  %s8182_s1 = inlined_call_operand.hbm [shape: s32[8,1], index: 1, kind: input, shape index: {}]   ;;  %s8183_s2 = inlined_call_operand.hbm [shape: f32[2,256,512], index: 2, kind: input, shape index: {}]   ;;  %s8184_s3 = inlined_call_operand.hbm [shape: f32[2,1,512], index: 3, kind: input, shape index: {}]   ;;  %s8185_s4 = inlined_call_operand.hbm [shape: f32[8,8,32], index: 4, kind: output, shape index: {}]  }
   0x1   :  { %10 = vsyncpa [#allocation10], 0 }
   0x2   :  { %11 = vsyncpa [#allocation13], 0 }
   0x3   :  { %12 = vsyncpa [#allocation8], 0  ;;  %s7700_s15 = smov [#allocation9]   ;;  %s7701_s17 = smov [#allocation6]  }
   0x4   :  { %s31_s16 = sshll.u32 %s7700_s15, 4  ;;  %s18_s18 = sshll.u32 %s7701_s17, 4  ;;  %s32_s16 = int_to_ptr.vmem [resolvable:$true] %s31_s16  ;;  %s7738_s18 = int_to_ptr.vmem [resolvable:$true] %s18_s18 }
   0x5   :  { %s7582_s21 = scalar_lea.hbm %s8182_s1, 128 }
   0x6   :  { %p7583_p0 = scmp.ne.s32.totalorder %s8182_s1, %s7582_s21  ;;  %p7586_p1 = scmp.lt.u32.totalorder %s7582_s21, %s8182_s1 }
   0x8   :  { %p7588_p2 = pnand %p7586_p1, %p7583_p0 }
   0xa   :  { %7591 = shalt.err (!%p7588_p2)
}
   0xb   :  { %s7592_s26 = scalar_lea.vmem %s32_s16, 128  ;;  %p7597_p4 = scmp.lt.s32.totalorder %s32_s16, %s32_s16 }
   0xc   :  { %p7593_p3 = scmp.ne.s32.totalorder %s32_s16, %s7592_s26  ;;  %p7598_p5 = scmp.lt.s32.totalorder %s7592_s26, %s7592_s26 }
   0xe   :  { %p7599_p6 = por %p7598_p5, %p7597_p4 }
  0x10   :  { %p7600_p7 = pnand %p7599_p6, %p7593_p3 }
  0x12   :  { %7603 = shalt.err (!%p7600_p7)
}
  0x13   :  { %34 = dma.hbm_to_vmem [thread:$0]  %s8182_s1, 128, %s32_s16, [#allocation10]  }
  0x14   :  { %s7604_s5 = scalar_lea.hbm %s8181_s0, 1024 }
  0x15   :  { %p7605_p8 = scmp.ne.s32.totalorder %s8181_s0, %s7604_s5  ;;  %p7608_p9 = scmp.lt.u32.totalorder %s7604_s5, %s8181_s0 }
  0x17   :  { %p7610_p10 = pnand %p7608_p9, %p7605_p8 }
  0x19   :  { %7613 = shalt.err (!%p7610_p10)
}
  0x1a   :  { %s7614_s10 = scalar_lea.vmem %s7738_s18, 1024  ;;  %p7619_p12 = scmp.lt.s32.totalorder %s7738_s18, %s7738_s18 }
  0x1b   :  { %p7615_p11 = scmp.ne.s32.totalorder %s7738_s18, %s7614_s10  ;;  %p7620_p13 = scmp.lt.s32.totalorder %s7614_s10, %s7614_s10 }
  0x1d   :  { %p7621_p0 = por %p7620_p13, %p7619_p12 }
  0x1f   :  { %p7622_p1 = pnand %p7621_p0, %p7615_p11 }
  0x21   :  { %7625 = shalt.err (!%p7622_p1)
}
  0x22   :  { %s7702_s1 = smov 128   ;;  %s7703_s11 = smov 8  }
  0x23   :  { %24 = dma.hbm_to_vmem [thread:$0]  %s8181_s0, 1024, %s7738_s18, [#allocation7], %s7702_s1, %s7702_s1, %s7703_s11  }
  0x24   :  { %s7704_s14 = smov [#allocation11]   ;;  %s7626_s19 = scalar_lea.hbm %s8183_s2, 32768 }
  0x25   :  { %s40_s15 = sshll.u32 %s7704_s14, 4  ;;  %p7627_p2 = scmp.ne.s32.totalorder %s8183_s2, %s7626_s19  ;;  %s41_s15 = int_to_ptr.vmem [resolvable:$true] %s40_s15 }
  0x26   :  { %p7630_p3 = scmp.lt.u32.totalorder %s7626_s19, %s8183_s2 }
  0x28   :  { %p7632_p4 = pnand %p7630_p3, %p7627_p2 }
  0x2a   :  { %7635 = shalt.err (!%p7632_p4)
}
  0x2b   :  { %s7636_s24 = scalar_lea.vmem %s41_s15, 32768  ;;  %p7641_p6 = scmp.lt.s32.totalorder %s41_s15, %s41_s15 }
  0x2c   :  { %p7637_p5 = scmp.ne.s32.totalorder %s41_s15, %s7636_s24  ;;  %p7642_p7 = scmp.lt.s32.totalorder %s7636_s24, %s7636_s24 }
  0x2e   :  { %p7643_p8 = por %p7642_p7, %p7641_p6 }
  0x30   :  { %p7644_p9 = pnand %p7643_p8, %p7637_p5 }
  0x32   :  { %7647 = shalt.err (!%p7644_p9)
}
  0x33   :  { %s7705_s0 = smov 512   ;;  %s7706_s18 = smov 32  }
  0x34   :  { %46 = dma.hbm_to_vmem [thread:$0]  %s8183_s2, 32768, %s41_s15, [#allocation10], %s7705_s0, %s7705_s0, %s7706_s18  }
  0x35   :  { %s7707_s27 = smov [#allocation12]   ;;  %s7648_s5 = scalar_lea.hbm %s8184_s3, 128 }
  0x36   :  { %s52_s28 = sshll.u32 %s7707_s27, 4  ;;  %p7649_p10 = scmp.ne.s32.totalorder %s8184_s3, %s7648_s5  ;;  %s53_s28 = int_to_ptr.vmem [resolvable:$true] %s52_s28 }
  0x37   :  { %p7652_p11 = scmp.lt.u32.totalorder %s7648_s5, %s8184_s3 }
  0x39   :  { %p7654_p12 = pnand %p7652_p11, %p7649_p10 }
  0x3b   :  { %7657 = shalt.err (!%p7654_p12)
}
  0x3c   :  { %s7658_s10 = scalar_lea.vmem %s53_s28, 128  ;;  %p7663_p0 = scmp.lt.s32.totalorder %s53_s28, %s53_s28 }
  0x3d   :  { %p7659_p13 = scmp.ne.s32.totalorder %s53_s28, %s7658_s10  ;;  %p7664_p1 = scmp.lt.s32.totalorder %s7658_s10, %s7658_s10 }
  0x3f   :  { %p7665_p2 = por %p7664_p1, %p7663_p0 }
  0x41   :  { %p7666_p3 = pnand %p7665_p2, %p7659_p13 }
  0x43   :  { %7669 = shalt.err (!%p7666_p3)
}
  0x44   :  { %s7708_s2 = smov 64   ;;  %s7709_s12 = smov 4  }
  0x45   :  { %58 = dma.hbm_to_vmem [thread:$0]  %s8184_s3, 128, %s53_s28, [#allocation13], %s7708_s2, %s7708_s2, %s7709_s12  }
  0x46   :  { %7692 = dma.done.wait [#allocation7], 1024  }
  0x47   :  { %7693 = vsyncadd [#allocation7], 4294966272 }
  0x48   :  { %7694 = dma.done.wait [#allocation10], 32896  }
  0x49   :  { %7695 = vsyncadd [#allocation10], 4294934400 }
  0x4a   :  { %7696 = dma.done.wait [#allocation13], 128  }
  0x4b   :  { %7697 = vsyncadd [#allocation13], 4294967168  ;;  %v7710_v0 = vmov 0.0   ;;  %v7711_v1 = vmov 0   ;;  %v148_v2 = vld [vmem:[#allocation11 + $0x8] sm:$0xff]  ;;  %v147_v4 = vld [vmem:[#allocation11] sm:$0xff] }
  0x4c   :  { %343 = vmatprep.mubr.f32.mxu0 %v7710_v0  ;;  %414 = vmatprep.mubr.f32.mxu1 %v7710_v0  ;;  %v152_v3 = vld [vmem:[#allocation11 + $0x28] sm:$0xff]  ;;  %v151_v6 = vld [vmem:[#allocation11 + $0x20] sm:$0xff]  ;;  %v150_v20 = vld [vmem:[#allocation11 + $0x18] sm:$0xff]  ;;  %vm763_vm5 = vcmask 261120   ;;  %s7712_s3 = smov [#allocation14]  }
  0x4d   :  { %7323 = vset.pattern.permute.xlu0 %v7711_v1  ;;  %7324 = vset.pattern.permute.xlu1 %v7711_v1  ;;  %v5262_v5 = vpack.c.bf16 %v152_v3, %v148_v2  ;;  %v156_v7 = vld [vmem:[#allocation11 + $0x48] sm:$0xff]  ;;  %v5264_v9 = vpack.c.bf16 %v151_v6, %v147_v4  ;;  %v155_v11 = vld [vmem:[#allocation11 + $0x40] sm:$0xff]  ;;  %v154_v21 = vld [vmem:[#allocation11 + $0x38] sm:$0xff]  ;;  %s5180_s15 = sshll.u32 %s7712_s3, 4  ;;  %s5181_s15 = int_to_ptr.vmem [resolvable:$true] %s5180_s15 }
  0x4e   :  { %v160_v8 = vld [vmem:[#allocation11 + $0x68] sm:$0xff]  ;;  %v159_v12 = vld [vmem:[#allocation11 + $0x60] sm:$0xff]  ;;  %v5326_v23 = vpack.c.bf16 %v154_v21, %v150_v20  ;;  %v149_v24 = vld [vmem:[#allocation11 + $0x10] sm:$0xff]  ;;  %s7670_s16 = scalar_lea.vmem %s5181_s15, 1024  ;;  %p7675_p5 = scmp.lt.s32.totalorder %s5181_s15, %s5181_s15 }
  0x4f   :  { %v5266_v10 = vpack.c.bf16 %v160_v8, %v156_v7  ;;  %v164_v13 = vld [vmem:[#allocation11 + $0x88] sm:$0xff]  ;;  %5263 = vmatprep.subr.bf16.mxu0 %v5262_v5  ;;  %v5268_v15 = vpack.c.bf16 %v159_v12, %v155_v11  ;;  %v163_v16 = vld [vmem:[#allocation11 + $0x80] sm:$0xff]  ;;  %v153_v25 = vld [vmem:[#allocation11 + $0x30] sm:$0xff]  ;;  %p7671_p4 = scmp.ne.s32.totalorder %s5181_s15, %s7670_s16  ;;  %p7676_p6 = scmp.lt.s32.totalorder %s7670_s16, %s7670_s16 }
  0x50   :  { %v168_v14 = vld [vmem:[#allocation11 + $0xa8] sm:$0xff]  ;;  %5265 = vmatpush1.bf16.msra.mxu0 %v5264_v9  ;;  %v167_v17 = vld [vmem:[#allocation11 + $0xa0] sm:$0xff]  ;;  %v5328_v26 = vpack.c.bf16 %v153_v25, %v149_v24  ;;  %5327 = vmatprep.subr.bf16.mxu1 %v5326_v23  ;;  %v158_v28 = vld [vmem:[#allocation11 + $0x58] sm:$0xff] }
  0x51   :  { %5267 = vmatprep.subr.bf16.mxu0 %v5266_v10  ;;  %v5270_v18 = vpack.c.bf16 %v168_v14, %v164_v13  ;;  %v172_v19 = vld [vmem:[#allocation11 + $0xc8] sm:$0xff]  ;;  %v5272_v27 = vpack.c.bf16 %v167_v17, %v163_v16  ;;  %v162_v29 = vld [vmem:[#allocation11 + $0x78] sm:$0xff]  ;;  %v157_v30 = vld [vmem:[#allocation11 + $0x50] sm:$0xff]  ;;  %p7677_p7 = por %p7676_p6, %p7675_p5 }
  0x52   :  { %v176_v22 = vld [vmem:[#allocation11 + $0xe8] sm:$0xff]  ;;  %v171_v32 = vld [vmem:[#allocation11 + $0xc0] sm:$0xff]  ;;  %5329 = vmatpush1.bf16.msra.mxu1 %v5328_v26  ;;  %v5330_v34 = vpack.c.bf16 %v162_v29, %v158_v28  ;;  %v161_v35 = vld [vmem:[#allocation11 + $0x70] sm:$0xff] }
  0x53   :  { %v5274_v31 = vpack.c.bf16 %v176_v22, %v172_v19  ;;  %v175_v33 = vld [vmem:[#allocation11 + $0xe0] sm:$0xff]  ;;  %v180_v36 = vld [vmem:[#allocation11 + $0x108] sm:$0xff]  ;;  %v5332_v38 = vpack.c.bf16 %v161_v35, %v157_v30  ;;  %v166_v39 = vld [vmem:[#allocation11 + $0x98] sm:$0xff]  ;;  %p7678_p8 = pnand %p7677_p7, %p7671_p4 }
  0x54   :  { %5269 = vmatpush1.bf16.msra.mxu0 %v5268_v15  ;;  %v184_v37 = vld [vmem:[#allocation11 + $0x128] sm:$0xff]  ;;  %5331 = vmatprep.subr.bf16.mxu1 %v5330_v34  ;;  %v170_v40 = vld [vmem:[#allocation11 + $0xb8] sm:$0xff]  ;;  %v165_v41 = vld [vmem:[#allocation11 + $0x90] sm:$0xff]  ;;  %v5276_v43 = vpack.c.bf16 %v175_v33, %v171_v32 }
  0x55   :  { %5271 = vmatprep.subr.bf16.mxu0 %v5270_v18  ;;  %v169_v42 = vld [vmem:[#allocation11 + $0xb0] sm:$0xff]  ;;  %v179_v44 = vld [vmem:[#allocation11 + $0x100] sm:$0xff]  ;;  %v5334_v46 = vpack.c.bf16 %v170_v40, %v166_v39  ;;  %v5278_v47 = vpack.c.bf16 %v184_v37, %v180_v36  ;;  %v188_v48 = vld [vmem:[#allocation11 + $0x148] sm:$0xff] }
  0x56   :  { %v183_v45 = vld [vmem:[#allocation11 + $0x120] sm:$0xff]  ;;  %5333 = vmatpush1.bf16.msra.mxu1 %v5332_v38  ;;  %v5336_v49 = vpack.c.bf16 %v169_v42, %v165_v41  ;;  %v174_v50 = vld [vmem:[#allocation11 + $0xd8] sm:$0xff]  ;;  %v192_v52 = vld [vmem:[#allocation11 + $0x168] sm:$0xff] }
  0x57   :  { %v178_v51 = vld [vmem:[#allocation11 + $0xf8] sm:$0xff]  ;;  %5335 = vmatprep.subr.bf16.mxu1 %v5334_v46  ;;  %v173_v54 = vld [vmem:[#allocation11 + $0xd0] sm:$0xff]  ;;  %v5280_v56 = vpack.c.bf16 %v183_v45, %v179_v44  ;;  %v5282_v59 = vpack.c.bf16 %v192_v52, %v188_v48  ;;  %v187_v60 = vld [vmem:[#allocation11 + $0x140] sm:$0xff] }
  0x58   :  { %5273 = vmatpush1.bf16.msra.mxu0 %v5272_v27  ;;  %v5338_v53 = vpack.c.bf16 %v178_v51, %v174_v50  ;;  %v177_v55 = vld [vmem:[#allocation11 + $0xf0] sm:$0xff]  ;;  %v182_v57 = vld [vmem:[#allocation11 + $0x118] sm:$0xff]  ;;  %v191_v61 = vld [vmem:[#allocation11 + $0x160] sm:$0xff] }
  0x59   :  { %5275 = vmatprep.subr.bf16.mxu0 %v5274_v31  ;;  %v186_v58 = vld [vmem:[#allocation11 + $0x138] sm:$0xff]  ;;  %v196_v62 = vld [vmem:[#allocation11 + $0x188] sm:$0xff]  ;;  %v5340_v63 = vpack.c.bf16 %v177_v55, %v173_v54  ;;  %v181_v4 = vld [vmem:[#allocation11 + $0x110] sm:$0xff]  ;;  %v5284_v8 = vpack.c.bf16 %v191_v61, %v187_v60 }
  0x5a   :  { %5337 = vmatpush1.bf16.msra.mxu1 %v5336_v49  ;;  %v200_v2 = vld [vmem:[#allocation11 + $0x1a8] sm:$0xff]  ;;  %v5342_v3 = vpack.c.bf16 %v186_v58, %v182_v57  ;;  %v185_v5 = vld [vmem:[#allocation11 + $0x130] sm:$0xff]  ;;  %v190_v6 = vld [vmem:[#allocation11 + $0x158] sm:$0xff] }
  0x5b   :  { %5339 = vmatprep.subr.bf16.mxu1 %v5338_v53  ;;  %v194_v7 = vld [vmem:[#allocation11 + $0x178] sm:$0xff]  ;;  %v5286_v9 = vpack.c.bf16 %v200_v2, %v196_v62  ;;  %v195_v10 = vld [vmem:[#allocation11 + $0x180] sm:$0xff]  ;;  %v204_v12 = vld [vmem:[#allocation11 + $0x1c8] sm:$0xff]  ;;  %v5344_v13 = vpack.c.bf16 %v185_v5, %v181_v4 }
  0x5c   :  { %5277 = vmatpush1.bf16.msra.mxu0 %v5276_v43  ;;  %v199_v11 = vld [vmem:[#allocation11 + $0x1a0] sm:$0xff]  ;;  %v208_v14 = vld [vmem:[#allocation11 + $0x1e8] sm:$0xff]  ;;  %v5346_v15 = vpack.c.bf16 %v194_v7, %v190_v6  ;;  %v189_v16 = vld [vmem:[#allocation11 + $0x150] sm:$0xff] }
  0x5d   :  { %5279 = vmatprep.subr.bf16.mxu0 %v5278_v47  ;;  %v193_v17 = vld [vmem:[#allocation11 + $0x170] sm:$0xff]  ;;  %v198_v18 = vld [vmem:[#allocation11 + $0x198] sm:$0xff]  ;;  %v5288_v20 = vpack.c.bf16 %v199_v11, %v195_v10  ;;  %v5290_v21 = vpack.c.bf16 %v208_v14, %v204_v12  ;;  %v203_v22 = vld [vmem:[#allocation11 + $0x1c0] sm:$0xff] }
  0x5e   :  { %5341 = vmatpush1.bf16.msra.mxu1 %v5340_v63  ;;  %v202_v19 = vld [vmem:[#allocation11 + $0x1b8] sm:$0xff]  ;;  %v207_v23 = vld [vmem:[#allocation11 + $0x1e0] sm:$0xff]  ;;  %v212_v24 = vld [vmem:[#allocation11 + $0x208] sm:$0xff]  ;;  %v5348_v25 = vpack.c.bf16 %v193_v17, %v189_v16 }
  0x5f   :  { %5343 = vmatprep.subr.bf16.mxu1 %v5342_v3  ;;  %v216_v26 = vld [vmem:[#allocation11 + $0x228] sm:$0xff]  ;;  %v5350_v27 = vpack.c.bf16 %v202_v19, %v198_v18  ;;  %v197_v28 = vld [vmem:[#allocation11 + $0x190] sm:$0xff]  ;;  %v206_v30 = vld [vmem:[#allocation11 + $0x1d8] sm:$0xff]  ;;  %v5292_v32 = vpack.c.bf16 %v207_v23, %v203_v22 }
  0x60   :  { %5281 = vmatpush1.bf16.msra.mxu0 %v5280_v56  ;;  %v201_v29 = vld [vmem:[#allocation11 + $0x1b0] sm:$0xff]  ;;  %v210_v31 = vld [vmem:[#allocation11 + $0x1f8] sm:$0xff]  ;;  %v5294_v33 = vpack.c.bf16 %v216_v26, %v212_v24  ;;  %v211_v34 = vld [vmem:[#allocation11 + $0x200] sm:$0xff] }
  0x61   :  { %5283 = vmatprep.subr.bf16.mxu0 %v5282_v59  ;;  %v215_v35 = vld [vmem:[#allocation11 + $0x220] sm:$0xff]  ;;  %v220_v36 = vld [vmem:[#allocation11 + $0x248] sm:$0xff]  ;;  %v5352_v37 = vpack.c.bf16 %v201_v29, %v197_v28  ;;  %v5354_v39 = vpack.c.bf16 %v210_v31, %v206_v30  ;;  %v205_v40 = vld [vmem:[#allocation11 + $0x1d0] sm:$0xff] }
  0x62   :  { %5345 = vmatpush1.bf16.msra.mxu1 %v5344_v13  ;;  %v224_v38 = vld [vmem:[#allocation11 + $0x268] sm:$0xff]  ;;  %v209_v41 = vld [vmem:[#allocation11 + $0x1f0] sm:$0xff]  ;;  %v214_v42 = vld [vmem:[#allocation11 + $0x218] sm:$0xff]  ;;  %v5296_v44 = vpack.c.bf16 %v215_v35, %v211_v34 }
  0x63   :  { %5347 = vmatprep.subr.bf16.mxu1 %v5346_v15  ;;  %v218_v43 = vld [vmem:[#allocation11 + $0x238] sm:$0xff]  ;;  %v5298_v45 = vpack.c.bf16 %v224_v38, %v220_v36  ;;  %v219_v46 = vld [vmem:[#allocation11 + $0x240] sm:$0xff]  ;;  %v228_v48 = vld [vmem:[#allocation11 + $0x288] sm:$0xff]  ;;  %v5356_v49 = vpack.c.bf16 %v209_v41, %v205_v40 }
  0x64   :  { %5285 = vmatpush1.bf16.msra.mxu0 %v5284_v8  ;;  %v223_v47 = vld [vmem:[#allocation11 + $0x260] sm:$0xff]  ;;  %v232_v50 = vld [vmem:[#allocation11 + $0x2a8] sm:$0xff]  ;;  %v5358_v51 = vpack.c.bf16 %v218_v43, %v214_v42  ;;  %v213_v52 = vld [vmem:[#allocation11 + $0x210] sm:$0xff] }
  0x65   :  { %5287 = vmatprep.subr.bf16.mxu0 %v5286_v9  ;;  %v217_v53 = vld [vmem:[#allocation11 + $0x230] sm:$0xff]  ;;  %v222_v54 = vld [vmem:[#allocation11 + $0x258] sm:$0xff]  ;;  %v5300_v56 = vpack.c.bf16 %v223_v47, %v219_v46  ;;  %v5302_v57 = vpack.c.bf16 %v232_v50, %v228_v48  ;;  %v227_v58 = vld [vmem:[#allocation11 + $0x280] sm:$0xff] }
  0x66   :  { %5349 = vmatpush1.bf16.msra.mxu1 %v5348_v25  ;;  %v226_v55 = vld [vmem:[#allocation11 + $0x278] sm:$0xff]  ;;  %v231_v59 = vld [vmem:[#allocation11 + $0x2a0] sm:$0xff]  ;;  %v236_v60 = vld [vmem:[#allocation11 + $0x2c8] sm:$0xff]  ;;  %v5360_v61 = vpack.c.bf16 %v217_v53, %v213_v52 }
  0x67   :  { %5351 = vmatprep.subr.bf16.mxu1 %v5350_v27  ;;  %v240_v62 = vld [vmem:[#allocation11 + $0x2e8] sm:$0xff]  ;;  %v5362_v63 = vpack.c.bf16 %v226_v55, %v222_v54  ;;  %v221_v2 = vld [vmem:[#allocation11 + $0x250] sm:$0xff]  ;;  %v230_v4 = vld [vmem:[#allocation11 + $0x298] sm:$0xff]  ;;  %v5304_v6 = vpack.c.bf16 %v231_v59, %v227_v58 }
  0x68   :  { %5289 = vmatpush1.bf16.msra.mxu0 %v5288_v20  ;;  %v225_v3 = vld [vmem:[#allocation11 + $0x270] sm:$0xff]  ;;  %v234_v5 = vld [vmem:[#allocation11 + $0x2b8] sm:$0xff]  ;;  %v5306_v7 = vpack.c.bf16 %v240_v62, %v236_v60  ;;  %v235_v8 = vld [vmem:[#allocation11 + $0x2c0] sm:$0xff] }
  0x69   :  { %5291 = vmatprep.subr.bf16.mxu0 %v5290_v21  ;;  %v239_v9 = vld [vmem:[#allocation11 + $0x2e0] sm:$0xff]  ;;  %v244_v10 = vld [vmem:[#allocation11 + $0x308] sm:$0xff]  ;;  %v5364_v11 = vpack.c.bf16 %v225_v3, %v221_v2  ;;  %v5366_v13 = vpack.c.bf16 %v234_v5, %v230_v4  ;;  %v229_v14 = vld [vmem:[#allocation11 + $0x290] sm:$0xff] }
  0x6a   :  { %5353 = vmatpush1.bf16.msra.mxu1 %v5352_v37  ;;  %v248_v12 = vld [vmem:[#allocation11 + $0x328] sm:$0xff]  ;;  %v233_v15 = vld [vmem:[#allocation11 + $0x2b0] sm:$0xff]  ;;  %v238_v16 = vld [vmem:[#allocation11 + $0x2d8] sm:$0xff]  ;;  %v5308_v19 = vpack.c.bf16 %v239_v9, %v235_v8 }
  0x6b   :  { %5355 = vmatprep.subr.bf16.mxu1 %v5354_v39  ;;  %v242_v17 = vld [vmem:[#allocation11 + $0x2f8] sm:$0xff]  ;;  %v5310_v20 = vpack.c.bf16 %v248_v12, %v244_v10  ;;  %v243_v21 = vld [vmem:[#allocation11 + $0x300] sm:$0xff]  ;;  %v252_v23 = vld [vmem:[#allocation11 + $0x348] sm:$0xff]  ;;  %v5368_v24 = vpack.c.bf16 %v233_v15, %v229_v14 }
  0x6c   :  { %5293 = vmatpush1.bf16.msra.mxu0 %v5292_v32  ;;  %v131_v18 = vld [vmem:[#allocation9] sm:$0xff]  ;;  %v247_v22 = vld [vmem:[#allocation11 + $0x320] sm:$0xff]  ;;  %v256_v26 = vld [vmem:[#allocation11 + $0x368] sm:$0xff]  ;;  %v5370_v27 = vpack.c.bf16 %v242_v17, %v238_v16 }
  0x6d   :  { %5295 = vmatprep.subr.bf16.mxu0 %v5294_v33  ;;  %vm134_vm0 = vcmp.gt.s32.totalorder %v131_v18, 0  ;;  %vm767_vm1 = vcmp.gt.s32.totalorder %v131_v18, 1  ;;  %v237_v28 = vld [vmem:[#allocation11 + $0x2d0] sm:$0xff]  ;;  %v246_v30 = vld [vmem:[#allocation11 + $0x318] sm:$0xff]  ;;  %v5312_v33 = vpack.c.bf16 %v247_v22, %v243_v21  ;;  %vm2657_vm2 = vcmp.gt.s32.totalorder %v131_v18, 4  ;;  %v251_v35 = vld [vmem:[#allocation11 + $0x340] sm:$0xff] }
  0x6e   :  { %5357 = vmatpush1.bf16.msra.mxu1 %v5356_v49  ;;  %v135_v25 = vsel %vm134_vm0, 1, %v7711_v1  ;;  %v241_v29 = vld [vmem:[#allocation11 + $0x2f0] sm:$0xff]  ;;  %v250_v31 = vld [vmem:[#allocation11 + $0x338] sm:$0xff]  ;;  %v768_v32 = vsel %vm767_vm1, 1, %v7711_v1  ;;  %v5314_v34 = vpack.c.bf16 %v256_v26, %v252_v23  ;;  %v255_v36 = vld [vmem:[#allocation11 + $0x360] sm:$0xff]  ;;  %vm3917_vm3 = vcmp.gt.s32.totalorder %v131_v18, 6 }
  0x6f   :  { %5359 = vmatprep.subr.bf16.mxu1 %v5358_v51  ;;  %137 = vperm.xlu0 %7323, %v135_v25   ;;  %v260_v37 = vld [vmem:[#allocation11 + $0x388] sm:$0xff]  ;;  %v5372_v38 = vpack.c.bf16 %v241_v29, %v237_v28  ;;  %v5374_v40 = vpack.c.bf16 %v250_v31, %v246_v30  ;;  %v245_v41 = vld [vmem:[#allocation11 + $0x310] sm:$0xff]  ;;  %v254_v43 = vld [vmem:[#allocation11 + $0x358] sm:$0xff]  ;;  %v5316_v46 = vpack.c.bf16 %v255_v36, %v251_v35  ;;  %v3918_v58 = vsel %vm3917_vm3, 1, %v7711_v1 }
  0x70   :  { %5297 = vmatpush1.bf16.msra.mxu0 %v5296_v44  ;;  %v264_v39 = vld [vmem:[#allocation11 + $0x3a8] sm:$0xff]  ;;  %v249_v42 = vld [vmem:[#allocation11 + $0x330] sm:$0xff]  ;;  %v258_v44 = vld [vmem:[#allocation11 + $0x378] sm:$0xff] }
  0x71   :  { %5299 = vmatprep.subr.bf16.mxu0 %v5298_v45  ;;  %v2658_v45 = vsel %vm2657_vm2, 1, %v7711_v1  ;;  %v5318_v47 = vpack.c.bf16 %v264_v39, %v260_v37  ;;  %v259_v48 = vld [vmem:[#allocation11 + $0x380] sm:$0xff]  ;;  %v268_v50 = vld [vmem:[#allocation11 + $0x3c8] sm:$0xff]  ;;  %v5376_v51 = vpack.c.bf16 %v249_v42, %v245_v41  ;;  %v5378_v53 = vpack.c.bf16 %v258_v44, %v254_v43  ;;  %v253_v54 = vld [vmem:[#allocation11 + $0x350] sm:$0xff] }
  0x72   :  { %5361 = vmatpush1.bf16.msra.mxu1 %v5360_v61  ;;  %v263_v49 = vld [vmem:[#allocation11 + $0x3a0] sm:$0xff]  ;;  %v272_v52 = vld [vmem:[#allocation11 + $0x3e8] sm:$0xff]  ;;  %v257_v55 = vld [vmem:[#allocation11 + $0x370] sm:$0xff] }
  0x73   :  { %5363 = vmatprep.subr.bf16.mxu1 %v5362_v63  ;;  %770 = vperm.xlu0 %7323, %v768_v32   ;;  %v5320_v59 = vpack.c.bf16 %v263_v49, %v259_v48  ;;  %v5322_v60 = vpack.c.bf16 %v272_v52, %v268_v50  ;;  %v267_v61 = vld [vmem:[#allocation11 + $0x3c0] sm:$0xff]  ;;  %v5380_v63 = vpack.c.bf16 %v257_v55, %v253_v54  ;;  %v261_v2 = vld [vmem:[#allocation11 + $0x390] sm:$0xff]  ;;  %v460_v5 = vld [vmem:[#allocation11 + $0x408] sm:$0xff] }
  0x74   :  { %5301 = vmatpush1.bf16.msra.mxu0 %v5300_v56  ;;  %v262_v56 = vld [vmem:[#allocation11 + $0x398] sm:$0xff]  ;;  %v271_v62 = vld [vmem:[#allocation11 + $0x3e0] sm:$0xff]  ;;  %v265_v4 = vld [vmem:[#allocation11 + $0x3b0] sm:$0xff] }
  0x75   :  { %5303 = vmatprep.subr.bf16.mxu0 %v5302_v57  ;;  %v266_v57 = vld [vmem:[#allocation11 + $0x3b8] sm:$0xff]  ;;  %v5324_v9 = vpack.c.bf16 %v271_v62, %v267_v61  ;;  %v5384_v10 = vpack.c.bf16 %v265_v4, %v261_v2  ;;  %v463_v14 = vld [vmem:[#allocation11 + $0x420] sm:$0xff]  ;;  %v273_v16 = vld [vmem:[#allocation11 + $0x3f0] sm:$0xff] }
  0x76   :  { %5365 = vmatpush1.bf16.msra.mxu1 %v5364_v11  ;;  %v5382_v3 = vpack.c.bf16 %v266_v57, %v262_v56  ;;  %v274_v8 = vld [vmem:[#allocation11 + $0x3f8] sm:$0xff]  ;;  %v269_v11 = vld [vmem:[#allocation11 + $0x3d0] sm:$0xff]  ;;  %v468_v17 = vld [vmem:[#allocation11 + $0x448] sm:$0xff] }
  0x77   :  { %5367 = vmatprep.subr.bf16.mxu1 %v5366_v13  ;;  %2660 = vperm.xlu0 %7323, %v2658_v45   ;;  %v459_v13 = vld [vmem:[#allocation11 + $0x400] sm:$0xff]  ;;  %v472_v18 = vld [vmem:[#allocation11 + $0x468] sm:$0xff]  ;;  %v140_v21 = vld [vmem:[#allocation6] sm:$0xff]  ;;  %v5388_v23 = vpack.c.bf16 %v273_v16, %v269_v11 }
  0x78   :  { %5305 = vmatpush1.bf16.msra.mxu0 %v5304_v6  ;;  %v464_v6 = vld [vmem:[#allocation11 + $0x428] sm:$0xff]  ;;  %v5392_v22 = vpack.c.bf16 %v463_v14, %v459_v13  ;;  %v5394_v25 = vpack.c.bf16 %v472_v18, %v468_v17  ;;  %v467_v26 = vld [vmem:[#allocation11 + $0x440] sm:$0xff]  ;;  %v465_v29 = vld [vmem:[#allocation11 + $0x430] sm:$0xff] }
  0x79   :  { %5307 = vmatprep.subr.bf16.mxu0 %v5306_v7  ;;  %v270_v7 = vld [vmem:[#allocation11 + $0x3d8] sm:$0xff]  ;;  %v5390_v12 = vpack.c.bf16 %v464_v6, %v460_v5  ;;  %v476_v30 = vld [vmem:[#allocation11 + $0x488] sm:$0xff]  ;;  %v469_v36 = vld [vmem:[#allocation11 + $0x450] sm:$0xff] }
  0x7a   :  { %5369 = vmatpush1.bf16.msra.mxu1 %v5368_v24  ;;  %v5386_v15 = vpack.c.bf16 %v274_v8, %v270_v7  ;;  %v461_v24 = vld [vmem:[#allocation11 + $0x410] sm:$0xff]  ;;  %v480_v31 = vld [vmem:[#allocation11 + $0x4a8] sm:$0xff]  ;;  %v470_v32 = vld [vmem:[#allocation11 + $0x458] sm:$0xff] }
  0x7b   :  { %5371 = vmatprep.subr.bf16.mxu1 %v5370_v27  ;;  %3920 = vperm.xlu0 %7323, %v3918_v58   ;;  %v471_v27 = vld [vmem:[#allocation11 + $0x460] sm:$0xff]  ;;  %v5456_v35 = vpack.c.bf16 %v465_v29, %v461_v24  ;;  %v5398_v37 = vpack.c.bf16 %v480_v31, %v476_v30  ;;  %v473_v41 = vld [vmem:[#allocation11 + $0x470] sm:$0xff]  ;;  %v484_v42 = vld [vmem:[#allocation11 + $0x4c8] sm:$0xff] }
  0x7c   :  { %5309 = vmatpush1.bf16.msra.mxu0 %v5308_v19  ;;  %v462_v19 = vld [vmem:[#allocation11 + $0x418] sm:$0xff]  ;;  %v479_v39 = vld [vmem:[#allocation11 + $0x4a0] sm:$0xff]  ;;  %v488_v43 = vld [vmem:[#allocation11 + $0x4e8] sm:$0xff] }
  0x7d   :  { %5311 = vmatprep.subr.bf16.mxu0 %v5310_v20  ;;  %v466_v20 = vld [vmem:[#allocation11 + $0x438] sm:$0xff]  ;;  %v477_v48 = vld [vmem:[#allocation11 + $0x490] sm:$0xff]  ;;  %v5402_v49 = vpack.c.bf16 %v488_v43, %v484_v42  ;;  %v483_v50 = vld [vmem:[#allocation11 + $0x4c0] sm:$0xff] }
  0x7e   :  { %5373 = vmatpush1.bf16.msra.mxu1 %v5372_v38  ;;  %v5454_v28 = vpack.c.bf16 %v466_v20, %v462_v19  ;;  %v475_v38 = vld [vmem:[#allocation11 + $0x480] sm:$0xff]  ;;  %v478_v44 = vld [vmem:[#allocation11 + $0x498] sm:$0xff]  ;;  %v492_v54 = vld [vmem:[#allocation11 + $0x508] sm:$0xff] }
  0x7f   :  { %5375 = vmatprep.subr.bf16.mxu1 %v5374_v40  ;;  %v482_v45 = vld [vmem:[#allocation11 + $0x4b8] sm:$0xff]  ;;  %v496_v55 = vld [vmem:[#allocation11 + $0x528] sm:$0xff]  ;;  %v491_v61 = vld [vmem:[#allocation11 + $0x500] sm:$0xff] }
  0x80   :  { %5313 = vmatpush1.bf16.msra.mxu0 %v5312_v33  ;;  %v474_v33 = vld [vmem:[#allocation11 + $0x478] sm:$0xff]  ;;  %v5462_v52 = vpack.c.bf16 %v482_v45, %v478_v44  ;;  %v495_v62 = vld [vmem:[#allocation11 + $0x520] sm:$0xff]  ;;  %v485_v2 = vld [vmem:[#allocation11 + $0x4d0] sm:$0xff] }
  0x81   :  { %5315 = vmatprep.subr.bf16.mxu0 %v5314_v34  ;;  %v5396_v34 = vpack.c.bf16 %v471_v27, %v467_v26  ;;  %v5458_v40 = vpack.c.bf16 %v474_v33, %v470_v32  ;;  %v486_v56 = vld [vmem:[#allocation11 + $0x4d8] sm:$0xff]  ;;  %v5408_v6 = vpack.c.bf16 %v495_v62, %v491_v61  ;;  %v493_v8 = vld [vmem:[#allocation11 + $0x510] sm:$0xff]  ;;  %v500_v11 = vld [vmem:[#allocation11 + $0x548] sm:$0xff] }
  0x82   :  { %5377 = vmatpush1.bf16.msra.mxu1 %v5376_v51  ;;  %v487_v51 = vld [vmem:[#allocation11 + $0x4e0] sm:$0xff]  ;;  %v490_v57 = vld [vmem:[#allocation11 + $0x4f8] sm:$0xff]  ;;  %v501_v19 = vld [vmem:[#allocation11 + $0x550] sm:$0xff] }
  0x83   :  { %5379 = vmatprep.subr.bf16.mxu1 %v5378_v53  ;;  %v481_v53 = vld [vmem:[#allocation11 + $0x4b0] sm:$0xff]  ;;  %v5404_v58 = vpack.c.bf16 %v487_v51, %v483_v50  ;;  %v494_v4 = vld [vmem:[#allocation11 + $0x518] sm:$0xff]  ;;  %v499_v14 = vld [vmem:[#allocation11 + $0x540] sm:$0xff] }
  0x84   :  { %5317 = vmatpush1.bf16.msra.mxu0 %v5316_v46  ;;  %v5400_v46 = vpack.c.bf16 %v479_v39, %v475_v38  ;;  %v498_v5 = vld [vmem:[#allocation11 + $0x538] sm:$0xff]  ;;  %v505_v20 = vld [vmem:[#allocation11 + $0x570] sm:$0xff]  ;;  %v512_v24 = vld [vmem:[#allocation11 + $0x5a8] sm:$0xff] }
  0x85   :  { %5319 = vmatprep.subr.bf16.mxu0 %v5318_v47  ;;  %v5460_v47 = vpack.c.bf16 %v473_v41, %v469_v36  ;;  %v5470_v7 = vpack.c.bf16 %v498_v5, %v494_v4  ;;  %v502_v16 = vld [vmem:[#allocation11 + $0x558] sm:$0xff]  ;;  %v507_v26 = vld [vmem:[#allocation11 + $0x580] sm:$0xff]  ;;  %v509_v31 = vld [vmem:[#allocation11 + $0x590] sm:$0xff] }
  0x86   :  { %5381 = vmatpush1.bf16.msra.mxu1 %v5380_v63  ;;  %v5466_v63 = vpack.c.bf16 %v490_v57, %v486_v56  ;;  %v506_v18 = vld [vmem:[#allocation11 + $0x578] sm:$0xff]  ;;  %v511_v27 = vld [vmem:[#allocation11 + $0x5a0] sm:$0xff]  ;;  %v513_v32 = vld [vmem:[#allocation11 + $0x5b0] sm:$0xff] }
  0x87   :  { %5383 = vmatprep.subr.bf16.mxu1 %v5382_v3  ;;  %v489_v3 = vld [vmem:[#allocation11 + $0x4f0] sm:$0xff]  ;;  %v5416_v29 = vpack.c.bf16 %v511_v27, %v507_v26  ;;  %v514_v30 = vld [vmem:[#allocation11 + $0x5b8] sm:$0xff]  ;;  %v520_v36 = vld [vmem:[#allocation11 + $0x5e8] sm:$0xff] }
  0x88   :  { %5321 = vmatpush1.bf16.msra.mxu0 %v5320_v59  ;;  %v5464_v59 = vpack.c.bf16 %v481_v53, %v477_v48  ;;  %v515_v38 = vld [vmem:[#allocation11 + $0x5c0] sm:$0xff]  ;;  %v522_v42 = vld [vmem:[#allocation11 + $0x5f8] sm:$0xff]  ;;  %v517_v43 = vld [vmem:[#allocation11 + $0x5d0] sm:$0xff] }
  0x89   :  { %5323 = vmatprep.subr.bf16.mxu0 %v5322_v60  ;;  %v5406_v60 = vpack.c.bf16 %v496_v55, %v492_v54  ;;  %v519_v39 = vld [vmem:[#allocation11 + $0x5e0] sm:$0xff]  ;;  %v521_v44 = vld [vmem:[#allocation11 + $0x5f0] sm:$0xff]  ;;  %v528_v48 = vld [vmem:[#allocation11 + $0x628] sm:$0xff] }
  0x8a   :  { %5385 = vmatpush1.bf16.msra.mxu1 %v5384_v10  ;;  %v5420_v41 = vpack.c.bf16 %v519_v39, %v515_v38  ;;  %v523_v50 = vld [vmem:[#allocation11 + $0x600] sm:$0xff]  ;;  %v530_v54 = vld [vmem:[#allocation11 + $0x638] sm:$0xff]  ;;  %v525_v55 = vld [vmem:[#allocation11 + $0x610] sm:$0xff] }
  0x8b   :  { %5387 = vmatprep.subr.bf16.mxu1 %v5386_v15  ;;  %v503_v15 = vld [vmem:[#allocation11 + $0x560] sm:$0xff]  ;;  %v529_v56 = vld [vmem:[#allocation11 + $0x630] sm:$0xff]  ;;  %v538_v4 = vld [vmem:[#allocation11 + $0x678] sm:$0xff] }
  0x8c   :  { %5325 = vmatpush1.bf16.msra.mxu0 %v5324_v9  ;;  %v497_v9 = vld [vmem:[#allocation11 + $0x530] sm:$0xff]  ;;  %v5412_v17 = vpack.c.bf16 %v503_v15, %v499_v14  ;;  %v527_v51 = vld [vmem:[#allocation11 + $0x620] sm:$0xff]  ;;  %v546_v15 = vld [vmem:[#allocation11 + $0x6b8] sm:$0xff] }
  0x8d   :  { %5391 = vmatprep.subr.bf16.mxu0 %v5390_v12  ;;  %v5472_v10 = vpack.c.bf16 %v497_v9, %v493_v8  ;;  %v504_v12 = vld [vmem:[#allocation11 + $0x568] sm:$0xff]  ;;  %v5424_v53 = vpack.c.bf16 %v527_v51, %v523_v50  ;;  %v531_v62 = vld [vmem:[#allocation11 + $0x640] sm:$0xff]  ;;  %v533_v5 = vld [vmem:[#allocation11 + $0x650] sm:$0xff] }
  0x8e   :  { %5389 = vmatpush1.bf16.msra.mxu1 %v5388_v23  ;;  %v5410_v13 = vpack.c.bf16 %v504_v12, %v500_v11  ;;  %v508_v23 = vld [vmem:[#allocation11 + $0x588] sm:$0xff]  ;;  %v539_v11 = vld [vmem:[#allocation11 + $0x680] sm:$0xff]  ;;  %v554_v27 = vld [vmem:[#allocation11 + $0x6f8] sm:$0xff] }
  0x8f   :  { %344 = vmatmul.mubr.f32.vlgmr.msra.gmra.mrb[0].mxu0 %v140_v21  ;;  %5455 = vmatprep.subr.bf16.mxu1 %v5454_v28  ;;  %v510_v28 = vld [vmem:[#allocation11 + $0x598] sm:$0xff]  ;;  %v540_v8 = vld [vmem:[#allocation11 + $0x688] sm:$0xff]  ;;  %v543_v12 = vld [vmem:[#allocation11 + $0x6a0] sm:$0xff] }
  0x90   :  { %5393 = vmatpush1.bf16.msra.mxu0 %v5392_v22  ;;  %656 = vmatprep.mubr.f32.mxu0 %v7710_v0  ;;  %v5476_v22 = vpack.c.bf16 %v505_v20, %v501_v19  ;;  %v5478_v33 = vpack.c.bf16 %v514_v30, %v510_v28  ;;  %v544_v9 = vld [vmem:[#allocation11 + $0x6a8] sm:$0xff]  ;;  %v5432_v14 = vpack.c.bf16 %v543_v12, %v539_v11  ;;  %v549_v28 = vld [vmem:[#allocation11 + $0x6d0] sm:$0xff]  ;;  %v562_v39 = vld [vmem:[#allocation11 + $0x738] sm:$0xff] }
  0x91   :  { %5395 = vmatprep.subr.bf16.mxu0 %v5394_v25  ;;  %415 = vmatmul.mubr.f32.vlgmr.msra.gmra.mrb[0].mxu1 %v140_v21  ;;  %v5474_v21 = vpack.c.bf16 %v506_v18, %v502_v16  ;;  %v5414_v25 = vpack.c.bf16 %v512_v24, %v508_v23  ;;  %v541_v16 = vld [vmem:[#allocation11 + $0x690] sm:$0xff]  ;;  %v548_v20 = vld [vmem:[#allocation11 + $0x6c8] sm:$0xff]  ;;  %v547_v23 = vld [vmem:[#allocation11 + $0x6c0] sm:$0xff] }
  0x92   :  { %5457 = vmatpush1.bf16.msra.mxu1 %v5456_v35  ;;  %727 = vmatprep.mubr.f32.mxu1 %v7710_v0  ;;  %v5468_v0 = vpack.c.bf16 %v489_v3, %v485_v2  ;;  %v516_v35 = vld [vmem:[#allocation11 + $0x5c8] sm:$0xff]  ;;  %v534_v2 = vld [vmem:[#allocation11 + $0x658] sm:$0xff]  ;;  %v551_v24 = vld [vmem:[#allocation11 + $0x6e0] sm:$0xff] }
  0x93   :  { %5459 = vmatprep.subr.bf16.mxu1 %v5458_v40  ;;  %v518_v40 = vld [vmem:[#allocation11 + $0x5d8] sm:$0xff]  ;;  %v5436_v26 = vpack.c.bf16 %v551_v24, %v547_v23  ;;  %v581_v12 = vld [vmem:[#allocation11 + $0x7d0] sm:$0xff]  ;;  %v83_v23 = vlaneseq }
  0x94   :  { %5397 = vmatpush1.bf16.msra.mxu0 %v5396_v34  ;;  %v5480_v34 = vpack.c.bf16 %v513_v32, %v509_v31  ;;  %v5482_v45 = vpack.c.bf16 %v522_v42, %v518_v40  ;;  %v556_v32 = vld [vmem:[#allocation11 + $0x708] sm:$0xff]  ;;  %v557_v40 = vld [vmem:[#allocation11 + $0x710] sm:$0xff]  ;;  %v570_v51 = vld [vmem:[#allocation11 + $0x778] sm:$0xff] }
  0x95   :  { %5399 = vmatprep.subr.bf16.mxu0 %v5398_v37  ;;  %v5418_v37 = vpack.c.bf16 %v520_v36, %v516_v35  ;;  %v555_v35 = vld [vmem:[#allocation11 + $0x700] sm:$0xff]  ;;  %v586_v11 = vld [vmem:[#allocation11 + $0x7f8] sm:$0xff]  ;;  %v7809_v24 = vshrl.u32 %v83_v23, 7  ;;  %v810_v23 = vld [vmem:[#allocation11 + $0xe8] sm:$0xff] }
  0x96   :  { %5461 = vmatpush1.bf16.msra.mxu1 %v5460_v47  ;;  %v524_v47 = vld [vmem:[#allocation11 + $0x608] sm:$0xff]  ;;  %v559_v36 = vld [vmem:[#allocation11 + $0x720] sm:$0xff] }
  0x97   :  { %5463 = vmatprep.subr.bf16.mxu1 %v5462_v52  ;;  %v526_v52 = vld [vmem:[#allocation11 + $0x618] sm:$0xff]  ;;  %v5440_v38 = vpack.c.bf16 %v559_v36, %v555_v35 }
  0x98   :  { %5401 = vmatpush1.bf16.msra.mxu0 %v5400_v46  ;;  %v5484_v46 = vpack.c.bf16 %v521_v44, %v517_v43  ;;  %v5486_v57 = vpack.c.bf16 %v530_v54, %v526_v52  ;;  %v564_v44 = vld [vmem:[#allocation11 + $0x748] sm:$0xff]  ;;  %v565_v52 = vld [vmem:[#allocation11 + $0x750] sm:$0xff] }
  0x99   :  { %5403 = vmatprep.subr.bf16.mxu0 %v5402_v49  ;;  %v5422_v49 = vpack.c.bf16 %v528_v48, %v524_v47  ;;  %v563_v47 = vld [vmem:[#allocation11 + $0x740] sm:$0xff] }
  0x9a   :  { %5465 = vmatpush1.bf16.msra.mxu1 %v5464_v59  ;;  %v532_v59 = vld [vmem:[#allocation11 + $0x648] sm:$0xff]  ;;  %v567_v48 = vld [vmem:[#allocation11 + $0x760] sm:$0xff] }
  0x9b   :  { %5467 = vmatprep.subr.bf16.mxu1 %v5466_v63  ;;  %v535_v63 = vld [vmem:[#allocation11 + $0x660] sm:$0xff]  ;;  %v5444_v50 = vpack.c.bf16 %v567_v48, %v563_v47 }
  0x9c   :  { %5405 = vmatpush1.bf16.msra.mxu0 %v5404_v58  ;;  %v5488_v58 = vpack.c.bf16 %v529_v56, %v525_v55  ;;  %v5428_v3 = vpack.c.bf16 %v535_v63, %v531_v62  ;;  %v572_v56 = vld [vmem:[#allocation11 + $0x788] sm:$0xff]  ;;  %v578_v62 = vld [vmem:[#allocation11 + $0x7b8] sm:$0xff] }
  0x9d   :  { %5407 = vmatprep.subr.bf16.mxu0 %v5406_v60  ;;  %v536_v60 = vld [vmem:[#allocation11 + $0x668] sm:$0xff] }
  0x9e   :  { %5469 = vmatpush1.bf16.msra.mxu1 %v5468_v0  ;;  %v5426_v61 = vpack.c.bf16 %v536_v60, %v532_v59  ;;  %v5490_v0 = vpack.c.bf16 %v538_v4, %v534_v2  ;;  %v575_v60 = vld [vmem:[#allocation11 + $0x7a0] sm:$0xff]  ;;  %v577_v4 = vld [vmem:[#allocation11 + $0x7b0] sm:$0xff] }
  0x9f   :  { %5471 = vmatprep.subr.bf16.mxu1 %v5470_v7 }
  0xa0   :  { %5409 = vmatpush1.bf16.msra.mxu0 %v5408_v6  ;;  %v537_v6 = vld [vmem:[#allocation11 + $0x670] sm:$0xff] }
  0xa1   :  { %5411 = vmatprep.subr.bf16.mxu0 %v5410_v13  ;;  %v5492_v7 = vpack.c.bf16 %v537_v6, %v533_v5  ;;  %v542_v13 = vld [vmem:[#allocation11 + $0x698] sm:$0xff]  ;;  %v580_v5 = vld [vmem:[#allocation11 + $0x7c8] sm:$0xff] }
  0xa2   :  { %5473 = vmatpush1.bf16.msra.mxu1 %v5472_v10  ;;  %v5430_v10 = vpack.c.bf16 %v544_v9, %v540_v8  ;;  %v5494_v18 = vpack.c.bf16 %v546_v15, %v542_v13  ;;  %v583_v8 = vld [vmem:[#allocation11 + $0x7e0] sm:$0xff]  ;;  %v585_v15 = vld [vmem:[#allocation11 + $0x7f0] sm:$0xff] }
  0xa3   :  { %5475 = vmatprep.subr.bf16.mxu1 %v5474_v21  ;;  %v552_v21 = vld [vmem:[#allocation11 + $0x6e8] sm:$0xff] }
  0xa4   :  { %5413 = vmatpush1.bf16.msra.mxu0 %v5412_v17  ;;  %v545_v17 = vld [vmem:[#allocation11 + $0x6b0] sm:$0xff] }
  0xa5   :  { %5415 = vmatprep.subr.bf16.mxu0 %v5414_v25  ;;  %v5496_v19 = vpack.c.bf16 %v545_v17, %v541_v16  ;;  %v550_v25 = vld [vmem:[#allocation11 + $0x6d8] sm:$0xff]  ;;  %v782_v16 = vld [vmem:[#allocation11 + $0x8] sm:$0xff] }
  0xa6   :  { %5477 = vmatpush1.bf16.msra.mxu1 %v5476_v22  ;;  %v5434_v22 = vpack.c.bf16 %v552_v21, %v548_v20  ;;  %v5498_v30 = vpack.c.bf16 %v554_v27, %v550_v25  ;;  %v786_v17 = vld [vmem:[#allocation11 + $0x28] sm:$0xff]  ;;  %v784_v20 = vld [vmem:[#allocation11 + $0x18] sm:$0xff]  ;;  %v85_v25 = vsub.s32 0, %v7809_v24  ;;  %v89_v27 = vsub.s32 1, %v7809_v24 }
  0xa7   :  { %5479 = vmatprep.subr.bf16.mxu1 %v5478_v33  ;;  %v560_v33 = vld [vmem:[#allocation11 + $0x728] sm:$0xff]  ;;  %v788_v21 = vld [vmem:[#allocation11 + $0x38] sm:$0xff] }
  0xa8   :  { %5417 = vmatpush1.bf16.msra.mxu0 %v5416_v29  ;;  %v553_v29 = vld [vmem:[#allocation11 + $0x6f0] sm:$0xff] }
  0xa9   :  { %5419 = vmatprep.subr.bf16.mxu0 %v5418_v37  ;;  %v5500_v31 = vpack.c.bf16 %v553_v29, %v549_v28  ;;  %v558_v37 = vld [vmem:[#allocation11 + $0x718] sm:$0xff] }
  0xaa   :  { %5481 = vmatpush1.bf16.msra.mxu1 %v5480_v34  ;;  %v5438_v34 = vpack.c.bf16 %v560_v33, %v556_v32  ;;  %v5502_v42 = vpack.c.bf16 %v562_v39, %v558_v37 }
  0xab   :  { %5483 = vmatprep.subr.bf16.mxu1 %v5482_v45  ;;  %v568_v45 = vld [vmem:[#allocation11 + $0x768] sm:$0xff] }
  0xac   :  { %5421 = vmatpush1.bf16.msra.mxu0 %v5420_v41  ;;  %v561_v41 = vld [vmem:[#allocation11 + $0x730] sm:$0xff] }
  0xad   :  { %5423 = vmatprep.subr.bf16.mxu0 %v5422_v49  ;;  %v5504_v43 = vpack.c.bf16 %v561_v41, %v557_v40  ;;  %v566_v49 = vld [vmem:[#allocation11 + $0x758] sm:$0xff] }
  0xae   :  { %5485 = vmatpush1.bf16.msra.mxu1 %v5484_v46  ;;  %v5442_v46 = vpack.c.bf16 %v568_v45, %v564_v44  ;;  %v5506_v54 = vpack.c.bf16 %v570_v51, %v566_v49 }
  0xaf   :  { %5487 = vmatprep.subr.bf16.mxu1 %v5486_v57  ;;  %v576_v57 = vld [vmem:[#allocation11 + $0x7a8] sm:$0xff] }
  0xb0   :  { %5425 = vmatpush1.bf16.msra.mxu0 %v5424_v53  ;;  %v569_v53 = vld [vmem:[#allocation11 + $0x770] sm:$0xff]  ;;  %v5446_v59 = vpack.c.bf16 %v576_v57, %v572_v56  ;;  %v781_v57 = vld [vmem:[#allocation11] sm:$0xff] }
  0xb1   :  { %5427 = vmatprep.subr.bf16.mxu0 %v5426_v61  ;;  %v5508_v55 = vpack.c.bf16 %v569_v53, %v565_v52  ;;  %v574_v61 = vld [vmem:[#allocation11 + $0x798] sm:$0xff] }
  0xb2   :  { %5489 = vmatpush1.bf16.msra.mxu1 %v5488_v58  ;;  %v571_v58 = vld [vmem:[#allocation11 + $0x780] sm:$0xff]  ;;  %v5510_v2 = vpack.c.bf16 %v578_v62, %v574_v61  ;;  %v794_v61 = vld [vmem:[#allocation11 + $0x68] sm:$0xff] }
  0xb3   :  { %5491 = vmatprep.subr.bf16.mxu1 %v5490_v0  ;;  %v5448_v63 = vpack.c.bf16 %v575_v60, %v571_v58  ;;  %v584_v0 = vld [vmem:[#allocation11 + $0x7e8] sm:$0xff]  ;;  %v785_v58 = vld [vmem:[#allocation11 + $0x20] sm:$0xff] }
  0xb4   :  { %5429 = vmatpush1.bf16.msra.mxu0 %v5428_v3  ;;  %v573_v3 = vld [vmem:[#allocation11 + $0x790] sm:$0xff]  ;;  %v5450_v9 = vpack.c.bf16 %v584_v0, %v580_v5  ;;  %v790_v60 = vld [vmem:[#allocation11 + $0x48] sm:$0xff]  ;;  %v792_v5 = vld [vmem:[#allocation11 + $0x58] sm:$0xff] }
  0xb5   :  { %5431 = vmatprep.subr.bf16.mxu0 %v5430_v10  ;;  %v5512_v6 = vpack.c.bf16 %v577_v4, %v573_v3  ;;  %v582_v10 = vld [vmem:[#allocation11 + $0x7d8] sm:$0xff]  ;;  %v5520_v4 = vpack.c.bf16 %v785_v58, %v781_v57  ;;  %v826_v57 = vld [vmem:[#allocation11 + $0x168] sm:$0xff] }
  0xb6   :  { %5493 = vmatpush1.bf16.msra.mxu1 %v5492_v7  ;;  %v579_v7 = vld [vmem:[#allocation11 + $0x7c0] sm:$0xff] }
  0xb7   :  { %5495 = vmatprep.subr.bf16.mxu1 %v5494_v18  ;;  %v5452_v13 = vpack.c.bf16 %v583_v8, %v579_v7  ;;  %v5518_v18 = vpack.c.bf16 %v786_v17, %v782_v16  ;;  %v5522_v7 = vpack.c.bf16 %v794_v61, %v790_v60  ;;  %v789_v8 = vld [vmem:[#allocation11 + $0x40] sm:$0xff]  ;;  %v800_v17 = vld [vmem:[#allocation11 + $0x98] sm:$0xff]  ;;  %v815_v60 = vld [vmem:[#allocation11 + $0x110] sm:$0xff] }
  0xb8   :  { %5433 = vmatpush1.bf16.msra.mxu0 %v5432_v14  ;;  %v5514_v14 = vpack.c.bf16 %v586_v11, %v582_v10  ;;  %v798_v10 = vld [vmem:[#allocation11 + $0x88] sm:$0xff]  ;;  %v819_v61 = vld [vmem:[#allocation11 + $0x130] sm:$0xff] }
  0xb9   :  { %5435 = vmatprep.subr.bf16.mxu0 %v5434_v22  ;;  %v5582_v22 = vpack.c.bf16 %v788_v21, %v784_v20  ;;  %v802_v11 = vld [vmem:[#allocation11 + $0xa8] sm:$0xff]  ;;  %v797_v20 = vld [vmem:[#allocation11 + $0x80] sm:$0xff] }
  0xba   :  { %5497 = vmatpush1.bf16.msra.mxu1 %v5496_v19  ;;  %v5516_v19 = vpack.c.bf16 %v585_v15, %v581_v12  ;;  %v795_v15 = vld [vmem:[#allocation11 + $0x70] sm:$0xff]  ;;  %v801_v21 = vld [vmem:[#allocation11 + $0xa0] sm:$0xff] }
  0xbb   :  { %5499 = vmatprep.subr.bf16.mxu1 %v5498_v30  ;;  %v97_v30 = vsub.s32 3, %v7809_v24 }
  0xbc   :  { %5437 = vmatpush1.bf16.msra.mxu0 %v5436_v26  ;;  %v79_v26 = vld [vmem:[#allocation12] sm:$0xf] }
  0xbd   :  { %5439 = vmatprep.subr.bf16.mxu0 %v5438_v34  ;;  %v7815_v28 = vrot.slane %v79_v26, %v85_v25  ;;  %v7819_v29 = vrot.slane %v79_v26, %v89_v27  ;;  %v7826_v36 = vrot.slane %v79_v26, %v97_v30 }
  0xbe   :  { %5501 = vmatpush1.bf16.msra.mxu1 %v5500_v31 }
  0xbf   :  { %5503 = vmatprep.subr.bf16.mxu1 %v5502_v42 }
  0xc0   :  { %5441 = vmatpush1.bf16.msra.mxu0 %v5440_v38  ;;  %v93_v38 = vsub.s32 2, %v7809_v24 }
  0xc1   :  { %5443 = vmatprep.subr.bf16.mxu0 %v5442_v46 }
  0xc2   :  { %5505 = vmatpush1.bf16.msra.mxu1 %v5504_v43  ;;  %v7832_v42 = vrot.slane %v79_v26, %v93_v38 }
  0xc3   :  { %5507 = vmatprep.subr.bf16.mxu1 %v5506_v54 }
  0xc4   :  { %5445 = vmatpush1.bf16.msra.mxu0 %v5444_v50 }
  0xc5   :  { %5447 = vmatprep.subr.bf16.mxu0 %v5446_v59 }
  0xc6   :  { %5509 = vmatpush1.bf16.msra.mxu1 %v5508_v55 }
  0xc7   :  { %5511 = vmatprep.subr.bf16.mxu1 %v5510_v2  ;;  %v787_v2 = vld [vmem:[#allocation11 + $0x30] sm:$0xff] }
  0xc8   :  { %5449 = vmatpush1.bf16.msra.mxu0 %v5448_v63  ;;  %v783_v63 = vld [vmem:[#allocation11 + $0x10] sm:$0xff] }
  0xc9   :  { %5451 = vmatprep.subr.bf16.mxu0 %v5450_v9  ;;  %v793_v9 = vld [vmem:[#allocation11 + $0x60] sm:$0xff]  ;;  %v5584_v12 = vpack.c.bf16 %v787_v2, %v783_v63  ;;  %v824_v2 = vld [vmem:[#allocation11 + $0x158] sm:$0xff] }
  0xca   :  { %5513 = vmatpush1.bf16.msra.mxu1 %v5512_v6  ;;  %v796_v6 = vld [vmem:[#allocation11 + $0x78] sm:$0xff]  ;;  %v5524_v16 = vpack.c.bf16 %v793_v9, %v789_v8  ;;  %v834_v8 = vld [vmem:[#allocation11 + $0x1a8] sm:$0xff]  ;;  %v5600_v9 = vpack.c.bf16 %v819_v61, %v815_v60 }
  0xcb   :  { %5515 = vmatprep.subr.bf16.mxu1 %v5514_v14  ;;  %v791_v14 = vld [vmem:[#allocation11 + $0x50] sm:$0xff]  ;;  %v856_v60 = vld [vmem:[#allocation11 + $0x258] sm:$0xff] }
  0xcc   :  { %5453 = vmatpush1.bf16.msra.mxu0 %v5452_v13  ;;  %v5586_v13 = vpack.c.bf16 %v796_v6, %v792_v5  ;;  %v5588_v26 = vpack.c.bf16 %v795_v15, %v791_v14  ;;  %v821_v5 = vld [vmem:[#allocation11 + $0x140] sm:$0xff]  ;;  %v832_v14 = vld [vmem:[#allocation11 + $0x198] sm:$0xff] }
  0xcd   :  { %5519 = vmatprep.subr.bf16.mxu0 %v5518_v18  ;;  %v804_v18 = vld [vmem:[#allocation11 + $0xb8] sm:$0xff]  ;;  %v825_v6 = vld [vmem:[#allocation11 + $0x160] sm:$0xff] }
  0xce   :  { %5517 = vmatpush1.bf16.msra.mxu1 %v5516_v19  ;;  %v5526_v19 = vpack.c.bf16 %v802_v11, %v798_v10  ;;  %v823_v11 = vld [vmem:[#allocation11 + $0x150] sm:$0xff]  ;;  %v836_v15 = vld [vmem:[#allocation11 + $0x1b8] sm:$0xff] }
  0xcf   :  { %5583 = vmatprep.subr.bf16.mxu1 %v5582_v22  ;;  %v806_v22 = vld [vmem:[#allocation11 + $0xc8] sm:$0xff]  ;;  %v860_v61 = vld [vmem:[#allocation11 + $0x278] sm:$0xff] }
  0xee   :  { %v7838_v62 = vpop.permute.xlu0 %137 }
  0xef   :  { %vm139_vm4 = vcmp.eq.s32.totalorder %v7838_v62, 1 }
 0x162   :  { %v345_v31 = vpop.f32.mrb[0].mxu0 }
 0x163   :  { %v346_v32 = vadd.f32 %v345_v31, %v7815_v28  ;;  %v347_v33 = vpop.f32.mrb[1].mxu0  ;;  %v5590_v31 = vpack.c.bf16 %v804_v18, %v800_v17  ;;  %v829_v17 = vld [vmem:[#allocation11 + $0x180] sm:$0xff] }
 0x164   :  { %v348_v34 = vadd.f32 %v347_v33, %v7819_v29  ;;  %v416_v39 = vpop.f32.mrb[0].mxu1  ;;  %v803_v33 = vld [vmem:[#allocation11 + $0xb0] sm:$0xff]  ;;  %v833_v18 = vld [vmem:[#allocation11 + $0x1a0] sm:$0xff] }
 0x165   :  { %v5194_v35 = vmul.f32 -1.442695, %v346_v32  ;;  %v418_v40 = vpop.f32.mrb[1].mxu1  ;;  %v417_v44 = vadd.f32 %v416_v39, %v7832_v42  ;;  %v799_v32 = vld [vmem:[#allocation11 + $0x90] sm:$0xff]  ;;  %v5530_v39 = vpack.c.bf16 %v810_v23, %v806_v22  ;;  %v5606_v22 = vpack.c.bf16 %v836_v15, %v832_v14  ;;  %v861_v14 = vld [vmem:[#allocation11 + $0x280] sm:$0xff] }
 0x166   :  { %v5195_v37 = vmul.f32 -1.442695, %v348_v34  ;;  %v419_v41 = vadd.f32 %v418_v40, %v7826_v36  ;;  %v5528_v34 = vpack.c.bf16 %v801_v21, %v797_v20  ;;  %v805_v40 = vld [vmem:[#allocation11 + $0xc0] sm:$0xff]  ;;  %v842_v20 = vld [vmem:[#allocation11 + $0x1e8] sm:$0xff]  ;;  %v831_v23 = vld [vmem:[#allocation11 + $0x190] sm:$0xff] }
 0x167   :  { %7325 = vpow2.f32 %v5194_v35  ;;  %v808_v35 = vld [vmem:[#allocation11 + $0xd8] sm:$0xff]  ;;  %v865_v15 = vld [vmem:[#allocation11 + $0x2a0] sm:$0xff] }
 0x168   :  { %7327 = vpow2.f32 %v5195_v37  ;;  %v5196_v43 = vmul.f32 -1.442695, %v419_v41  ;;  %v812_v37 = vld [vmem:[#allocation11 + $0xf8] sm:$0xff]  ;;  %v809_v41 = vld [vmem:[#allocation11 + $0xe0] sm:$0xff] }
 0x16a   :  { %7329 = vpow2.f32 %v5196_v43  ;;  %v814_v43 = vld [vmem:[#allocation11 + $0x108] sm:$0xff] }
 0x16b   :  { %7331 = vtanh.f32 %v417_v44  ;;  %v818_v44 = vld [vmem:[#allocation11 + $0x128] sm:$0xff] }
 0x171   :  { %v7326_v45 = vpop.eup %7325 }
 0x172   :  { %v7328_v46 = vpop.eup %7327  ;;  %v424_v47 = vadd.f32 1.0, %v7326_v45  ;;  %v5592_v45 = vpack.c.bf16 %v803_v33, %v799_v32  ;;  %v840_v32 = vld [vmem:[#allocation11 + $0x1d8] sm:$0xff] }
 0x173   :  { %v430_v48 = vadd.f32 1.0, %v7328_v46  ;;  %v5594_v46 = vpack.c.bf16 %v812_v37, %v808_v35  ;;  %v844_v33 = vld [vmem:[#allocation11 + $0x1f8] sm:$0xff]  ;;  %v837_v35 = vld [vmem:[#allocation11 + $0x1c0] sm:$0xff] }
 0x174   :  { %7333 = vrcp.f32 %v424_v47  ;;  %v7330_v49 = vpop.eup %7329  ;;  %v807_v47 = vld [vmem:[#allocation11 + $0xd0] sm:$0xff]  ;;  %v841_v37 = vld [vmem:[#allocation11 + $0x1e0] sm:$0xff] }
 0x175   :  { %7335 = vrcp.f32 %v430_v48  ;;  %v7332_v50 = vpop.eup %7331  ;;  %v437_v52 = vadd.f32 1.0, %v7330_v49  ;;  %v811_v48 = vld [vmem:[#allocation11 + $0xf0] sm:$0xff]  ;;  %v5532_v49 = vpack.c.bf16 %v809_v41, %v805_v40  ;;  %v850_v40 = vld [vmem:[#allocation11 + $0x228] sm:$0xff] }
 0x176   :  { %v5596_v58 = vpack.c.bf16 %v811_v48, %v807_v47  ;;  %v848_v47 = vld [vmem:[#allocation11 + $0x218] sm:$0xff] }
 0x177   :  { %7337 = vrcp.f32 %v437_v52  ;;  %v5534_v52 = vpack.c.bf16 %v818_v44, %v814_v43  ;;  %v5610_v43 = vpack.c.bf16 %v844_v33, %v840_v32  ;;  %v839_v44 = vld [vmem:[#allocation11 + $0x1d0] sm:$0xff]  ;;  %v852_v48 = vld [vmem:[#allocation11 + $0x238] sm:$0xff]  ;;  %v869_v32 = vld [vmem:[#allocation11 + $0x2c0] sm:$0xff] }
 0x178   :  { %v873_v33 = vld [vmem:[#allocation11 + $0x2e0] sm:$0xff] }
 0x17e   :  { %v7334_v51 = vpop.eup %7333 }
 0x17f   :  { %v7336_v53 = vpop.eup %7335  ;;  %v441_v54 = vmul.f32 %v7334_v51, %v7332_v50  ;;  %v816_v50 = vld [vmem:[#allocation11 + $0x118] sm:$0xff] }
 0x180   :  { %v440_v55 = vmul.f32 0.0, %v7336_v53  ;;  %v820_v51 = vld [vmem:[#allocation11 + $0x138] sm:$0xff]  ;;  %v813_v53 = vld [vmem:[#allocation11 + $0x100] sm:$0xff] }
 0x181   :  { %v7338_v59 = vpop.eup %7337 }
 0x182   :  { %v7835_v56 = vadd.f32 %v441_v54, %v440_v55  ;;  %v817_v54 = vld [vmem:[#allocation11 + $0x120] sm:$0xff]  ;;  %v822_v55 = vld [vmem:[#allocation11 + $0x148] sm:$0xff] }
 0x183   :  { %v5536_v63 = vpack.c.bf16 %v817_v54, %v813_v53  ;;  %v858_v53 = vld [vmem:[#allocation11 + $0x268] sm:$0xff] }
 0x184   :  { %7339 = vtanh.f32 %v7835_v56 }
 0x18e   :  { %v7340_v3 = vpop.eup %7339 }
 0x18f   :  { %v7840_v0 = vmul.f32 %v7340_v3, %v7338_v59  ;;  %v5598_v59 = vpack.c.bf16 %v820_v51, %v816_v50  ;;  %v828_v3 = vld [vmem:[#allocation11 + $0x178] sm:$0xff]  ;;  %v845_v50 = vld [vmem:[#allocation11 + $0x200] sm:$0xff] }
 0x190   :  { %v5602_v10 = vpack.c.bf16 %v828_v3, %v824_v2  ;;  %v849_v51 = vld [vmem:[#allocation11 + $0x220] sm:$0xff] }
 0x191   :  { %5242 = vmatmul.mubr.msk.f32.vlgmr.msra.gmra.mrb[2].mxu0 %vm139_vm4, %v7840_v0  ;;  %5243 = vmatmul.mubr.msk.f32.vlgmr.msra.gmra.mrb[2].mxu1 %vm139_vm4, %v7840_v0  ;;  %v853_v2 = vld [vmem:[#allocation11 + $0x240] sm:$0xff] }
 0x192   :  { %5521 = vmatpush1.bf16.msra.mxu0 %v5520_v4  ;;  %5244 = vmatprep.mubr.msk.f32.mxu0 %vm139_vm4, %v7840_v0  ;;  %v5538_v4 = vpack.c.bf16 %v826_v57, %v822_v55  ;;  %v5614_v55 = vpack.c.bf16 %v852_v48, %v848_v47  ;;  %v847_v57 = vld [vmem:[#allocation11 + $0x210] sm:$0xff]  ;;  %v857_v3 = vld [vmem:[#allocation11 + $0x260] sm:$0xff] }
 0x193   :  { %5245 = vmatprep.mubr.msk.f32.mxu1 %vm139_vm4, %v7840_v0  ;;  %5523 = vmatprep.subr.bf16.mxu0 %v5522_v7  ;;  %v830_v7 = vld [vmem:[#allocation11 + $0x188] sm:$0xff]  ;;  %v877_v47 = vld [vmem:[#allocation11 + $0x300] sm:$0xff] }
 0x194   :  { %5585 = vmatpush1.bf16.msra.mxu1 %v5584_v12  ;;  %v827_v12 = vld [vmem:[#allocation11 + $0x170] sm:$0xff]  ;;  %v881_v48 = vld [vmem:[#allocation11 + $0x320] sm:$0xff] }
 0x195   :  { %5587 = vmatprep.subr.bf16.mxu1 %v5586_v13  ;;  %v5540_v13 = vpack.c.bf16 %v825_v6, %v821_v5  ;;  %v5604_v21 = vpack.c.bf16 %v827_v12, %v823_v11  ;;  %v866_v5 = vld [vmem:[#allocation11 + $0x2a8] sm:$0xff]  ;;  %v864_v11 = vld [vmem:[#allocation11 + $0x298] sm:$0xff] }
 0x196   :  { %5525 = vmatpush1.bf16.msra.mxu0 %v5524_v16  ;;  %v5542_v16 = vpack.c.bf16 %v834_v8, %v830_v7  ;;  %v5618_v7 = vpack.c.bf16 %v860_v61, %v856_v60  ;;  %v855_v8 = vld [vmem:[#allocation11 + $0x250] sm:$0xff]  ;;  %v868_v12 = vld [vmem:[#allocation11 + $0x2b8] sm:$0xff]  ;;  %v885_v60 = vld [vmem:[#allocation11 + $0x340] sm:$0xff] }
 0x197   :  { %5527 = vmatprep.subr.bf16.mxu0 %v5526_v19  ;;  %v838_v19 = vld [vmem:[#allocation11 + $0x1c8] sm:$0xff]  ;;  %v889_v61 = vld [vmem:[#allocation11 + $0x360] sm:$0xff] }
 0x198   :  { %5589 = vmatpush1.bf16.msra.mxu1 %v5588_v26  ;;  %v835_v26 = vld [vmem:[#allocation11 + $0x1b0] sm:$0xff] }
 0x199   :  { %5591 = vmatprep.subr.bf16.mxu1 %v5590_v31  ;;  %v5544_v31 = vpack.c.bf16 %v833_v18, %v829_v17  ;;  %v5608_v41 = vpack.c.bf16 %v835_v26, %v831_v23  ;;  %v874_v17 = vld [vmem:[#allocation11 + $0x2e8] sm:$0xff]  ;;  %v872_v23 = vld [vmem:[#allocation11 + $0x2d8] sm:$0xff] }
 0x19a   :  { %5529 = vmatpush1.bf16.msra.mxu0 %v5528_v34  ;;  %v5546_v34 = vpack.c.bf16 %v842_v20, %v838_v19  ;;  %v5622_v19 = vpack.c.bf16 %v868_v12, %v864_v11  ;;  %v863_v20 = vld [vmem:[#allocation11 + $0x290] sm:$0xff]  ;;  %v876_v26 = vld [vmem:[#allocation11 + $0x2f8] sm:$0xff]  ;;  %v893_v11 = vld [vmem:[#allocation11 + $0x380] sm:$0xff] }
 0x19b   :  { %5531 = vmatprep.subr.bf16.mxu0 %v5530_v39  ;;  %v846_v39 = vld [vmem:[#allocation11 + $0x208] sm:$0xff]  ;;  %v897_v12 = vld [vmem:[#allocation11 + $0x3a0] sm:$0xff] }
 0x19c   :  { %5593 = vmatpush1.bf16.msra.mxu1 %v5592_v45  ;;  %v843_v45 = vld [vmem:[#allocation11 + $0x1f0] sm:$0xff] }
 0x19d   :  { %5595 = vmatprep.subr.bf16.mxu1 %v5594_v46  ;;  %v5548_v46 = vpack.c.bf16 %v841_v37, %v837_v35  ;;  %v5612_v54 = vpack.c.bf16 %v843_v45, %v839_v44  ;;  %v882_v35 = vld [vmem:[#allocation11 + $0x328] sm:$0xff]  ;;  %v880_v44 = vld [vmem:[#allocation11 + $0x318] sm:$0xff] }
 0x19e   :  { %5533 = vmatpush1.bf16.msra.mxu0 %v5532_v49  ;;  %v5550_v49 = vpack.c.bf16 %v850_v40, %v846_v39  ;;  %v5626_v39 = vpack.c.bf16 %v876_v26, %v872_v23  ;;  %v871_v40 = vld [vmem:[#allocation11 + $0x2d0] sm:$0xff]  ;;  %v884_v45 = vld [vmem:[#allocation11 + $0x338] sm:$0xff]  ;;  %v901_v23 = vld [vmem:[#allocation11 + $0x3c0] sm:$0xff] }
 0x19f   :  { %5535 = vmatprep.subr.bf16.mxu0 %v5534_v52  ;;  %v854_v52 = vld [vmem:[#allocation11 + $0x248] sm:$0xff]  ;;  %v905_v26 = vld [vmem:[#allocation11 + $0x3e0] sm:$0xff] }
 0x1a0   :  { %5597 = vmatpush1.bf16.msra.mxu1 %v5596_v58  ;;  %v851_v58 = vld [vmem:[#allocation11 + $0x230] sm:$0xff] }
 0x1a1   :  { %5599 = vmatprep.subr.bf16.mxu1 %v5598_v59  ;;  %v5552_v59 = vpack.c.bf16 %v849_v51, %v845_v50  ;;  %v5616_v6 = vpack.c.bf16 %v851_v58, %v847_v57  ;;  %v890_v50 = vld [vmem:[#allocation11 + $0x368] sm:$0xff]  ;;  %v888_v57 = vld [vmem:[#allocation11 + $0x358] sm:$0xff] }
 0x1a2   :  { %5537 = vmatpush1.bf16.msra.mxu0 %v5536_v63  ;;  %v5554_v63 = vpack.c.bf16 %v858_v53, %v854_v52  ;;  %v5630_v52 = vpack.c.bf16 %v884_v45, %v880_v44  ;;  %v879_v53 = vld [vmem:[#allocation11 + $0x310] sm:$0xff]  ;;  %v892_v58 = vld [vmem:[#allocation11 + $0x378] sm:$0xff]  ;;  %v1094_v45 = vld [vmem:[#allocation11 + $0x420] sm:$0xff] }
 0x1a3   :  { %5539 = vmatprep.subr.bf16.mxu0 %v5538_v4  ;;  %v862_v4 = vld [vmem:[#allocation11 + $0x288] sm:$0xff] }
 0x1a4   :  { %5601 = vmatpush1.bf16.msra.mxu1 %v5600_v9  ;;  %v859_v9 = vld [vmem:[#allocation11 + $0x270] sm:$0xff] }
 0x1a5   :  { %5603 = vmatprep.subr.bf16.mxu1 %v5602_v10  ;;  %v5556_v10 = vpack.c.bf16 %v857_v3, %v853_v2  ;;  %v5620_v18 = vpack.c.bf16 %v859_v9, %v855_v8  ;;  %v898_v2 = vld [vmem:[#allocation11 + $0x3a8] sm:$0xff]  ;;  %v896_v8 = vld [vmem:[#allocation11 + $0x398] sm:$0xff] }
 0x1a6   :  { %5541 = vmatpush1.bf16.msra.mxu0 %v5540_v13  ;;  %v5558_v13 = vpack.c.bf16 %v866_v5, %v862_v4  ;;  %v5634_v4 = vpack.c.bf16 %v892_v58, %v888_v57  ;;  %v887_v5 = vld [vmem:[#allocation11 + $0x350] sm:$0xff]  ;;  %v900_v9 = vld [vmem:[#allocation11 + $0x3b8] sm:$0xff]  ;;  %v1102_v58 = vld [vmem:[#allocation11 + $0x460] sm:$0xff] }
 0x1a7   :  { %5543 = vmatprep.subr.bf16.mxu0 %v5542_v16  ;;  %v870_v16 = vld [vmem:[#allocation11 + $0x2c8] sm:$0xff] }
 0x1a8   :  { %5605 = vmatpush1.bf16.msra.mxu1 %v5604_v21  ;;  %v867_v21 = vld [vmem:[#allocation11 + $0x2b0] sm:$0xff] }
 0x1a9   :  { %5607 = vmatprep.subr.bf16.mxu1 %v5606_v22  ;;  %v5560_v22 = vpack.c.bf16 %v865_v15, %v861_v14  ;;  %v5624_v37 = vpack.c.bf16 %v867_v21, %v863_v20  ;;  %v906_v14 = vld [vmem:[#allocation11 + $0x3e8] sm:$0xff]  ;;  %v904_v20 = vld [vmem:[#allocation11 + $0x3d8] sm:$0xff] }
 0x1aa   :  { %5545 = vmatpush1.bf16.msra.mxu0 %v5544_v31  ;;  %v5562_v31 = vpack.c.bf16 %v874_v17, %v870_v16  ;;  %v5638_v16 = vpack.c.bf16 %v900_v9, %v896_v8  ;;  %v895_v17 = vld [vmem:[#allocation11 + $0x390] sm:$0xff]  ;;  %v908_v21 = vld [vmem:[#allocation11 + $0x3f8] sm:$0xff]  ;;  %v1110_v8 = vld [vmem:[#allocation11 + $0x4a0] sm:$0xff] }
 0x1ab   :  { %5547 = vmatprep.subr.bf16.mxu0 %v5546_v34  ;;  %v878_v34 = vld [vmem:[#allocation11 + $0x308] sm:$0xff] }
 0x1ac   :  { %5609 = vmatpush1.bf16.msra.mxu1 %v5608_v41  ;;  %v875_v41 = vld [vmem:[#allocation11 + $0x2f0] sm:$0xff] }
 0x1ad   :  { %5611 = vmatprep.subr.bf16.mxu1 %v5610_v43  ;;  %v5564_v43 = vpack.c.bf16 %v873_v33, %v869_v32  ;;  %v5628_v51 = vpack.c.bf16 %v875_v41, %v871_v40  ;;  %v5642_v32 = vpack.c.bf16 %v908_v21, %v904_v20  ;;  %v903_v33 = vld [vmem:[#allocation11 + $0x3d0] sm:$0xff]  ;;  %v1091_v40 = vld [vmem:[#allocation11 + $0x408] sm:$0xff]  ;;  %v1114_v20 = vld [vmem:[#allocation11 + $0x4c0] sm:$0xff] }
 0x1ae   :  { %5549 = vmatpush1.bf16.msra.mxu0 %v5548_v46  ;;  %v5566_v46 = vpack.c.bf16 %v882_v35, %v878_v34  ;;  %v907_v34 = vld [vmem:[#allocation11 + $0x3f0] sm:$0xff]  ;;  %v5580_v35 = vpack.c.bf16 %v905_v26, %v901_v23  ;;  %v1095_v41 = vld [vmem:[#allocation11 + $0x428] sm:$0xff]  ;;  %v1118_v21 = vld [vmem:[#allocation11 + $0x4e0] sm:$0xff] }
 0x1af   :  { %5551 = vmatprep.subr.bf16.mxu0 %v5550_v49  ;;  %v886_v49 = vld [vmem:[#allocation11 + $0x348] sm:$0xff]  ;;  %v5646_v44 = vpack.c.bf16 %v1095_v41, %v1091_v40  ;;  %v1121_v23 = vld [vmem:[#allocation11 + $0x4f8] sm:$0xff]  ;;  %v1116_v26 = vld [vmem:[#allocation11 + $0x4d0] sm:$0xff] }
 0x1b0   :  { %5613 = vmatpush1.bf16.msra.mxu1 %v5612_v54  ;;  %v883_v54 = vld [vmem:[#allocation11 + $0x330] sm:$0xff]  ;;  %v1126_v41 = vld [vmem:[#allocation11 + $0x520] sm:$0xff] }
 0x1b1   :  { %5615 = vmatprep.subr.bf16.mxu1 %v5614_v55  ;;  %v5568_v55 = vpack.c.bf16 %v881_v48, %v877_v47  ;;  %v5632_v3 = vpack.c.bf16 %v883_v54, %v879_v53  ;;  %v1097_v47 = vld [vmem:[#allocation11 + $0x438] sm:$0xff]  ;;  %v1099_v53 = vld [vmem:[#allocation11 + $0x448] sm:$0xff] }
 0x1b2   :  { %5553 = vmatpush1.bf16.msra.mxu0 %v5552_v59  ;;  %v5570_v59 = vpack.c.bf16 %v890_v50, %v886_v49  ;;  %v1092_v50 = vld [vmem:[#allocation11 + $0x410] sm:$0xff]  ;;  %v1103_v54 = vld [vmem:[#allocation11 + $0x468] sm:$0xff] }
 0x1b3   :  { %5555 = vmatprep.subr.bf16.mxu0 %v5554_v63  ;;  %v894_v63 = vld [vmem:[#allocation11 + $0x388] sm:$0xff]  ;;  %v5650_v57 = vpack.c.bf16 %v1103_v54, %v1099_v53  ;;  %v1130_v53 = vld [vmem:[#allocation11 + $0x540] sm:$0xff] }
 0x1b4   :  { %5617 = vmatpush1.bf16.msra.mxu1 %v5616_v6  ;;  %v891_v6 = vld [vmem:[#allocation11 + $0x370] sm:$0xff]  ;;  %v1134_v54 = vld [vmem:[#allocation11 + $0x560] sm:$0xff] }
 0x1b5   :  { %5619 = vmatprep.subr.bf16.mxu1 %v5618_v7  ;;  %v5572_v7 = vpack.c.bf16 %v889_v61, %v885_v60  ;;  %v5636_v15 = vpack.c.bf16 %v891_v6, %v887_v5  ;;  %v1105_v60 = vld [vmem:[#allocation11 + $0x478] sm:$0xff]  ;;  %v1111_v6 = vld [vmem:[#allocation11 + $0x4a8] sm:$0xff] }
 0x1b6   :  { %5557 = vmatpush1.bf16.msra.mxu0 %v5556_v10  ;;  %v5574_v10 = vpack.c.bf16 %v898_v2, %v894_v63  ;;  %v1100_v2 = vld [vmem:[#allocation11 + $0x450] sm:$0xff] }
 0x1b7   :  { %5559 = vmatprep.subr.bf16.mxu0 %v5558_v13  ;;  %v902_v13 = vld [vmem:[#allocation11 + $0x3c8] sm:$0xff] }
 0x1b8   :  { %5621 = vmatpush1.bf16.msra.mxu1 %v5620_v18  ;;  %v899_v18 = vld [vmem:[#allocation11 + $0x3b0] sm:$0xff] }
 0x1b9   :  { %5623 = vmatprep.subr.bf16.mxu1 %v5622_v19  ;;  %v5576_v19 = vpack.c.bf16 %v897_v12, %v893_v11  ;;  %v1109_v11 = vld [vmem:[#allocation11 + $0x498] sm:$0xff] }
 0x1ba   :  { %5561 = vmatpush1.bf16.msra.mxu0 %v5560_v22  ;;  %v5578_v22 = vpack.c.bf16 %v906_v14, %v902_v13  ;;  %v1113_v12 = vld [vmem:[#allocation11 + $0x4b8] sm:$0xff]  ;;  %v1108_v13 = vld [vmem:[#allocation11 + $0x490] sm:$0xff] }
 0x1bb   :  { %5563 = vmatprep.subr.bf16.mxu0 %v5562_v31  ;;  %v5640_v31 = vpack.c.bf16 %v899_v18, %v895_v17  ;;  %v5718_v14 = vpack.c.bf16 %v1113_v12, %v1109_v11  ;;  %v1119_v17 = vld [vmem:[#allocation11 + $0x4e8] sm:$0xff]  ;;  %v1144_v11 = vld [vmem:[#allocation11 + $0x5b0] sm:$0xff] }
 0x1bc   :  { %5625 = vmatpush1.bf16.msra.mxu1 %v5624_v37  ;;  %v5644_v37 = vpack.c.bf16 %v907_v34, %v903_v33  ;;  %v1123_v34 = vld [vmem:[#allocation11 + $0x508] sm:$0xff] }
 0x1bd   :  { %5627 = vmatprep.subr.bf16.mxu1 %v5626_v39  ;;  %v774_v39 = vld [vmem:[#allocation6 + $0x8] sm:$0xff] }
 0x1be   :  { %5565 = vmatpush1.bf16.msra.mxu0 %v5564_v43  ;;  %v1090_v43 = vld [vmem:[#allocation11 + $0x400] sm:$0xff] }
 0x1bf   :  { %5567 = vmatprep.subr.bf16.mxu0 %v5566_v46  ;;  %v1093_v46 = vld [vmem:[#allocation11 + $0x418] sm:$0xff]  ;;  %v5648_v48 = vpack.c.bf16 %v1094_v45, %v1090_v43 }
 0x1c0   :  { %5629 = vmatpush1.bf16.msra.mxu1 %v5628_v51  ;;  %v5710_v49 = vpack.c.bf16 %v1097_v47, %v1093_v46  ;;  %v1096_v51 = vld [vmem:[#allocation11 + $0x430] sm:$0xff]  ;;  %v1125_v43 = vld [vmem:[#allocation11 + $0x518] sm:$0xff] }
 0x1c1   :  { %5631 = vmatprep.subr.bf16.mxu1 %v5630_v52  ;;  %v5712_v52 = vpack.c.bf16 %v1096_v51, %v1092_v50  ;;  %v1124_v47 = vld [vmem:[#allocation11 + $0x510] sm:$0xff]  ;;  %v1131_v50 = vld [vmem:[#allocation11 + $0x548] sm:$0xff] }
 0x1c2   :  { %5569 = vmatpush1.bf16.msra.mxu0 %v5568_v55  ;;  %v1098_v55 = vld [vmem:[#allocation11 + $0x440] sm:$0xff]  ;;  %v1135_v51 = vld [vmem:[#allocation11 + $0x568] sm:$0xff] }
 0x1c3   :  { %5571 = vmatprep.subr.bf16.mxu0 %v5570_v59  ;;  %v1101_v59 = vld [vmem:[#allocation11 + $0x458] sm:$0xff]  ;;  %v5652_v61 = vpack.c.bf16 %v1102_v58, %v1098_v55 }
 0x1c4   :  { %5633 = vmatpush1.bf16.msra.mxu1 %v5632_v3  ;;  %v5714_v63 = vpack.c.bf16 %v1105_v60, %v1101_v59  ;;  %v1104_v3 = vld [vmem:[#allocation11 + $0x470] sm:$0xff]  ;;  %v1133_v55 = vld [vmem:[#allocation11 + $0x558] sm:$0xff] }
 0x1c5   :  { %5635 = vmatprep.subr.bf16.mxu1 %v5634_v4  ;;  %v1107_v4 = vld [vmem:[#allocation11 + $0x488] sm:$0xff]  ;;  %v5716_v5 = vpack.c.bf16 %v1104_v3, %v1100_v2  ;;  %v1137_v58 = vld [vmem:[#allocation11 + $0x578] sm:$0xff]  ;;  %v1132_v59 = vld [vmem:[#allocation11 + $0x550] sm:$0xff] }
 0x1c6   :  { %5573 = vmatpush1.bf16.msra.mxu0 %v5572_v7  ;;  %v1106_v7 = vld [vmem:[#allocation11 + $0x480] sm:$0xff]  ;;  %v5654_v9 = vpack.c.bf16 %v1111_v6, %v1107_v4  ;;  %v1136_v60 = vld [vmem:[#allocation11 + $0x570] sm:$0xff]  ;;  %v1139_v2 = vld [vmem:[#allocation11 + $0x588] sm:$0xff] }
 0x1c7   :  { %5575 = vmatprep.subr.bf16.mxu0 %v5574_v10  ;;  %v5656_v10 = vpack.c.bf16 %v1110_v8, %v1106_v7  ;;  %v1143_v3 = vld [vmem:[#allocation11 + $0x5a8] sm:$0xff]  ;;  %v1142_v6 = vld [vmem:[#allocation11 + $0x5a0] sm:$0xff]  ;;  %v1141_v7 = vld [vmem:[#allocation11 + $0x598] sm:$0xff] }
 0x1c8   :  { %5637 = vmatpush1.bf16.msra.mxu1 %v5636_v15  ;;  %v1112_v15 = vld [vmem:[#allocation11 + $0x4b0] sm:$0xff]  ;;  %v5670_v4 = vpack.c.bf16 %v1143_v3, %v1139_v2  ;;  %v1170_v2 = vld [vmem:[#allocation11 + $0x680] sm:$0xff] }
 0x1c9   :  { %5639 = vmatprep.subr.bf16.mxu1 %v5638_v16  ;;  %v1115_v16 = vld [vmem:[#allocation11 + $0x4c8] sm:$0xff]  ;;  %v5720_v18 = vpack.c.bf16 %v1112_v15, %v1108_v13  ;;  %v1174_v3 = vld [vmem:[#allocation11 + $0x6a0] sm:$0xff] }
 0x1ca   :  { %5577 = vmatpush1.bf16.msra.mxu0 %v5576_v19  ;;  %v5658_v19 = vpack.c.bf16 %v1119_v17, %v1115_v16  ;;  %v1151_v15 = vld [vmem:[#allocation11 + $0x5e8] sm:$0xff]  ;;  %v1146_v17 = vld [vmem:[#allocation11 + $0x5c0] sm:$0xff] }
 0x1cb   :  { %5579 = vmatprep.subr.bf16.mxu0 %v5578_v22  ;;  %v1117_v22 = vld [vmem:[#allocation11 + $0x4d8] sm:$0xff] }
 0x1cc   :  { %5641 = vmatpush1.bf16.msra.mxu1 %v5640_v31  ;;  %v1120_v31 = vld [vmem:[#allocation11 + $0x4f0] sm:$0xff]  ;;  %v5722_v33 = vpack.c.bf16 %v1121_v23, %v1117_v22 }
 0x1cd   :  { %5643 = vmatprep.subr.bf16.mxu1 %v5642_v32  ;;  %v5660_v32 = vpack.c.bf16 %v1118_v21, %v1114_v20  ;;  %v1153_v21 = vld [vmem:[#allocation11 + $0x5f8] sm:$0xff]  ;;  %v1148_v22 = vld [vmem:[#allocation11 + $0x5d0] sm:$0xff] }
 0x1ce   :  { %5581 = vmatpush1.bf16.msra.mxu0 %v5580_v35  ;;  %v1127_v35 = vld [vmem:[#allocation11 + $0x528] sm:$0xff]  ;;  %v1152_v23 = vld [vmem:[#allocation11 + $0x5f0] sm:$0xff] }
 0x1cf   :  { %5647 = vmatprep.subr.bf16.mxu0 %v5646_v44  ;;  %v5662_v40 = vpack.c.bf16 %v1127_v35, %v1123_v34  ;;  %v1129_v44 = vld [vmem:[#allocation11 + $0x538] sm:$0xff]  ;;  %v1154_v35 = vld [vmem:[#allocation11 + $0x600] sm:$0xff] }
 0x1d0   :  { %5645 = vmatpush1.bf16.msra.mxu1 %v5644_v37  ;;  %v1122_v37 = vld [vmem:[#allocation11 + $0x500] sm:$0xff]  ;;  %v5726_v45 = vpack.c.bf16 %v1129_v44, %v1125_v43  ;;  %v1156_v43 = vld [vmem:[#allocation11 + $0x610] sm:$0xff] }
 0x1d1   :  { %978 = vmatmul.mubr.f32.vlgmr.msra.gmra.mrb[4].mxu0 %v774_v39  ;;  %5711 = vmatprep.subr.bf16.mxu1 %v5710_v49  ;;  %v5664_v46 = vpack.c.bf16 %v1126_v41, %v1122_v37  ;;  %v1158_v37 = vld [vmem:[#allocation11 + $0x620] sm:$0xff]  ;;  %v1161_v41 = vld [vmem:[#allocation11 + $0x638] sm:$0xff]  ;;  %v1160_v44 = vld [vmem:[#allocation11 + $0x630] sm:$0xff] }
 0x1d2   :  { %5649 = vmatpush1.bf16.msra.mxu0 %v5648_v48  ;;  %v1128_v48 = vld [vmem:[#allocation11 + $0x530] sm:$0xff] }
 0x1d3   :  { %1049 = vmatmul.mubr.f32.vlgmr.msra.gmra.mrb[4].mxu1 %v774_v39  ;;  %5651 = vmatprep.subr.bf16.mxu0 %v5650_v57  ;;  %v5724_v39 = vpack.c.bf16 %v1120_v31, %v1116_v26  ;;  %v5728_v49 = vpack.c.bf16 %v1128_v48, %v1124_v47  ;;  %v5668_v57 = vpack.c.bf16 %v1134_v54, %v1130_v53  ;;  %v1163_v47 = vld [vmem:[#allocation11 + $0x648] sm:$0xff]  ;;  %v1169_v54 = vld [vmem:[#allocation11 + $0x678] sm:$0xff] }
 0x1d4   :  { %5713 = vmatpush1.bf16.msra.mxu1 %v5712_v52  ;;  %v5666_v52 = vpack.c.bf16 %v1135_v51, %v1131_v50  ;;  %v5740_v31 = vpack.c.bf16 %v1152_v23, %v1148_v22  ;;  %v1167_v48 = vld [vmem:[#allocation11 + $0x668] sm:$0xff]  ;;  %v1162_v50 = vld [vmem:[#allocation11 + $0x640] sm:$0xff] }
 0x1d5   :  { %5715 = vmatprep.subr.bf16.mxu1 %v5714_v63  ;;  %v5732_v63 = vpack.c.bf16 %v1136_v60, %v1132_v59  ;;  %v1166_v51 = vld [vmem:[#allocation11 + $0x660] sm:$0xff]  ;;  %v1171_v60 = vld [vmem:[#allocation11 + $0x688] sm:$0xff] }
 0x1d6   :  { %5653 = vmatpush1.bf16.msra.mxu0 %v5652_v61  ;;  %v5730_v61 = vpack.c.bf16 %v1137_v58, %v1133_v55  ;;  %v5684_v53 = vpack.c.bf16 %v1166_v51, %v1162_v50  ;;  %v1164_v55 = vld [vmem:[#allocation11 + $0x650] sm:$0xff]  ;;  %v1187_v23 = vld [vmem:[#allocation11 + $0x708] sm:$0xff]  ;;  %v1201_v51 = vld [vmem:[#allocation11 + $0x778] sm:$0xff] }
 0x1d7   :  { %5655 = vmatprep.subr.bf16.mxu0 %v5654_v9  ;;  %v1145_v9 = vld [vmem:[#allocation11 + $0x5b8] sm:$0xff] }
 0x1d8   :  { %5717 = vmatpush1.bf16.msra.mxu1 %v5716_v5  ;;  %v1138_v5 = vld [vmem:[#allocation11 + $0x580] sm:$0xff]  ;;  %v5734_v12 = vpack.c.bf16 %v1145_v9, %v1141_v7  ;;  %v1172_v7 = vld [vmem:[#allocation11 + $0x690] sm:$0xff] }
 0x1d9   :  { %5719 = vmatprep.subr.bf16.mxu1 %v5718_v14  ;;  %v5672_v8 = vpack.c.bf16 %v1142_v6, %v1138_v5  ;;  %v1147_v14 = vld [vmem:[#allocation11 + $0x5c8] sm:$0xff]  ;;  %v5688_v5 = vpack.c.bf16 %v1174_v3, %v1170_v2  ;;  %v1177_v6 = vld [vmem:[#allocation11 + $0x6b8] sm:$0xff] }
 0x1da   :  { %5657 = vmatpush1.bf16.msra.mxu0 %v5656_v10  ;;  %v1140_v10 = vld [vmem:[#allocation11 + $0x590] sm:$0xff]  ;;  %v5674_v16 = vpack.c.bf16 %v1151_v15, %v1147_v14  ;;  %v1178_v14 = vld [vmem:[#allocation11 + $0x6c0] sm:$0xff]  ;;  %v1209_v2 = vld [vmem:[#allocation11 + $0x7b8] sm:$0xff] }
 0x1db   :  { %5659 = vmatprep.subr.bf16.mxu0 %v5658_v19  ;;  %v5736_v13 = vpack.c.bf16 %v1144_v11, %v1140_v10  ;;  %v1149_v19 = vld [vmem:[#allocation11 + $0x5d8] sm:$0xff]  ;;  %v1179_v11 = vld [vmem:[#allocation11 + $0x6c8] sm:$0xff]  ;;  %v1182_v15 = vld [vmem:[#allocation11 + $0x6e0] sm:$0xff] }
 0x1dc   :  { %5721 = vmatpush1.bf16.msra.mxu1 %v5720_v18  ;;  %v1150_v18 = vld [vmem:[#allocation11 + $0x5e0] sm:$0xff]  ;;  %v5738_v26 = vpack.c.bf16 %v1153_v21, %v1149_v19  ;;  %v1180_v19 = vld [vmem:[#allocation11 + $0x6d0] sm:$0xff] }
 0x1dd   :  { %5723 = vmatprep.subr.bf16.mxu1 %v5722_v33  ;;  %v5676_v20 = vpack.c.bf16 %v1150_v18, %v1146_v17  ;;  %v1159_v33 = vld [vmem:[#allocation11 + $0x628] sm:$0xff]  ;;  %v5692_v17 = vpack.c.bf16 %v1182_v15, %v1178_v14  ;;  %v1185_v18 = vld [vmem:[#allocation11 + $0x6f8] sm:$0xff]  ;;  %v1212_v15 = vld [vmem:[#allocation11 + $0x7d0] sm:$0xff] }
 0x1de   :  { %5661 = vmatpush1.bf16.msra.mxu0 %v5660_v32  ;;  %v1155_v32 = vld [vmem:[#allocation11 + $0x608] sm:$0xff]  ;;  %v1217_v14 = vld [vmem:[#allocation11 + $0x7f8] sm:$0xff] }
 0x1df   :  { %5663 = vmatprep.subr.bf16.mxu0 %v5662_v40  ;;  %v5678_v34 = vpack.c.bf16 %v1159_v33, %v1155_v32  ;;  %v5680_v40 = vpack.c.bf16 %v1158_v37, %v1154_v35  ;;  %v1186_v32 = vld [vmem:[#allocation11 + $0x700] sm:$0xff]  ;;  %v1193_v37 = vld [vmem:[#allocation11 + $0x738] sm:$0xff] }
 0x1e0   :  { %5725 = vmatpush1.bf16.msra.mxu1 %v5724_v39  ;;  %v1157_v39 = vld [vmem:[#allocation11 + $0x618] sm:$0xff]  ;;  %v1190_v33 = vld [vmem:[#allocation11 + $0x720] sm:$0xff] }
 0x1e1   :  { %5727 = vmatprep.subr.bf16.mxu1 %v5726_v45  ;;  %v5742_v45 = vpack.c.bf16 %v1161_v41, %v1157_v39  ;;  %v5696_v35 = vpack.c.bf16 %v1190_v33, %v1186_v32  ;;  %v1188_v39 = vld [vmem:[#allocation11 + $0x710] sm:$0xff] }
 0x1e2   :  { %5665 = vmatpush1.bf16.msra.mxu0 %v5664_v46  ;;  %v5744_v46 = vpack.c.bf16 %v1160_v44, %v1156_v43  ;;  %v1195_v44 = vld [vmem:[#allocation11 + $0x748] sm:$0xff] }
 0x1e3   :  { %5667 = vmatprep.subr.bf16.mxu0 %v5666_v52  ;;  %v1165_v52 = vld [vmem:[#allocation11 + $0x658] sm:$0xff] }
 0x1e4   :  { %5729 = vmatpush1.bf16.msra.mxu1 %v5728_v49  ;;  %v5682_v49 = vpack.c.bf16 %v1167_v48, %v1163_v47  ;;  %v5746_v58 = vpack.c.bf16 %v1169_v54, %v1165_v52  ;;  %v1194_v47 = vld [vmem:[#allocation11 + $0x740] sm:$0xff]  ;;  %v1196_v52 = vld [vmem:[#allocation11 + $0x750] sm:$0xff] }
 0x1e5   :  { %5731 = vmatprep.subr.bf16.mxu1 %v5730_v61  ;;  %v1175_v61 = vld [vmem:[#allocation11 + $0x6a8] sm:$0xff]  ;;  %v1198_v48 = vld [vmem:[#allocation11 + $0x760] sm:$0xff] }
 0x1e6   :  { %5669 = vmatpush1.bf16.msra.mxu0 %v5668_v57  ;;  %v1168_v57 = vld [vmem:[#allocation11 + $0x670] sm:$0xff]  ;;  %v5700_v50 = vpack.c.bf16 %v1198_v48, %v1194_v47 }
 0x1e7   :  { %5671 = vmatprep.subr.bf16.mxu0 %v5670_v4  ;;  %v5748_v59 = vpack.c.bf16 %v1168_v57, %v1164_v55  ;;  %v1173_v4 = vld [vmem:[#allocation11 + $0x698] sm:$0xff]  ;;  %v1203_v57 = vld [vmem:[#allocation11 + $0x788] sm:$0xff] }
 0x1e8   :  { %5733 = vmatpush1.bf16.msra.mxu1 %v5732_v63  ;;  %v5686_v63 = vpack.c.bf16 %v1175_v61, %v1171_v60  ;;  %v5750_v9 = vpack.c.bf16 %v1177_v6, %v1173_v4  ;;  %v1206_v61 = vld [vmem:[#allocation11 + $0x7a0] sm:$0xff]  ;;  %v1208_v6 = vld [vmem:[#allocation11 + $0x7b0] sm:$0xff] }
 0x1e9   :  { %5735 = vmatprep.subr.bf16.mxu1 %v5734_v12  ;;  %v1183_v12 = vld [vmem:[#allocation11 + $0x6e8] sm:$0xff] }
 0x1ea   :  { %5673 = vmatpush1.bf16.msra.mxu0 %v5672_v8  ;;  %v1176_v8 = vld [vmem:[#allocation11 + $0x6b0] sm:$0xff] }
 0x1eb   :  { %5675 = vmatprep.subr.bf16.mxu0 %v5674_v16  ;;  %v5752_v10 = vpack.c.bf16 %v1176_v8, %v1172_v7  ;;  %v1181_v16 = vld [vmem:[#allocation11 + $0x6d8] sm:$0xff]  ;;  %v1211_v7 = vld [vmem:[#allocation11 + $0x7c8] sm:$0xff] }
 0x1ec   :  { %5737 = vmatpush1.bf16.msra.mxu1 %v5736_v13  ;;  %v5690_v13 = vpack.c.bf16 %v1183_v12, %v1179_v11  ;;  %v5754_v21 = vpack.c.bf16 %v1185_v18, %v1181_v16  ;;  %v1214_v11 = vld [vmem:[#allocation11 + $0x7e0] sm:$0xff]  ;;  %v1216_v18 = vld [vmem:[#allocation11 + $0x7f0] sm:$0xff] }
 0x1ed   :  { %5739 = vmatprep.subr.bf16.mxu1 %v5738_v26  ;;  %v1191_v26 = vld [vmem:[#allocation11 + $0x728] sm:$0xff] }
 0x1ee   :  { %5677 = vmatpush1.bf16.msra.mxu0 %v5676_v20  ;;  %v1184_v20 = vld [vmem:[#allocation11 + $0x6f0] sm:$0xff] }
 0x1ef   :  { %5679 = vmatprep.subr.bf16.mxu0 %v5678_v34  ;;  %v5756_v22 = vpack.c.bf16 %v1184_v20, %v1180_v19  ;;  %v1189_v34 = vld [vmem:[#allocation11 + $0x718] sm:$0xff]  ;;  %v1412_v19 = vld [vmem:[#allocation11 + $0x8] sm:$0xff] }
 0x1f0   :  { %5741 = vmatpush1.bf16.msra.mxu1 %v5740_v31  ;;  %v5694_v31 = vpack.c.bf16 %v1191_v26, %v1187_v23  ;;  %v5758_v41 = vpack.c.bf16 %v1193_v37, %v1189_v34  ;;  %v1416_v20 = vld [vmem:[#allocation11 + $0x28] sm:$0xff]  ;;  %v80_v23 = vld [vmem:[#allocation12 + $0x4] sm:$0xf]  ;;  %v1414_v26 = vld [vmem:[#allocation11 + $0x18] sm:$0xff] }
 0x1f1   :  { %5743 = vmatprep.subr.bf16.mxu1 %v5742_v45  ;;  %v1199_v45 = vld [vmem:[#allocation11 + $0x768] sm:$0xff]  ;;  %v7857_v33 = vrot.slane %v80_v23, %v85_v25  ;;  %v7861_v34 = vrot.slane %v80_v23, %v89_v27  ;;  %v7872_v27 = vrot.slane %v80_v23, %v93_v38 }
 0x1f2   :  { %5681 = vmatpush1.bf16.msra.mxu0 %v5680_v40  ;;  %v1192_v40 = vld [vmem:[#allocation11 + $0x730] sm:$0xff] }
 0x1f3   :  { %5683 = vmatprep.subr.bf16.mxu0 %v5682_v49  ;;  %v5760_v43 = vpack.c.bf16 %v1192_v40, %v1188_v39  ;;  %v1197_v49 = vld [vmem:[#allocation11 + $0x758] sm:$0xff] }
 0x1f4   :  { %5745 = vmatpush1.bf16.msra.mxu1 %v5744_v46  ;;  %v5698_v46 = vpack.c.bf16 %v1199_v45, %v1195_v44  ;;  %v5762_v54 = vpack.c.bf16 %v1201_v51, %v1197_v49 }
 0x1f5   :  { %5747 = vmatprep.subr.bf16.mxu1 %v5746_v58  ;;  %v1207_v58 = vld [vmem:[#allocation11 + $0x7a8] sm:$0xff] }
 0x1f6   :  { %5685 = vmatpush1.bf16.msra.mxu0 %v5684_v53  ;;  %v1200_v53 = vld [vmem:[#allocation11 + $0x770] sm:$0xff]  ;;  %v5702_v60 = vpack.c.bf16 %v1207_v58, %v1203_v57 }
 0x1f7   :  { %5687 = vmatprep.subr.bf16.mxu0 %v5686_v63  ;;  %v5764_v55 = vpack.c.bf16 %v1200_v53, %v1196_v52  ;;  %v1205_v63 = vld [vmem:[#allocation11 + $0x798] sm:$0xff] }
 0x1f8   :  { %5749 = vmatpush1.bf16.msra.mxu1 %v5748_v59  ;;  %v1202_v59 = vld [vmem:[#allocation11 + $0x780] sm:$0xff]  ;;  %v5766_v4 = vpack.c.bf16 %v1209_v2, %v1205_v63  ;;  %v7581_v2 = vld [vmem:[#allocation9] sm:$0xff] }
 0x1f9   :  { %5751 = vmatprep.subr.bf16.mxu1 %v5750_v9  ;;  %v5704_v3 = vpack.c.bf16 %v1206_v61, %v1202_v59  ;;  %v1215_v9 = vld [vmem:[#allocation11 + $0x7e8] sm:$0xff]  ;;  %vm1397_vm6 = vcmp.gt.s32.totalorder %v7581_v2, 2  ;;  %vm2027_vm7 = vcmp.gt.s32.totalorder %v7581_v2, 3  ;;  %vm3287_vm8 = vcmp.gt.s32.totalorder %v7581_v2, 5 }
 0x1fa   :  { %5689 = vmatpush1.bf16.msra.mxu0 %v5688_v5  ;;  %v1204_v5 = vld [vmem:[#allocation11 + $0x790] sm:$0xff]  ;;  %v5706_v12 = vpack.c.bf16 %v1215_v9, %v1211_v7  ;;  %vm4547_vm9 = vcmp.gt.s32.totalorder %v7581_v2, 7 }
 0x1fb   :  { %5691 = vmatprep.subr.bf16.mxu0 %v5690_v13  ;;  %v5768_v8 = vpack.c.bf16 %v1208_v6, %v1204_v5  ;;  %v1213_v13 = vld [vmem:[#allocation11 + $0x7d8] sm:$0xff]  ;;  %v3288_v5 = vsel %vm3287_vm8, 1, %v7711_v1  ;;  %v4548_v6 = vsel %vm4547_vm9, 1, %v7711_v1  ;;  %v1421_v2 = vld [vmem:[#allocation11 + $0x50] sm:$0xff] }
 0x1fc   :  { %5753 = vmatpush1.bf16.msra.mxu1 %v5752_v10  ;;  %v1210_v10 = vld [vmem:[#allocation11 + $0x7c0] sm:$0xff] }
 0x1fd   :  { %5755 = vmatprep.subr.bf16.mxu1 %v5754_v21  ;;  %v5708_v16 = vpack.c.bf16 %v1214_v11, %v1210_v10  ;;  %v5774_v21 = vpack.c.bf16 %v1416_v20, %v1412_v19 }
 0x1fe   :  { %5693 = vmatpush1.bf16.msra.mxu0 %v5692_v17  ;;  %v5770_v17 = vpack.c.bf16 %v1217_v14, %v1213_v13 }
 0x1ff   :  { %5695 = vmatprep.subr.bf16.mxu0 %v5694_v31  ;;  %v1418_v31 = vld [vmem:[#allocation11 + $0x38] sm:$0xff] }
 0x200   :  { %5757 = vmatpush1.bf16.msra.mxu1 %v5756_v22  ;;  %v5772_v22 = vpack.c.bf16 %v1216_v18, %v1212_v15  ;;  %v5838_v32 = vpack.c.bf16 %v1418_v31, %v1414_v26 }
 0x201   :  { %5759 = vmatprep.subr.bf16.mxu1 %v5758_v41 }
 0x202   :  { %5697 = vmatpush1.bf16.msra.mxu0 %v5696_v35 }
 0x203   :  { %5699 = vmatprep.subr.bf16.mxu0 %v5698_v46  ;;  %v7867_v46 = vrot.slane %v80_v23, %v97_v30 }
 0x204   :  { %5761 = vmatpush1.bf16.msra.mxu1 %v5760_v43 }
 0x205   :  { %5763 = vmatprep.subr.bf16.mxu1 %v5762_v54 }
 0x206   :  { %5701 = vmatpush1.bf16.msra.mxu0 %v5700_v50 }
 0x207   :  { %5703 = vmatprep.subr.bf16.mxu0 %v5702_v60 }
 0x208   :  { %5765 = vmatpush1.bf16.msra.mxu1 %v5764_v55 }
 0x209   :  { %5767 = vmatprep.subr.bf16.mxu1 %v5766_v4  ;;  %v2028_v4 = vsel %vm2027_vm7, 1, %v7711_v1 }
 0x20a   :  { %5705 = vmatpush1.bf16.msra.mxu0 %v5704_v3  ;;  %v1398_v3 = vsel %vm1397_vm6, 1, %v7711_v1 }
 0x20b   :  { %5707 = vmatprep.subr.bf16.mxu0 %v5706_v12  ;;  %1400 = vperm.xlu1 %7324, %v1398_v3   ;;  %v1425_v3 = vld [vmem:[#allocation11 + $0x70] sm:$0xff] }
 0x20c   :  { %5769 = vmatpush1.bf16.msra.mxu1 %v5768_v8 }
 0x20d   :  { %5771 = vmatprep.subr.bf16.mxu1 %v5770_v17 }
 0x20e   :  { %5709 = vmatpush1.bf16.msra.mxu0 %v5708_v16 }
 0x20f   :  { %5775 = vmatprep.subr.bf16.mxu0 %v5774_v21  ;;  %2030 = vperm.xlu1 %7324, %v2028_v4   ;;  %v1430_v4 = vld [vmem:[#allocation11 + $0x98] sm:$0xff] }
 0x210   :  { %5773 = vmatpush1.bf16.msra.mxu1 %v5772_v22 }
 0x211   :  { %5839 = vmatprep.subr.bf16.mxu1 %v5838_v32  ;;  %v445_v32 = vsel %vm139_vm4, %v7835_v56, 0.0  ;;  %v1417_v56 = vld [vmem:[#allocation11 + $0x30] sm:$0xff] }
 0x213   :  { %3290 = vperm.xlu1 %7324, %v3288_v5   ;;  %v1434_v5 = vld [vmem:[#allocation11 + $0xb8] sm:$0xff] }
 0x217   :  { %4550 = vperm.xlu1 %7324, %v4548_v6  }
 0x264   :  { %v658_v35 = vpop.f32.mrb[2].mxu0  ;;  %v729_v37 = vpop.f32.mrb[2].mxu1 }
 0x265   :  { %v659_v39 = vadd.f32 %v658_v35, %v7857_v33  ;;  %v660_v40 = vpop.f32.mrb[3].mxu0  ;;  %v731_v41 = vpop.f32.mrb[3].mxu1  ;;  %v730_v48 = vadd.f32 %v729_v37, %v7872_v27 }
 0x266   :  { %v661_v43 = vadd.f32 %v660_v40, %v7861_v34  ;;  %v732_v25 = vadd.f32 %v731_v41, %v7867_v46 }
 0x267   :  { %v5197_v44 = vmul.f32 -1.442695, %v659_v39  ;;  %v7899_v39 = vpop.permute.xlu0 %770 }
 0x268   :  { %v5198_v45 = vmul.f32 -1.442695, %v661_v43  ;;  %v5199_v47 = vmul.f32 -1.442695, %v732_v25  ;;  %vm772_vm10 = vcmp.eq.s32.totalorder %v7899_v39, 1  ;;  %v1411_v43 = vld [vmem:[#allocation11] sm:$0xff] }
 0x269   :  { %7341 = vpow2.f32 %v5197_v44  ;;  %v1415_v44 = vld [vmem:[#allocation11 + $0x20] sm:$0xff]  ;;  %v1420_v25 = vld [vmem:[#allocation11 + $0x48] sm:$0xff] }
 0x26a   :  { %7343 = vpow2.f32 %v5198_v45 }
 0x26b   :  { %7345 = vpow2.f32 %v5199_v47  ;;  %v1424_v47 = vld [vmem:[#allocation11 + $0x68] sm:$0xff] }
 0x26c   :  { %7347 = vtanh.f32 %v730_v48  ;;  %v1413_v48 = vld [vmem:[#allocation11 + $0x10] sm:$0xff] }
 0x273   :  { %v7342_v49 = vpop.eup %7341 }
 0x274   :  { %v7344_v50 = vpop.eup %7343  ;;  %v737_v51 = vadd.f32 1.0, %v7342_v49 }
 0x275   :  { %v743_v52 = vadd.f32 1.0, %v7344_v50  ;;  %v7346_v30 = vpop.eup %7345  ;;  %v5776_v50 = vpack.c.bf16 %v1415_v44, %v1411_v43  ;;  %v1443_v43 = vld [vmem:[#allocation11 + $0x100] sm:$0xff] }
 0x276   :  { %7349 = vrcp.f32 %v737_v51  ;;  %v7348_v53 = vpop.eup %7347  ;;  %v750_v58 = vadd.f32 1.0, %v7346_v30  ;;  %v1422_v51 = vld [vmem:[#allocation11 + $0x58] sm:$0xff]  ;;  %v1447_v44 = vld [vmem:[#allocation11 + $0x120] sm:$0xff] }
 0x277   :  { %7351 = vrcp.f32 %v743_v52  ;;  %v1426_v52 = vld [vmem:[#allocation11 + $0x78] sm:$0xff] }
 0x278   :  { %7353 = vrcp.f32 %v750_v58  ;;  %v1428_v58 = vld [vmem:[#allocation11 + $0x88] sm:$0xff] }
 0x280   :  { %v7350_v54 = vpop.eup %7349 }
 0x281   :  { %v7352_v55 = vpop.eup %7351  ;;  %v754_v57 = vmul.f32 %v7350_v54, %v7348_v53  ;;  %v5778_v53 = vpack.c.bf16 %v1424_v47, %v1420_v25  ;;  %v1419_v54 = vld [vmem:[#allocation11 + $0x40] sm:$0xff]  ;;  %v1456_v25 = vld [vmem:[#allocation11 + $0x168] sm:$0xff] }
 0x282   :  { %v753_v24 = vmul.f32 0.0, %v7352_v55  ;;  %v7354_v59 = vpop.eup %7353  ;;  %v1423_v55 = vld [vmem:[#allocation11 + $0x60] sm:$0xff] }
 0x284   :  { %v7875_v38 = vadd.f32 %v754_v57, %v753_v24  ;;  %v447_v57 = vsel %vm139_vm4, %v7840_v0, 0.0  ;;  %v1432_v24 = vld [vmem:[#allocation11 + $0xa8] sm:$0xff]  ;;  %v5780_v0 = vpack.c.bf16 %v1423_v55, %v1419_v54  ;;  %v1455_v54 = vld [vmem:[#allocation11 + $0x160] sm:$0xff] }
 0x285   :  { %v5782_v6 = vpack.c.bf16 %v1432_v24, %v1428_v58  ;;  %v1460_v55 = vld [vmem:[#allocation11 + $0x188] sm:$0xff] }
 0x286   :  { %7355 = vtanh.f32 %v7875_v38 }
 0x290   :  { %v7356_v60 = vpop.eup %7355 }
 0x291   :  { %v757_v61 = vmul.f32 %v7356_v60, %v7354_v59  ;;  %v5840_v59 = vpack.c.bf16 %v1417_v56, %v1413_v48  ;;  %v1445_v56 = vld [vmem:[#allocation11 + $0x110] sm:$0xff] }
 0x293   :  { %5246 = vmatprep.mubr.msk.f32.mxu0 %vm139_vm4, %v757_v61  ;;  %5248 = vmatprep.mubr.msk.f32.mxu1 %vm139_vm4, %v757_v61  ;;  %v7884_v63 = vsel %vm139_vm4, %v757_v61, 0.0  ;;  %v5842_v61 = vpack.c.bf16 %v1426_v52, %v1422_v51  ;;  %v1454_v51 = vld [vmem:[#allocation11 + $0x158] sm:$0xff] }
 0x294   :  { %764 = vst.msk [vmem:[#allocation14] sm:$0xff] %vm763_vm5, %v7884_v63  ;;  %v1458_v52 = vld [vmem:[#allocation11 + $0x178] sm:$0xff] }
 0x295   :  { %v5858_v24 = vpack.c.bf16 %v1458_v52, %v1454_v51  ;;  %v1483_v52 = vld [vmem:[#allocation11 + $0x240] sm:$0xff] }
 0x2a4   :  { %v979_v7 = vpop.f32.mrb[4].mxu0 }
 0x2a5   :  { %v980_v8 = vadd.f32 %v979_v7, %v7815_v28  ;;  %v981_v9 = vpop.f32.mrb[5].mxu0  ;;  %v1427_v7 = vld [vmem:[#allocation11 + $0x80] sm:$0xff] }
 0x2a6   :  { %v982_v10 = vadd.f32 %v981_v9, %v7819_v29  ;;  %v1050_v11 = vpop.f32.mrb[4].mxu1  ;;  %v1436_v9 = vld [vmem:[#allocation11 + $0xc8] sm:$0xff] }
 0x2a7   :  { %v5200_v12 = vmul.f32 -1.442695, %v980_v8  ;;  %v1052_v13 = vpop.f32.mrb[5].mxu1  ;;  %v1051_v17 = vadd.f32 %v1050_v11, %v7832_v42  ;;  %v1431_v8 = vld [vmem:[#allocation11 + $0xa0] sm:$0xff]  ;;  %v5844_v11 = vpack.c.bf16 %v1425_v3, %v1421_v2  ;;  %v1462_v3 = vld [vmem:[#allocation11 + $0x198] sm:$0xff] }
 0x2a8   :  { %v5201_v14 = vmul.f32 -1.442695, %v982_v10  ;;  %v1053_v15 = vadd.f32 %v1052_v13, %v7826_v36  ;;  %v1440_v10 = vld [vmem:[#allocation11 + $0xe8] sm:$0xff]  ;;  %v1429_v13 = vld [vmem:[#allocation11 + $0x90] sm:$0xff] }
 0x2a9   :  { %7357 = vpow2.f32 %v5200_v12  ;;  %v5846_v12 = vpack.c.bf16 %v1434_v5, %v1430_v4  ;;  %v1459_v5 = vld [vmem:[#allocation11 + $0x180] sm:$0xff] }
 0x2aa   :  { %7359 = vpow2.f32 %v5201_v14  ;;  %v5202_v16 = vmul.f32 -1.442695, %v1053_v15  ;;  %v1433_v14 = vld [vmem:[#allocation11 + $0xb0] sm:$0xff]  ;;  %v5784_v15 = vpack.c.bf16 %v1431_v8, %v1427_v7  ;;  %v1468_v7 = vld [vmem:[#allocation11 + $0x1c8] sm:$0xff] }
 0x2ab   :  { %v1472_v8 = vld [vmem:[#allocation11 + $0x1e8] sm:$0xff] }
 0x2ac   :  { %7361 = vpow2.f32 %v5202_v16  ;;  %v1438_v16 = vld [vmem:[#allocation11 + $0xd8] sm:$0xff] }
 0x2ad   :  { %7363 = vtanh.f32 %v1051_v17  ;;  %v1442_v17 = vld [vmem:[#allocation11 + $0xf8] sm:$0xff] }
 0x2b3   :  { %v7358_v18 = vpop.eup %7357 }
 0x2b4   :  { %v7360_v1 = vpop.eup %7359  ;;  %v1058_v19 = vadd.f32 1.0, %v7358_v18  ;;  %v5786_v18 = vpack.c.bf16 %v1440_v10, %v1436_v9 }
 0x2b5   :  { %v1064_v20 = vadd.f32 1.0, %v7360_v1  ;;  %v1435_v1 = vld [vmem:[#allocation11 + $0xc0] sm:$0xff] }
 0x2b6   :  { %7365 = vrcp.f32 %v1058_v19  ;;  %v7362_v21 = vpop.eup %7361  ;;  %v1439_v19 = vld [vmem:[#allocation11 + $0xe0] sm:$0xff] }
 0x2b7   :  { %7367 = vrcp.f32 %v1064_v20  ;;  %v7364_v22 = vpop.eup %7363  ;;  %v1071_v26 = vadd.f32 1.0, %v7362_v21  ;;  %v1444_v20 = vld [vmem:[#allocation11 + $0x108] sm:$0xff] }
 0x2b8   :  { %v1448_v21 = vld [vmem:[#allocation11 + $0x128] sm:$0xff] }
 0x2b9   :  { %7369 = vrcp.f32 %v1071_v26  ;;  %v1437_v26 = vld [vmem:[#allocation11 + $0xd0] sm:$0xff] }
 0x2c0   :  { %v7366_v23 = vpop.eup %7365 }
 0x2c1   :  { %v7368_v31 = vpop.eup %7367  ;;  %v1075_v35 = vmul.f32 %v7366_v23, %v7364_v22  ;;  %v5848_v22 = vpack.c.bf16 %v1433_v14, %v1429_v13  ;;  %v5850_v23 = vpack.c.bf16 %v1442_v17, %v1438_v16  ;;  %v1470_v14 = vld [vmem:[#allocation11 + $0x1d8] sm:$0xff]  ;;  %v5802_v16 = vpack.c.bf16 %v1472_v8, %v1468_v7  ;;  %v1467_v17 = vld [vmem:[#allocation11 + $0x1c0] sm:$0xff] }
 0x2c2   :  { %v1074_v37 = vmul.f32 %v7368_v31, %v445_v32  ;;  %v1441_v31 = vld [vmem:[#allocation11 + $0xf0] sm:$0xff] }
 0x2c3   :  { %v7370_v45 = vpop.eup %7369  ;;  %v5852_v47 = vpack.c.bf16 %v1441_v31, %v1437_v26  ;;  %v1478_v31 = vld [vmem:[#allocation11 + $0x218] sm:$0xff] }
 0x2c4   :  { %v1076_v40 = vadd.f32 %v1075_v35, %v1074_v37  ;;  %v1446_v35 = vld [vmem:[#allocation11 + $0x118] sm:$0xff] }
 0x2c5   :  { %v1450_v37 = vld [vmem:[#allocation11 + $0x138] sm:$0xff] }
 0x2c6   :  { %7371 = vtanh.f32 %v1076_v40  ;;  %v7904_v41 = vsel %vm772_vm10, %v1076_v40, %v445_v32  ;;  %v5788_v32 = vpack.c.bf16 %v1439_v19, %v1435_v1  ;;  %v5790_v40 = vpack.c.bf16 %v1448_v21, %v1444_v20  ;;  %v1476_v1 = vld [vmem:[#allocation11 + $0x208] sm:$0xff] }
 0x2c7   :  { %v5854_v48 = vpack.c.bf16 %v1450_v37, %v1446_v35  ;;  %v1480_v19 = vld [vmem:[#allocation11 + $0x228] sm:$0xff]  ;;  %v1475_v37 = vld [vmem:[#allocation11 + $0x200] sm:$0xff] }
 0x2c8   :  { %v5806_v35 = vpack.c.bf16 %v1480_v19, %v1476_v1 }
 0x2d0   :  { %v7372_v49 = vpop.eup %7371 }
 0x2d1   :  { %v1078_v30 = vmul.f32 %v7372_v49, %v7370_v45  ;;  %v1452_v45 = vld [vmem:[#allocation11 + $0x148] sm:$0xff]  ;;  %v1449_v49 = vld [vmem:[#allocation11 + $0x130] sm:$0xff] }
 0x2d2   :  { %v5856_v58 = vpack.c.bf16 %v1449_v49, %v1445_v56  ;;  %v1486_v49 = vld [vmem:[#allocation11 + $0x258] sm:$0xff] }
 0x2d3   :  { %5247 = vmatmul.mubr.msk.f32.vlgmr.msra.gmra.mrb[6].mxu0 %vm772_vm10, %v1078_v30  ;;  %5249 = vmatmul.mubr.msk.f32.vlgmr.msra.gmra.mrb[6].mxu1 %vm772_vm10, %v1078_v30  ;;  %v7915_v60 = vsel %vm772_vm10, %v1078_v30, %v447_v57  ;;  %v5794_v30 = vpack.c.bf16 %v1456_v25, %v1452_v45  ;;  %v1464_v57 = vld [vmem:[#allocation11 + $0x1a8] sm:$0xff] }
 0x2d4   :  { %5777 = vmatpush1.bf16.msra.mxu0 %v5776_v50  ;;  %1607 = vmatprep.mubr.f32.mxu0 %v7915_v60  ;;  %v5792_v50 = vpack.c.bf16 %v1447_v44, %v1443_v43  ;;  %v5798_v4 = vpack.c.bf16 %v1464_v57, %v1460_v55  ;;  %v1484_v43 = vld [vmem:[#allocation11 + $0x248] sm:$0xff] }
 0x2d5   :  { %1678 = vmatprep.mubr.f32.mxu1 %v7915_v60  ;;  %5779 = vmatprep.subr.bf16.mxu0 %v5778_v53  ;;  %v1451_v53 = vld [vmem:[#allocation11 + $0x140] sm:$0xff]  ;;  %v1488_v44 = vld [vmem:[#allocation11 + $0x268] sm:$0xff] }
 0x2d6   :  { %5841 = vmatpush1.bf16.msra.mxu1 %v5840_v59  ;;  %v1453_v59 = vld [vmem:[#allocation11 + $0x150] sm:$0xff]  ;;  %v5796_v2 = vpack.c.bf16 %v1455_v54, %v1451_v53  ;;  %v5810_v51 = vpack.c.bf16 %v1488_v44, %v1484_v43  ;;  %v1492_v53 = vld [vmem:[#allocation11 + $0x288] sm:$0xff] }
 0x2d7   :  { %5843 = vmatprep.subr.bf16.mxu1 %v5842_v61  ;;  %v1457_v61 = vld [vmem:[#allocation11 + $0x170] sm:$0xff]  ;;  %v1496_v54 = vld [vmem:[#allocation11 + $0x2a8] sm:$0xff] }
 0x2d8   :  { %5781 = vmatpush1.bf16.msra.mxu0 %v5780_v0  ;;  %v1466_v0 = vld [vmem:[#allocation11 + $0x1b8] sm:$0xff]  ;;  %v5860_v9 = vpack.c.bf16 %v1457_v61, %v1453_v59 }
 0x2d9   :  { %5783 = vmatprep.subr.bf16.mxu0 %v5782_v6  ;;  %v1463_v6 = vld [vmem:[#allocation11 + $0x1a0] sm:$0xff]  ;;  %v5862_v10 = vpack.c.bf16 %v1466_v0, %v1462_v3  ;;  %v1494_v61 = vld [vmem:[#allocation11 + $0x298] sm:$0xff]  ;;  %v5814_v3 = vpack.c.bf16 %v1496_v54, %v1492_v53 }
 0x2da   :  { %5845 = vmatpush1.bf16.msra.mxu1 %v5844_v11  ;;  %v1461_v11 = vld [vmem:[#allocation11 + $0x190] sm:$0xff]  ;;  %v5800_v13 = vpack.c.bf16 %v1463_v6, %v1459_v5  ;;  %v1491_v0 = vld [vmem:[#allocation11 + $0x280] sm:$0xff]  ;;  %v1500_v5 = vld [vmem:[#allocation11 + $0x2c8] sm:$0xff] }
 0x2db   :  { %5847 = vmatprep.subr.bf16.mxu1 %v5846_v12  ;;  %v1465_v12 = vld [vmem:[#allocation11 + $0x1b0] sm:$0xff]  ;;  %v1504_v6 = vld [vmem:[#allocation11 + $0x2e8] sm:$0xff] }
 0x2dc   :  { %5785 = vmatpush1.bf16.msra.mxu0 %v5784_v15  ;;  %v1474_v15 = vld [vmem:[#allocation11 + $0x1f8] sm:$0xff]  ;;  %v5864_v20 = vpack.c.bf16 %v1465_v12, %v1461_v11 }
 0x2dd   :  { %5787 = vmatprep.subr.bf16.mxu0 %v5786_v18  ;;  %v1471_v18 = vld [vmem:[#allocation11 + $0x1e0] sm:$0xff]  ;;  %v5866_v21 = vpack.c.bf16 %v1474_v15, %v1470_v14  ;;  %v1502_v12 = vld [vmem:[#allocation11 + $0x2d8] sm:$0xff]  ;;  %v5818_v14 = vpack.c.bf16 %v1504_v6, %v1500_v5 }
 0x2de   :  { %5849 = vmatpush1.bf16.msra.mxu1 %v5848_v22  ;;  %v1469_v22 = vld [vmem:[#allocation11 + $0x1d0] sm:$0xff]  ;;  %v5804_v26 = vpack.c.bf16 %v1471_v18, %v1467_v17  ;;  %v1499_v15 = vld [vmem:[#allocation11 + $0x2c0] sm:$0xff]  ;;  %v1508_v17 = vld [vmem:[#allocation11 + $0x308] sm:$0xff] }
 0x2df   :  { %5851 = vmatprep.subr.bf16.mxu1 %v5850_v23  ;;  %v1473_v23 = vld [vmem:[#allocation11 + $0x1f0] sm:$0xff]  ;;  %v1512_v18 = vld [vmem:[#allocation11 + $0x328] sm:$0xff] }
 0x2e0   :  { %5789 = vmatpush1.bf16.msra.mxu0 %v5788_v32  ;;  %v1482_v32 = vld [vmem:[#allocation11 + $0x238] sm:$0xff]  ;;  %v5868_v45 = vpack.c.bf16 %v1473_v23, %v1469_v22 }
 0x2e1   :  { %5791 = vmatprep.subr.bf16.mxu0 %v5790_v40  ;;  %v1479_v40 = vld [vmem:[#allocation11 + $0x220] sm:$0xff]  ;;  %v5870_v25 = vpack.c.bf16 %v1482_v32, %v1478_v31  ;;  %v1510_v23 = vld [vmem:[#allocation11 + $0x318] sm:$0xff]  ;;  %v5822_v31 = vpack.c.bf16 %v1512_v18, %v1508_v17  ;;  %v1533_v17 = vld [vmem:[#allocation11 + $0x3d0] sm:$0xff] }
 0x2e2   :  { %5853 = vmatpush1.bf16.msra.mxu1 %v5852_v47  ;;  %v1477_v47 = vld [vmem:[#allocation11 + $0x210] sm:$0xff]  ;;  %v5808_v56 = vpack.c.bf16 %v1479_v40, %v1475_v37  ;;  %v1507_v32 = vld [vmem:[#allocation11 + $0x300] sm:$0xff]  ;;  %v1516_v37 = vld [vmem:[#allocation11 + $0x348] sm:$0xff] }
 0x2e3   :  { %5855 = vmatprep.subr.bf16.mxu1 %v5854_v48  ;;  %v1481_v48 = vld [vmem:[#allocation11 + $0x230] sm:$0xff]  ;;  %v1520_v40 = vld [vmem:[#allocation11 + $0x368] sm:$0xff] }
 0x2e4   :  { %5793 = vmatpush1.bf16.msra.mxu0 %v5792_v50  ;;  %v1490_v50 = vld [vmem:[#allocation11 + $0x278] sm:$0xff]  ;;  %v5872_v55 = vpack.c.bf16 %v1481_v48, %v1477_v47  ;;  %v1537_v18 = vld [vmem:[#allocation11 + $0x3f0] sm:$0xff] }
 0x2e5   :  { %5795 = vmatprep.subr.bf16.mxu0 %v5794_v30  ;;  %v1487_v30 = vld [vmem:[#allocation11 + $0x260] sm:$0xff]  ;;  %v5874_v57 = vpack.c.bf16 %v1490_v50, %v1486_v49  ;;  %v1518_v48 = vld [vmem:[#allocation11 + $0x358] sm:$0xff]  ;;  %v5826_v49 = vpack.c.bf16 %v1520_v40, %v1516_v37 }
 0x2e6   :  { %5857 = vmatpush1.bf16.msra.mxu1 %v5856_v58  ;;  %v1485_v58 = vld [vmem:[#allocation11 + $0x250] sm:$0xff]  ;;  %v5812_v59 = vpack.c.bf16 %v1487_v30, %v1483_v52  ;;  %v1515_v50 = vld [vmem:[#allocation11 + $0x340] sm:$0xff]  ;;  %v1524_v52 = vld [vmem:[#allocation11 + $0x388] sm:$0xff] }
 0x2e7   :  { %5859 = vmatprep.subr.bf16.mxu1 %v5858_v24  ;;  %v1489_v24 = vld [vmem:[#allocation11 + $0x270] sm:$0xff]  ;;  %v1528_v30 = vld [vmem:[#allocation11 + $0x3a8] sm:$0xff] }
 0x2e8   :  { %5797 = vmatpush1.bf16.msra.mxu0 %v5796_v2  ;;  %v1498_v2 = vld [vmem:[#allocation11 + $0x2b8] sm:$0xff]  ;;  %v5876_v7 = vpack.c.bf16 %v1489_v24, %v1485_v58 }
 0x2e9   :  { %5799 = vmatprep.subr.bf16.mxu0 %v5798_v4  ;;  %v1495_v4 = vld [vmem:[#allocation11 + $0x2a0] sm:$0xff]  ;;  %v5878_v8 = vpack.c.bf16 %v1498_v2, %v1494_v61  ;;  %v1526_v24 = vld [vmem:[#allocation11 + $0x398] sm:$0xff]  ;;  %v5830_v61 = vpack.c.bf16 %v1528_v30, %v1524_v52  ;;  %v1730_v30 = vld [vmem:[#allocation11 + $0x450] sm:$0xff] }
 0x2ea   :  { %5861 = vmatpush1.bf16.msra.mxu1 %v5860_v9  ;;  %v1493_v9 = vld [vmem:[#allocation11 + $0x290] sm:$0xff]  ;;  %v5816_v11 = vpack.c.bf16 %v1495_v4, %v1491_v0  ;;  %v1523_v2 = vld [vmem:[#allocation11 + $0x380] sm:$0xff]  ;;  %v1532_v0 = vld [vmem:[#allocation11 + $0x3c8] sm:$0xff] }
 0x2eb   :  { %5863 = vmatprep.subr.bf16.mxu1 %v5862_v10  ;;  %v1497_v10 = vld [vmem:[#allocation11 + $0x2b0] sm:$0xff]  ;;  %v1536_v4 = vld [vmem:[#allocation11 + $0x3e8] sm:$0xff]  ;;  %v1735_v52 = vld [vmem:[#allocation11 + $0x478] sm:$0xff] }
 0x2ec   :  { %5801 = vmatpush1.bf16.msra.mxu0 %v5800_v13  ;;  %v1506_v13 = vld [vmem:[#allocation11 + $0x2f8] sm:$0xff]  ;;  %v5880_v1 = vpack.c.bf16 %v1497_v10, %v1493_v9 }
 0x2ed   :  { %5803 = vmatprep.subr.bf16.mxu0 %v5802_v16  ;;  %v1503_v16 = vld [vmem:[#allocation11 + $0x2e0] sm:$0xff]  ;;  %v5882_v19 = vpack.c.bf16 %v1506_v13, %v1502_v12  ;;  %v1534_v10 = vld [vmem:[#allocation11 + $0x3d8] sm:$0xff]  ;;  %v5834_v12 = vpack.c.bf16 %v1536_v4, %v1532_v0 }
 0x2ee   :  { %5865 = vmatpush1.bf16.msra.mxu1 %v5864_v20  ;;  %v1501_v20 = vld [vmem:[#allocation11 + $0x2d0] sm:$0xff]  ;;  %v5820_v22 = vpack.c.bf16 %v1503_v16, %v1499_v15  ;;  %v1531_v13 = vld [vmem:[#allocation11 + $0x3c0] sm:$0xff] }
 0x2ef   :  { %5867 = vmatprep.subr.bf16.mxu1 %v5866_v21  ;;  %v1505_v21 = vld [vmem:[#allocation11 + $0x2f0] sm:$0xff] }
 0x2f0   :  { %5805 = vmatpush1.bf16.msra.mxu0 %v5804_v26  ;;  %v1514_v26 = vld [vmem:[#allocation11 + $0x338] sm:$0xff]  ;;  %v5884_v43 = vpack.c.bf16 %v1505_v21, %v1501_v20  ;;  %v1404_v20 = vld [vmem:[#allocation6 + $0x10] sm:$0xff] }
 0x2f1   :  { %5807 = vmatprep.subr.bf16.mxu0 %v5806_v35  ;;  %v1511_v35 = vld [vmem:[#allocation11 + $0x320] sm:$0xff]  ;;  %v5886_v44 = vpack.c.bf16 %v1514_v26, %v1510_v23  ;;  %v1721_v21 = vld [vmem:[#allocation11 + $0x408] sm:$0xff] }
 0x2f2   :  { %5869 = vmatpush1.bf16.msra.mxu1 %v5868_v45  ;;  %v1509_v45 = vld [vmem:[#allocation11 + $0x310] sm:$0xff]  ;;  %v5824_v47 = vpack.c.bf16 %v1511_v35, %v1507_v32  ;;  %v1720_v23 = vld [vmem:[#allocation11 + $0x400] sm:$0xff]  ;;  %v1723_v32 = vld [vmem:[#allocation11 + $0x418] sm:$0xff] }
 0x2f3   :  { %5871 = vmatprep.subr.bf16.mxu1 %v5870_v25  ;;  %v1513_v25 = vld [vmem:[#allocation11 + $0x330] sm:$0xff]  ;;  %v1727_v35 = vld [vmem:[#allocation11 + $0x438] sm:$0xff] }
 0x2f4   :  { %5809 = vmatpush1.bf16.msra.mxu0 %v5808_v56  ;;  %v1522_v56 = vld [vmem:[#allocation11 + $0x378] sm:$0xff]  ;;  %v5888_v53 = vpack.c.bf16 %v1513_v25, %v1509_v45  ;;  %v5966_v40 = vpack.c.bf16 %v1727_v35, %v1723_v32  ;;  %v1729_v25 = vld [vmem:[#allocation11 + $0x448] sm:$0xff] }
 0x2f5   :  { %5811 = vmatprep.subr.bf16.mxu0 %v5810_v51  ;;  %v1519_v51 = vld [vmem:[#allocation11 + $0x360] sm:$0xff]  ;;  %v5890_v54 = vpack.c.bf16 %v1522_v56, %v1518_v48 }
 0x2f6   :  { %5873 = vmatpush1.bf16.msra.mxu1 %v5872_v55  ;;  %v1517_v55 = vld [vmem:[#allocation11 + $0x350] sm:$0xff]  ;;  %v5828_v58 = vpack.c.bf16 %v1519_v51, %v1515_v50  ;;  %v1728_v56 = vld [vmem:[#allocation11 + $0x440] sm:$0xff]  ;;  %v1731_v50 = vld [vmem:[#allocation11 + $0x458] sm:$0xff] }
 0x2f7   :  { %5875 = vmatprep.subr.bf16.mxu1 %v5874_v57  ;;  %v1521_v57 = vld [vmem:[#allocation11 + $0x370] sm:$0xff] }
 0x2f8   :  { %5813 = vmatpush1.bf16.msra.mxu0 %v5812_v59  ;;  %v1530_v59 = vld [vmem:[#allocation11 + $0x3b8] sm:$0xff]  ;;  %v5892_v5 = vpack.c.bf16 %v1521_v57, %v1517_v55  ;;  %v1737_v57 = vld [vmem:[#allocation11 + $0x488] sm:$0xff] }
 0x2f9   :  { %5815 = vmatprep.subr.bf16.mxu0 %v5814_v3  ;;  %v1527_v3 = vld [vmem:[#allocation11 + $0x3a0] sm:$0xff]  ;;  %v5894_v6 = vpack.c.bf16 %v1530_v59, %v1526_v24 }
 0x2fa   :  { %5877 = vmatpush1.bf16.msra.mxu1 %v5876_v7  ;;  %v1525_v7 = vld [vmem:[#allocation11 + $0x390] sm:$0xff]  ;;  %v5832_v9 = vpack.c.bf16 %v1527_v3, %v1523_v2  ;;  %v1736_v24 = vld [vmem:[#allocation11 + $0x480] sm:$0xff]  ;;  %v1739_v2 = vld [vmem:[#allocation11 + $0x498] sm:$0xff] }
 0x2fb   :  { %5879 = vmatprep.subr.bf16.mxu1 %v5878_v8  ;;  %v1529_v8 = vld [vmem:[#allocation11 + $0x3b0] sm:$0xff]  ;;  %v1743_v3 = vld [vmem:[#allocation11 + $0x4b8] sm:$0xff] }
 0x2fc   :  { %5817 = vmatpush1.bf16.msra.mxu0 %v5816_v11  ;;  %v1538_v11 = vld [vmem:[#allocation11 + $0x3f8] sm:$0xff]  ;;  %v5896_v15 = vpack.c.bf16 %v1529_v8, %v1525_v7  ;;  %v5974_v4 = vpack.c.bf16 %v1743_v3, %v1739_v2  ;;  %v1745_v7 = vld [vmem:[#allocation11 + $0x4c8] sm:$0xff]  ;;  %v1770_v3 = vld [vmem:[#allocation11 + $0x590] sm:$0xff] }
 0x2fd   :  { %5819 = vmatprep.subr.bf16.mxu0 %v5818_v14  ;;  %v1535_v14 = vld [vmem:[#allocation11 + $0x3e0] sm:$0xff]  ;;  %v5898_v16 = vpack.c.bf16 %v1538_v11, %v1534_v10  ;;  %v1775_v2 = vld [vmem:[#allocation11 + $0x5b8] sm:$0xff] }
 0x2fe   :  { %5881 = vmatpush1.bf16.msra.mxu1 %v5880_v1  ;;  %v5836_v1 = vpack.c.bf16 %v1535_v14, %v1531_v13  ;;  %v1744_v10 = vld [vmem:[#allocation11 + $0x4c0] sm:$0xff]  ;;  %v1747_v13 = vld [vmem:[#allocation11 + $0x4d8] sm:$0xff] }
 0x2ff   :  { %5883 = vmatprep.subr.bf16.mxu1 %v5882_v19  ;;  %v5900_v19 = vpack.c.bf16 %v1537_v18, %v1533_v17  ;;  %v1748_v11 = vld [vmem:[#allocation11 + $0x4e0] sm:$0xff]  ;;  %v1751_v14 = vld [vmem:[#allocation11 + $0x4f8] sm:$0xff]  ;;  %v1750_v18 = vld [vmem:[#allocation11 + $0x4f0] sm:$0xff] }
 0x300   :  { %5821 = vmatpush1.bf16.msra.mxu0 %v5820_v22  ;;  %v1725_v22 = vld [vmem:[#allocation11 + $0x428] sm:$0xff]  ;;  %v5978_v17 = vpack.c.bf16 %v1751_v14, %v1747_v13  ;;  %v1783_v13 = vld [vmem:[#allocation11 + $0x5f8] sm:$0xff]  ;;  %v1778_v14 = vld [vmem:[#allocation11 + $0x5d0] sm:$0xff] }
 0x301   :  { %5823 = vmatprep.subr.bf16.mxu0 %v5822_v31  ;;  %v5902_v26 = vpack.c.bf16 %v1725_v22, %v1721_v21  ;;  %v1724_v31 = vld [vmem:[#allocation11 + $0x420] sm:$0xff] }
 0x302   :  { %5885 = vmatpush1.bf16.msra.mxu1 %v5884_v43  ;;  %v5904_v37 = vpack.c.bf16 %v1724_v31, %v1720_v23  ;;  %v1722_v43 = vld [vmem:[#allocation11 + $0x410] sm:$0xff]  ;;  %v1752_v21 = vld [vmem:[#allocation11 + $0x500] sm:$0xff]  ;;  %v1755_v23 = vld [vmem:[#allocation11 + $0x518] sm:$0xff] }
 0x303   :  { %5887 = vmatprep.subr.bf16.mxu1 %v5886_v44  ;;  %v1726_v44 = vld [vmem:[#allocation11 + $0x430] sm:$0xff]  ;;  %v1756_v22 = vld [vmem:[#allocation11 + $0x520] sm:$0xff]  ;;  %v1759_v31 = vld [vmem:[#allocation11 + $0x538] sm:$0xff] }
 0x304   :  { %5825 = vmatpush1.bf16.msra.mxu0 %v5824_v47  ;;  %v5968_v45 = vpack.c.bf16 %v1726_v44, %v1722_v43  ;;  %v1733_v47 = vld [vmem:[#allocation11 + $0x468] sm:$0xff]  ;;  %v5982_v32 = vpack.c.bf16 %v1759_v31, %v1755_v23  ;;  %v5920_v35 = vpack.c.bf16 %v1756_v22, %v1752_v21  ;;  %v1788_v21 = vld [vmem:[#allocation11 + $0x620] sm:$0xff]  ;;  %v1787_v22 = vld [vmem:[#allocation11 + $0x618] sm:$0xff] }
 0x305   :  { %5827 = vmatprep.subr.bf16.mxu0 %v5826_v49  ;;  %v5906_v48 = vpack.c.bf16 %v1733_v47, %v1729_v25  ;;  %v1732_v49 = vld [vmem:[#allocation11 + $0x460] sm:$0xff]  ;;  %v1761_v44 = vld [vmem:[#allocation11 + $0x548] sm:$0xff]  ;;  %v1786_v31 = vld [vmem:[#allocation11 + $0x610] sm:$0xff] }
 0x306   :  { %5889 = vmatpush1.bf16.msra.mxu1 %v5888_v53  ;;  %v5908_v51 = vpack.c.bf16 %v1732_v49, %v1728_v56  ;;  %v1734_v53 = vld [vmem:[#allocation11 + $0x470] sm:$0xff]  ;;  %v1760_v47 = vld [vmem:[#allocation11 + $0x540] sm:$0xff]  ;;  %v1763_v56 = vld [vmem:[#allocation11 + $0x558] sm:$0xff] }
 0x307   :  { %5891 = vmatprep.subr.bf16.mxu1 %v5890_v54  ;;  %v5970_v54 = vpack.c.bf16 %v1735_v52, %v1731_v50  ;;  %v5972_v55 = vpack.c.bf16 %v1734_v53, %v1730_v30  ;;  %v1767_v50 = vld [vmem:[#allocation11 + $0x578] sm:$0xff]  ;;  %v1766_v52 = vld [vmem:[#allocation11 + $0x570] sm:$0xff] }
 0x308   :  { %5829 = vmatpush1.bf16.msra.mxu0 %v5828_v58  ;;  %v1741_v58 = vld [vmem:[#allocation11 + $0x4a8] sm:$0xff]  ;;  %v5986_v30 = vpack.c.bf16 %v1767_v50, %v1763_v56  ;;  %v1799_v56 = vld [vmem:[#allocation11 + $0x678] sm:$0xff]  ;;  %v1798_v50 = vld [vmem:[#allocation11 + $0x670] sm:$0xff] }
 0x309   :  { %5831 = vmatprep.subr.bf16.mxu0 %v5830_v61  ;;  %v5910_v59 = vpack.c.bf16 %v1741_v58, %v1737_v57  ;;  %v1740_v61 = vld [vmem:[#allocation11 + $0x4a0] sm:$0xff] }
 0x30a   :  { %5893 = vmatpush1.bf16.msra.mxu1 %v5892_v5  ;;  %v5912_v0 = vpack.c.bf16 %v1740_v61, %v1736_v24  ;;  %v1738_v5 = vld [vmem:[#allocation11 + $0x490] sm:$0xff]  ;;  %v1768_v58 = vld [vmem:[#allocation11 + $0x580] sm:$0xff] }
 0x30b   :  { %5895 = vmatprep.subr.bf16.mxu1 %v5894_v6  ;;  %v1742_v6 = vld [vmem:[#allocation11 + $0x4b0] sm:$0xff]  ;;  %v1772_v24 = vld [vmem:[#allocation11 + $0x5a0] sm:$0xff] }
 0x30c   :  { %5833 = vmatpush1.bf16.msra.mxu0 %v5832_v9  ;;  %v5976_v8 = vpack.c.bf16 %v1742_v6, %v1738_v5  ;;  %v1749_v9 = vld [vmem:[#allocation11 + $0x4e8] sm:$0xff]  ;;  %v5928_v61 = vpack.c.bf16 %v1772_v24, %v1768_v58  ;;  %v1803_v58 = vld [vmem:[#allocation11 + $0x698] sm:$0xff] }
 0x30d   :  { %5835 = vmatprep.subr.bf16.mxu0 %v5834_v12  ;;  %v5914_v12 = vpack.c.bf16 %v1749_v9, %v1745_v7  ;;  %v1777_v6 = vld [vmem:[#allocation11 + $0x5c8] sm:$0xff]  ;;  %v1776_v9 = vld [vmem:[#allocation11 + $0x5c0] sm:$0xff] }
 0x30e   :  { %5897 = vmatpush1.bf16.msra.mxu1 %v5896_v15  ;;  %v1746_v15 = vld [vmem:[#allocation11 + $0x4d0] sm:$0xff]  ;;  %v1781_v7 = vld [vmem:[#allocation11 + $0x5e8] sm:$0xff] }
 0x30f   :  { %5899 = vmatprep.subr.bf16.mxu1 %v5898_v16  ;;  %v5916_v16 = vpack.c.bf16 %v1748_v11, %v1744_v10  ;;  %v1780_v10 = vld [vmem:[#allocation11 + $0x5e0] sm:$0xff]  ;;  %v1779_v11 = vld [vmem:[#allocation11 + $0x5d8] sm:$0xff] }
 0x310   :  { %5837 = vmatpush1.bf16.msra.mxu0 %v5836_v1  ;;  %v1753_v1 = vld [vmem:[#allocation11 + $0x508] sm:$0xff] }
 0x311   :  { %5903 = vmatprep.subr.bf16.mxu0 %v5902_v26  ;;  %v5980_v26 = vpack.c.bf16 %v1750_v18, %v1746_v15  ;;  %v1782_v15 = vld [vmem:[#allocation11 + $0x5f0] sm:$0xff]  ;;  %v1785_v18 = vld [vmem:[#allocation11 + $0x608] sm:$0xff] }
 0x312   :  { %5901 = vmatpush1.bf16.msra.mxu1 %v5900_v19  ;;  %v1757_v19 = vld [vmem:[#allocation11 + $0x528] sm:$0xff] }
 0x313   :  { %1608 = vmatmul.mubr.f32.vlgmr.msra.gmra.mrb[8].mxu0 %v1404_v20  ;;  %5967 = vmatprep.subr.bf16.mxu1 %v5966_v40  ;;  %v1758_v40 = vld [vmem:[#allocation11 + $0x530] sm:$0xff] }
 0x314   :  { %5905 = vmatpush1.bf16.msra.mxu0 %v5904_v37  ;;  %v1754_v37 = vld [vmem:[#allocation11 + $0x510] sm:$0xff] }
 0x315   :  { %1679 = vmatmul.mubr.f32.vlgmr.msra.gmra.mrb[8].mxu1 %v1404_v20  ;;  %5907 = vmatprep.subr.bf16.mxu0 %v5906_v48  ;;  %v5918_v20 = vpack.c.bf16 %v1757_v19, %v1753_v1  ;;  %v5984_v43 = vpack.c.bf16 %v1758_v40, %v1754_v37  ;;  %v1764_v48 = vld [vmem:[#allocation11 + $0x560] sm:$0xff]  ;;  %v1789_v1 = vld [vmem:[#allocation11 + $0x628] sm:$0xff] }
 0x316   :  { %5969 = vmatpush1.bf16.msra.mxu1 %v5968_v45  ;;  %v1765_v45 = vld [vmem:[#allocation11 + $0x568] sm:$0xff]  ;;  %v5924_v49 = vpack.c.bf16 %v1764_v48, %v1760_v47  ;;  %v5934_v19 = vpack.c.bf16 %v1789_v1, %v1785_v18  ;;  %v1795_v47 = vld [vmem:[#allocation11 + $0x658] sm:$0xff]  ;;  %v1816_v1 = vld [vmem:[#allocation11 + $0x700] sm:$0xff] }
 0x317   :  { %5971 = vmatprep.subr.bf16.mxu1 %v5970_v54  ;;  %v5922_v25 = vpack.c.bf16 %v1765_v45, %v1761_v44  ;;  %v1769_v54 = vld [vmem:[#allocation11 + $0x588] sm:$0xff]  ;;  %v1792_v45 = vld [vmem:[#allocation11 + $0x640] sm:$0xff] }
 0x318   :  { %5909 = vmatpush1.bf16.msra.mxu0 %v5908_v51  ;;  %v1762_v51 = vld [vmem:[#allocation11 + $0x550] sm:$0xff]  ;;  %v1793_v40 = vld [vmem:[#allocation11 + $0x648] sm:$0xff] }
 0x319   :  { %5911 = vmatprep.subr.bf16.mxu0 %v5910_v59  ;;  %v5988_v53 = vpack.c.bf16 %v1766_v52, %v1762_v51  ;;  %v1771_v59 = vld [vmem:[#allocation11 + $0x598] sm:$0xff]  ;;  %v6002_v51 = vpack.c.bf16 %v1799_v56, %v1795_v47  ;;  %v1830_v56 = vld [vmem:[#allocation11 + $0x770] sm:$0xff] }
 0x31a   :  { %5973 = vmatpush1.bf16.msra.mxu1 %v5972_v55  ;;  %v1773_v55 = vld [vmem:[#allocation11 + $0x5a8] sm:$0xff]  ;;  %v1831_v47 = vld [vmem:[#allocation11 + $0x778] sm:$0xff] }
 0x31b   :  { %5975 = vmatprep.subr.bf16.mxu1 %v5974_v4  ;;  %v5926_v57 = vpack.c.bf16 %v1773_v55, %v1769_v54  ;;  %v5990_v4 = vpack.c.bf16 %v1775_v2, %v1771_v59  ;;  %v1800_v55 = vld [vmem:[#allocation11 + $0x680] sm:$0xff]  ;;  %v1807_v59 = vld [vmem:[#allocation11 + $0x6b8] sm:$0xff]  ;;  %v1806_v2 = vld [vmem:[#allocation11 + $0x6b0] sm:$0xff] }
 0x31c   :  { %5913 = vmatpush1.bf16.msra.mxu0 %v5912_v0  ;;  %v1774_v0 = vld [vmem:[#allocation11 + $0x5b0] sm:$0xff] }
 0x31d   :  { %5915 = vmatprep.subr.bf16.mxu0 %v5914_v12  ;;  %v5992_v5 = vpack.c.bf16 %v1774_v0, %v1770_v3  ;;  %v5932_v12 = vpack.c.bf16 %v1780_v10, %v1776_v9  ;;  %v6006_v3 = vpack.c.bf16 %v1807_v59, %v1803_v58  ;;  %v1811_v9 = vld [vmem:[#allocation11 + $0x6d8] sm:$0xff]  ;;  %v1834_v59 = vld [vmem:[#allocation11 + $0x790] sm:$0xff] }
 0x31e   :  { %5977 = vmatpush1.bf16.msra.mxu1 %v5976_v8  ;;  %v5930_v8 = vpack.c.bf16 %v1781_v7, %v1777_v6  ;;  %v1808_v7 = vld [vmem:[#allocation11 + $0x6c0] sm:$0xff] }
 0x31f   :  { %5979 = vmatprep.subr.bf16.mxu1 %v5978_v17  ;;  %v5996_v17 = vpack.c.bf16 %v1782_v15, %v1778_v14 }
 0x320   :  { %5917 = vmatpush1.bf16.msra.mxu0 %v5916_v16  ;;  %v5994_v16 = vpack.c.bf16 %v1783_v13, %v1779_v11  ;;  %v1815_v11 = vld [vmem:[#allocation11 + $0x6f8] sm:$0xff]  ;;  %v1814_v13 = vld [vmem:[#allocation11 + $0x6f0] sm:$0xff] }
 0x321   :  { %5919 = vmatprep.subr.bf16.mxu0 %v5918_v20  ;;  %v1784_v20 = vld [vmem:[#allocation11 + $0x600] sm:$0xff]  ;;  %v6010_v14 = vpack.c.bf16 %v1815_v11, %v1811_v9  ;;  %v1842_v9 = vld [vmem:[#allocation11 + $0x7d0] sm:$0xff] }
 0x322   :  { %5981 = vmatpush1.bf16.msra.mxu1 %v5980_v26  ;;  %v5936_v23 = vpack.c.bf16 %v1788_v21, %v1784_v20  ;;  %v1791_v26 = vld [vmem:[#allocation11 + $0x638] sm:$0xff] }
 0x323   :  { %5983 = vmatprep.subr.bf16.mxu1 %v5982_v32  ;;  %v1790_v32 = vld [vmem:[#allocation11 + $0x630] sm:$0xff]  ;;  %v1819_v20 = vld [vmem:[#allocation11 + $0x718] sm:$0xff] }
 0x324   :  { %5921 = vmatpush1.bf16.msra.mxu0 %v5920_v35  ;;  %v5998_v35 = vpack.c.bf16 %v1791_v26, %v1787_v22  ;;  %v6000_v37 = vpack.c.bf16 %v1790_v32, %v1786_v31  ;;  %v1823_v22 = vld [vmem:[#allocation11 + $0x738] sm:$0xff]  ;;  %v1822_v26 = vld [vmem:[#allocation11 + $0x730] sm:$0xff] }
 0x325   :  { %5923 = vmatprep.subr.bf16.mxu0 %v5922_v25  ;;  %v1796_v25 = vld [vmem:[#allocation11 + $0x660] sm:$0xff]  ;;  %v6014_v31 = vpack.c.bf16 %v1823_v22, %v1819_v20 }
 0x326   :  { %5985 = vmatpush1.bf16.msra.mxu1 %v5984_v43  ;;  %v1797_v43 = vld [vmem:[#allocation11 + $0x668] sm:$0xff]  ;;  %v5940_v48 = vpack.c.bf16 %v1796_v25, %v1792_v45  ;;  %v1827_v45 = vld [vmem:[#allocation11 + $0x758] sm:$0xff] }
 0x327   :  { %5987 = vmatprep.subr.bf16.mxu1 %v5986_v30  ;;  %v5938_v44 = vpack.c.bf16 %v1797_v43, %v1793_v40  ;;  %v1801_v30 = vld [vmem:[#allocation11 + $0x688] sm:$0xff]  ;;  %v1824_v43 = vld [vmem:[#allocation11 + $0x740] sm:$0xff] }
 0x328   :  { %5925 = vmatpush1.bf16.msra.mxu0 %v5924_v49  ;;  %v1794_v49 = vld [vmem:[#allocation11 + $0x650] sm:$0xff] }
 0x329   :  { %5927 = vmatprep.subr.bf16.mxu0 %v5926_v57  ;;  %v6004_v52 = vpack.c.bf16 %v1798_v50, %v1794_v49  ;;  %v1804_v57 = vld [vmem:[#allocation11 + $0x6a0] sm:$0xff]  ;;  %v6018_v49 = vpack.c.bf16 %v1831_v47, %v1827_v45 }
 0x32a   :  { %5989 = vmatpush1.bf16.msra.mxu1 %v5988_v53  ;;  %v1805_v53 = vld [vmem:[#allocation11 + $0x6a8] sm:$0xff]  ;;  %v5944_v24 = vpack.c.bf16 %v1804_v57, %v1800_v55  ;;  %v1835_v55 = vld [vmem:[#allocation11 + $0x798] sm:$0xff] }
 0x32b   :  { %5991 = vmatprep.subr.bf16.mxu1 %v5990_v4  ;;  %v5942_v54 = vpack.c.bf16 %v1805_v53, %v1801_v30  ;;  %v1809_v4 = vld [vmem:[#allocation11 + $0x6c8] sm:$0xff]  ;;  %v1832_v30 = vld [vmem:[#allocation11 + $0x780] sm:$0xff]  ;;  %v1839_v57 = vld [vmem:[#allocation11 + $0x7b8] sm:$0xff] }
 0x32c   :  { %5929 = vmatpush1.bf16.msra.mxu0 %v5928_v61  ;;  %v1802_v61 = vld [vmem:[#allocation11 + $0x690] sm:$0xff] }
 0x32d   :  { %5931 = vmatprep.subr.bf16.mxu0 %v5930_v8  ;;  %v6008_v0 = vpack.c.bf16 %v1806_v2, %v1802_v61  ;;  %v1812_v8 = vld [vmem:[#allocation11 + $0x6e0] sm:$0xff]  ;;  %v1838_v61 = vld [vmem:[#allocation11 + $0x7b0] sm:$0xff]  ;;  %v1841_v2 = vld [vmem:[#allocation11 + $0x7c8] sm:$0xff] }
 0x32e   :  { %5993 = vmatpush1.bf16.msra.mxu1 %v5992_v5  ;;  %v1813_v5 = vld [vmem:[#allocation11 + $0x6e8] sm:$0xff]  ;;  %v5948_v10 = vpack.c.bf16 %v1812_v8, %v1808_v7  ;;  %v1843_v7 = vld [vmem:[#allocation11 + $0x7d8] sm:$0xff] }
 0x32f   :  { %5995 = vmatprep.subr.bf16.mxu1 %v5994_v16  ;;  %v5946_v6 = vpack.c.bf16 %v1813_v5, %v1809_v4  ;;  %v1817_v16 = vld [vmem:[#allocation11 + $0x708] sm:$0xff]  ;;  %v1840_v4 = vld [vmem:[#allocation11 + $0x7c0] sm:$0xff]  ;;  %v1847_v8 = vld [vmem:[#allocation11 + $0x7f8] sm:$0xff] }
 0x330   :  { %5933 = vmatpush1.bf16.msra.mxu0 %v5932_v12  ;;  %v1810_v12 = vld [vmem:[#allocation11 + $0x6d0] sm:$0xff]  ;;  %v1844_v5 = vld [vmem:[#allocation11 + $0x7e0] sm:$0xff]  ;;  %v6026_v11 = vpack.c.bf16 %v1847_v8, %v1843_v7 }
 0x331   :  { %5935 = vmatprep.subr.bf16.mxu0 %v5934_v19  ;;  %v6012_v15 = vpack.c.bf16 %v1814_v13, %v1810_v12  ;;  %v1820_v19 = vld [vmem:[#allocation11 + $0x720] sm:$0xff]  ;;  %v1846_v12 = vld [vmem:[#allocation11 + $0x7f0] sm:$0xff]  ;;  %v2042_v13 = vld [vmem:[#allocation11 + $0x8] sm:$0xff] }
 0x332   :  { %5997 = vmatpush1.bf16.msra.mxu1 %v5996_v17  ;;  %v1821_v17 = vld [vmem:[#allocation11 + $0x728] sm:$0xff]  ;;  %v5952_v21 = vpack.c.bf16 %v1820_v19, %v1816_v1 }
 0x333   :  { %5999 = vmatprep.subr.bf16.mxu1 %v5998_v35  ;;  %v5950_v18 = vpack.c.bf16 %v1821_v17, %v1817_v16  ;;  %v1825_v35 = vld [vmem:[#allocation11 + $0x748] sm:$0xff]  ;;  %v6028_v16 = vpack.c.bf16 %v1846_v12, %v1842_v9  ;;  %v2044_v17 = vld [vmem:[#allocation11 + $0x18] sm:$0xff] }
 0x334   :  { %5937 = vmatpush1.bf16.msra.mxu0 %v5936_v23  ;;  %v1818_v23 = vld [vmem:[#allocation11 + $0x710] sm:$0xff] }
 0x335   :  { %5939 = vmatprep.subr.bf16.mxu0 %v5938_v44  ;;  %v6016_v32 = vpack.c.bf16 %v1822_v26, %v1818_v23  ;;  %v1828_v44 = vld [vmem:[#allocation11 + $0x760] sm:$0xff] }
 0x336   :  { %6001 = vmatpush1.bf16.msra.mxu1 %v6000_v37  ;;  %v1829_v37 = vld [vmem:[#allocation11 + $0x768] sm:$0xff]  ;;  %v5956_v25 = vpack.c.bf16 %v1828_v44, %v1824_v43 }
 0x337   :  { %6003 = vmatprep.subr.bf16.mxu1 %v6002_v51  ;;  %v5954_v40 = vpack.c.bf16 %v1829_v37, %v1825_v35  ;;  %v1833_v51 = vld [vmem:[#allocation11 + $0x788] sm:$0xff] }
 0x338   :  { %5941 = vmatpush1.bf16.msra.mxu0 %v5940_v48  ;;  %v1826_v48 = vld [vmem:[#allocation11 + $0x750] sm:$0xff] }
 0x339   :  { %5943 = vmatprep.subr.bf16.mxu0 %v5942_v54  ;;  %v6020_v50 = vpack.c.bf16 %v1830_v56, %v1826_v48  ;;  %v1836_v54 = vld [vmem:[#allocation11 + $0x7a0] sm:$0xff] }
 0x33a   :  { %6005 = vmatpush1.bf16.msra.mxu1 %v6004_v52  ;;  %v1837_v52 = vld [vmem:[#allocation11 + $0x7a8] sm:$0xff]  ;;  %v5960_v58 = vpack.c.bf16 %v1836_v54, %v1832_v30 }
 0x33b   :  { %6007 = vmatprep.subr.bf16.mxu1 %v6006_v3  ;;  %v5958_v53 = vpack.c.bf16 %v1837_v52, %v1833_v51  ;;  %v6024_v3 = vpack.c.bf16 %v1838_v61, %v1834_v59 }
 0x33c   :  { %5945 = vmatpush1.bf16.msra.mxu0 %v5944_v24  ;;  %v6022_v24 = vpack.c.bf16 %v1839_v57, %v1835_v55 }
 0x33d   :  { %5947 = vmatprep.subr.bf16.mxu0 %v5946_v6 }
 0x33e   :  { %6009 = vmatpush1.bf16.msra.mxu1 %v6008_v0  ;;  %v1845_v0 = vld [vmem:[#allocation11 + $0x7e8] sm:$0xff] }
 0x33f   :  { %6011 = vmatprep.subr.bf16.mxu1 %v6010_v14  ;;  %v5962_v6 = vpack.c.bf16 %v1845_v0, %v1841_v2  ;;  %v2046_v14 = vld [vmem:[#allocation11 + $0x28] sm:$0xff] }
 0x340   :  { %5949 = vmatpush1.bf16.msra.mxu0 %v5948_v10  ;;  %v5964_v10 = vpack.c.bf16 %v1844_v5, %v1840_v4 }
 0x341   :  { %5951 = vmatprep.subr.bf16.mxu0 %v5950_v18  ;;  %v2048_v18 = vld [vmem:[#allocation11 + $0x38] sm:$0xff] }
 0x342   :  { %6013 = vmatpush1.bf16.msra.mxu1 %v6012_v15  ;;  %v6030_v15 = vpack.c.bf16 %v2046_v14, %v2042_v13  ;;  %v6094_v1 = vpack.c.bf16 %v2048_v18, %v2044_v17 }
 0x343   :  { %6015 = vmatprep.subr.bf16.mxu1 %v6014_v31 }
 0x344   :  { %5953 = vmatpush1.bf16.msra.mxu0 %v5952_v21 }
 0x345   :  { %5955 = vmatprep.subr.bf16.mxu0 %v5954_v40 }
 0x346   :  { %6017 = vmatpush1.bf16.msra.mxu1 %v6016_v32 }
 0x347   :  { %6019 = vmatprep.subr.bf16.mxu1 %v6018_v49 }
 0x348   :  { %5957 = vmatpush1.bf16.msra.mxu0 %v5956_v25 }
 0x349   :  { %5959 = vmatprep.subr.bf16.mxu0 %v5958_v53 }
 0x34a   :  { %6021 = vmatpush1.bf16.msra.mxu1 %v6020_v50  ;;  %v758_v50 = vsel %vm139_vm4, %v7875_v38, 0.0 }
 0x34b   :  { %6023 = vmatprep.subr.bf16.mxu1 %v6022_v24 }
 0x34c   :  { %5961 = vmatpush1.bf16.msra.mxu0 %v5960_v58 }
 0x34d   :  { %5963 = vmatprep.subr.bf16.mxu0 %v5962_v6 }
 0x34e   :  { %6025 = vmatpush1.bf16.msra.mxu1 %v6024_v3 }
 0x34f   :  { %6027 = vmatprep.subr.bf16.mxu1 %v6026_v11 }
 0x350   :  { %5965 = vmatpush1.bf16.msra.mxu0 %v5964_v10 }
 0x351   :  { %6031 = vmatprep.subr.bf16.mxu0 %v6030_v15  ;;  %v7944_v15 = vpop.permute.xlu1 %1400 }
 0x352   :  { %6029 = vmatpush1.bf16.msra.mxu1 %v6028_v16  ;;  %vm1402_vm11 = vcmp.eq.s32.totalorder %v7944_v15, 1 }
 0x353   :  { %6095 = vmatprep.subr.bf16.mxu1 %v6094_v1 }
 0x3a6   :  { %v1288_v19 = vpop.f32.mrb[6].mxu0  ;;  %v1359_v20 = vpop.f32.mrb[6].mxu1 }
 0x3a7   :  { %v1289_v21 = vadd.f32 %v1288_v19, %v7857_v33  ;;  %v1290_v22 = vpop.f32.mrb[7].mxu0  ;;  %v1361_v23 = vpop.f32.mrb[7].mxu1  ;;  %v1360_v40 = vadd.f32 %v1359_v20, %v7872_v27  ;;  %v2041_v20 = vld [vmem:[#allocation11] sm:$0xff] }
 0x3a8   :  { %v1291_v26 = vadd.f32 %v1290_v22, %v7861_v34  ;;  %v1362_v35 = vadd.f32 %v1361_v23, %v7867_v46  ;;  %v2050_v23 = vld [vmem:[#allocation11 + $0x48] sm:$0xff] }
 0x3a9   :  { %v5203_v31 = vmul.f32 -1.442695, %v1289_v21  ;;  %v2045_v21 = vld [vmem:[#allocation11 + $0x20] sm:$0xff] }
 0x3aa   :  { %v5204_v32 = vmul.f32 -1.442695, %v1291_v26  ;;  %v5205_v37 = vmul.f32 -1.442695, %v1362_v35  ;;  %v2054_v26 = vld [vmem:[#allocation11 + $0x68] sm:$0xff] }
 0x3ab   :  { %7373 = vpow2.f32 %v5203_v31  ;;  %v2043_v31 = vld [vmem:[#allocation11 + $0x10] sm:$0xff] }
 0x3ac   :  { %7375 = vpow2.f32 %v5204_v32  ;;  %v2047_v32 = vld [vmem:[#allocation11 + $0x30] sm:$0xff] }
 0x3ad   :  { %7377 = vpow2.f32 %v5205_v37  ;;  %v6032_v37 = vpack.c.bf16 %v2045_v21, %v2041_v20  ;;  %v2082_v20 = vld [vmem:[#allocation11 + $0x148] sm:$0xff] }
 0x3ae   :  { %7379 = vtanh.f32 %v1360_v40  ;;  %v2052_v40 = vld [vmem:[#allocation11 + $0x58] sm:$0xff]  ;;  %v2086_v21 = vld [vmem:[#allocation11 + $0x168] sm:$0xff] }
 0x3b5   :  { %v7374_v43 = vpop.eup %7373 }
 0x3b6   :  { %v7376_v44 = vpop.eup %7375  ;;  %v1367_v45 = vadd.f32 1.0, %v7374_v43  ;;  %v2056_v43 = vld [vmem:[#allocation11 + $0x78] sm:$0xff] }
 0x3b7   :  { %v1373_v25 = vadd.f32 1.0, %v7376_v44  ;;  %v7378_v47 = vpop.eup %7377 }
 0x3b8   :  { %7381 = vrcp.f32 %v1367_v45  ;;  %v7380_v48 = vpop.eup %7379  ;;  %v1380_v52 = vadd.f32 1.0, %v7378_v47  ;;  %v6034_v45 = vpack.c.bf16 %v2054_v26, %v2050_v23  ;;  %v2053_v47 = vld [vmem:[#allocation11 + $0x60] sm:$0xff]  ;;  %v2075_v26 = vld [vmem:[#allocation11 + $0x110] sm:$0xff] }
 0x3b9   :  { %7383 = vrcp.f32 %v1373_v25  ;;  %v2049_v25 = vld [vmem:[#allocation11 + $0x40] sm:$0xff] }
 0x3ba   :  { %7385 = vrcp.f32 %v1380_v52  ;;  %v2055_v52 = vld [vmem:[#allocation11 + $0x70] sm:$0xff] }
 0x3c2   :  { %v7382_v56 = vpop.eup %7381 }
 0x3c3   :  { %v7384_v49 = vpop.eup %7383  ;;  %v1384_v51 = vmul.f32 %v7382_v56, %v7380_v48  ;;  %v2058_v48 = vld [vmem:[#allocation11 + $0x88] sm:$0xff] }
 0x3c4   :  { %v1383_v30 = vmul.f32 %v7384_v49, %v758_v50  ;;  %v7386_v55 = vpop.eup %7385  ;;  %v2062_v56 = vld [vmem:[#allocation11 + $0xa8] sm:$0xff]  ;;  %v6096_v49 = vpack.c.bf16 %v2047_v32, %v2043_v31  ;;  %v2079_v31 = vld [vmem:[#allocation11 + $0x130] sm:$0xff] }
 0x3c6   :  { %v1385_v53 = vadd.f32 %v1384_v51, %v1383_v30  ;;  %v2051_v51 = vld [vmem:[#allocation11 + $0x50] sm:$0xff]  ;;  %v6036_v30 = vpack.c.bf16 %v2053_v47, %v2049_v25  ;;  %v2094_v25 = vld [vmem:[#allocation11 + $0x1a8] sm:$0xff]  ;;  %v6112_v47 = vpack.c.bf16 %v2079_v31, %v2075_v26  ;;  %v2116_v26 = vld [vmem:[#allocation11 + $0x258] sm:$0xff] }
 0x3c7   :  { %v2120_v31 = vld [vmem:[#allocation11 + $0x278] sm:$0xff] }
 0x3c8   :  { %7387 = vtanh.f32 %v1385_v53  ;;  %v7928_v54 = vsel %vm772_vm10, %v1385_v53, %v758_v50  ;;  %v6098_v50 = vpack.c.bf16 %v2056_v43, %v2052_v40  ;;  %v2060_v53 = vld [vmem:[#allocation11 + $0x98] sm:$0xff]  ;;  %v6050_v40 = vpack.c.bf16 %v2086_v21, %v2082_v20  ;;  %v2081_v43 = vld [vmem:[#allocation11 + $0x140] sm:$0xff]  ;;  %v2107_v21 = vld [vmem:[#allocation11 + $0x210] sm:$0xff] }
 0x3d2   :  { %v7388_v57 = vpop.eup %7387 }
 0x3d3   :  { %v1387_v58 = vmul.f32 %v7388_v57, %v7386_v55  ;;  %v2064_v55 = vld [vmem:[#allocation11 + $0xb8] sm:$0xff]  ;;  %v6038_v57 = vpack.c.bf16 %v2062_v56, %v2058_v48  ;;  %v2083_v56 = vld [vmem:[#allocation11 + $0x150] sm:$0xff] }
 0x3d5   :  { %v7933_v24 = vsel %vm772_vm10, %v1387_v58, %v7884_v63  ;;  %v1392_v62 = vsel %vm772_vm10, %v1387_v58, 0.0  ;;  %v2057_v58 = vld [vmem:[#allocation11 + $0x80] sm:$0xff] }
 0x3d6   :  { %1394 = vst.msk [vmem:[#allocation14 + $0x8] sm:$0xff] %vm763_vm5, %v1392_v62  ;;  %1916 = vmatprep.mubr.f32.mxu0 %v7933_v24  ;;  %1987 = vmatprep.mubr.f32.mxu1 %v7933_v24  ;;  %v2061_v62 = vld [vmem:[#allocation11 + $0xa0] sm:$0xff] }
 0x3e6   :  { %v1609_v38 = vpop.f32.mrb[8].mxu0 }
 0x3e7   :  { %v1610_v59 = vadd.f32 %v1609_v38, %v7815_v28  ;;  %v1611_v61 = vpop.f32.mrb[9].mxu0  ;;  %v2066_v38 = vld [vmem:[#allocation11 + $0xc8] sm:$0xff] }
 0x3e8   :  { %v1612_v2 = vadd.f32 %v1611_v61, %v7819_v29  ;;  %v1680_v3 = vpop.f32.mrb[8].mxu1  ;;  %v6102_v61 = vpack.c.bf16 %v2064_v55, %v2060_v53  ;;  %v2089_v53 = vld [vmem:[#allocation11 + $0x180] sm:$0xff] }
 0x3e9   :  { %v5206_v0 = vmul.f32 -1.442695, %v1610_v59  ;;  %v1682_v4 = vpop.f32.mrb[9].mxu1  ;;  %v1681_v6 = vadd.f32 %v1680_v3, %v7832_v42  ;;  %v2070_v59 = vld [vmem:[#allocation11 + $0xe8] sm:$0xff]  ;;  %v2063_v3 = vld [vmem:[#allocation11 + $0xb0] sm:$0xff]  ;;  %v2093_v55 = vld [vmem:[#allocation11 + $0x1a0] sm:$0xff] }
 0x3ea   :  { %v5207_v63 = vmul.f32 -1.442695, %v1612_v2  ;;  %v1683_v39 = vadd.f32 %v1682_v4, %v7826_v36  ;;  %v2059_v2 = vld [vmem:[#allocation11 + $0x90] sm:$0xff]  ;;  %v2068_v4 = vld [vmem:[#allocation11 + $0xd8] sm:$0xff] }
 0x3eb   :  { %7389 = vpow2.f32 %v5206_v0  ;;  %v6040_v0 = vpack.c.bf16 %v2061_v62, %v2057_v58  ;;  %v2102_v58 = vld [vmem:[#allocation11 + $0x1e8] sm:$0xff] }
 0x3ec   :  { %7391 = vpow2.f32 %v5207_v63  ;;  %v5208_v5 = vmul.f32 -1.442695, %v1683_v39  ;;  %v2072_v63 = vld [vmem:[#allocation11 + $0xf8] sm:$0xff]  ;;  %v6042_v39 = vpack.c.bf16 %v2070_v59, %v2066_v38  ;;  %v2091_v59 = vld [vmem:[#allocation11 + $0x190] sm:$0xff] }
 0x3ee   :  { %7393 = vpow2.f32 %v5208_v5  ;;  %v2065_v5 = vld [vmem:[#allocation11 + $0xc0] sm:$0xff] }
 0x3ef   :  { %7395 = vtanh.f32 %v1681_v6  ;;  %v2069_v6 = vld [vmem:[#allocation11 + $0xe0] sm:$0xff] }
 0x3f5   :  { %v7390_v7 = vpop.eup %7389 }
 0x3f6   :  { %v7392_v8 = vpop.eup %7391  ;;  %v1688_v9 = vadd.f32 1.0, %v7390_v7  ;;  %v2074_v7 = vld [vmem:[#allocation11 + $0x108] sm:$0xff] }
 0x3f7   :  { %v1694_v10 = vadd.f32 1.0, %v7392_v8  ;;  %v2078_v8 = vld [vmem:[#allocation11 + $0x128] sm:$0xff] }
 0x3f8   :  { %7397 = vrcp.f32 %v1688_v9  ;;  %v7394_v11 = vpop.eup %7393  ;;  %v6104_v9 = vpack.c.bf16 %v2063_v3, %v2059_v2  ;;  %v2100_v2 = vld [vmem:[#allocation11 + $0x1d8] sm:$0xff] }
 0x3f9   :  { %7399 = vrcp.f32 %v1694_v10  ;;  %v7396_v12 = vpop.eup %7395  ;;  %v1701_v14 = vadd.f32 1.0, %v7394_v11  ;;  %v6106_v10 = vpack.c.bf16 %v2072_v63, %v2068_v4  ;;  %v2067_v11 = vld [vmem:[#allocation11 + $0xd0] sm:$0xff]  ;;  %v2104_v3 = vld [vmem:[#allocation11 + $0x1f8] sm:$0xff]  ;;  %v2097_v4 = vld [vmem:[#allocation11 + $0x1c0] sm:$0xff] }
 0x3fa   :  { %v2101_v63 = vld [vmem:[#allocation11 + $0x1e0] sm:$0xff] }
 0x3fb   :  { %7401 = vrcp.f32 %v1701_v14  ;;  %v2076_v14 = vld [vmem:[#allocation11 + $0x118] sm:$0xff] }
 0x402   :  { %v7398_v13 = vpop.eup %7397 }
 0x403   :  { %v7400_v16 = vpop.eup %7399  ;;  %v1705_v17 = vmul.f32 %v7398_v13, %v7396_v12  ;;  %v2071_v12 = vld [vmem:[#allocation11 + $0xf0] sm:$0xff]  ;;  %v6044_v13 = vpack.c.bf16 %v2069_v6, %v2065_v5  ;;  %v2110_v5 = vld [vmem:[#allocation11 + $0x228] sm:$0xff] }
 0x404   :  { %v1704_v18 = vmul.f32 %v7400_v16, %v7904_v41  ;;  %v2080_v16 = vld [vmem:[#allocation11 + $0x138] sm:$0xff] }
 0x405   :  { %v7402_v22 = vpop.eup %7401  ;;  %v6110_v23 = vpack.c.bf16 %v2080_v16, %v2076_v14  ;;  %v2105_v14 = vld [vmem:[#allocation11 + $0x200] sm:$0xff] }
 0x406   :  { %v1706_v1 = vadd.f32 %v1705_v17, %v1704_v18  ;;  %v6046_v17 = vpack.c.bf16 %v2078_v8, %v2074_v7  ;;  %v2073_v18 = vld [vmem:[#allocation11 + $0x100] sm:$0xff]  ;;  %v6122_v7 = vpack.c.bf16 %v2104_v3, %v2100_v2  ;;  %v2099_v8 = vld [vmem:[#allocation11 + $0x1d0] sm:$0xff] }
 0x407   :  { %v2109_v16 = vld [vmem:[#allocation11 + $0x220] sm:$0xff] }
 0x408   :  { %7403 = vtanh.f32 %v1706_v1  ;;  %v7951_v19 = vsel %vm1402_vm11, %v1706_v1, %v7904_v41  ;;  %v2077_v1 = vld [vmem:[#allocation11 + $0x120] sm:$0xff] }
 0x409   :  { %v6048_v32 = vpack.c.bf16 %v2077_v1, %v2073_v18  ;;  %v2118_v18 = vld [vmem:[#allocation11 + $0x268] sm:$0xff]  ;;  %v2129_v2 = vld [vmem:[#allocation11 + $0x2c0] sm:$0xff] }
 0x40a   :  { %v2133_v3 = vld [vmem:[#allocation11 + $0x2e0] sm:$0xff] }
 0x412   :  { %v7404_v35 = vpop.eup %7403 }
 0x413   :  { %v1708_v44 = vmul.f32 %v7404_v35, %v7402_v22  ;;  %v6108_v22 = vpack.c.bf16 %v2071_v12, %v2067_v11  ;;  %v2084_v35 = vld [vmem:[#allocation11 + $0x158] sm:$0xff] }
 0x414   :  { %v2108_v11 = vld [vmem:[#allocation11 + $0x218] sm:$0xff] }
 0x415   :  { %5250 = vmatmul.mubr.msk.f32.vlgmr.msra.gmra.mrb[10].mxu0 %vm1402_vm11, %v1708_v44  ;;  %5251 = vmatmul.mubr.msk.f32.vlgmr.msra.gmra.mrb[10].mxu1 %vm1402_vm11, %v1708_v44  ;;  %v7960_v41 = vsel %vm1402_vm11, %v1708_v44, %v7915_v60  ;;  %v6100_v60 = vpack.c.bf16 %v2055_v52, %v2051_v51  ;;  %v2085_v44 = vld [vmem:[#allocation11 + $0x160] sm:$0xff]  ;;  %v2092_v51 = vld [vmem:[#allocation11 + $0x198] sm:$0xff] }
 0x416   :  { %6033 = vmatpush1.bf16.msra.mxu0 %v6032_v37  ;;  %2237 = vmatprep.mubr.f32.mxu0 %v7960_v41  ;;  %v2088_v37 = vld [vmem:[#allocation11 + $0x178] sm:$0xff] }
 0x417   :  { %2308 = vmatprep.mubr.f32.mxu1 %v7960_v41  ;;  %6035 = vmatprep.subr.bf16.mxu0 %v6034_v45  ;;  %v2090_v45 = vld [vmem:[#allocation11 + $0x188] sm:$0xff]  ;;  %v6114_v48 = vpack.c.bf16 %v2088_v37, %v2084_v35  ;;  %v2096_v52 = vld [vmem:[#allocation11 + $0x1b8] sm:$0xff]  ;;  %v2113_v35 = vld [vmem:[#allocation11 + $0x240] sm:$0xff] }
 0x418   :  { %6097 = vmatpush1.bf16.msra.mxu1 %v6096_v49  ;;  %v2087_v49 = vld [vmem:[#allocation11 + $0x170] sm:$0xff]  ;;  %v6118_v38 = vpack.c.bf16 %v2096_v52, %v2092_v51  ;;  %v2112_v12 = vld [vmem:[#allocation11 + $0x238] sm:$0xff]  ;;  %v2117_v37 = vld [vmem:[#allocation11 + $0x260] sm:$0xff] }
 0x419   :  { %6099 = vmatprep.subr.bf16.mxu1 %v6098_v50  ;;  %v6052_v50 = vpack.c.bf16 %v2085_v44, %v2081_v43  ;;  %v6116_v62 = vpack.c.bf16 %v2087_v49, %v2083_v56  ;;  %v6126_v20 = vpack.c.bf16 %v2112_v12, %v2108_v11  ;;  %v2126_v43 = vld [vmem:[#allocation11 + $0x2a8] sm:$0xff]  ;;  %v2124_v56 = vld [vmem:[#allocation11 + $0x298] sm:$0xff]  ;;  %v2121_v51 = vld [vmem:[#allocation11 + $0x280] sm:$0xff] }
 0x41a   :  { %6037 = vmatpush1.bf16.msra.mxu0 %v6036_v30  ;;  %v6054_v30 = vpack.c.bf16 %v2094_v25, %v2090_v45  ;;  %v6130_v45 = vpack.c.bf16 %v2120_v31, %v2116_v26  ;;  %v2115_v25 = vld [vmem:[#allocation11 + $0x250] sm:$0xff]  ;;  %v2128_v49 = vld [vmem:[#allocation11 + $0x2b8] sm:$0xff]  ;;  %v2125_v52 = vld [vmem:[#allocation11 + $0x2a0] sm:$0xff] }
 0x41b   :  { %6039 = vmatprep.subr.bf16.mxu0 %v6038_v57  ;;  %v2098_v57 = vld [vmem:[#allocation11 + $0x1c8] sm:$0xff]  ;;  %v2137_v11 = vld [vmem:[#allocation11 + $0x300] sm:$0xff] }
 0x41c   :  { %6101 = vmatpush1.bf16.msra.mxu1 %v6100_v60  ;;  %v2095_v60 = vld [vmem:[#allocation11 + $0x1b0] sm:$0xff]  ;;  %v2141_v12 = vld [vmem:[#allocation11 + $0x320] sm:$0xff] }
 0x41d   :  { %6103 = vmatprep.subr.bf16.mxu1 %v6102_v61  ;;  %v6056_v61 = vpack.c.bf16 %v2093_v55, %v2089_v53  ;;  %v6120_v6 = vpack.c.bf16 %v2095_v60, %v2091_v59  ;;  %v2134_v53 = vld [vmem:[#allocation11 + $0x2e8] sm:$0xff]  ;;  %v2132_v59 = vld [vmem:[#allocation11 + $0x2d8] sm:$0xff]  ;;  %v2145_v26 = vld [vmem:[#allocation11 + $0x340] sm:$0xff] }
 0x41e   :  { %6041 = vmatpush1.bf16.msra.mxu0 %v6040_v0  ;;  %v6058_v0 = vpack.c.bf16 %v2102_v58, %v2098_v57  ;;  %v6134_v57 = vpack.c.bf16 %v2128_v49, %v2124_v56  ;;  %v2123_v58 = vld [vmem:[#allocation11 + $0x290] sm:$0xff]  ;;  %v2136_v60 = vld [vmem:[#allocation11 + $0x2f8] sm:$0xff]  ;;  %v2149_v31 = vld [vmem:[#allocation11 + $0x360] sm:$0xff] }
 0x41f   :  { %6043 = vmatprep.subr.bf16.mxu0 %v6042_v39  ;;  %v2106_v39 = vld [vmem:[#allocation11 + $0x208] sm:$0xff]  ;;  %v2153_v56 = vld [vmem:[#allocation11 + $0x380] sm:$0xff] }
 0x420   :  { %6105 = vmatpush1.bf16.msra.mxu1 %v6104_v9  ;;  %v2103_v9 = vld [vmem:[#allocation11 + $0x1f0] sm:$0xff]  ;;  %v2157_v49 = vld [vmem:[#allocation11 + $0x3a0] sm:$0xff] }
 0x421   :  { %6107 = vmatprep.subr.bf16.mxu1 %v6106_v10  ;;  %v6060_v10 = vpack.c.bf16 %v2101_v63, %v2097_v4  ;;  %v6124_v1 = vpack.c.bf16 %v2103_v9, %v2099_v8  ;;  %v2142_v4 = vld [vmem:[#allocation11 + $0x328] sm:$0xff]  ;;  %v2140_v8 = vld [vmem:[#allocation11 + $0x318] sm:$0xff] }
 0x422   :  { %6045 = vmatpush1.bf16.msra.mxu0 %v6044_v13  ;;  %v6062_v13 = vpack.c.bf16 %v2110_v5, %v2106_v39  ;;  %v6138_v39 = vpack.c.bf16 %v2136_v60, %v2132_v59  ;;  %v2131_v5 = vld [vmem:[#allocation11 + $0x2d0] sm:$0xff]  ;;  %v2144_v9 = vld [vmem:[#allocation11 + $0x338] sm:$0xff]  ;;  %v2161_v59 = vld [vmem:[#allocation11 + $0x3c0] sm:$0xff] }
 0x423   :  { %6047 = vmatprep.subr.bf16.mxu0 %v6046_v17  ;;  %v2114_v17 = vld [vmem:[#allocation11 + $0x248] sm:$0xff]  ;;  %v2165_v60 = vld [vmem:[#allocation11 + $0x3e0] sm:$0xff] }
 0x424   :  { %6109 = vmatpush1.bf16.msra.mxu1 %v6108_v22  ;;  %v2111_v22 = vld [vmem:[#allocation11 + $0x230] sm:$0xff] }
 0x425   :  { %6111 = vmatprep.subr.bf16.mxu1 %v6110_v23  ;;  %v6064_v23 = vpack.c.bf16 %v2109_v16, %v2105_v14  ;;  %v6128_v44 = vpack.c.bf16 %v2111_v22, %v2107_v21  ;;  %v2150_v14 = vld [vmem:[#allocation11 + $0x368] sm:$0xff]  ;;  %v2148_v21 = vld [vmem:[#allocation11 + $0x358] sm:$0xff] }
 0x426   :  { %6049 = vmatpush1.bf16.msra.mxu0 %v6048_v32  ;;  %v6066_v32 = vpack.c.bf16 %v2118_v18, %v2114_v17  ;;  %v6142_v17 = vpack.c.bf16 %v2144_v9, %v2140_v8  ;;  %v2139_v18 = vld [vmem:[#allocation11 + $0x310] sm:$0xff]  ;;  %v2152_v22 = vld [vmem:[#allocation11 + $0x378] sm:$0xff]  ;;  %v2354_v9 = vld [vmem:[#allocation11 + $0x420] sm:$0xff] }
 0x427   :  { %6051 = vmatprep.subr.bf16.mxu0 %v6050_v40  ;;  %v2122_v40 = vld [vmem:[#allocation11 + $0x288] sm:$0xff] }
 0x428   :  { %6113 = vmatpush1.bf16.msra.mxu1 %v6112_v47  ;;  %v2119_v47 = vld [vmem:[#allocation11 + $0x270] sm:$0xff] }
 0x429   :  { %6115 = vmatprep.subr.bf16.mxu1 %v6114_v48  ;;  %v6068_v48 = vpack.c.bf16 %v2117_v37, %v2113_v35  ;;  %v6132_v55 = vpack.c.bf16 %v2119_v47, %v2115_v25  ;;  %v2158_v35 = vld [vmem:[#allocation11 + $0x3a8] sm:$0xff]  ;;  %v2156_v25 = vld [vmem:[#allocation11 + $0x398] sm:$0xff] }
 0x42a   :  { %6053 = vmatpush1.bf16.msra.mxu0 %v6052_v50  ;;  %v6070_v50 = vpack.c.bf16 %v2126_v43, %v2122_v40  ;;  %v6146_v40 = vpack.c.bf16 %v2152_v22, %v2148_v21  ;;  %v2147_v43 = vld [vmem:[#allocation11 + $0x350] sm:$0xff]  ;;  %v2160_v47 = vld [vmem:[#allocation11 + $0x3b8] sm:$0xff]  ;;  %v2358_v21 = vld [vmem:[#allocation11 + $0x440] sm:$0xff] }
 0x42b   :  { %6055 = vmatprep.subr.bf16.mxu0 %v6054_v30  ;;  %v2130_v30 = vld [vmem:[#allocation11 + $0x2c8] sm:$0xff]  ;;  %v2362_v22 = vld [vmem:[#allocation11 + $0x460] sm:$0xff] }
 0x42c   :  { %6117 = vmatpush1.bf16.msra.mxu1 %v6116_v62  ;;  %v2127_v62 = vld [vmem:[#allocation11 + $0x2b0] sm:$0xff] }
 0x42d   :  { %6119 = vmatprep.subr.bf16.mxu1 %v6118_v38  ;;  %v6072_v38 = vpack.c.bf16 %v2125_v52, %v2121_v51  ;;  %v6136_v63 = vpack.c.bf16 %v2127_v62, %v2123_v58  ;;  %v2166_v51 = vld [vmem:[#allocation11 + $0x3e8] sm:$0xff]  ;;  %v2164_v58 = vld [vmem:[#allocation11 + $0x3d8] sm:$0xff] }
 0x42e   :  { %6057 = vmatpush1.bf16.msra.mxu0 %v6056_v61  ;;  %v6074_v61 = vpack.c.bf16 %v2134_v53, %v2130_v30  ;;  %v6150_v30 = vpack.c.bf16 %v2160_v47, %v2156_v25  ;;  %v2155_v53 = vld [vmem:[#allocation11 + $0x390] sm:$0xff]  ;;  %v2168_v62 = vld [vmem:[#allocation11 + $0x3f8] sm:$0xff]  ;;  %v2370_v47 = vld [vmem:[#allocation11 + $0x4a0] sm:$0xff] }
 0x42f   :  { %6059 = vmatprep.subr.bf16.mxu0 %v6058_v0  ;;  %v2138_v0 = vld [vmem:[#allocation11 + $0x308] sm:$0xff] }
 0x430   :  { %6121 = vmatpush1.bf16.msra.mxu1 %v6120_v6  ;;  %v2135_v6 = vld [vmem:[#allocation11 + $0x2f0] sm:$0xff] }
 0x431   :  { %6123 = vmatprep.subr.bf16.mxu1 %v6122_v7  ;;  %v6076_v7 = vpack.c.bf16 %v2133_v3, %v2129_v2  ;;  %v6140_v16 = vpack.c.bf16 %v2135_v6, %v2131_v5  ;;  %v6154_v2 = vpack.c.bf16 %v2168_v62, %v2164_v58  ;;  %v2163_v3 = vld [vmem:[#allocation11 + $0x3d0] sm:$0xff]  ;;  %v2351_v5 = vld [vmem:[#allocation11 + $0x408] sm:$0xff]  ;;  %v2378_v58 = vld [vmem:[#allocation11 + $0x4e0] sm:$0xff] }
 0x432   :  { %6061 = vmatpush1.bf16.msra.mxu0 %v6060_v10  ;;  %v6078_v10 = vpack.c.bf16 %v2142_v4, %v2138_v0  ;;  %v2167_v0 = vld [vmem:[#allocation11 + $0x3f0] sm:$0xff]  ;;  %v6092_v4 = vpack.c.bf16 %v2165_v60, %v2161_v59  ;;  %v2355_v6 = vld [vmem:[#allocation11 + $0x428] sm:$0xff]  ;;  %v2381_v59 = vld [vmem:[#allocation11 + $0x4f8] sm:$0xff] }
 0x433   :  { %6063 = vmatprep.subr.bf16.mxu0 %v6062_v13  ;;  %v2146_v13 = vld [vmem:[#allocation11 + $0x348] sm:$0xff]  ;;  %v6158_v8 = vpack.c.bf16 %v2355_v6, %v2351_v5  ;;  %v2376_v60 = vld [vmem:[#allocation11 + $0x4d0] sm:$0xff]  ;;  %v2386_v5 = vld [vmem:[#allocation11 + $0x520] sm:$0xff] }
 0x434   :  { %6125 = vmatpush1.bf16.msra.mxu1 %v6124_v1  ;;  %v2143_v1 = vld [vmem:[#allocation11 + $0x330] sm:$0xff]  ;;  %v2385_v6 = vld [vmem:[#allocation11 + $0x518] sm:$0xff] }
 0x435   :  { %6127 = vmatprep.subr.bf16.mxu1 %v6126_v20  ;;  %v6080_v20 = vpack.c.bf16 %v2141_v12, %v2137_v11  ;;  %v6144_v37 = vpack.c.bf16 %v2143_v1, %v2139_v18  ;;  %v2357_v11 = vld [vmem:[#allocation11 + $0x438] sm:$0xff]  ;;  %v2359_v18 = vld [vmem:[#allocation11 + $0x448] sm:$0xff] }
 0x436   :  { %6065 = vmatpush1.bf16.msra.mxu0 %v6064_v23  ;;  %v6082_v23 = vpack.c.bf16 %v2150_v14, %v2146_v13  ;;  %v2352_v14 = vld [vmem:[#allocation11 + $0x410] sm:$0xff]  ;;  %v2363_v1 = vld [vmem:[#allocation11 + $0x468] sm:$0xff] }
 0x437   :  { %6067 = vmatprep.subr.bf16.mxu0 %v6066_v32  ;;  %v2154_v32 = vld [vmem:[#allocation11 + $0x388] sm:$0xff] }
 0x438   :  { %6129 = vmatpush1.bf16.msra.mxu1 %v6128_v44  ;;  %v2151_v44 = vld [vmem:[#allocation11 + $0x370] sm:$0xff] }
 0x439   :  { %6131 = vmatprep.subr.bf16.mxu1 %v6130_v45  ;;  %v6084_v45 = vpack.c.bf16 %v2149_v31, %v2145_v26  ;;  %v6148_v52 = vpack.c.bf16 %v2151_v44, %v2147_v43  ;;  %v6164_v26 = vpack.c.bf16 %v2362_v22, %v2358_v21  ;;  %v2365_v31 = vld [vmem:[#allocation11 + $0x478] sm:$0xff]  ;;  %v2367_v43 = vld [vmem:[#allocation11 + $0x488] sm:$0xff] }
 0x43a   :  { %6069 = vmatpush1.bf16.msra.mxu0 %v6068_v48  ;;  %v6086_v48 = vpack.c.bf16 %v2158_v35, %v2154_v32  ;;  %v2360_v32 = vld [vmem:[#allocation11 + $0x450] sm:$0xff]  ;;  %v2371_v44 = vld [vmem:[#allocation11 + $0x4a8] sm:$0xff]  ;;  %v2397_v22 = vld [vmem:[#allocation11 + $0x578] sm:$0xff] }
 0x43b   :  { %6071 = vmatprep.subr.bf16.mxu0 %v6070_v50  ;;  %v2162_v50 = vld [vmem:[#allocation11 + $0x3c8] sm:$0xff]  ;;  %v2364_v35 = vld [vmem:[#allocation11 + $0x470] sm:$0xff]  ;;  %v6166_v25 = vpack.c.bf16 %v2371_v44, %v2367_v43  ;;  %v2398_v43 = vld [vmem:[#allocation11 + $0x580] sm:$0xff] }
 0x43c   :  { %6133 = vmatpush1.bf16.msra.mxu1 %v6132_v55  ;;  %v2159_v55 = vld [vmem:[#allocation11 + $0x3b0] sm:$0xff]  ;;  %v2402_v44 = vld [vmem:[#allocation11 + $0x5a0] sm:$0xff] }
 0x43d   :  { %6135 = vmatprep.subr.bf16.mxu1 %v6134_v57  ;;  %v6088_v57 = vpack.c.bf16 %v2157_v49, %v2153_v56  ;;  %v2373_v56 = vld [vmem:[#allocation11 + $0x4b8] sm:$0xff] }
 0x43e   :  { %6073 = vmatpush1.bf16.msra.mxu0 %v6072_v38  ;;  %v6090_v38 = vpack.c.bf16 %v2166_v51, %v2162_v50  ;;  %v2368_v51 = vld [vmem:[#allocation11 + $0x490] sm:$0xff] }
 0x43f   :  { %6075 = vmatprep.subr.bf16.mxu0 %v6074_v61  ;;  %v6152_v61 = vpack.c.bf16 %v2159_v55, %v2155_v53  ;;  %v2379_v55 = vld [vmem:[#allocation11 + $0x4e8] sm:$0xff] }
 0x440   :  { %6137 = vmatpush1.bf16.msra.mxu1 %v6136_v63  ;;  %v6156_v63 = vpack.c.bf16 %v2167_v0, %v2163_v3  ;;  %v2380_v3 = vld [vmem:[#allocation11 + $0x4f0] sm:$0xff]  ;;  %v2383_v0 = vld [vmem:[#allocation11 + $0x508] sm:$0xff] }
 0x441   :  { %6139 = vmatprep.subr.bf16.mxu1 %v6138_v39  ;;  %v2034_v39 = vld [vmem:[#allocation6 + $0x18] sm:$0xff] }
 0x442   :  { %6077 = vmatpush1.bf16.msra.mxu0 %v6076_v7  ;;  %v2350_v7 = vld [vmem:[#allocation11 + $0x400] sm:$0xff] }
 0x443   :  { %6079 = vmatprep.subr.bf16.mxu0 %v6078_v10  ;;  %v2353_v10 = vld [vmem:[#allocation11 + $0x418] sm:$0xff]  ;;  %v6160_v12 = vpack.c.bf16 %v2354_v9, %v2350_v7  ;;  %v6236_v7 = vpack.c.bf16 %v2380_v3, %v2376_v60  ;;  %v2419_v3 = vld [vmem:[#allocation11 + $0x628] sm:$0xff] }
 0x444   :  { %6141 = vmatpush1.bf16.msra.mxu1 %v6140_v16  ;;  %v6222_v13 = vpack.c.bf16 %v2357_v11, %v2353_v10  ;;  %v2356_v16 = vld [vmem:[#allocation11 + $0x430] sm:$0xff] }
 0x445   :  { %6143 = vmatprep.subr.bf16.mxu1 %v6142_v17  ;;  %v6224_v17 = vpack.c.bf16 %v2356_v16, %v2352_v14  ;;  %v2384_v11 = vld [vmem:[#allocation11 + $0x510] sm:$0xff]  ;;  %v2391_v14 = vld [vmem:[#allocation11 + $0x548] sm:$0xff] }
 0x446   :  { %6081 = vmatpush1.bf16.msra.mxu0 %v6080_v20  ;;  %v6162_v20 = vpack.c.bf16 %v2363_v1, %v2359_v18  ;;  %v2395_v16 = vld [vmem:[#allocation11 + $0x568] sm:$0xff]  ;;  %v2390_v18 = vld [vmem:[#allocation11 + $0x540] sm:$0xff] }
 0x447   :  { %6083 = vmatprep.subr.bf16.mxu0 %v6082_v23  ;;  %v2361_v23 = vld [vmem:[#allocation11 + $0x458] sm:$0xff]  ;;  %v2394_v1 = vld [vmem:[#allocation11 + $0x560] sm:$0xff] }
 0x448   :  { %6145 = vmatpush1.bf16.msra.mxu1 %v6144_v37  ;;  %v6226_v37 = vpack.c.bf16 %v2365_v31, %v2361_v23  ;;  %v6180_v21 = vpack.c.bf16 %v2394_v1, %v2390_v18  ;;  %v2392_v23 = vld [vmem:[#allocation11 + $0x550] sm:$0xff]  ;;  %v2429_v1 = vld [vmem:[#allocation11 + $0x678] sm:$0xff] }
 0x449   :  { %6147 = vmatprep.subr.bf16.mxu1 %v6146_v40  ;;  %v6228_v40 = vpack.c.bf16 %v2364_v35, %v2360_v32  ;;  %v2399_v35 = vld [vmem:[#allocation11 + $0x588] sm:$0xff] }
 0x44a   :  { %6085 = vmatpush1.bf16.msra.mxu0 %v6084_v45  ;;  %v2366_v45 = vld [vmem:[#allocation11 + $0x480] sm:$0xff] }
 0x44b   :  { %6087 = vmatprep.subr.bf16.mxu0 %v6086_v48  ;;  %v2369_v48 = vld [vmem:[#allocation11 + $0x498] sm:$0xff]  ;;  %v6168_v49 = vpack.c.bf16 %v2370_v47, %v2366_v45 }
 0x44c   :  { %6149 = vmatpush1.bf16.msra.mxu1 %v6148_v52  ;;  %v6230_v50 = vpack.c.bf16 %v2373_v56, %v2369_v48  ;;  %v2372_v52 = vld [vmem:[#allocation11 + $0x4b0] sm:$0xff]  ;;  %v2401_v45 = vld [vmem:[#allocation11 + $0x598] sm:$0xff] }
 0x44d   :  { %6151 = vmatprep.subr.bf16.mxu1 %v6150_v30  ;;  %v2375_v30 = vld [vmem:[#allocation11 + $0x4c8] sm:$0xff]  ;;  %v6232_v53 = vpack.c.bf16 %v2372_v52, %v2368_v51  ;;  %v2405_v47 = vld [vmem:[#allocation11 + $0x5b8] sm:$0xff]  ;;  %v2400_v48 = vld [vmem:[#allocation11 + $0x590] sm:$0xff] }
 0x44e   :  { %6089 = vmatpush1.bf16.msra.mxu0 %v6088_v57  ;;  %v2374_v57 = vld [vmem:[#allocation11 + $0x4c0] sm:$0xff]  ;;  %v6170_v62 = vpack.c.bf16 %v2379_v55, %v2375_v30  ;;  %v2404_v56 = vld [vmem:[#allocation11 + $0x5b0] sm:$0xff]  ;;  %v2407_v51 = vld [vmem:[#allocation11 + $0x5c8] sm:$0xff] }
 0x44f   :  { %6091 = vmatprep.subr.bf16.mxu0 %v6090_v38  ;;  %v2377_v38 = vld [vmem:[#allocation11 + $0x4d8] sm:$0xff]  ;;  %v2411_v52 = vld [vmem:[#allocation11 + $0x5e8] sm:$0xff]  ;;  %v2410_v55 = vld [vmem:[#allocation11 + $0x5e0] sm:$0xff] }
 0x450   :  { %6153 = vmatpush1.bf16.msra.mxu1 %v6152_v61  ;;  %v6172_v61 = vpack.c.bf16 %v2378_v58, %v2374_v57  ;;  %v6186_v30 = vpack.c.bf16 %v2411_v52, %v2407_v51  ;;  %v2409_v57 = vld [vmem:[#allocation11 + $0x5d8] sm:$0xff]  ;;  %v2438_v51 = vld [vmem:[#allocation11 + $0x6c0] sm:$0xff] }
 0x451   :  { %6155 = vmatprep.subr.bf16.mxu1 %v6154_v2  ;;  %v6234_v2 = vpack.c.bf16 %v2381_v59, %v2377_v38  ;;  %v2408_v38 = vld [vmem:[#allocation11 + $0x5d0] sm:$0xff]  ;;  %v2442_v52 = vld [vmem:[#allocation11 + $0x6e0] sm:$0xff] }
 0x452   :  { %6093 = vmatpush1.bf16.msra.mxu0 %v6092_v4  ;;  %v2387_v4 = vld [vmem:[#allocation11 + $0x528] sm:$0xff]  ;;  %v2412_v59 = vld [vmem:[#allocation11 + $0x5f0] sm:$0xff] }
 0x453   :  { %6159 = vmatprep.subr.bf16.mxu0 %v6158_v8  ;;  %v2389_v8 = vld [vmem:[#allocation11 + $0x538] sm:$0xff] }
 0x454   :  { %6157 = vmatpush1.bf16.msra.mxu1 %v6156_v63  ;;  %v6174_v63 = vpack.c.bf16 %v2387_v4, %v2383_v0  ;;  %v6238_v9 = vpack.c.bf16 %v2389_v8, %v2385_v6  ;;  %v2414_v4 = vld [vmem:[#allocation11 + $0x600] sm:$0xff]  ;;  %v2421_v6 = vld [vmem:[#allocation11 + $0x638] sm:$0xff]  ;;  %v2420_v8 = vld [vmem:[#allocation11 + $0x630] sm:$0xff] }
 0x455   :  { %2238 = vmatmul.mubr.f32.vlgmr.msra.gmra.mrb[12].mxu0 %v2034_v39  ;;  %6223 = vmatprep.subr.bf16.mxu1 %v6222_v13 }
 0x456   :  { %6161 = vmatpush1.bf16.msra.mxu0 %v6160_v12  ;;  %v2388_v12 = vld [vmem:[#allocation11 + $0x530] sm:$0xff] }
 0x457   :  { %2309 = vmatmul.mubr.f32.vlgmr.msra.gmra.mrb[12].mxu1 %v2034_v39  ;;  %6163 = vmatprep.subr.bf16.mxu0 %v6162_v20  ;;  %v2382_v39 = vld [vmem:[#allocation11 + $0x500] sm:$0xff]  ;;  %v6240_v13 = vpack.c.bf16 %v2388_v12, %v2384_v11  ;;  %v2393_v20 = vld [vmem:[#allocation11 + $0x558] sm:$0xff]  ;;  %v2423_v11 = vld [vmem:[#allocation11 + $0x648] sm:$0xff] }
 0x458   :  { %6225 = vmatpush1.bf16.msra.mxu1 %v6224_v17  ;;  %v6176_v10 = vpack.c.bf16 %v2386_v5, %v2382_v39  ;;  %v6178_v17 = vpack.c.bf16 %v2395_v16, %v2391_v14  ;;  %v6242_v31 = vpack.c.bf16 %v2397_v22, %v2393_v20  ;;  %v2417_v39 = vld [vmem:[#allocation11 + $0x618] sm:$0xff]  ;;  %v2427_v12 = vld [vmem:[#allocation11 + $0x668] sm:$0xff]  ;;  %v2422_v14 = vld [vmem:[#allocation11 + $0x640] sm:$0xff] }
 0x459   :  { %6227 = vmatprep.subr.bf16.mxu1 %v6226_v37  ;;  %v2403_v37 = vld [vmem:[#allocation11 + $0x5a8] sm:$0xff]  ;;  %v2426_v16 = vld [vmem:[#allocation11 + $0x660] sm:$0xff]  ;;  %v2424_v20 = vld [vmem:[#allocation11 + $0x650] sm:$0xff] }
 0x45a   :  { %6165 = vmatpush1.bf16.msra.mxu0 %v6164_v26  ;;  %v2396_v26 = vld [vmem:[#allocation11 + $0x570] sm:$0xff]  ;;  %v6196_v18 = vpack.c.bf16 %v2426_v16, %v2422_v14  ;;  %v2461_v16 = vld [vmem:[#allocation11 + $0x778] sm:$0xff] }
 0x45b   :  { %6167 = vmatprep.subr.bf16.mxu0 %v6166_v25  ;;  %v6244_v32 = vpack.c.bf16 %v2396_v26, %v2392_v23  ;;  %v6184_v25 = vpack.c.bf16 %v2402_v44, %v2398_v43  ;;  %v2431_v26 = vld [vmem:[#allocation11 + $0x688] sm:$0xff]  ;;  %v2437_v44 = vld [vmem:[#allocation11 + $0x6b8] sm:$0xff] }
 0x45c   :  { %6229 = vmatpush1.bf16.msra.mxu1 %v6228_v40  ;;  %v6182_v40 = vpack.c.bf16 %v2403_v37, %v2399_v35  ;;  %v2430_v35 = vld [vmem:[#allocation11 + $0x680] sm:$0xff] }
 0x45d   :  { %6231 = vmatprep.subr.bf16.mxu1 %v6230_v50  ;;  %v6248_v50 = vpack.c.bf16 %v2404_v56, %v2400_v48  ;;  %v2434_v37 = vld [vmem:[#allocation11 + $0x6a0] sm:$0xff]  ;;  %v2439_v56 = vld [vmem:[#allocation11 + $0x6c8] sm:$0xff] }
 0x45e   :  { %6169 = vmatpush1.bf16.msra.mxu0 %v6168_v49  ;;  %v6246_v49 = vpack.c.bf16 %v2405_v47, %v2401_v45  ;;  %v6200_v43 = vpack.c.bf16 %v2434_v37, %v2430_v35  ;;  %v2432_v45 = vld [vmem:[#allocation11 + $0x690] sm:$0xff]  ;;  %v2469_v35 = vld [vmem:[#allocation11 + $0x7b8] sm:$0xff] }
 0x45f   :  { %6171 = vmatprep.subr.bf16.mxu0 %v6170_v62  ;;  %v2413_v62 = vld [vmem:[#allocation11 + $0x5f8] sm:$0xff] }
 0x460   :  { %6233 = vmatpush1.bf16.msra.mxu1 %v6232_v53  ;;  %v2406_v53 = vld [vmem:[#allocation11 + $0x5c0] sm:$0xff]  ;;  %v6250_v60 = vpack.c.bf16 %v2413_v62, %v2409_v57  ;;  %v2440_v57 = vld [vmem:[#allocation11 + $0x6d0] sm:$0xff] }
 0x461   :  { %6235 = vmatprep.subr.bf16.mxu1 %v6234_v2  ;;  %v6188_v58 = vpack.c.bf16 %v2410_v55, %v2406_v53  ;;  %v2415_v2 = vld [vmem:[#allocation11 + $0x608] sm:$0xff]  ;;  %v6204_v53 = vpack.c.bf16 %v2442_v52, %v2438_v51  ;;  %v2445_v55 = vld [vmem:[#allocation11 + $0x6f8] sm:$0xff]  ;;  %v2472_v52 = vld [vmem:[#allocation11 + $0x7d0] sm:$0xff] }
 0x462   :  { %6173 = vmatpush1.bf16.msra.mxu0 %v6172_v61  ;;  %v6252_v61 = vpack.c.bf16 %v2412_v59, %v2408_v38  ;;  %v6190_v0 = vpack.c.bf16 %v2419_v3, %v2415_v2  ;;  %v2447_v59 = vld [vmem:[#allocation11 + $0x708] sm:$0xff]  ;;  %v2446_v2 = vld [vmem:[#allocation11 + $0x700] sm:$0xff]  ;;  %v2477_v51 = vld [vmem:[#allocation11 + $0x7f8] sm:$0xff] }
 0x463   :  { %6175 = vmatprep.subr.bf16.mxu0 %v6174_v63  ;;  %v2418_v63 = vld [vmem:[#allocation11 + $0x620] sm:$0xff] }
 0x464   :  { %6237 = vmatpush1.bf16.msra.mxu1 %v6236_v7  ;;  %v6192_v5 = vpack.c.bf16 %v2418_v63, %v2414_v4  ;;  %v2416_v7 = vld [vmem:[#allocation11 + $0x610] sm:$0xff]  ;;  %v2450_v3 = vld [vmem:[#allocation11 + $0x720] sm:$0xff]  ;;  %v2453_v63 = vld [vmem:[#allocation11 + $0x738] sm:$0xff] }
 0x465   :  { %6239 = vmatprep.subr.bf16.mxu1 %v6238_v9  ;;  %v6254_v9 = vpack.c.bf16 %v2421_v6, %v2417_v39  ;;  %v6208_v4 = vpack.c.bf16 %v2450_v3, %v2446_v2  ;;  %v2448_v39 = vld [vmem:[#allocation11 + $0x710] sm:$0xff] }
 0x466   :  { %6177 = vmatpush1.bf16.msra.mxu0 %v6176_v10  ;;  %v6256_v10 = vpack.c.bf16 %v2420_v8, %v2416_v7  ;;  %v2455_v8 = vld [vmem:[#allocation11 + $0x748] sm:$0xff] }
 0x467   :  { %6179 = vmatprep.subr.bf16.mxu0 %v6178_v17  ;;  %v2425_v17 = vld [vmem:[#allocation11 + $0x658] sm:$0xff] }
 0x468   :  { %6241 = vmatpush1.bf16.msra.mxu1 %v6240_v13  ;;  %v6194_v13 = vpack.c.bf16 %v2427_v12, %v2423_v11  ;;  %v6258_v22 = vpack.c.bf16 %v2429_v1, %v2425_v17  ;;  %v2454_v11 = vld [vmem:[#allocation11 + $0x740] sm:$0xff]  ;;  %v2456_v17 = vld [vmem:[#allocation11 + $0x750] sm:$0xff] }
 0x469   :  { %6243 = vmatprep.subr.bf16.mxu1 %v6242_v31  ;;  %v2435_v31 = vld [vmem:[#allocation11 + $0x6a8] sm:$0xff]  ;;  %v2458_v12 = vld [vmem:[#allocation11 + $0x760] sm:$0xff] }
 0x46a   :  { %6181 = vmatpush1.bf16.msra.mxu0 %v6180_v21  ;;  %v2428_v21 = vld [vmem:[#allocation11 + $0x670] sm:$0xff]  ;;  %v6212_v14 = vpack.c.bf16 %v2458_v12, %v2454_v11 }
 0x46b   :  { %6183 = vmatprep.subr.bf16.mxu0 %v6182_v40  ;;  %v6260_v23 = vpack.c.bf16 %v2428_v21, %v2424_v20  ;;  %v2433_v40 = vld [vmem:[#allocation11 + $0x698] sm:$0xff]  ;;  %v2463_v21 = vld [vmem:[#allocation11 + $0x788] sm:$0xff] }
 0x46c   :  { %6245 = vmatpush1.bf16.msra.mxu1 %v6244_v32  ;;  %v6198_v32 = vpack.c.bf16 %v2435_v31, %v2431_v26  ;;  %v6262_v47 = vpack.c.bf16 %v2437_v44, %v2433_v40  ;;  %v2466_v31 = vld [vmem:[#allocation11 + $0x7a0] sm:$0xff]  ;;  %v2468_v44 = vld [vmem:[#allocation11 + $0x7b0] sm:$0xff] }
 0x46d   :  { %6247 = vmatprep.subr.bf16.mxu1 %v6246_v49  ;;  %v2443_v49 = vld [vmem:[#allocation11 + $0x6e8] sm:$0xff] }
 0x46e   :  { %6185 = vmatpush1.bf16.msra.mxu0 %v6184_v25  ;;  %v2436_v25 = vld [vmem:[#allocation11 + $0x6b0] sm:$0xff] }
 0x46f   :  { %6187 = vmatprep.subr.bf16.mxu0 %v6186_v30  ;;  %v6264_v48 = vpack.c.bf16 %v2436_v25, %v2432_v45  ;;  %v2441_v30 = vld [vmem:[#allocation11 + $0x6d8] sm:$0xff]  ;;  %v2471_v45 = vld [vmem:[#allocation11 + $0x7c8] sm:$0xff] }
 0x470   :  { %6249 = vmatpush1.bf16.msra.mxu1 %v6248_v50  ;;  %v6202_v50 = vpack.c.bf16 %v2443_v49, %v2439_v56  ;;  %v6266_v62 = vpack.c.bf16 %v2445_v55, %v2441_v30  ;;  %v2474_v56 = vld [vmem:[#allocation11 + $0x7e0] sm:$0xff]  ;;  %v2476_v55 = vld [vmem:[#allocation11 + $0x7f0] sm:$0xff] }
 0x471   :  { %6251 = vmatprep.subr.bf16.mxu1 %v6250_v60  ;;  %v2451_v60 = vld [vmem:[#allocation11 + $0x728] sm:$0xff] }
 0x472   :  { %6189 = vmatpush1.bf16.msra.mxu0 %v6188_v58  ;;  %v2444_v58 = vld [vmem:[#allocation11 + $0x6f0] sm:$0xff] }
 0x473   :  { %6191 = vmatprep.subr.bf16.mxu0 %v6190_v0  ;;  %v6268_v38 = vpack.c.bf16 %v2444_v58, %v2440_v57  ;;  %v2449_v0 = vld [vmem:[#allocation11 + $0x718] sm:$0xff]  ;;  %v2672_v57 = vld [vmem:[#allocation11 + $0x8] sm:$0xff] }
 0x474   :  { %6253 = vmatpush1.bf16.msra.mxu1 %v6252_v61  ;;  %v6206_v61 = vpack.c.bf16 %v2451_v60, %v2447_v59  ;;  %v6270_v6 = vpack.c.bf16 %v2453_v63, %v2449_v0  ;;  %v2676_v58 = vld [vmem:[#allocation11 + $0x28] sm:$0xff]  ;;  %v2674_v59 = vld [vmem:[#allocation11 + $0x18] sm:$0xff] }
 0x475   :  { %6255 = vmatprep.subr.bf16.mxu1 %v6254_v9  ;;  %v2459_v9 = vld [vmem:[#allocation11 + $0x768] sm:$0xff]  ;;  %v2678_v60 = vld [vmem:[#allocation11 + $0x38] sm:$0xff] }
 0x476   :  { %6193 = vmatpush1.bf16.msra.mxu0 %v6192_v5  ;;  %v2452_v5 = vld [vmem:[#allocation11 + $0x730] sm:$0xff] }
 0x477   :  { %6195 = vmatprep.subr.bf16.mxu0 %v6194_v13  ;;  %v6272_v7 = vpack.c.bf16 %v2452_v5, %v2448_v39  ;;  %v2457_v13 = vld [vmem:[#allocation11 + $0x758] sm:$0xff] }
 0x478   :  { %6257 = vmatpush1.bf16.msra.mxu1 %v6256_v10  ;;  %v6210_v10 = vpack.c.bf16 %v2459_v9, %v2455_v8  ;;  %v6274_v1 = vpack.c.bf16 %v2461_v16, %v2457_v13 }
 0x479   :  { %6259 = vmatprep.subr.bf16.mxu1 %v6258_v22  ;;  %v2467_v22 = vld [vmem:[#allocation11 + $0x7a8] sm:$0xff] }
 0x47a   :  { %6197 = vmatpush1.bf16.msra.mxu0 %v6196_v18  ;;  %v2460_v18 = vld [vmem:[#allocation11 + $0x770] sm:$0xff]  ;;  %v6214_v26 = vpack.c.bf16 %v2467_v22, %v2463_v21 }
 0x47b   :  { %6199 = vmatprep.subr.bf16.mxu0 %v6198_v32  ;;  %v6276_v20 = vpack.c.bf16 %v2460_v18, %v2456_v17  ;;  %v2465_v32 = vld [vmem:[#allocation11 + $0x798] sm:$0xff] }
 0x47c   :  { %6261 = vmatpush1.bf16.msra.mxu1 %v6260_v23  ;;  %v2462_v23 = vld [vmem:[#allocation11 + $0x780] sm:$0xff]  ;;  %v6278_v40 = vpack.c.bf16 %v2469_v35, %v2465_v32 }
 0x47d   :  { %6263 = vmatprep.subr.bf16.mxu1 %v6262_v47  ;;  %v6216_v37 = vpack.c.bf16 %v2466_v31, %v2462_v23  ;;  %v2475_v47 = vld [vmem:[#allocation11 + $0x7e8] sm:$0xff] }
 0x47e   :  { %6201 = vmatpush1.bf16.msra.mxu0 %v6200_v43  ;;  %v2464_v43 = vld [vmem:[#allocation11 + $0x790] sm:$0xff]  ;;  %v6218_v49 = vpack.c.bf16 %v2475_v47, %v2471_v45 }
 0x47f   :  { %6203 = vmatprep.subr.bf16.mxu0 %v6202_v50  ;;  %v6280_v25 = vpack.c.bf16 %v2468_v44, %v2464_v43  ;;  %v2473_v50 = vld [vmem:[#allocation11 + $0x7d8] sm:$0xff] }
 0x480   :  { %6265 = vmatpush1.bf16.msra.mxu1 %v6264_v48  ;;  %v2470_v48 = vld [vmem:[#allocation11 + $0x7c0] sm:$0xff] }
 0x481   :  { %6267 = vmatprep.subr.bf16.mxu1 %v6266_v62  ;;  %v6220_v30 = vpack.c.bf16 %v2474_v56, %v2470_v48  ;;  %v6286_v62 = vpack.c.bf16 %v2676_v58, %v2672_v57 }
 0x482   :  { %6205 = vmatpush1.bf16.msra.mxu0 %v6204_v53  ;;  %v6282_v53 = vpack.c.bf16 %v2477_v51, %v2473_v50 }
 0x483   :  { %6207 = vmatprep.subr.bf16.mxu0 %v6206_v61  ;;  %v6350_v61 = vpack.c.bf16 %v2678_v60, %v2674_v59  ;;  %v7989_v59 = vpop.permute.xlu1 %2030 }
 0x484   :  { %6269 = vmatpush1.bf16.msra.mxu1 %v6268_v38  ;;  %v6284_v38 = vpack.c.bf16 %v2476_v55, %v2472_v52  ;;  %vm2032_vm12 = vcmp.eq.s32.totalorder %v7989_v59, 1 }
 0x485   :  { %6271 = vmatprep.subr.bf16.mxu1 %v6270_v6 }
 0x486   :  { %6209 = vmatpush1.bf16.msra.mxu0 %v6208_v4 }
 0x487   :  { %6211 = vmatprep.subr.bf16.mxu0 %v6210_v10 }
 0x488   :  { %6273 = vmatpush1.bf16.msra.mxu1 %v6272_v7 }
 0x489   :  { %6275 = vmatprep.subr.bf16.mxu1 %v6274_v1 }
 0x48a   :  { %6213 = vmatpush1.bf16.msra.mxu0 %v6212_v14 }
 0x48b   :  { %6215 = vmatprep.subr.bf16.mxu0 %v6214_v26 }
 0x48c   :  { %6277 = vmatpush1.bf16.msra.mxu1 %v6276_v20 }
 0x48d   :  { %6279 = vmatprep.subr.bf16.mxu1 %v6278_v40 }
 0x48e   :  { %6217 = vmatpush1.bf16.msra.mxu0 %v6216_v37 }
 0x48f   :  { %6219 = vmatprep.subr.bf16.mxu0 %v6218_v49 }
 0x490   :  { %6281 = vmatpush1.bf16.msra.mxu1 %v6280_v25 }
 0x491   :  { %6283 = vmatprep.subr.bf16.mxu1 %v6282_v53 }
 0x492   :  { %6221 = vmatpush1.bf16.msra.mxu0 %v6220_v30 }
 0x493   :  { %6287 = vmatprep.subr.bf16.mxu0 %v6286_v62 }
 0x494   :  { %6285 = vmatpush1.bf16.msra.mxu1 %v6284_v38 }
 0x495   :  { %6351 = vmatprep.subr.bf16.mxu1 %v6350_v61 }
 0x4e8   :  { %v1918_v2 = vpop.f32.mrb[10].mxu0  ;;  %v1989_v3 = vpop.f32.mrb[10].mxu1 }
 0x4e9   :  { %v1919_v0 = vadd.f32 %v1918_v2, %v7857_v33  ;;  %v1920_v4 = vpop.f32.mrb[11].mxu0  ;;  %v1991_v63 = vpop.f32.mrb[11].mxu1  ;;  %v1990_v9 = vadd.f32 %v1989_v3, %v7872_v27  ;;  %v2671_v2 = vld [vmem:[#allocation11] sm:$0xff] }
 0x4ea   :  { %v1921_v39 = vadd.f32 %v1920_v4, %v7861_v34  ;;  %v1992_v7 = vadd.f32 %v1991_v63, %v7867_v46  ;;  %v2675_v3 = vld [vmem:[#allocation11 + $0x20] sm:$0xff]  ;;  %v2680_v4 = vld [vmem:[#allocation11 + $0x48] sm:$0xff] }
 0x4eb   :  { %v5209_v5 = vmul.f32 -1.442695, %v1919_v0  ;;  %v2684_v63 = vld [vmem:[#allocation11 + $0x68] sm:$0xff] }
 0x4ec   :  { %v5210_v6 = vmul.f32 -1.442695, %v1921_v39  ;;  %v5211_v8 = vmul.f32 -1.442695, %v1992_v7  ;;  %v2673_v39 = vld [vmem:[#allocation11 + $0x10] sm:$0xff]  ;;  %v6288_v7 = vpack.c.bf16 %v2675_v3, %v2671_v2  ;;  %v2712_v2 = vld [vmem:[#allocation11 + $0x148] sm:$0xff] }
 0x4ed   :  { %7405 = vpow2.f32 %v5209_v5  ;;  %v2677_v5 = vld [vmem:[#allocation11 + $0x30] sm:$0xff]  ;;  %v2716_v3 = vld [vmem:[#allocation11 + $0x168] sm:$0xff] }
 0x4ee   :  { %7407 = vpow2.f32 %v5210_v6 }
 0x4ef   :  { %7409 = vpow2.f32 %v5211_v8  ;;  %v2682_v8 = vld [vmem:[#allocation11 + $0x58] sm:$0xff] }
 0x4f0   :  { %7411 = vtanh.f32 %v1990_v9  ;;  %v2686_v9 = vld [vmem:[#allocation11 + $0x78] sm:$0xff] }
 0x4f7   :  { %v7406_v10 = vpop.eup %7405 }
 0x4f8   :  { %v7408_v11 = vpop.eup %7407  ;;  %v1997_v12 = vadd.f32 1.0, %v7406_v10 }
 0x4f9   :  { %v2003_v13 = vadd.f32 1.0, %v7408_v11  ;;  %v7410_v14 = vpop.eup %7409  ;;  %v6290_v11 = vpack.c.bf16 %v2684_v63, %v2680_v4  ;;  %v2705_v63 = vld [vmem:[#allocation11 + $0x110] sm:$0xff] }
 0x4fa   :  { %7413 = vrcp.f32 %v1997_v12  ;;  %v7412_v16 = vpop.eup %7411  ;;  %v2010_v20 = vadd.f32 1.0, %v7410_v14  ;;  %v2679_v12 = vld [vmem:[#allocation11 + $0x40] sm:$0xff]  ;;  %v2688_v14 = vld [vmem:[#allocation11 + $0x88] sm:$0xff] }
 0x4fb   :  { %7415 = vrcp.f32 %v2003_v13  ;;  %v2683_v13 = vld [vmem:[#allocation11 + $0x60] sm:$0xff] }
 0x4fc   :  { %7417 = vrcp.f32 %v2010_v20  ;;  %v2685_v20 = vld [vmem:[#allocation11 + $0x70] sm:$0xff] }
 0x504   :  { %v7414_v17 = vpop.eup %7413 }
 0x505   :  { %v7416_v18 = vpop.eup %7415  ;;  %v2014_v1 = vmul.f32 %v7414_v17, %v7412_v16  ;;  %v2692_v16 = vld [vmem:[#allocation11 + $0xa8] sm:$0xff]  ;;  %v6352_v17 = vpack.c.bf16 %v2677_v5, %v2673_v39  ;;  %v2709_v39 = vld [vmem:[#allocation11 + $0x130] sm:$0xff] }
 0x506   :  { %v2013_v21 = vmul.f32 %v7416_v18, %v7928_v54  ;;  %v7418_v26 = vpop.eup %7417  ;;  %v6354_v18 = vpack.c.bf16 %v2686_v9, %v2682_v8  ;;  %v6306_v8 = vpack.c.bf16 %v2716_v3, %v2712_v2  ;;  %v2711_v9 = vld [vmem:[#allocation11 + $0x140] sm:$0xff]  ;;  %v2737_v3 = vld [vmem:[#allocation11 + $0x210] sm:$0xff] }
 0x508   :  { %v2015_v22 = vadd.f32 %v2014_v1, %v2013_v21  ;;  %v2681_v1 = vld [vmem:[#allocation11 + $0x50] sm:$0xff]  ;;  %v6292_v21 = vpack.c.bf16 %v2683_v13, %v2679_v12  ;;  %v2724_v12 = vld [vmem:[#allocation11 + $0x1a8] sm:$0xff]  ;;  %v6368_v13 = vpack.c.bf16 %v2709_v39, %v2705_v63  ;;  %v2746_v63 = vld [vmem:[#allocation11 + $0x258] sm:$0xff] }
 0x509   :  { %v2750_v39 = vld [vmem:[#allocation11 + $0x278] sm:$0xff] }
 0x50a   :  { %7419 = vtanh.f32 %v2015_v22  ;;  %v7972_v23 = vsel %vm1402_vm11, %v2015_v22, %v7928_v54  ;;  %v2690_v22 = vld [vmem:[#allocation11 + $0x98] sm:$0xff] }
 0x514   :  { %v7420_v31 = vpop.eup %7419 }
 0x515   :  { %v2017_v32 = vmul.f32 %v7420_v31, %v7418_v26  ;;  %v2694_v26 = vld [vmem:[#allocation11 + $0xb8] sm:$0xff]  ;;  %v6294_v31 = vpack.c.bf16 %v2692_v16, %v2688_v14  ;;  %v2713_v16 = vld [vmem:[#allocation11 + $0x150] sm:$0xff] }
 0x517   :  { %v7977_v35 = vsel %vm1402_vm11, %v2017_v32, %v7933_v24  ;;  %v2022_v37 = vsel %vm1402_vm11, %v2017_v32, 0.0  ;;  %v2687_v32 = vld [vmem:[#allocation11 + $0x80] sm:$0xff] }
 0x518   :  { %2024 = vst.msk [vmem:[#allocation14 + $0x10] sm:$0xff] %vm763_vm5, %v2022_v37  ;;  %2546 = vmatprep.mubr.f32.mxu0 %v7977_v35  ;;  %2617 = vmatprep.mubr.f32.mxu1 %v7977_v35  ;;  %v2691_v37 = vld [vmem:[#allocation11 + $0xa0] sm:$0xff] }
 0x528   :  { %v2239_v40 = vpop.f32.mrb[12].mxu0 }
 0x529   :  { %v2240_v54 = vadd.f32 %v2239_v40, %v7815_v28  ;;  %v2241_v43 = vpop.f32.mrb[13].mxu0  ;;  %v2696_v40 = vld [vmem:[#allocation11 + $0xc8] sm:$0xff] }
 0x52a   :  { %v2242_v44 = vadd.f32 %v2241_v43, %v7819_v29  ;;  %v2310_v45 = vpop.f32.mrb[12].mxu1  ;;  %v6358_v43 = vpack.c.bf16 %v2694_v26, %v2690_v22  ;;  %v2719_v22 = vld [vmem:[#allocation11 + $0x180] sm:$0xff] }
 0x52b   :  { %v5212_v25 = vmul.f32 -1.442695, %v2240_v54  ;;  %v2312_v47 = vpop.f32.mrb[13].mxu1  ;;  %v2311_v56 = vadd.f32 %v2310_v45, %v7832_v42  ;;  %v2700_v54 = vld [vmem:[#allocation11 + $0xe8] sm:$0xff]  ;;  %v2693_v45 = vld [vmem:[#allocation11 + $0xb0] sm:$0xff]  ;;  %v2723_v26 = vld [vmem:[#allocation11 + $0x1a0] sm:$0xff] }
 0x52c   :  { %v5213_v24 = vmul.f32 -1.442695, %v2242_v44  ;;  %v2313_v15 = vadd.f32 %v2312_v47, %v7826_v36  ;;  %v2689_v44 = vld [vmem:[#allocation11 + $0x90] sm:$0xff]  ;;  %v2698_v47 = vld [vmem:[#allocation11 + $0xd8] sm:$0xff] }
 0x52d   :  { %7421 = vpow2.f32 %v5212_v25  ;;  %v6296_v25 = vpack.c.bf16 %v2691_v37, %v2687_v32  ;;  %v2732_v32 = vld [vmem:[#allocation11 + $0x1e8] sm:$0xff] }
 0x52e   :  { %7423 = vpow2.f32 %v5213_v24  ;;  %v5214_v48 = vmul.f32 -1.442695, %v2313_v15  ;;  %v2702_v24 = vld [vmem:[#allocation11 + $0xf8] sm:$0xff]  ;;  %v6298_v15 = vpack.c.bf16 %v2700_v54, %v2696_v40  ;;  %v2721_v54 = vld [vmem:[#allocation11 + $0x190] sm:$0xff] }
 0x530   :  { %7425 = vpow2.f32 %v5214_v48  ;;  %v2695_v48 = vld [vmem:[#allocation11 + $0xc0] sm:$0xff] }
 0x531   :  { %7427 = vtanh.f32 %v2311_v56  ;;  %v2699_v56 = vld [vmem:[#allocation11 + $0xe0] sm:$0xff] }
 0x537   :  { %v7422_v49 = vpop.eup %7421 }
 0x538   :  { %v7424_v50 = vpop.eup %7423  ;;  %v2318_v51 = vadd.f32 1.0, %v7422_v49  ;;  %v2704_v49 = vld [vmem:[#allocation11 + $0x108] sm:$0xff] }
 0x539   :  { %v2324_v52 = vadd.f32 1.0, %v7424_v50  ;;  %v2708_v50 = vld [vmem:[#allocation11 + $0x128] sm:$0xff] }
 0x53a   :  { %7429 = vrcp.f32 %v2318_v51  ;;  %v7426_v30 = vpop.eup %7425  ;;  %v6360_v51 = vpack.c.bf16 %v2693_v45, %v2689_v44  ;;  %v2730_v44 = vld [vmem:[#allocation11 + $0x1d8] sm:$0xff] }
 0x53b   :  { %7431 = vrcp.f32 %v2324_v52  ;;  %v7428_v53 = vpop.eup %7427  ;;  %v2331_v57 = vadd.f32 1.0, %v7426_v30  ;;  %v6362_v52 = vpack.c.bf16 %v2702_v24, %v2698_v47  ;;  %v2697_v30 = vld [vmem:[#allocation11 + $0xd0] sm:$0xff]  ;;  %v2734_v45 = vld [vmem:[#allocation11 + $0x1f8] sm:$0xff]  ;;  %v2727_v47 = vld [vmem:[#allocation11 + $0x1c0] sm:$0xff] }
 0x53c   :  { %v2731_v24 = vld [vmem:[#allocation11 + $0x1e0] sm:$0xff] }
 0x53d   :  { %7433 = vrcp.f32 %v2331_v57  ;;  %v2706_v57 = vld [vmem:[#allocation11 + $0x118] sm:$0xff] }
 0x544   :  { %v7430_v55 = vpop.eup %7429 }
 0x545   :  { %v7432_v58 = vpop.eup %7431  ;;  %v2335_v62 = vmul.f32 %v7430_v55, %v7428_v53  ;;  %v2701_v53 = vld [vmem:[#allocation11 + $0xf0] sm:$0xff]  ;;  %v6300_v55 = vpack.c.bf16 %v2699_v56, %v2695_v48  ;;  %v2740_v48 = vld [vmem:[#allocation11 + $0x228] sm:$0xff] }
 0x546   :  { %v2334_v38 = vmul.f32 %v7432_v58, %v7951_v19  ;;  %v2710_v58 = vld [vmem:[#allocation11 + $0x138] sm:$0xff] }
 0x547   :  { %v7434_v0 = vpop.eup %7433  ;;  %v6366_v4 = vpack.c.bf16 %v2710_v58, %v2706_v57  ;;  %v2735_v57 = vld [vmem:[#allocation11 + $0x200] sm:$0xff] }
 0x548   :  { %v2336_v60 = vadd.f32 %v2335_v62, %v2334_v38  ;;  %v6302_v62 = vpack.c.bf16 %v2708_v50, %v2704_v49  ;;  %v2703_v38 = vld [vmem:[#allocation11 + $0x100] sm:$0xff]  ;;  %v6378_v49 = vpack.c.bf16 %v2734_v45, %v2730_v44  ;;  %v2729_v50 = vld [vmem:[#allocation11 + $0x1d0] sm:$0xff] }
 0x549   :  { %v2739_v58 = vld [vmem:[#allocation11 + $0x220] sm:$0xff] }
 0x54a   :  { %7435 = vtanh.f32 %v2336_v60  ;;  %v7995_v61 = vsel %vm2032_vm12, %v2336_v60, %v7951_v19  ;;  %v2707_v60 = vld [vmem:[#allocation11 + $0x120] sm:$0xff] }
 0x54b   :  { %v6304_v5 = vpack.c.bf16 %v2707_v60, %v2703_v38  ;;  %v2748_v38 = vld [vmem:[#allocation11 + $0x268] sm:$0xff]  ;;  %v2759_v44 = vld [vmem:[#allocation11 + $0x2c0] sm:$0xff] }
 0x54c   :  { %v2763_v45 = vld [vmem:[#allocation11 + $0x2e0] sm:$0xff] }
 0x554   :  { %v7436_v6 = vpop.eup %7435 }
 0x555   :  { %v2338_v10 = vmul.f32 %v7436_v6, %v7434_v0  ;;  %v6364_v0 = vpack.c.bf16 %v2701_v53, %v2697_v30  ;;  %v2714_v6 = vld [vmem:[#allocation11 + $0x158] sm:$0xff] }
 0x556   :  { %v2738_v30 = vld [vmem:[#allocation11 + $0x218] sm:$0xff] }
 0x557   :  { %5252 = vmatmul.mubr.msk.f32.vlgmr.msra.gmra.mrb[14].mxu0 %vm2032_vm12, %v2338_v10  ;;  %5253 = vmatmul.mubr.msk.f32.vlgmr.msra.gmra.mrb[14].mxu1 %vm2032_vm12, %v2338_v10  ;;  %v8004_v19 = vsel %vm2032_vm12, %v2338_v10, %v7960_v41  ;;  %v6356_v41 = vpack.c.bf16 %v2685_v20, %v2681_v1  ;;  %v2715_v10 = vld [vmem:[#allocation11 + $0x160] sm:$0xff]  ;;  %v2722_v1 = vld [vmem:[#allocation11 + $0x198] sm:$0xff] }
 0x558   :  { %6289 = vmatpush1.bf16.msra.mxu0 %v6288_v7  ;;  %2867 = vmatprep.mubr.f32.mxu0 %v8004_v19  ;;  %v2718_v7 = vld [vmem:[#allocation11 + $0x178] sm:$0xff] }
 0x559   :  { %2938 = vmatprep.mubr.f32.mxu1 %v8004_v19  ;;  %6291 = vmatprep.subr.bf16.mxu0 %v6290_v11  ;;  %v2720_v11 = vld [vmem:[#allocation11 + $0x188] sm:$0xff]  ;;  %v6370_v14 = vpack.c.bf16 %v2718_v7, %v2714_v6  ;;  %v2726_v20 = vld [vmem:[#allocation11 + $0x1b8] sm:$0xff]  ;;  %v2743_v6 = vld [vmem:[#allocation11 + $0x240] sm:$0xff] }
 0x55a   :  { %6353 = vmatpush1.bf16.msra.mxu1 %v6352_v17  ;;  %v2717_v17 = vld [vmem:[#allocation11 + $0x170] sm:$0xff]  ;;  %v6374_v40 = vpack.c.bf16 %v2726_v20, %v2722_v1  ;;  %v2742_v53 = vld [vmem:[#allocation11 + $0x238] sm:$0xff]  ;;  %v2747_v7 = vld [vmem:[#allocation11 + $0x260] sm:$0xff] }
 0x55b   :  { %6355 = vmatprep.subr.bf16.mxu1 %v6354_v18  ;;  %v6308_v18 = vpack.c.bf16 %v2715_v10, %v2711_v9  ;;  %v6372_v37 = vpack.c.bf16 %v2717_v17, %v2713_v16  ;;  %v6382_v2 = vpack.c.bf16 %v2742_v53, %v2738_v30  ;;  %v2756_v9 = vld [vmem:[#allocation11 + $0x2a8] sm:$0xff]  ;;  %v2754_v16 = vld [vmem:[#allocation11 + $0x298] sm:$0xff]  ;;  %v2751_v1 = vld [vmem:[#allocation11 + $0x280] sm:$0xff] }
 0x55c   :  { %6293 = vmatpush1.bf16.msra.mxu0 %v6292_v21  ;;  %v6310_v21 = vpack.c.bf16 %v2724_v12, %v2720_v11  ;;  %v6386_v11 = vpack.c.bf16 %v2750_v39, %v2746_v63  ;;  %v2745_v12 = vld [vmem:[#allocation11 + $0x250] sm:$0xff]  ;;  %v2758_v17 = vld [vmem:[#allocation11 + $0x2b8] sm:$0xff]  ;;  %v2755_v20 = vld [vmem:[#allocation11 + $0x2a0] sm:$0xff] }
 0x55d   :  { %6295 = vmatprep.subr.bf16.mxu0 %v6294_v31  ;;  %v2728_v31 = vld [vmem:[#allocation11 + $0x1c8] sm:$0xff]  ;;  %v2767_v30 = vld [vmem:[#allocation11 + $0x300] sm:$0xff] }
 0x55e   :  { %6357 = vmatpush1.bf16.msra.mxu1 %v6356_v41  ;;  %v2725_v41 = vld [vmem:[#allocation11 + $0x1b0] sm:$0xff]  ;;  %v2771_v53 = vld [vmem:[#allocation11 + $0x320] sm:$0xff] }
 0x55f   :  { %6359 = vmatprep.subr.bf16.mxu1 %v6358_v43  ;;  %v6312_v43 = vpack.c.bf16 %v2723_v26, %v2719_v22  ;;  %v6376_v56 = vpack.c.bf16 %v2725_v41, %v2721_v54  ;;  %v2764_v22 = vld [vmem:[#allocation11 + $0x2e8] sm:$0xff]  ;;  %v2762_v54 = vld [vmem:[#allocation11 + $0x2d8] sm:$0xff]  ;;  %v2775_v63 = vld [vmem:[#allocation11 + $0x340] sm:$0xff] }
 0x560   :  { %6297 = vmatpush1.bf16.msra.mxu0 %v6296_v25  ;;  %v6314_v25 = vpack.c.bf16 %v2732_v32, %v2728_v31  ;;  %v6390_v31 = vpack.c.bf16 %v2758_v17, %v2754_v16  ;;  %v2753_v32 = vld [vmem:[#allocation11 + $0x290] sm:$0xff]  ;;  %v2766_v41 = vld [vmem:[#allocation11 + $0x2f8] sm:$0xff]  ;;  %v2779_v39 = vld [vmem:[#allocation11 + $0x360] sm:$0xff] }
 0x561   :  { %6299 = vmatprep.subr.bf16.mxu0 %v6298_v15  ;;  %v2736_v15 = vld [vmem:[#allocation11 + $0x208] sm:$0xff]  ;;  %v2783_v16 = vld [vmem:[#allocation11 + $0x380] sm:$0xff] }
 0x562   :  { %6361 = vmatpush1.bf16.msra.mxu1 %v6360_v51  ;;  %v2733_v51 = vld [vmem:[#allocation11 + $0x1f0] sm:$0xff]  ;;  %v2787_v17 = vld [vmem:[#allocation11 + $0x3a0] sm:$0xff] }
 0x563   :  { %6363 = vmatprep.subr.bf16.mxu1 %v6362_v52  ;;  %v6316_v52 = vpack.c.bf16 %v2731_v24, %v2727_v47  ;;  %v6380_v60 = vpack.c.bf16 %v2733_v51, %v2729_v50  ;;  %v2772_v47 = vld [vmem:[#allocation11 + $0x328] sm:$0xff]  ;;  %v2770_v50 = vld [vmem:[#allocation11 + $0x318] sm:$0xff] }
 0x564   :  { %6301 = vmatpush1.bf16.msra.mxu0 %v6300_v55  ;;  %v6318_v55 = vpack.c.bf16 %v2740_v48, %v2736_v15  ;;  %v6394_v15 = vpack.c.bf16 %v2766_v41, %v2762_v54  ;;  %v2761_v48 = vld [vmem:[#allocation11 + $0x2d0] sm:$0xff]  ;;  %v2774_v51 = vld [vmem:[#allocation11 + $0x338] sm:$0xff]  ;;  %v2791_v54 = vld [vmem:[#allocation11 + $0x3c0] sm:$0xff] }
 0x565   :  { %6303 = vmatprep.subr.bf16.mxu0 %v6302_v62  ;;  %v2744_v62 = vld [vmem:[#allocation11 + $0x248] sm:$0xff]  ;;  %v2795_v41 = vld [vmem:[#allocation11 + $0x3e0] sm:$0xff] }
 0x566   :  { %6365 = vmatpush1.bf16.msra.mxu1 %v6364_v0  ;;  %v2741_v0 = vld [vmem:[#allocation11 + $0x230] sm:$0xff] }
 0x567   :  { %6367 = vmatprep.subr.bf16.mxu1 %v6366_v4  ;;  %v6320_v4 = vpack.c.bf16 %v2739_v58, %v2735_v57  ;;  %v6384_v10 = vpack.c.bf16 %v2741_v0, %v2737_v3  ;;  %v2780_v57 = vld [vmem:[#allocation11 + $0x368] sm:$0xff]  ;;  %v2778_v3 = vld [vmem:[#allocation11 + $0x358] sm:$0xff] }
 0x568   :  { %6305 = vmatpush1.bf16.msra.mxu0 %v6304_v5  ;;  %v6322_v5 = vpack.c.bf16 %v2748_v38, %v2744_v62  ;;  %v6398_v62 = vpack.c.bf16 %v2774_v51, %v2770_v50  ;;  %v2769_v38 = vld [vmem:[#allocation11 + $0x310] sm:$0xff]  ;;  %v2782_v0 = vld [vmem:[#allocation11 + $0x378] sm:$0xff]  ;;  %v2984_v51 = vld [vmem:[#allocation11 + $0x420] sm:$0xff] }
 0x569   :  { %6307 = vmatprep.subr.bf16.mxu0 %v6306_v8  ;;  %v2752_v8 = vld [vmem:[#allocation11 + $0x288] sm:$0xff] }
 0x56a   :  { %6369 = vmatpush1.bf16.msra.mxu1 %v6368_v13  ;;  %v2749_v13 = vld [vmem:[#allocation11 + $0x270] sm:$0xff] }
 0x56b   :  { %6371 = vmatprep.subr.bf16.mxu1 %v6370_v14  ;;  %v6324_v14 = vpack.c.bf16 %v2747_v7, %v2743_v6  ;;  %v6388_v26 = vpack.c.bf16 %v2749_v13, %v2745_v12  ;;  %v2788_v6 = vld [vmem:[#allocation11 + $0x3a8] sm:$0xff]  ;;  %v2786_v12 = vld [vmem:[#allocation11 + $0x398] sm:$0xff] }
 0x56c   :  { %6309 = vmatpush1.bf16.msra.mxu0 %v6308_v18  ;;  %v6326_v18 = vpack.c.bf16 %v2756_v9, %v2752_v8  ;;  %v6402_v8 = vpack.c.bf16 %v2782_v0, %v2778_v3  ;;  %v2777_v9 = vld [vmem:[#allocation11 + $0x350] sm:$0xff]  ;;  %v2790_v13 = vld [vmem:[#allocation11 + $0x3b8] sm:$0xff]  ;;  %v2988_v3 = vld [vmem:[#allocation11 + $0x440] sm:$0xff] }
 0x56d   :  { %6311 = vmatprep.subr.bf16.mxu0 %v6310_v21  ;;  %v2760_v21 = vld [vmem:[#allocation11 + $0x2c8] sm:$0xff]  ;;  %v2992_v0 = vld [vmem:[#allocation11 + $0x460] sm:$0xff] }
 0x56e   :  { %6373 = vmatpush1.bf16.msra.mxu1 %v6372_v37  ;;  %v2757_v37 = vld [vmem:[#allocation11 + $0x2b0] sm:$0xff] }
 0x56f   :  { %6375 = vmatprep.subr.bf16.mxu1 %v6374_v40  ;;  %v6328_v40 = vpack.c.bf16 %v2755_v20, %v2751_v1  ;;  %v6392_v24 = vpack.c.bf16 %v2757_v37, %v2753_v32  ;;  %v2796_v1 = vld [vmem:[#allocation11 + $0x3e8] sm:$0xff]  ;;  %v2794_v32 = vld [vmem:[#allocation11 + $0x3d8] sm:$0xff] }
 0x570   :  { %6313 = vmatpush1.bf16.msra.mxu0 %v6312_v43  ;;  %v6330_v43 = vpack.c.bf16 %v2764_v22, %v2760_v21  ;;  %v6406_v21 = vpack.c.bf16 %v2790_v13, %v2786_v12  ;;  %v2785_v22 = vld [vmem:[#allocation11 + $0x390] sm:$0xff]  ;;  %v2798_v37 = vld [vmem:[#allocation11 + $0x3f8] sm:$0xff]  ;;  %v3000_v13 = vld [vmem:[#allocation11 + $0x4a0] sm:$0xff] }
 0x571   :  { %6315 = vmatprep.subr.bf16.mxu0 %v6314_v25  ;;  %v2768_v25 = vld [vmem:[#allocation11 + $0x308] sm:$0xff] }
 0x572   :  { %6377 = vmatpush1.bf16.msra.mxu1 %v6376_v56  ;;  %v2765_v56 = vld [vmem:[#allocation11 + $0x2f0] sm:$0xff] }
 0x573   :  { %6379 = vmatprep.subr.bf16.mxu1 %v6378_v49  ;;  %v6332_v49 = vpack.c.bf16 %v2763_v45, %v2759_v44  ;;  %v6396_v58 = vpack.c.bf16 %v2765_v56, %v2761_v48  ;;  %v6410_v44 = vpack.c.bf16 %v2798_v37, %v2794_v32  ;;  %v2793_v45 = vld [vmem:[#allocation11 + $0x3d0] sm:$0xff]  ;;  %v2981_v48 = vld [vmem:[#allocation11 + $0x408] sm:$0xff]  ;;  %v3008_v32 = vld [vmem:[#allocation11 + $0x4e0] sm:$0xff] }
 0x574   :  { %6317 = vmatpush1.bf16.msra.mxu0 %v6316_v52  ;;  %v6334_v52 = vpack.c.bf16 %v2772_v47, %v2768_v25  ;;  %v2797_v25 = vld [vmem:[#allocation11 + $0x3f0] sm:$0xff]  ;;  %v6348_v47 = vpack.c.bf16 %v2795_v41, %v2791_v54  ;;  %v2985_v56 = vld [vmem:[#allocation11 + $0x428] sm:$0xff]  ;;  %v3011_v54 = vld [vmem:[#allocation11 + $0x4f8] sm:$0xff] }
 0x575   :  { %6319 = vmatprep.subr.bf16.mxu0 %v6318_v55  ;;  %v2776_v55 = vld [vmem:[#allocation11 + $0x348] sm:$0xff]  ;;  %v6414_v50 = vpack.c.bf16 %v2985_v56, %v2981_v48  ;;  %v3006_v41 = vld [vmem:[#allocation11 + $0x4d0] sm:$0xff]  ;;  %v3016_v48 = vld [vmem:[#allocation11 + $0x520] sm:$0xff] }
 0x576   :  { %6381 = vmatpush1.bf16.msra.mxu1 %v6380_v60  ;;  %v2773_v60 = vld [vmem:[#allocation11 + $0x330] sm:$0xff]  ;;  %v3015_v56 = vld [vmem:[#allocation11 + $0x518] sm:$0xff] }
 0x577   :  { %6383 = vmatprep.subr.bf16.mxu1 %v6382_v2  ;;  %v6336_v2 = vpack.c.bf16 %v2771_v53, %v2767_v30  ;;  %v6400_v7 = vpack.c.bf16 %v2773_v60, %v2769_v38  ;;  %v2987_v30 = vld [vmem:[#allocation11 + $0x438] sm:$0xff]  ;;  %v2989_v38 = vld [vmem:[#allocation11 + $0x448] sm:$0xff] }
 0x578   :  { %6321 = vmatpush1.bf16.msra.mxu0 %v6320_v4  ;;  %v6338_v4 = vpack.c.bf16 %v2780_v57, %v2776_v55  ;;  %v2982_v57 = vld [vmem:[#allocation11 + $0x410] sm:$0xff]  ;;  %v2993_v60 = vld [vmem:[#allocation11 + $0x468] sm:$0xff] }
 0x579   :  { %6323 = vmatprep.subr.bf16.mxu0 %v6322_v5  ;;  %v2784_v5 = vld [vmem:[#allocation11 + $0x388] sm:$0xff] }
 0x57a   :  { %6385 = vmatpush1.bf16.msra.mxu1 %v6384_v10  ;;  %v2781_v10 = vld [vmem:[#allocation11 + $0x370] sm:$0xff] }
 0x57b   :  { %6387 = vmatprep.subr.bf16.mxu1 %v6386_v11  ;;  %v6340_v11 = vpack.c.bf16 %v2779_v39, %v2775_v63  ;;  %v6404_v20 = vpack.c.bf16 %v2781_v10, %v2777_v9  ;;  %v6420_v63 = vpack.c.bf16 %v2992_v0, %v2988_v3  ;;  %v2995_v39 = vld [vmem:[#allocation11 + $0x478] sm:$0xff]  ;;  %v2997_v9 = vld [vmem:[#allocation11 + $0x488] sm:$0xff] }
 0x57c   :  { %6325 = vmatpush1.bf16.msra.mxu0 %v6324_v14  ;;  %v6342_v14 = vpack.c.bf16 %v2788_v6, %v2784_v5  ;;  %v2990_v5 = vld [vmem:[#allocation11 + $0x450] sm:$0xff]  ;;  %v3001_v10 = vld [vmem:[#allocation11 + $0x4a8] sm:$0xff]  ;;  %v3027_v0 = vld [vmem:[#allocation11 + $0x578] sm:$0xff] }
 0x57d   :  { %6327 = vmatprep.subr.bf16.mxu0 %v6326_v18  ;;  %v2792_v18 = vld [vmem:[#allocation11 + $0x3c8] sm:$0xff]  ;;  %v2994_v6 = vld [vmem:[#allocation11 + $0x470] sm:$0xff]  ;;  %v6422_v12 = vpack.c.bf16 %v3001_v10, %v2997_v9  ;;  %v3028_v9 = vld [vmem:[#allocation11 + $0x580] sm:$0xff] }
 0x57e   :  { %6389 = vmatpush1.bf16.msra.mxu1 %v6388_v26  ;;  %v2789_v26 = vld [vmem:[#allocation11 + $0x3b0] sm:$0xff]  ;;  %v3032_v10 = vld [vmem:[#allocation11 + $0x5a0] sm:$0xff] }
 0x57f   :  { %6391 = vmatprep.subr.bf16.mxu1 %v6390_v31  ;;  %v6344_v31 = vpack.c.bf16 %v2787_v17, %v2783_v16  ;;  %v3003_v16 = vld [vmem:[#allocation11 + $0x4b8] sm:$0xff] }
 0x580   :  { %6329 = vmatpush1.bf16.msra.mxu0 %v6328_v40  ;;  %v6346_v40 = vpack.c.bf16 %v2796_v1, %v2792_v18  ;;  %v2998_v1 = vld [vmem:[#allocation11 + $0x490] sm:$0xff] }
 0x581   :  { %6331 = vmatprep.subr.bf16.mxu0 %v6330_v43  ;;  %v6408_v43 = vpack.c.bf16 %v2789_v26, %v2785_v22  ;;  %v3009_v26 = vld [vmem:[#allocation11 + $0x4e8] sm:$0xff] }
 0x582   :  { %6393 = vmatpush1.bf16.msra.mxu1 %v6392_v24  ;;  %v6412_v24 = vpack.c.bf16 %v2797_v25, %v2793_v45  ;;  %v3010_v45 = vld [vmem:[#allocation11 + $0x4f0] sm:$0xff]  ;;  %v3013_v25 = vld [vmem:[#allocation11 + $0x508] sm:$0xff] }
 0x583   :  { %6395 = vmatprep.subr.bf16.mxu1 %v6394_v15  ;;  %v2664_v15 = vld [vmem:[#allocation6 + $0x20] sm:$0xff] }
 0x584   :  { %6333 = vmatpush1.bf16.msra.mxu0 %v6332_v49  ;;  %v2980_v49 = vld [vmem:[#allocation11 + $0x400] sm:$0xff] }
 0x585   :  { %6335 = vmatprep.subr.bf16.mxu0 %v6334_v52  ;;  %v2983_v52 = vld [vmem:[#allocation11 + $0x418] sm:$0xff]  ;;  %v6416_v53 = vpack.c.bf16 %v2984_v51, %v2980_v49  ;;  %v6492_v49 = vpack.c.bf16 %v3010_v45, %v3006_v41  ;;  %v3049_v45 = vld [vmem:[#allocation11 + $0x628] sm:$0xff] }
 0x586   :  { %6397 = vmatpush1.bf16.msra.mxu1 %v6396_v58  ;;  %v6478_v55 = vpack.c.bf16 %v2987_v30, %v2983_v52  ;;  %v2986_v58 = vld [vmem:[#allocation11 + $0x430] sm:$0xff] }
 0x587   :  { %6399 = vmatprep.subr.bf16.mxu1 %v6398_v62  ;;  %v6480_v62 = vpack.c.bf16 %v2986_v58, %v2982_v57  ;;  %v3014_v30 = vld [vmem:[#allocation11 + $0x510] sm:$0xff]  ;;  %v3021_v57 = vld [vmem:[#allocation11 + $0x548] sm:$0xff] }
 0x588   :  { %6337 = vmatpush1.bf16.msra.mxu0 %v6336_v2  ;;  %v6418_v2 = vpack.c.bf16 %v2993_v60, %v2989_v38  ;;  %v3025_v58 = vld [vmem:[#allocation11 + $0x568] sm:$0xff]  ;;  %v3020_v38 = vld [vmem:[#allocation11 + $0x540] sm:$0xff] }
 0x589   :  { %6339 = vmatprep.subr.bf16.mxu0 %v6338_v4  ;;  %v2991_v4 = vld [vmem:[#allocation11 + $0x458] sm:$0xff]  ;;  %v3024_v60 = vld [vmem:[#allocation11 + $0x560] sm:$0xff] }
 0x58a   :  { %6401 = vmatpush1.bf16.msra.mxu1 %v6400_v7  ;;  %v6482_v7 = vpack.c.bf16 %v2995_v39, %v2991_v4  ;;  %v6436_v3 = vpack.c.bf16 %v3024_v60, %v3020_v38  ;;  %v3022_v4 = vld [vmem:[#allocation11 + $0x550] sm:$0xff]  ;;  %v3059_v60 = vld [vmem:[#allocation11 + $0x678] sm:$0xff] }
 0x58b   :  { %6403 = vmatprep.subr.bf16.mxu1 %v6402_v8  ;;  %v6484_v8 = vpack.c.bf16 %v2994_v6, %v2990_v5  ;;  %v3029_v6 = vld [vmem:[#allocation11 + $0x588] sm:$0xff] }
 0x58c   :  { %6341 = vmatpush1.bf16.msra.mxu0 %v6340_v11  ;;  %v2996_v11 = vld [vmem:[#allocation11 + $0x480] sm:$0xff] }
 0x58d   :  { %6343 = vmatprep.subr.bf16.mxu0 %v6342_v14  ;;  %v2999_v14 = vld [vmem:[#allocation11 + $0x498] sm:$0xff]  ;;  %v6424_v17 = vpack.c.bf16 %v3000_v13, %v2996_v11 }
 0x58e   :  { %6405 = vmatpush1.bf16.msra.mxu1 %v6404_v20  ;;  %v6486_v18 = vpack.c.bf16 %v3003_v16, %v2999_v14  ;;  %v3002_v20 = vld [vmem:[#allocation11 + $0x4b0] sm:$0xff]  ;;  %v3031_v11 = vld [vmem:[#allocation11 + $0x598] sm:$0xff] }
 0x58f   :  { %6407 = vmatprep.subr.bf16.mxu1 %v6406_v21  ;;  %v3005_v21 = vld [vmem:[#allocation11 + $0x4c8] sm:$0xff]  ;;  %v6488_v22 = vpack.c.bf16 %v3002_v20, %v2998_v1  ;;  %v3035_v13 = vld [vmem:[#allocation11 + $0x5b8] sm:$0xff]  ;;  %v3030_v14 = vld [vmem:[#allocation11 + $0x590] sm:$0xff] }
 0x590   :  { %6345 = vmatpush1.bf16.msra.mxu0 %v6344_v31  ;;  %v3004_v31 = vld [vmem:[#allocation11 + $0x4c0] sm:$0xff]  ;;  %v6426_v37 = vpack.c.bf16 %v3009_v26, %v3005_v21  ;;  %v3034_v16 = vld [vmem:[#allocation11 + $0x5b0] sm:$0xff]  ;;  %v3037_v1 = vld [vmem:[#allocation11 + $0x5c8] sm:$0xff] }
 0x591   :  { %6347 = vmatprep.subr.bf16.mxu0 %v6346_v40  ;;  %v3007_v40 = vld [vmem:[#allocation11 + $0x4d8] sm:$0xff]  ;;  %v3041_v20 = vld [vmem:[#allocation11 + $0x5e8] sm:$0xff]  ;;  %v3040_v26 = vld [vmem:[#allocation11 + $0x5e0] sm:$0xff] }
 0x592   :  { %6409 = vmatpush1.bf16.msra.mxu1 %v6408_v43  ;;  %v6428_v43 = vpack.c.bf16 %v3008_v32, %v3004_v31  ;;  %v6442_v21 = vpack.c.bf16 %v3041_v20, %v3037_v1  ;;  %v3039_v31 = vld [vmem:[#allocation11 + $0x5d8] sm:$0xff]  ;;  %v3068_v1 = vld [vmem:[#allocation11 + $0x6c0] sm:$0xff] }
 0x593   :  { %6411 = vmatprep.subr.bf16.mxu1 %v6410_v44  ;;  %v6490_v44 = vpack.c.bf16 %v3011_v54, %v3007_v40  ;;  %v3038_v40 = vld [vmem:[#allocation11 + $0x5d0] sm:$0xff]  ;;  %v3072_v20 = vld [vmem:[#allocation11 + $0x6e0] sm:$0xff] }
 0x594   :  { %6349 = vmatpush1.bf16.msra.mxu0 %v6348_v47  ;;  %v3017_v47 = vld [vmem:[#allocation11 + $0x528] sm:$0xff]  ;;  %v3042_v54 = vld [vmem:[#allocation11 + $0x5f0] sm:$0xff] }
 0x595   :  { %6415 = vmatprep.subr.bf16.mxu0 %v6414_v50  ;;  %v3019_v50 = vld [vmem:[#allocation11 + $0x538] sm:$0xff] }
 0x596   :  { %6413 = vmatpush1.bf16.msra.mxu1 %v6412_v24  ;;  %v6430_v24 = vpack.c.bf16 %v3017_v47, %v3013_v25  ;;  %v6494_v51 = vpack.c.bf16 %v3019_v50, %v3015_v56  ;;  %v3044_v47 = vld [vmem:[#allocation11 + $0x600] sm:$0xff]  ;;  %v3051_v56 = vld [vmem:[#allocation11 + $0x638] sm:$0xff]  ;;  %v3050_v50 = vld [vmem:[#allocation11 + $0x630] sm:$0xff] }
 0x597   :  { %2868 = vmatmul.mubr.f32.vlgmr.msra.gmra.mrb[16].mxu0 %v2664_v15  ;;  %6479 = vmatprep.subr.bf16.mxu1 %v6478_v55 }
 0x598   :  { %6417 = vmatpush1.bf16.msra.mxu0 %v6416_v53  ;;  %v3018_v53 = vld [vmem:[#allocation11 + $0x530] sm:$0xff] }
 0x599   :  { %2939 = vmatmul.mubr.f32.vlgmr.msra.gmra.mrb[16].mxu1 %v2664_v15  ;;  %6419 = vmatprep.subr.bf16.mxu0 %v6418_v2  ;;  %v3012_v15 = vld [vmem:[#allocation11 + $0x500] sm:$0xff]  ;;  %v6496_v55 = vpack.c.bf16 %v3018_v53, %v3014_v30  ;;  %v3023_v2 = vld [vmem:[#allocation11 + $0x558] sm:$0xff]  ;;  %v3053_v30 = vld [vmem:[#allocation11 + $0x648] sm:$0xff] }
 0x59a   :  { %6481 = vmatpush1.bf16.msra.mxu1 %v6480_v62  ;;  %v6432_v52 = vpack.c.bf16 %v3016_v48, %v3012_v15  ;;  %v6434_v62 = vpack.c.bf16 %v3025_v58, %v3021_v57  ;;  %v6498_v39 = vpack.c.bf16 %v3027_v0, %v3023_v2  ;;  %v3047_v15 = vld [vmem:[#allocation11 + $0x618] sm:$0xff]  ;;  %v3057_v53 = vld [vmem:[#allocation11 + $0x668] sm:$0xff]  ;;  %v3052_v57 = vld [vmem:[#allocation11 + $0x640] sm:$0xff] }
 0x59b   :  { %6483 = vmatprep.subr.bf16.mxu1 %v6482_v7  ;;  %v3033_v7 = vld [vmem:[#allocation11 + $0x5a8] sm:$0xff]  ;;  %v3056_v58 = vld [vmem:[#allocation11 + $0x660] sm:$0xff]  ;;  %v3054_v2 = vld [vmem:[#allocation11 + $0x650] sm:$0xff] }
 0x59c   :  { %6421 = vmatpush1.bf16.msra.mxu0 %v6420_v63  ;;  %v3026_v63 = vld [vmem:[#allocation11 + $0x570] sm:$0xff]  ;;  %v6452_v38 = vpack.c.bf16 %v3056_v58, %v3052_v57  ;;  %v3091_v58 = vld [vmem:[#allocation11 + $0x778] sm:$0xff] }
 0x59d   :  { %6423 = vmatprep.subr.bf16.mxu0 %v6422_v12  ;;  %v6500_v5 = vpack.c.bf16 %v3026_v63, %v3022_v4  ;;  %v6440_v12 = vpack.c.bf16 %v3032_v10, %v3028_v9  ;;  %v3061_v63 = vld [vmem:[#allocation11 + $0x688] sm:$0xff]  ;;  %v3067_v10 = vld [vmem:[#allocation11 + $0x6b8] sm:$0xff] }
 0x59e   :  { %6485 = vmatpush1.bf16.msra.mxu1 %v6484_v8  ;;  %v6438_v8 = vpack.c.bf16 %v3033_v7, %v3029_v6  ;;  %v3060_v6 = vld [vmem:[#allocation11 + $0x680] sm:$0xff] }
 0x59f   :  { %6487 = vmatprep.subr.bf16.mxu1 %v6486_v18  ;;  %v6504_v18 = vpack.c.bf16 %v3034_v16, %v3030_v14  ;;  %v3064_v7 = vld [vmem:[#allocation11 + $0x6a0] sm:$0xff]  ;;  %v3069_v16 = vld [vmem:[#allocation11 + $0x6c8] sm:$0xff] }
 0x5a0   :  { %6425 = vmatpush1.bf16.msra.mxu0 %v6424_v17  ;;  %v6502_v17 = vpack.c.bf16 %v3035_v13, %v3031_v11  ;;  %v6456_v9 = vpack.c.bf16 %v3064_v7, %v3060_v6  ;;  %v3062_v11 = vld [vmem:[#allocation11 + $0x690] sm:$0xff]  ;;  %v3099_v6 = vld [vmem:[#allocation11 + $0x7b8] sm:$0xff] }
 0x5a1   :  { %6427 = vmatprep.subr.bf16.mxu0 %v6426_v37  ;;  %v3043_v37 = vld [vmem:[#allocation11 + $0x5f8] sm:$0xff] }
 0x5a2   :  { %6489 = vmatpush1.bf16.msra.mxu1 %v6488_v22  ;;  %v3036_v22 = vld [vmem:[#allocation11 + $0x5c0] sm:$0xff]  ;;  %v6506_v41 = vpack.c.bf16 %v3043_v37, %v3039_v31  ;;  %v3070_v31 = vld [vmem:[#allocation11 + $0x6d0] sm:$0xff] }
 0x5a3   :  { %6491 = vmatprep.subr.bf16.mxu1 %v6490_v44  ;;  %v6444_v32 = vpack.c.bf16 %v3040_v26, %v3036_v22  ;;  %v3045_v44 = vld [vmem:[#allocation11 + $0x608] sm:$0xff]  ;;  %v6460_v22 = vpack.c.bf16 %v3072_v20, %v3068_v1  ;;  %v3075_v26 = vld [vmem:[#allocation11 + $0x6f8] sm:$0xff]  ;;  %v3102_v20 = vld [vmem:[#allocation11 + $0x7d0] sm:$0xff] }
 0x5a4   :  { %6429 = vmatpush1.bf16.msra.mxu0 %v6428_v43  ;;  %v6508_v43 = vpack.c.bf16 %v3042_v54, %v3038_v40  ;;  %v6446_v25 = vpack.c.bf16 %v3049_v45, %v3045_v44  ;;  %v3077_v54 = vld [vmem:[#allocation11 + $0x708] sm:$0xff]  ;;  %v3076_v44 = vld [vmem:[#allocation11 + $0x700] sm:$0xff]  ;;  %v3107_v1 = vld [vmem:[#allocation11 + $0x7f8] sm:$0xff] }
 0x5a5   :  { %6431 = vmatprep.subr.bf16.mxu0 %v6430_v24  ;;  %v3048_v24 = vld [vmem:[#allocation11 + $0x620] sm:$0xff] }
 0x5a6   :  { %6493 = vmatpush1.bf16.msra.mxu1 %v6492_v49  ;;  %v6448_v48 = vpack.c.bf16 %v3048_v24, %v3044_v47  ;;  %v3046_v49 = vld [vmem:[#allocation11 + $0x610] sm:$0xff]  ;;  %v3080_v45 = vld [vmem:[#allocation11 + $0x720] sm:$0xff]  ;;  %v3083_v24 = vld [vmem:[#allocation11 + $0x738] sm:$0xff] }
 0x5a7   :  { %6495 = vmatprep.subr.bf16.mxu1 %v6494_v51  ;;  %v6510_v51 = vpack.c.bf16 %v3051_v56, %v3047_v15  ;;  %v6464_v47 = vpack.c.bf16 %v3080_v45, %v3076_v44  ;;  %v3078_v15 = vld [vmem:[#allocation11 + $0x710] sm:$0xff] }
 0x5a8   :  { %6433 = vmatpush1.bf16.msra.mxu0 %v6432_v52  ;;  %v6512_v52 = vpack.c.bf16 %v3050_v50, %v3046_v49  ;;  %v3085_v50 = vld [vmem:[#allocation11 + $0x748] sm:$0xff] }
 0x5a9   :  { %6435 = vmatprep.subr.bf16.mxu0 %v6434_v62  ;;  %v3055_v62 = vld [vmem:[#allocation11 + $0x658] sm:$0xff] }
 0x5aa   :  { %6497 = vmatpush1.bf16.msra.mxu1 %v6496_v55  ;;  %v6450_v55 = vpack.c.bf16 %v3057_v53, %v3053_v30  ;;  %v6514_v0 = vpack.c.bf16 %v3059_v60, %v3055_v62  ;;  %v3084_v30 = vld [vmem:[#allocation11 + $0x740] sm:$0xff]  ;;  %v3086_v62 = vld [vmem:[#allocation11 + $0x750] sm:$0xff] }
 0x5ab   :  { %6499 = vmatprep.subr.bf16.mxu1 %v6498_v39  ;;  %v3065_v39 = vld [vmem:[#allocation11 + $0x6a8] sm:$0xff]  ;;  %v3088_v53 = vld [vmem:[#allocation11 + $0x760] sm:$0xff] }
 0x5ac   :  { %6437 = vmatpush1.bf16.msra.mxu0 %v6436_v3  ;;  %v3058_v3 = vld [vmem:[#allocation11 + $0x670] sm:$0xff]  ;;  %v6468_v57 = vpack.c.bf16 %v3088_v53, %v3084_v30 }
 0x5ad   :  { %6439 = vmatprep.subr.bf16.mxu0 %v6438_v8  ;;  %v6516_v4 = vpack.c.bf16 %v3058_v3, %v3054_v2  ;;  %v3063_v8 = vld [vmem:[#allocation11 + $0x698] sm:$0xff]  ;;  %v3093_v3 = vld [vmem:[#allocation11 + $0x788] sm:$0xff] }
 0x5ae   :  { %6501 = vmatpush1.bf16.msra.mxu1 %v6500_v5  ;;  %v6454_v5 = vpack.c.bf16 %v3065_v39, %v3061_v63  ;;  %v6518_v13 = vpack.c.bf16 %v3067_v10, %v3063_v8  ;;  %v3096_v39 = vld [vmem:[#allocation11 + $0x7a0] sm:$0xff]  ;;  %v3098_v10 = vld [vmem:[#allocation11 + $0x7b0] sm:$0xff] }
 0x5af   :  { %6503 = vmatprep.subr.bf16.mxu1 %v6502_v17  ;;  %v3073_v17 = vld [vmem:[#allocation11 + $0x6e8] sm:$0xff] }
 0x5b0   :  { %6441 = vmatpush1.bf16.msra.mxu0 %v6440_v12  ;;  %v3066_v12 = vld [vmem:[#allocation11 + $0x6b0] sm:$0xff] }
 0x5b1   :  { %6443 = vmatprep.subr.bf16.mxu0 %v6442_v21  ;;  %v6520_v14 = vpack.c.bf16 %v3066_v12, %v3062_v11  ;;  %v3071_v21 = vld [vmem:[#allocation11 + $0x6d8] sm:$0xff]  ;;  %v3101_v11 = vld [vmem:[#allocation11 + $0x7c8] sm:$0xff] }
 0x5b2   :  { %6505 = vmatpush1.bf16.msra.mxu1 %v6504_v18  ;;  %v6458_v18 = vpack.c.bf16 %v3073_v17, %v3069_v16  ;;  %v6522_v37 = vpack.c.bf16 %v3075_v26, %v3071_v21  ;;  %v3104_v16 = vld [vmem:[#allocation11 + $0x7e0] sm:$0xff]  ;;  %v3106_v26 = vld [vmem:[#allocation11 + $0x7f0] sm:$0xff] }
 0x5b3   :  { %6507 = vmatprep.subr.bf16.mxu1 %v6506_v41  ;;  %v3081_v41 = vld [vmem:[#allocation11 + $0x728] sm:$0xff] }
 0x5b4   :  { %6445 = vmatpush1.bf16.msra.mxu0 %v6444_v32  ;;  %v3074_v32 = vld [vmem:[#allocation11 + $0x6f0] sm:$0xff] }
 0x5b5   :  { %6447 = vmatprep.subr.bf16.mxu0 %v6446_v25  ;;  %v6524_v40 = vpack.c.bf16 %v3074_v32, %v3070_v31  ;;  %v3079_v25 = vld [vmem:[#allocation11 + $0x718] sm:$0xff]  ;;  %v3302_v31 = vld [vmem:[#allocation11 + $0x8] sm:$0xff] }
 0x5b6   :  { %6509 = vmatpush1.bf16.msra.mxu1 %v6508_v43  ;;  %v6462_v43 = vpack.c.bf16 %v3081_v41, %v3077_v54  ;;  %v6526_v56 = vpack.c.bf16 %v3083_v24, %v3079_v25  ;;  %v3306_v32 = vld [vmem:[#allocation11 + $0x28] sm:$0xff]  ;;  %v3304_v54 = vld [vmem:[#allocation11 + $0x18] sm:$0xff] }
 0x5b7   :  { %6511 = vmatprep.subr.bf16.mxu1 %v6510_v51  ;;  %v3089_v51 = vld [vmem:[#allocation11 + $0x768] sm:$0xff]  ;;  %v3308_v41 = vld [vmem:[#allocation11 + $0x38] sm:$0xff] }
 0x5b8   :  { %6449 = vmatpush1.bf16.msra.mxu0 %v6448_v48  ;;  %v3082_v48 = vld [vmem:[#allocation11 + $0x730] sm:$0xff] }
 0x5b9   :  { %6451 = vmatprep.subr.bf16.mxu0 %v6450_v55  ;;  %v6528_v49 = vpack.c.bf16 %v3082_v48, %v3078_v15  ;;  %v3087_v55 = vld [vmem:[#allocation11 + $0x758] sm:$0xff] }
 0x5ba   :  { %6513 = vmatpush1.bf16.msra.mxu1 %v6512_v52  ;;  %v6466_v52 = vpack.c.bf16 %v3089_v51, %v3085_v50  ;;  %v6530_v60 = vpack.c.bf16 %v3091_v58, %v3087_v55 }
 0x5bb   :  { %6515 = vmatprep.subr.bf16.mxu1 %v6514_v0  ;;  %v3097_v0 = vld [vmem:[#allocation11 + $0x7a8] sm:$0xff] }
 0x5bc   :  { %6453 = vmatpush1.bf16.msra.mxu0 %v6452_v38  ;;  %v3090_v38 = vld [vmem:[#allocation11 + $0x770] sm:$0xff]  ;;  %v6470_v63 = vpack.c.bf16 %v3097_v0, %v3093_v3 }
 0x5bd   :  { %6455 = vmatprep.subr.bf16.mxu0 %v6454_v5  ;;  %v6532_v2 = vpack.c.bf16 %v3090_v38, %v3086_v62  ;;  %v3095_v5 = vld [vmem:[#allocation11 + $0x798] sm:$0xff] }
 0x5be   :  { %6517 = vmatpush1.bf16.msra.mxu1 %v6516_v4  ;;  %v3092_v4 = vld [vmem:[#allocation11 + $0x780] sm:$0xff]  ;;  %v6534_v8 = vpack.c.bf16 %v3099_v6, %v3095_v5 }
 0x5bf   :  { %6519 = vmatprep.subr.bf16.mxu1 %v6518_v13  ;;  %v6472_v7 = vpack.c.bf16 %v3096_v39, %v3092_v4  ;;  %v3105_v13 = vld [vmem:[#allocation11 + $0x7e8] sm:$0xff] }
 0x5c0   :  { %6457 = vmatpush1.bf16.msra.mxu0 %v6456_v9  ;;  %v3094_v9 = vld [vmem:[#allocation11 + $0x790] sm:$0xff]  ;;  %v6474_v17 = vpack.c.bf16 %v3105_v13, %v3101_v11 }
 0x5c1   :  { %6459 = vmatprep.subr.bf16.mxu0 %v6458_v18  ;;  %v6536_v12 = vpack.c.bf16 %v3098_v10, %v3094_v9  ;;  %v3103_v18 = vld [vmem:[#allocation11 + $0x7d8] sm:$0xff] }
 0x5c2   :  { %6521 = vmatpush1.bf16.msra.mxu1 %v6520_v14  ;;  %v3100_v14 = vld [vmem:[#allocation11 + $0x7c0] sm:$0xff] }
 0x5c3   :  { %6523 = vmatprep.subr.bf16.mxu1 %v6522_v37  ;;  %v6476_v21 = vpack.c.bf16 %v3104_v16, %v3100_v14  ;;  %v6542_v37 = vpack.c.bf16 %v3306_v32, %v3302_v31 }
 0x5c4   :  { %6461 = vmatpush1.bf16.msra.mxu0 %v6460_v22  ;;  %v6538_v22 = vpack.c.bf16 %v3107_v1, %v3103_v18 }
 0x5c5   :  { %6463 = vmatprep.subr.bf16.mxu0 %v6462_v43  ;;  %v6606_v43 = vpack.c.bf16 %v3308_v41, %v3304_v54  ;;  %v8033_v54 = vpop.permute.xlu0 %2660 }
 0x5c6   :  { %6525 = vmatpush1.bf16.msra.mxu1 %v6524_v40  ;;  %v6540_v40 = vpack.c.bf16 %v3106_v26, %v3102_v20  ;;  %vm2662_vm13 = vcmp.eq.s32.totalorder %v8033_v54, 1 }
 0x5c7   :  { %6527 = vmatprep.subr.bf16.mxu1 %v6526_v56 }
 0x5c8   :  { %6465 = vmatpush1.bf16.msra.mxu0 %v6464_v47 }
 0x5c9   :  { %6467 = vmatprep.subr.bf16.mxu0 %v6466_v52 }
 0x5ca   :  { %6529 = vmatpush1.bf16.msra.mxu1 %v6528_v49 }
 0x5cb   :  { %6531 = vmatprep.subr.bf16.mxu1 %v6530_v60 }
 0x5cc   :  { %6469 = vmatpush1.bf16.msra.mxu0 %v6468_v57 }
 0x5cd   :  { %6471 = vmatprep.subr.bf16.mxu0 %v6470_v63 }
 0x5ce   :  { %6533 = vmatpush1.bf16.msra.mxu1 %v6532_v2 }
 0x5cf   :  { %6535 = vmatprep.subr.bf16.mxu1 %v6534_v8 }
 0x5d0   :  { %6473 = vmatpush1.bf16.msra.mxu0 %v6472_v7 }
 0x5d1   :  { %6475 = vmatprep.subr.bf16.mxu0 %v6474_v17 }
 0x5d2   :  { %6537 = vmatpush1.bf16.msra.mxu1 %v6536_v12 }
 0x5d3   :  { %6539 = vmatprep.subr.bf16.mxu1 %v6538_v22 }
 0x5d4   :  { %6477 = vmatpush1.bf16.msra.mxu0 %v6476_v21 }
 0x5d5   :  { %6543 = vmatprep.subr.bf16.mxu0 %v6542_v37 }
 0x5d6   :  { %6541 = vmatpush1.bf16.msra.mxu1 %v6540_v40 }
 0x5d7   :  { %6607 = vmatprep.subr.bf16.mxu1 %v6606_v43 }
 0x62a   :  { %v2548_v44 = vpop.f32.mrb[14].mxu0  ;;  %v2619_v45 = vpop.f32.mrb[14].mxu1 }
 0x62b   :  { %v2549_v25 = vadd.f32 %v2548_v44, %v7857_v33  ;;  %v2550_v47 = vpop.f32.mrb[15].mxu0  ;;  %v2621_v24 = vpop.f32.mrb[15].mxu1  ;;  %v2620_v51 = vadd.f32 %v2619_v45, %v7872_v27  ;;  %v3301_v44 = vld [vmem:[#allocation11] sm:$0xff] }
 0x62c   :  { %v2551_v15 = vadd.f32 %v2550_v47, %v7861_v34  ;;  %v2622_v49 = vadd.f32 %v2621_v24, %v7867_v46  ;;  %v3305_v45 = vld [vmem:[#allocation11 + $0x20] sm:$0xff]  ;;  %v3310_v47 = vld [vmem:[#allocation11 + $0x48] sm:$0xff] }
 0x62d   :  { %v5215_v48 = vmul.f32 -1.442695, %v2549_v25  ;;  %v3314_v24 = vld [vmem:[#allocation11 + $0x68] sm:$0xff] }
 0x62e   :  { %v5216_v56 = vmul.f32 -1.442695, %v2551_v15  ;;  %v5217_v50 = vmul.f32 -1.442695, %v2622_v49  ;;  %v3303_v15 = vld [vmem:[#allocation11 + $0x10] sm:$0xff]  ;;  %v6544_v49 = vpack.c.bf16 %v3305_v45, %v3301_v44  ;;  %v3342_v44 = vld [vmem:[#allocation11 + $0x148] sm:$0xff] }
 0x62f   :  { %7437 = vpow2.f32 %v5215_v48  ;;  %v3307_v48 = vld [vmem:[#allocation11 + $0x30] sm:$0xff]  ;;  %v3346_v45 = vld [vmem:[#allocation11 + $0x168] sm:$0xff] }
 0x630   :  { %7439 = vpow2.f32 %v5216_v56 }
 0x631   :  { %7441 = vpow2.f32 %v5217_v50  ;;  %v3312_v50 = vld [vmem:[#allocation11 + $0x58] sm:$0xff] }
 0x632   :  { %7443 = vtanh.f32 %v2620_v51  ;;  %v3316_v51 = vld [vmem:[#allocation11 + $0x78] sm:$0xff] }
 0x639   :  { %v7438_v52 = vpop.eup %7437 }
 0x63a   :  { %v7440_v30 = vpop.eup %7439  ;;  %v2627_v53 = vadd.f32 1.0, %v7438_v52 }
 0x63b   :  { %v2633_v55 = vadd.f32 1.0, %v7440_v30  ;;  %v7442_v57 = vpop.eup %7441  ;;  %v6546_v30 = vpack.c.bf16 %v3314_v24, %v3310_v47  ;;  %v3335_v24 = vld [vmem:[#allocation11 + $0x110] sm:$0xff] }
 0x63c   :  { %7445 = vrcp.f32 %v2627_v53  ;;  %v7444_v58 = vpop.eup %7443  ;;  %v2640_v2 = vadd.f32 1.0, %v7442_v57  ;;  %v3309_v53 = vld [vmem:[#allocation11 + $0x40] sm:$0xff]  ;;  %v3318_v57 = vld [vmem:[#allocation11 + $0x88] sm:$0xff] }
 0x63d   :  { %7447 = vrcp.f32 %v2633_v55  ;;  %v3313_v55 = vld [vmem:[#allocation11 + $0x60] sm:$0xff] }
 0x63e   :  { %7449 = vrcp.f32 %v2640_v2  ;;  %v3315_v2 = vld [vmem:[#allocation11 + $0x70] sm:$0xff] }
 0x646   :  { %v7446_v62 = vpop.eup %7445 }
 0x647   :  { %v7448_v38 = vpop.eup %7447  ;;  %v2644_v60 = vmul.f32 %v7446_v62, %v7444_v58  ;;  %v3322_v58 = vld [vmem:[#allocation11 + $0xa8] sm:$0xff]  ;;  %v6608_v62 = vpack.c.bf16 %v3307_v48, %v3303_v15  ;;  %v3339_v15 = vld [vmem:[#allocation11 + $0x130] sm:$0xff] }
 0x648   :  { %v2643_v3 = vmul.f32 %v7448_v38, %v7972_v23  ;;  %v7450_v63 = vpop.eup %7449  ;;  %v6610_v38 = vpack.c.bf16 %v3316_v51, %v3312_v50  ;;  %v6562_v50 = vpack.c.bf16 %v3346_v45, %v3342_v44  ;;  %v3341_v51 = vld [vmem:[#allocation11 + $0x140] sm:$0xff]  ;;  %v3367_v45 = vld [vmem:[#allocation11 + $0x210] sm:$0xff] }
 0x64a   :  { %v2645_v0 = vadd.f32 %v2644_v60, %v2643_v3  ;;  %v3311_v60 = vld [vmem:[#allocation11 + $0x50] sm:$0xff]  ;;  %v6548_v3 = vpack.c.bf16 %v3313_v55, %v3309_v53  ;;  %v3354_v53 = vld [vmem:[#allocation11 + $0x1a8] sm:$0xff]  ;;  %v6624_v55 = vpack.c.bf16 %v3339_v15, %v3335_v24  ;;  %v3376_v24 = vld [vmem:[#allocation11 + $0x258] sm:$0xff] }
 0x64b   :  { %v3380_v15 = vld [vmem:[#allocation11 + $0x278] sm:$0xff] }
 0x64c   :  { %7451 = vtanh.f32 %v2645_v0  ;;  %v8016_v4 = vsel %vm2032_vm12, %v2645_v0, %v7972_v23  ;;  %v3320_v0 = vld [vmem:[#allocation11 + $0x98] sm:$0xff] }
 0x656   :  { %v7452_v39 = vpop.eup %7451 }
 0x657   :  { %v2647_v5 = vmul.f32 %v7452_v39, %v7450_v63  ;;  %v3324_v63 = vld [vmem:[#allocation11 + $0xb8] sm:$0xff]  ;;  %v6550_v39 = vpack.c.bf16 %v3322_v58, %v3318_v57  ;;  %v3343_v58 = vld [vmem:[#allocation11 + $0x150] sm:$0xff] }
 0x659   :  { %v8021_v6 = vsel %vm2032_vm12, %v2647_v5, %v7977_v35  ;;  %v2652_v7 = vsel %vm2032_vm12, %v2647_v5, 0.0  ;;  %v3317_v5 = vld [vmem:[#allocation11 + $0x80] sm:$0xff] }
 0x65a   :  { %2654 = vst.msk [vmem:[#allocation14 + $0x18] sm:$0xff] %vm763_vm5, %v2652_v7  ;;  %3176 = vmatprep.mubr.f32.mxu0 %v8021_v6  ;;  %3247 = vmatprep.mubr.f32.mxu1 %v8021_v6  ;;  %v3321_v7 = vld [vmem:[#allocation11 + $0xa0] sm:$0xff] }
 0x66a   :  { %v2869_v8 = vpop.f32.mrb[16].mxu0 }
 0x66b   :  { %v2870_v23 = vadd.f32 %v2869_v8, %v7815_v28  ;;  %v2871_v9 = vpop.f32.mrb[17].mxu0  ;;  %v3326_v8 = vld [vmem:[#allocation11 + $0xc8] sm:$0xff] }
 0x66c   :  { %v2872_v10 = vadd.f32 %v2871_v9, %v7819_v29  ;;  %v2940_v11 = vpop.f32.mrb[16].mxu1  ;;  %v6614_v9 = vpack.c.bf16 %v3324_v63, %v3320_v0  ;;  %v3349_v0 = vld [vmem:[#allocation11 + $0x180] sm:$0xff] }
 0x66d   :  { %v5218_v12 = vmul.f32 -1.442695, %v2870_v23  ;;  %v2942_v13 = vpop.f32.mrb[17].mxu1  ;;  %v2941_v16 = vadd.f32 %v2940_v11, %v7832_v42  ;;  %v3330_v23 = vld [vmem:[#allocation11 + $0xe8] sm:$0xff]  ;;  %v3323_v11 = vld [vmem:[#allocation11 + $0xb0] sm:$0xff]  ;;  %v3353_v63 = vld [vmem:[#allocation11 + $0x1a0] sm:$0xff] }
 0x66e   :  { %v5219_v35 = vmul.f32 -1.442695, %v2872_v10  ;;  %v2943_v59 = vadd.f32 %v2942_v13, %v7826_v36  ;;  %v3319_v10 = vld [vmem:[#allocation11 + $0x90] sm:$0xff]  ;;  %v3328_v13 = vld [vmem:[#allocation11 + $0xd8] sm:$0xff] }
 0x66f   :  { %7453 = vpow2.f32 %v5218_v12  ;;  %v6552_v12 = vpack.c.bf16 %v3321_v7, %v3317_v5  ;;  %v3362_v5 = vld [vmem:[#allocation11 + $0x1e8] sm:$0xff] }
 0x670   :  { %7455 = vpow2.f32 %v5219_v35  ;;  %v5220_v14 = vmul.f32 -1.442695, %v2943_v59  ;;  %v3332_v35 = vld [vmem:[#allocation11 + $0xf8] sm:$0xff]  ;;  %v6554_v59 = vpack.c.bf16 %v3330_v23, %v3326_v8  ;;  %v3351_v23 = vld [vmem:[#allocation11 + $0x190] sm:$0xff] }
 0x672   :  { %7457 = vpow2.f32 %v5220_v14  ;;  %v3325_v14 = vld [vmem:[#allocation11 + $0xc0] sm:$0xff] }
 0x673   :  { %7459 = vtanh.f32 %v2941_v16  ;;  %v3329_v16 = vld [vmem:[#allocation11 + $0xe0] sm:$0xff] }
 0x679   :  { %v7454_v17 = vpop.eup %7453 }
 0x67a   :  { %v7456_v18 = vpop.eup %7455  ;;  %v2948_v1 = vadd.f32 1.0, %v7454_v17  ;;  %v3334_v17 = vld [vmem:[#allocation11 + $0x108] sm:$0xff] }
 0x67b   :  { %v2954_v20 = vadd.f32 1.0, %v7456_v18  ;;  %v3338_v18 = vld [vmem:[#allocation11 + $0x128] sm:$0xff] }
 0x67c   :  { %7461 = vrcp.f32 %v2948_v1  ;;  %v7458_v21 = vpop.eup %7457  ;;  %v6616_v1 = vpack.c.bf16 %v3323_v11, %v3319_v10  ;;  %v3360_v10 = vld [vmem:[#allocation11 + $0x1d8] sm:$0xff] }
 0x67d   :  { %7463 = vrcp.f32 %v2954_v20  ;;  %v7460_v22 = vpop.eup %7459  ;;  %v2961_v31 = vadd.f32 1.0, %v7458_v21  ;;  %v6618_v20 = vpack.c.bf16 %v3332_v35, %v3328_v13  ;;  %v3327_v21 = vld [vmem:[#allocation11 + $0xd0] sm:$0xff]  ;;  %v3364_v11 = vld [vmem:[#allocation11 + $0x1f8] sm:$0xff]  ;;  %v3357_v13 = vld [vmem:[#allocation11 + $0x1c0] sm:$0xff] }
 0x67e   :  { %v3361_v35 = vld [vmem:[#allocation11 + $0x1e0] sm:$0xff] }
 0x67f   :  { %7465 = vrcp.f32 %v2961_v31  ;;  %v3336_v31 = vld [vmem:[#allocation11 + $0x118] sm:$0xff] }
 0x686   :  { %v7462_v26 = vpop.eup %7461 }
 0x687   :  { %v7464_v32 = vpop.eup %7463  ;;  %v2965_v37 = vmul.f32 %v7462_v26, %v7460_v22  ;;  %v3331_v22 = vld [vmem:[#allocation11 + $0xf0] sm:$0xff]  ;;  %v6556_v26 = vpack.c.bf16 %v3329_v16, %v3325_v14  ;;  %v3370_v14 = vld [vmem:[#allocation11 + $0x228] sm:$0xff] }
 0x688   :  { %v2964_v40 = vmul.f32 %v7464_v32, %v7995_v61  ;;  %v3340_v32 = vld [vmem:[#allocation11 + $0x138] sm:$0xff] }
 0x689   :  { %v7466_v25 = vpop.eup %7465  ;;  %v6622_v47 = vpack.c.bf16 %v3340_v32, %v3336_v31  ;;  %v3365_v31 = vld [vmem:[#allocation11 + $0x200] sm:$0xff] }
 0x68a   :  { %v2966_v41 = vadd.f32 %v2965_v37, %v2964_v40  ;;  %v6558_v37 = vpack.c.bf16 %v3338_v18, %v3334_v17  ;;  %v3333_v40 = vld [vmem:[#allocation11 + $0x100] sm:$0xff]  ;;  %v6634_v17 = vpack.c.bf16 %v3364_v11, %v3360_v10  ;;  %v3359_v18 = vld [vmem:[#allocation11 + $0x1d0] sm:$0xff] }
 0x68b   :  { %v3369_v32 = vld [vmem:[#allocation11 + $0x220] sm:$0xff] }
 0x68c   :  { %7467 = vtanh.f32 %v2966_v41  ;;  %v8039_v43 = vsel %vm2662_vm13, %v2966_v41, %v7995_v61  ;;  %v3337_v41 = vld [vmem:[#allocation11 + $0x120] sm:$0xff] }
 0x68d   :  { %v6560_v48 = vpack.c.bf16 %v3337_v41, %v3333_v40  ;;  %v3378_v40 = vld [vmem:[#allocation11 + $0x268] sm:$0xff]  ;;  %v3389_v10 = vld [vmem:[#allocation11 + $0x2c0] sm:$0xff] }
 0x68e   :  { %v3393_v11 = vld [vmem:[#allocation11 + $0x2e0] sm:$0xff] }
 0x696   :  { %v7468_v56 = vpop.eup %7467 }
 0x697   :  { %v2968_v52 = vmul.f32 %v7468_v56, %v7466_v25  ;;  %v6620_v25 = vpack.c.bf16 %v3331_v22, %v3327_v21  ;;  %v3344_v56 = vld [vmem:[#allocation11 + $0x158] sm:$0xff] }
 0x698   :  { %v3368_v21 = vld [vmem:[#allocation11 + $0x218] sm:$0xff] }
 0x699   :  { %5254 = vmatmul.mubr.msk.f32.vlgmr.msra.gmra.mrb[18].mxu0 %vm2662_vm13, %v2968_v52  ;;  %5255 = vmatmul.mubr.msk.f32.vlgmr.msra.gmra.mrb[18].mxu1 %vm2662_vm13, %v2968_v52  ;;  %v8048_v61 = vsel %vm2662_vm13, %v2968_v52, %v8004_v19  ;;  %v6612_v19 = vpack.c.bf16 %v3315_v2, %v3311_v60  ;;  %v3345_v52 = vld [vmem:[#allocation11 + $0x160] sm:$0xff]  ;;  %v3352_v60 = vld [vmem:[#allocation11 + $0x198] sm:$0xff] }
 0x69a   :  { %6545 = vmatpush1.bf16.msra.mxu0 %v6544_v49  ;;  %3497 = vmatprep.mubr.f32.mxu0 %v8048_v61  ;;  %v3348_v49 = vld [vmem:[#allocation11 + $0x178] sm:$0xff] }
 0x69b   :  { %3568 = vmatprep.mubr.f32.mxu1 %v8048_v61  ;;  %6547 = vmatprep.subr.bf16.mxu0 %v6546_v30  ;;  %v3350_v30 = vld [vmem:[#allocation11 + $0x188] sm:$0xff]  ;;  %v6626_v57 = vpack.c.bf16 %v3348_v49, %v3344_v56  ;;  %v3356_v2 = vld [vmem:[#allocation11 + $0x1b8] sm:$0xff]  ;;  %v3373_v56 = vld [vmem:[#allocation11 + $0x240] sm:$0xff] }
 0x69c   :  { %6609 = vmatpush1.bf16.msra.mxu1 %v6608_v62  ;;  %v3347_v62 = vld [vmem:[#allocation11 + $0x170] sm:$0xff]  ;;  %v6630_v8 = vpack.c.bf16 %v3356_v2, %v3352_v60  ;;  %v3372_v22 = vld [vmem:[#allocation11 + $0x238] sm:$0xff]  ;;  %v3377_v49 = vld [vmem:[#allocation11 + $0x260] sm:$0xff] }
 0x69d   :  { %6611 = vmatprep.subr.bf16.mxu1 %v6610_v38  ;;  %v6564_v38 = vpack.c.bf16 %v3345_v52, %v3341_v51  ;;  %v6628_v7 = vpack.c.bf16 %v3347_v62, %v3343_v58  ;;  %v6638_v44 = vpack.c.bf16 %v3372_v22, %v3368_v21  ;;  %v3386_v51 = vld [vmem:[#allocation11 + $0x2a8] sm:$0xff]  ;;  %v3384_v58 = vld [vmem:[#allocation11 + $0x298] sm:$0xff]  ;;  %v3381_v60 = vld [vmem:[#allocation11 + $0x280] sm:$0xff] }
 0x69e   :  { %6549 = vmatpush1.bf16.msra.mxu0 %v6548_v3  ;;  %v6566_v3 = vpack.c.bf16 %v3354_v53, %v3350_v30  ;;  %v6642_v30 = vpack.c.bf16 %v3380_v15, %v3376_v24  ;;  %v3375_v53 = vld [vmem:[#allocation11 + $0x250] sm:$0xff]  ;;  %v3388_v62 = vld [vmem:[#allocation11 + $0x2b8] sm:$0xff]  ;;  %v3385_v2 = vld [vmem:[#allocation11 + $0x2a0] sm:$0xff] }
 0x69f   :  { %6551 = vmatprep.subr.bf16.mxu0 %v6550_v39  ;;  %v3358_v39 = vld [vmem:[#allocation11 + $0x1c8] sm:$0xff]  ;;  %v3397_v21 = vld [vmem:[#allocation11 + $0x300] sm:$0xff] }
 0x6a0   :  { %6613 = vmatpush1.bf16.msra.mxu1 %v6612_v19  ;;  %v3355_v19 = vld [vmem:[#allocation11 + $0x1b0] sm:$0xff]  ;;  %v3401_v22 = vld [vmem:[#allocation11 + $0x320] sm:$0xff] }
 0x6a1   :  { %6615 = vmatprep.subr.bf16.mxu1 %v6614_v9  ;;  %v6568_v9 = vpack.c.bf16 %v3353_v63, %v3349_v0  ;;  %v6632_v16 = vpack.c.bf16 %v3355_v19, %v3351_v23  ;;  %v3394_v0 = vld [vmem:[#allocation11 + $0x2e8] sm:$0xff]  ;;  %v3392_v23 = vld [vmem:[#allocation11 + $0x2d8] sm:$0xff]  ;;  %v3405_v24 = vld [vmem:[#allocation11 + $0x340] sm:$0xff] }
 0x6a2   :  { %6553 = vmatpush1.bf16.msra.mxu0 %v6552_v12  ;;  %v6570_v12 = vpack.c.bf16 %v3362_v5, %v3358_v39  ;;  %v6646_v39 = vpack.c.bf16 %v3388_v62, %v3384_v58  ;;  %v3383_v5 = vld [vmem:[#allocation11 + $0x290] sm:$0xff]  ;;  %v3396_v19 = vld [vmem:[#allocation11 + $0x2f8] sm:$0xff]  ;;  %v3409_v15 = vld [vmem:[#allocation11 + $0x360] sm:$0xff] }
 0x6a3   :  { %6555 = vmatprep.subr.bf16.mxu0 %v6554_v59  ;;  %v3366_v59 = vld [vmem:[#allocation11 + $0x208] sm:$0xff]  ;;  %v3413_v58 = vld [vmem:[#allocation11 + $0x380] sm:$0xff] }
 0x6a4   :  { %6617 = vmatpush1.bf16.msra.mxu1 %v6616_v1  ;;  %v3363_v1 = vld [vmem:[#allocation11 + $0x1f0] sm:$0xff]  ;;  %v3417_v62 = vld [vmem:[#allocation11 + $0x3a0] sm:$0xff] }
 0x6a5   :  { %6619 = vmatprep.subr.bf16.mxu1 %v6618_v20  ;;  %v6572_v20 = vpack.c.bf16 %v3361_v35, %v3357_v13  ;;  %v6636_v41 = vpack.c.bf16 %v3363_v1, %v3359_v18  ;;  %v3402_v13 = vld [vmem:[#allocation11 + $0x328] sm:$0xff]  ;;  %v3400_v18 = vld [vmem:[#allocation11 + $0x318] sm:$0xff] }
 0x6a6   :  { %6557 = vmatpush1.bf16.msra.mxu0 %v6556_v26  ;;  %v6574_v26 = vpack.c.bf16 %v3370_v14, %v3366_v59  ;;  %v6650_v59 = vpack.c.bf16 %v3396_v19, %v3392_v23  ;;  %v3391_v14 = vld [vmem:[#allocation11 + $0x2d0] sm:$0xff]  ;;  %v3404_v1 = vld [vmem:[#allocation11 + $0x338] sm:$0xff]  ;;  %v3421_v23 = vld [vmem:[#allocation11 + $0x3c0] sm:$0xff] }
 0x6a7   :  { %6559 = vmatprep.subr.bf16.mxu0 %v6558_v37  ;;  %v3374_v37 = vld [vmem:[#allocation11 + $0x248] sm:$0xff]  ;;  %v3425_v19 = vld [vmem:[#allocation11 + $0x3e0] sm:$0xff] }
 0x6a8   :  { %6621 = vmatpush1.bf16.msra.mxu1 %v6620_v25  ;;  %v3371_v25 = vld [vmem:[#allocation11 + $0x230] sm:$0xff] }
 0x6a9   :  { %6623 = vmatprep.subr.bf16.mxu1 %v6622_v47  ;;  %v6576_v47 = vpack.c.bf16 %v3369_v32, %v3365_v31  ;;  %v6640_v52 = vpack.c.bf16 %v3371_v25, %v3367_v45  ;;  %v3410_v31 = vld [vmem:[#allocation11 + $0x368] sm:$0xff]  ;;  %v3408_v45 = vld [vmem:[#allocation11 + $0x358] sm:$0xff] }
 0x6aa   :  { %6561 = vmatpush1.bf16.msra.mxu0 %v6560_v48  ;;  %v6578_v48 = vpack.c.bf16 %v3378_v40, %v3374_v37  ;;  %v6654_v37 = vpack.c.bf16 %v3404_v1, %v3400_v18  ;;  %v3399_v40 = vld [vmem:[#allocation11 + $0x310] sm:$0xff]  ;;  %v3412_v25 = vld [vmem:[#allocation11 + $0x378] sm:$0xff]  ;;  %v3614_v1 = vld [vmem:[#allocation11 + $0x420] sm:$0xff] }
 0x6ab   :  { %6563 = vmatprep.subr.bf16.mxu0 %v6562_v50  ;;  %v3382_v50 = vld [vmem:[#allocation11 + $0x288] sm:$0xff] }
 0x6ac   :  { %6625 = vmatpush1.bf16.msra.mxu1 %v6624_v55  ;;  %v3379_v55 = vld [vmem:[#allocation11 + $0x270] sm:$0xff] }
 0x6ad   :  { %6627 = vmatprep.subr.bf16.mxu1 %v6626_v57  ;;  %v6580_v57 = vpack.c.bf16 %v3377_v49, %v3373_v56  ;;  %v6644_v63 = vpack.c.bf16 %v3379_v55, %v3375_v53  ;;  %v3418_v56 = vld [vmem:[#allocation11 + $0x3a8] sm:$0xff]  ;;  %v3416_v53 = vld [vmem:[#allocation11 + $0x398] sm:$0xff] }
 0x6ae   :  { %6565 = vmatpush1.bf16.msra.mxu0 %v6564_v38  ;;  %v6582_v38 = vpack.c.bf16 %v3386_v51, %v3382_v50  ;;  %v6658_v50 = vpack.c.bf16 %v3412_v25, %v3408_v45  ;;  %v3407_v51 = vld [vmem:[#allocation11 + $0x350] sm:$0xff]  ;;  %v3420_v55 = vld [vmem:[#allocation11 + $0x3b8] sm:$0xff]  ;;  %v3618_v45 = vld [vmem:[#allocation11 + $0x440] sm:$0xff] }
 0x6af   :  { %6567 = vmatprep.subr.bf16.mxu0 %v6566_v3  ;;  %v3390_v3 = vld [vmem:[#allocation11 + $0x2c8] sm:$0xff]  ;;  %v3622_v25 = vld [vmem:[#allocation11 + $0x460] sm:$0xff] }
 0x6b0   :  { %6629 = vmatpush1.bf16.msra.mxu1 %v6628_v7  ;;  %v3387_v7 = vld [vmem:[#allocation11 + $0x2b0] sm:$0xff] }
 0x6b1   :  { %6631 = vmatprep.subr.bf16.mxu1 %v6630_v8  ;;  %v6584_v8 = vpack.c.bf16 %v3385_v2, %v3381_v60  ;;  %v6648_v35 = vpack.c.bf16 %v3387_v7, %v3383_v5  ;;  %v3426_v60 = vld [vmem:[#allocation11 + $0x3e8] sm:$0xff]  ;;  %v3424_v5 = vld [vmem:[#allocation11 + $0x3d8] sm:$0xff] }
 0x6b2   :  { %6569 = vmatpush1.bf16.msra.mxu0 %v6568_v9  ;;  %v6586_v9 = vpack.c.bf16 %v3394_v0, %v3390_v3  ;;  %v6662_v3 = vpack.c.bf16 %v3420_v55, %v3416_v53  ;;  %v3415_v0 = vld [vmem:[#allocation11 + $0x390] sm:$0xff]  ;;  %v3428_v7 = vld [vmem:[#allocation11 + $0x3f8] sm:$0xff]  ;;  %v3630_v55 = vld [vmem:[#allocation11 + $0x4a0] sm:$0xff] }
 0x6b3   :  { %6571 = vmatprep.subr.bf16.mxu0 %v6570_v12  ;;  %v3398_v12 = vld [vmem:[#allocation11 + $0x308] sm:$0xff] }
 0x6b4   :  { %6633 = vmatpush1.bf16.msra.mxu1 %v6632_v16  ;;  %v3395_v16 = vld [vmem:[#allocation11 + $0x2f0] sm:$0xff] }
 0x6b5   :  { %6635 = vmatprep.subr.bf16.mxu1 %v6634_v17  ;;  %v6588_v17 = vpack.c.bf16 %v3393_v11, %v3389_v10  ;;  %v6652_v32 = vpack.c.bf16 %v3395_v16, %v3391_v14  ;;  %v6666_v10 = vpack.c.bf16 %v3428_v7, %v3424_v5  ;;  %v3423_v11 = vld [vmem:[#allocation11 + $0x3d0] sm:$0xff]  ;;  %v3611_v14 = vld [vmem:[#allocation11 + $0x408] sm:$0xff]  ;;  %v3638_v5 = vld [vmem:[#allocation11 + $0x4e0] sm:$0xff] }
 0x6b6   :  { %6573 = vmatpush1.bf16.msra.mxu0 %v6572_v20  ;;  %v6590_v20 = vpack.c.bf16 %v3402_v13, %v3398_v12  ;;  %v3427_v12 = vld [vmem:[#allocation11 + $0x3f0] sm:$0xff]  ;;  %v6604_v13 = vpack.c.bf16 %v3425_v19, %v3421_v23  ;;  %v3615_v16 = vld [vmem:[#allocation11 + $0x428] sm:$0xff]  ;;  %v3641_v23 = vld [vmem:[#allocation11 + $0x4f8] sm:$0xff] }
 0x6b7   :  { %6575 = vmatprep.subr.bf16.mxu0 %v6574_v26  ;;  %v3406_v26 = vld [vmem:[#allocation11 + $0x348] sm:$0xff]  ;;  %v6670_v18 = vpack.c.bf16 %v3615_v16, %v3611_v14  ;;  %v3636_v19 = vld [vmem:[#allocation11 + $0x4d0] sm:$0xff]  ;;  %v3646_v14 = vld [vmem:[#allocation11 + $0x520] sm:$0xff] }
 0x6b8   :  { %6637 = vmatpush1.bf16.msra.mxu1 %v6636_v41  ;;  %v3403_v41 = vld [vmem:[#allocation11 + $0x330] sm:$0xff]  ;;  %v3645_v16 = vld [vmem:[#allocation11 + $0x518] sm:$0xff] }
 0x6b9   :  { %6639 = vmatprep.subr.bf16.mxu1 %v6638_v44  ;;  %v6592_v44 = vpack.c.bf16 %v3401_v22, %v3397_v21  ;;  %v6656_v49 = vpack.c.bf16 %v3403_v41, %v3399_v40  ;;  %v3617_v21 = vld [vmem:[#allocation11 + $0x438] sm:$0xff]  ;;  %v3619_v40 = vld [vmem:[#allocation11 + $0x448] sm:$0xff] }
 0x6ba   :  { %6577 = vmatpush1.bf16.msra.mxu0 %v6576_v47  ;;  %v6594_v47 = vpack.c.bf16 %v3410_v31, %v3406_v26  ;;  %v3612_v31 = vld [vmem:[#allocation11 + $0x410] sm:$0xff]  ;;  %v3623_v41 = vld [vmem:[#allocation11 + $0x468] sm:$0xff] }
 0x6bb   :  { %6579 = vmatprep.subr.bf16.mxu0 %v6578_v48  ;;  %v3414_v48 = vld [vmem:[#allocation11 + $0x388] sm:$0xff] }
 0x6bc   :  { %6641 = vmatpush1.bf16.msra.mxu1 %v6640_v52  ;;  %v3411_v52 = vld [vmem:[#allocation11 + $0x370] sm:$0xff] }
 0x6bd   :  { %6643 = vmatprep.subr.bf16.mxu1 %v6642_v30  ;;  %v6596_v30 = vpack.c.bf16 %v3409_v15, %v3405_v24  ;;  %v6660_v2 = vpack.c.bf16 %v3411_v52, %v3407_v51  ;;  %v6676_v24 = vpack.c.bf16 %v3622_v25, %v3618_v45  ;;  %v3625_v15 = vld [vmem:[#allocation11 + $0x478] sm:$0xff]  ;;  %v3627_v51 = vld [vmem:[#allocation11 + $0x488] sm:$0xff] }
 0x6be   :  { %6581 = vmatpush1.bf16.msra.mxu0 %v6580_v57  ;;  %v6598_v57 = vpack.c.bf16 %v3418_v56, %v3414_v48  ;;  %v3620_v48 = vld [vmem:[#allocation11 + $0x450] sm:$0xff]  ;;  %v3631_v52 = vld [vmem:[#allocation11 + $0x4a8] sm:$0xff]  ;;  %v3657_v25 = vld [vmem:[#allocation11 + $0x578] sm:$0xff] }
 0x6bf   :  { %6583 = vmatprep.subr.bf16.mxu0 %v6582_v38  ;;  %v3422_v38 = vld [vmem:[#allocation11 + $0x3c8] sm:$0xff]  ;;  %v3624_v56 = vld [vmem:[#allocation11 + $0x470] sm:$0xff]  ;;  %v6678_v53 = vpack.c.bf16 %v3631_v52, %v3627_v51  ;;  %v3658_v51 = vld [vmem:[#allocation11 + $0x580] sm:$0xff] }
 0x6c0   :  { %6645 = vmatpush1.bf16.msra.mxu1 %v6644_v63  ;;  %v3419_v63 = vld [vmem:[#allocation11 + $0x3b0] sm:$0xff]  ;;  %v3662_v52 = vld [vmem:[#allocation11 + $0x5a0] sm:$0xff] }
 0x6c1   :  { %6647 = vmatprep.subr.bf16.mxu1 %v6646_v39  ;;  %v6600_v39 = vpack.c.bf16 %v3417_v62, %v3413_v58  ;;  %v3633_v58 = vld [vmem:[#allocation11 + $0x4b8] sm:$0xff] }
 0x6c2   :  { %6585 = vmatpush1.bf16.msra.mxu0 %v6584_v8  ;;  %v6602_v8 = vpack.c.bf16 %v3426_v60, %v3422_v38  ;;  %v3628_v60 = vld [vmem:[#allocation11 + $0x490] sm:$0xff] }
 0x6c3   :  { %6587 = vmatprep.subr.bf16.mxu0 %v6586_v9  ;;  %v6664_v9 = vpack.c.bf16 %v3419_v63, %v3415_v0  ;;  %v3639_v63 = vld [vmem:[#allocation11 + $0x4e8] sm:$0xff] }
 0x6c4   :  { %6649 = vmatpush1.bf16.msra.mxu1 %v6648_v35  ;;  %v6668_v35 = vpack.c.bf16 %v3427_v12, %v3423_v11  ;;  %v3640_v11 = vld [vmem:[#allocation11 + $0x4f0] sm:$0xff]  ;;  %v3643_v12 = vld [vmem:[#allocation11 + $0x508] sm:$0xff] }
 0x6c5   :  { %6651 = vmatprep.subr.bf16.mxu1 %v6650_v59  ;;  %v3294_v59 = vld [vmem:[#allocation6 + $0x28] sm:$0xff] }
 0x6c6   :  { %6589 = vmatpush1.bf16.msra.mxu0 %v6588_v17  ;;  %v3610_v17 = vld [vmem:[#allocation11 + $0x400] sm:$0xff] }
 0x6c7   :  { %6591 = vmatprep.subr.bf16.mxu0 %v6590_v20  ;;  %v3613_v20 = vld [vmem:[#allocation11 + $0x418] sm:$0xff]  ;;  %v6672_v22 = vpack.c.bf16 %v3614_v1, %v3610_v17  ;;  %v6748_v17 = vpack.c.bf16 %v3640_v11, %v3636_v19  ;;  %v3679_v11 = vld [vmem:[#allocation11 + $0x628] sm:$0xff] }
 0x6c8   :  { %6653 = vmatpush1.bf16.msra.mxu1 %v6652_v32  ;;  %v6734_v26 = vpack.c.bf16 %v3617_v21, %v3613_v20  ;;  %v3616_v32 = vld [vmem:[#allocation11 + $0x430] sm:$0xff] }
 0x6c9   :  { %6655 = vmatprep.subr.bf16.mxu1 %v6654_v37  ;;  %v6736_v37 = vpack.c.bf16 %v3616_v32, %v3612_v31  ;;  %v3644_v21 = vld [vmem:[#allocation11 + $0x510] sm:$0xff]  ;;  %v3651_v31 = vld [vmem:[#allocation11 + $0x548] sm:$0xff] }
 0x6ca   :  { %6593 = vmatpush1.bf16.msra.mxu0 %v6592_v44  ;;  %v6674_v44 = vpack.c.bf16 %v3623_v41, %v3619_v40  ;;  %v3655_v32 = vld [vmem:[#allocation11 + $0x568] sm:$0xff]  ;;  %v3650_v40 = vld [vmem:[#allocation11 + $0x540] sm:$0xff] }
 0x6cb   :  { %6595 = vmatprep.subr.bf16.mxu0 %v6594_v47  ;;  %v3621_v47 = vld [vmem:[#allocation11 + $0x458] sm:$0xff]  ;;  %v3654_v41 = vld [vmem:[#allocation11 + $0x560] sm:$0xff] }
 0x6cc   :  { %6657 = vmatpush1.bf16.msra.mxu1 %v6656_v49  ;;  %v6738_v49 = vpack.c.bf16 %v3625_v15, %v3621_v47  ;;  %v6692_v45 = vpack.c.bf16 %v3654_v41, %v3650_v40  ;;  %v3652_v47 = vld [vmem:[#allocation11 + $0x550] sm:$0xff]  ;;  %v3689_v41 = vld [vmem:[#allocation11 + $0x678] sm:$0xff] }
 0x6cd   :  { %6659 = vmatprep.subr.bf16.mxu1 %v6658_v50  ;;  %v6740_v50 = vpack.c.bf16 %v3624_v56, %v3620_v48  ;;  %v3659_v56 = vld [vmem:[#allocation11 + $0x588] sm:$0xff] }
 0x6ce   :  { %6597 = vmatpush1.bf16.msra.mxu0 %v6596_v30  ;;  %v3626_v30 = vld [vmem:[#allocation11 + $0x480] sm:$0xff] }
 0x6cf   :  { %6599 = vmatprep.subr.bf16.mxu0 %v6598_v57  ;;  %v3629_v57 = vld [vmem:[#allocation11 + $0x498] sm:$0xff]  ;;  %v6680_v62 = vpack.c.bf16 %v3630_v55, %v3626_v30 }
 0x6d0   :  { %6661 = vmatpush1.bf16.msra.mxu1 %v6660_v2  ;;  %v6742_v38 = vpack.c.bf16 %v3633_v58, %v3629_v57  ;;  %v3632_v2 = vld [vmem:[#allocation11 + $0x4b0] sm:$0xff]  ;;  %v3661_v30 = vld [vmem:[#allocation11 + $0x598] sm:$0xff] }
 0x6d1   :  { %6663 = vmatprep.subr.bf16.mxu1 %v6662_v3  ;;  %v3635_v3 = vld [vmem:[#allocation11 + $0x4c8] sm:$0xff]  ;;  %v6744_v0 = vpack.c.bf16 %v3632_v2, %v3628_v60  ;;  %v3665_v55 = vld [vmem:[#allocation11 + $0x5b8] sm:$0xff]  ;;  %v3660_v57 = vld [vmem:[#allocation11 + $0x590] sm:$0xff] }
 0x6d2   :  { %6601 = vmatpush1.bf16.msra.mxu0 %v6600_v39  ;;  %v3634_v39 = vld [vmem:[#allocation11 + $0x4c0] sm:$0xff]  ;;  %v6682_v7 = vpack.c.bf16 %v3639_v63, %v3635_v3  ;;  %v3664_v58 = vld [vmem:[#allocation11 + $0x5b0] sm:$0xff]  ;;  %v3667_v60 = vld [vmem:[#allocation11 + $0x5c8] sm:$0xff] }
 0x6d3   :  { %6603 = vmatprep.subr.bf16.mxu0 %v6602_v8  ;;  %v3637_v8 = vld [vmem:[#allocation11 + $0x4d8] sm:$0xff]  ;;  %v3671_v2 = vld [vmem:[#allocation11 + $0x5e8] sm:$0xff]  ;;  %v3670_v63 = vld [vmem:[#allocation11 + $0x5e0] sm:$0xff] }
 0x6d4   :  { %6665 = vmatpush1.bf16.msra.mxu1 %v6664_v9  ;;  %v6684_v9 = vpack.c.bf16 %v3638_v5, %v3634_v39  ;;  %v6698_v3 = vpack.c.bf16 %v3671_v2, %v3667_v60  ;;  %v3669_v39 = vld [vmem:[#allocation11 + $0x5d8] sm:$0xff]  ;;  %v3698_v60 = vld [vmem:[#allocation11 + $0x6c0] sm:$0xff] }
 0x6d5   :  { %6667 = vmatprep.subr.bf16.mxu1 %v6666_v10  ;;  %v6746_v10 = vpack.c.bf16 %v3641_v23, %v3637_v8  ;;  %v3668_v8 = vld [vmem:[#allocation11 + $0x5d0] sm:$0xff]  ;;  %v3702_v2 = vld [vmem:[#allocation11 + $0x6e0] sm:$0xff] }
 0x6d6   :  { %6605 = vmatpush1.bf16.msra.mxu0 %v6604_v13  ;;  %v3647_v13 = vld [vmem:[#allocation11 + $0x528] sm:$0xff]  ;;  %v3672_v23 = vld [vmem:[#allocation11 + $0x5f0] sm:$0xff] }
 0x6d7   :  { %6671 = vmatprep.subr.bf16.mxu0 %v6670_v18  ;;  %v3649_v18 = vld [vmem:[#allocation11 + $0x538] sm:$0xff] }
 0x6d8   :  { %6669 = vmatpush1.bf16.msra.mxu1 %v6668_v35  ;;  %v6686_v35 = vpack.c.bf16 %v3647_v13, %v3643_v12  ;;  %v6750_v1 = vpack.c.bf16 %v3649_v18, %v3645_v16  ;;  %v3674_v13 = vld [vmem:[#allocation11 + $0x600] sm:$0xff]  ;;  %v3681_v16 = vld [vmem:[#allocation11 + $0x638] sm:$0xff]  ;;  %v3680_v18 = vld [vmem:[#allocation11 + $0x630] sm:$0xff] }
 0x6d9   :  { %3498 = vmatmul.mubr.f32.vlgmr.msra.gmra.mrb[20].mxu0 %v3294_v59  ;;  %6735 = vmatprep.subr.bf16.mxu1 %v6734_v26 }
 0x6da   :  { %6673 = vmatpush1.bf16.msra.mxu0 %v6672_v22  ;;  %v3648_v22 = vld [vmem:[#allocation11 + $0x530] sm:$0xff] }
 0x6db   :  { %3569 = vmatmul.mubr.f32.vlgmr.msra.gmra.mrb[20].mxu1 %v3294_v59  ;;  %6675 = vmatprep.subr.bf16.mxu0 %v6674_v44  ;;  %v3642_v59 = vld [vmem:[#allocation11 + $0x500] sm:$0xff]  ;;  %v6752_v26 = vpack.c.bf16 %v3648_v22, %v3644_v21  ;;  %v3653_v44 = vld [vmem:[#allocation11 + $0x558] sm:$0xff]  ;;  %v3683_v21 = vld [vmem:[#allocation11 + $0x648] sm:$0xff] }
 0x6dc   :  { %6737 = vmatpush1.bf16.msra.mxu1 %v6736_v37  ;;  %v6688_v20 = vpack.c.bf16 %v3646_v14, %v3642_v59  ;;  %v6690_v37 = vpack.c.bf16 %v3655_v32, %v3651_v31  ;;  %v6754_v15 = vpack.c.bf16 %v3657_v25, %v3653_v44  ;;  %v3677_v59 = vld [vmem:[#allocation11 + $0x618] sm:$0xff]  ;;  %v3687_v22 = vld [vmem:[#allocation11 + $0x668] sm:$0xff]  ;;  %v3682_v31 = vld [vmem:[#allocation11 + $0x640] sm:$0xff] }
 0x6dd   :  { %6739 = vmatprep.subr.bf16.mxu1 %v6738_v49  ;;  %v3663_v49 = vld [vmem:[#allocation11 + $0x5a8] sm:$0xff]  ;;  %v3686_v32 = vld [vmem:[#allocation11 + $0x660] sm:$0xff]  ;;  %v3684_v44 = vld [vmem:[#allocation11 + $0x650] sm:$0xff] }
 0x6de   :  { %6677 = vmatpush1.bf16.msra.mxu0 %v6676_v24  ;;  %v3656_v24 = vld [vmem:[#allocation11 + $0x570] sm:$0xff]  ;;  %v6708_v40 = vpack.c.bf16 %v3686_v32, %v3682_v31  ;;  %v3721_v32 = vld [vmem:[#allocation11 + $0x778] sm:$0xff] }
 0x6df   :  { %6679 = vmatprep.subr.bf16.mxu0 %v6678_v53  ;;  %v6756_v48 = vpack.c.bf16 %v3656_v24, %v3652_v47  ;;  %v6696_v53 = vpack.c.bf16 %v3662_v52, %v3658_v51  ;;  %v3691_v24 = vld [vmem:[#allocation11 + $0x688] sm:$0xff]  ;;  %v3697_v52 = vld [vmem:[#allocation11 + $0x6b8] sm:$0xff] }
 0x6e0   :  { %6741 = vmatpush1.bf16.msra.mxu1 %v6740_v50  ;;  %v6694_v50 = vpack.c.bf16 %v3663_v49, %v3659_v56  ;;  %v3690_v56 = vld [vmem:[#allocation11 + $0x680] sm:$0xff] }
 0x6e1   :  { %6743 = vmatprep.subr.bf16.mxu1 %v6742_v38  ;;  %v6760_v38 = vpack.c.bf16 %v3664_v58, %v3660_v57  ;;  %v3694_v49 = vld [vmem:[#allocation11 + $0x6a0] sm:$0xff]  ;;  %v3699_v58 = vld [vmem:[#allocation11 + $0x6c8] sm:$0xff] }
 0x6e2   :  { %6681 = vmatpush1.bf16.msra.mxu0 %v6680_v62  ;;  %v6758_v62 = vpack.c.bf16 %v3665_v55, %v3661_v30  ;;  %v6712_v51 = vpack.c.bf16 %v3694_v49, %v3690_v56  ;;  %v3692_v30 = vld [vmem:[#allocation11 + $0x690] sm:$0xff]  ;;  %v3729_v56 = vld [vmem:[#allocation11 + $0x7b8] sm:$0xff] }
 0x6e3   :  { %6683 = vmatprep.subr.bf16.mxu0 %v6682_v7  ;;  %v3673_v7 = vld [vmem:[#allocation11 + $0x5f8] sm:$0xff] }
 0x6e4   :  { %6745 = vmatpush1.bf16.msra.mxu1 %v6744_v0  ;;  %v3666_v0 = vld [vmem:[#allocation11 + $0x5c0] sm:$0xff]  ;;  %v6762_v19 = vpack.c.bf16 %v3673_v7, %v3669_v39  ;;  %v3700_v39 = vld [vmem:[#allocation11 + $0x6d0] sm:$0xff] }
 0x6e5   :  { %6747 = vmatprep.subr.bf16.mxu1 %v6746_v10  ;;  %v6700_v5 = vpack.c.bf16 %v3670_v63, %v3666_v0  ;;  %v3675_v10 = vld [vmem:[#allocation11 + $0x608] sm:$0xff]  ;;  %v6716_v0 = vpack.c.bf16 %v3702_v2, %v3698_v60  ;;  %v3705_v63 = vld [vmem:[#allocation11 + $0x6f8] sm:$0xff]  ;;  %v3732_v2 = vld [vmem:[#allocation11 + $0x7d0] sm:$0xff] }
 0x6e6   :  { %6685 = vmatpush1.bf16.msra.mxu0 %v6684_v9  ;;  %v6764_v9 = vpack.c.bf16 %v3672_v23, %v3668_v8  ;;  %v6702_v12 = vpack.c.bf16 %v3679_v11, %v3675_v10  ;;  %v3707_v23 = vld [vmem:[#allocation11 + $0x708] sm:$0xff]  ;;  %v3706_v10 = vld [vmem:[#allocation11 + $0x700] sm:$0xff]  ;;  %v3737_v60 = vld [vmem:[#allocation11 + $0x7f8] sm:$0xff] }
 0x6e7   :  { %6687 = vmatprep.subr.bf16.mxu0 %v6686_v35  ;;  %v3678_v35 = vld [vmem:[#allocation11 + $0x620] sm:$0xff] }
 0x6e8   :  { %6749 = vmatpush1.bf16.msra.mxu1 %v6748_v17  ;;  %v6704_v14 = vpack.c.bf16 %v3678_v35, %v3674_v13  ;;  %v3676_v17 = vld [vmem:[#allocation11 + $0x610] sm:$0xff]  ;;  %v3710_v11 = vld [vmem:[#allocation11 + $0x720] sm:$0xff]  ;;  %v3713_v35 = vld [vmem:[#allocation11 + $0x738] sm:$0xff] }
 0x6e9   :  { %6751 = vmatprep.subr.bf16.mxu1 %v6750_v1  ;;  %v6766_v1 = vpack.c.bf16 %v3681_v16, %v3677_v59  ;;  %v6720_v13 = vpack.c.bf16 %v3710_v11, %v3706_v10  ;;  %v3708_v59 = vld [vmem:[#allocation11 + $0x710] sm:$0xff] }
 0x6ea   :  { %6689 = vmatpush1.bf16.msra.mxu0 %v6688_v20  ;;  %v6768_v20 = vpack.c.bf16 %v3680_v18, %v3676_v17  ;;  %v3715_v18 = vld [vmem:[#allocation11 + $0x748] sm:$0xff] }
 0x6eb   :  { %6691 = vmatprep.subr.bf16.mxu0 %v6690_v37  ;;  %v3685_v37 = vld [vmem:[#allocation11 + $0x658] sm:$0xff] }
 0x6ec   :  { %6753 = vmatpush1.bf16.msra.mxu1 %v6752_v26  ;;  %v6706_v26 = vpack.c.bf16 %v3687_v22, %v3683_v21  ;;  %v6770_v25 = vpack.c.bf16 %v3689_v41, %v3685_v37  ;;  %v3714_v21 = vld [vmem:[#allocation11 + $0x740] sm:$0xff]  ;;  %v3716_v37 = vld [vmem:[#allocation11 + $0x750] sm:$0xff] }
 0x6ed   :  { %6755 = vmatprep.subr.bf16.mxu1 %v6754_v15  ;;  %v3695_v15 = vld [vmem:[#allocation11 + $0x6a8] sm:$0xff]  ;;  %v3718_v22 = vld [vmem:[#allocation11 + $0x760] sm:$0xff] }
 0x6ee   :  { %6693 = vmatpush1.bf16.msra.mxu0 %v6692_v45  ;;  %v3688_v45 = vld [vmem:[#allocation11 + $0x670] sm:$0xff]  ;;  %v6724_v31 = vpack.c.bf16 %v3718_v22, %v3714_v21 }
 0x6ef   :  { %6695 = vmatprep.subr.bf16.mxu0 %v6694_v50  ;;  %v6772_v47 = vpack.c.bf16 %v3688_v45, %v3684_v44  ;;  %v3693_v50 = vld [vmem:[#allocation11 + $0x698] sm:$0xff]  ;;  %v3723_v45 = vld [vmem:[#allocation11 + $0x788] sm:$0xff] }
 0x6f0   :  { %6757 = vmatpush1.bf16.msra.mxu1 %v6756_v48  ;;  %v6710_v48 = vpack.c.bf16 %v3695_v15, %v3691_v24  ;;  %v6774_v55 = vpack.c.bf16 %v3697_v52, %v3693_v50  ;;  %v3726_v15 = vld [vmem:[#allocation11 + $0x7a0] sm:$0xff]  ;;  %v3728_v52 = vld [vmem:[#allocation11 + $0x7b0] sm:$0xff] }
 0x6f1   :  { %6759 = vmatprep.subr.bf16.mxu1 %v6758_v62  ;;  %v3703_v62 = vld [vmem:[#allocation11 + $0x6e8] sm:$0xff] }
 0x6f2   :  { %6697 = vmatpush1.bf16.msra.mxu0 %v6696_v53  ;;  %v3696_v53 = vld [vmem:[#allocation11 + $0x6b0] sm:$0xff] }
 0x6f3   :  { %6699 = vmatprep.subr.bf16.mxu0 %v6698_v3  ;;  %v6776_v57 = vpack.c.bf16 %v3696_v53, %v3692_v30  ;;  %v3701_v3 = vld [vmem:[#allocation11 + $0x6d8] sm:$0xff]  ;;  %v3731_v30 = vld [vmem:[#allocation11 + $0x7c8] sm:$0xff] }
 0x6f4   :  { %6761 = vmatpush1.bf16.msra.mxu1 %v6760_v38  ;;  %v6714_v38 = vpack.c.bf16 %v3703_v62, %v3699_v58  ;;  %v6778_v7 = vpack.c.bf16 %v3705_v63, %v3701_v3  ;;  %v3734_v58 = vld [vmem:[#allocation11 + $0x7e0] sm:$0xff]  ;;  %v3736_v63 = vld [vmem:[#allocation11 + $0x7f0] sm:$0xff] }
 0x6f5   :  { %6763 = vmatprep.subr.bf16.mxu1 %v6762_v19  ;;  %v3711_v19 = vld [vmem:[#allocation11 + $0x728] sm:$0xff] }
 0x6f6   :  { %6701 = vmatpush1.bf16.msra.mxu0 %v6700_v5  ;;  %v3704_v5 = vld [vmem:[#allocation11 + $0x6f0] sm:$0xff] }
 0x6f7   :  { %6703 = vmatprep.subr.bf16.mxu0 %v6702_v12  ;;  %v6780_v8 = vpack.c.bf16 %v3704_v5, %v3700_v39  ;;  %v3709_v12 = vld [vmem:[#allocation11 + $0x718] sm:$0xff]  ;;  %v3932_v39 = vld [vmem:[#allocation11 + $0x8] sm:$0xff] }
 0x6f8   :  { %6765 = vmatpush1.bf16.msra.mxu1 %v6764_v9  ;;  %v6718_v9 = vpack.c.bf16 %v3711_v19, %v3707_v23  ;;  %v6782_v16 = vpack.c.bf16 %v3713_v35, %v3709_v12  ;;  %v3936_v5 = vld [vmem:[#allocation11 + $0x28] sm:$0xff]  ;;  %v3934_v23 = vld [vmem:[#allocation11 + $0x18] sm:$0xff] }
 0x6f9   :  { %6767 = vmatprep.subr.bf16.mxu1 %v6766_v1  ;;  %v3719_v1 = vld [vmem:[#allocation11 + $0x768] sm:$0xff]  ;;  %v3938_v19 = vld [vmem:[#allocation11 + $0x38] sm:$0xff] }
 0x6fa   :  { %6705 = vmatpush1.bf16.msra.mxu0 %v6704_v14  ;;  %v3712_v14 = vld [vmem:[#allocation11 + $0x730] sm:$0xff] }
 0x6fb   :  { %6707 = vmatprep.subr.bf16.mxu0 %v6706_v26  ;;  %v6784_v17 = vpack.c.bf16 %v3712_v14, %v3708_v59  ;;  %v3717_v26 = vld [vmem:[#allocation11 + $0x758] sm:$0xff] }
 0x6fc   :  { %6769 = vmatpush1.bf16.msra.mxu1 %v6768_v20  ;;  %v6722_v20 = vpack.c.bf16 %v3719_v1, %v3715_v18  ;;  %v6786_v41 = vpack.c.bf16 %v3721_v32, %v3717_v26 }
 0x6fd   :  { %6771 = vmatprep.subr.bf16.mxu1 %v6770_v25  ;;  %v3727_v25 = vld [vmem:[#allocation11 + $0x7a8] sm:$0xff] }
 0x6fe   :  { %6709 = vmatpush1.bf16.msra.mxu0 %v6708_v40  ;;  %v3720_v40 = vld [vmem:[#allocation11 + $0x770] sm:$0xff]  ;;  %v6726_v24 = vpack.c.bf16 %v3727_v25, %v3723_v45 }
 0x6ff   :  { %6711 = vmatprep.subr.bf16.mxu0 %v6710_v48  ;;  %v6788_v44 = vpack.c.bf16 %v3720_v40, %v3716_v37  ;;  %v3725_v48 = vld [vmem:[#allocation11 + $0x798] sm:$0xff] }
 0x700   :  { %6773 = vmatpush1.bf16.msra.mxu1 %v6772_v47  ;;  %v3722_v47 = vld [vmem:[#allocation11 + $0x780] sm:$0xff]  ;;  %v6790_v50 = vpack.c.bf16 %v3729_v56, %v3725_v48 }
 0x701   :  { %6775 = vmatprep.subr.bf16.mxu1 %v6774_v55  ;;  %v6728_v49 = vpack.c.bf16 %v3726_v15, %v3722_v47  ;;  %v3735_v55 = vld [vmem:[#allocation11 + $0x7e8] sm:$0xff] }
 0x702   :  { %6713 = vmatpush1.bf16.msra.mxu0 %v6712_v51  ;;  %v3724_v51 = vld [vmem:[#allocation11 + $0x790] sm:$0xff]  ;;  %v6730_v62 = vpack.c.bf16 %v3735_v55, %v3731_v30 }
 0x703   :  { %6715 = vmatprep.subr.bf16.mxu0 %v6714_v38  ;;  %v6792_v53 = vpack.c.bf16 %v3728_v52, %v3724_v51  ;;  %v3733_v38 = vld [vmem:[#allocation11 + $0x7d8] sm:$0xff] }
 0x704   :  { %6777 = vmatpush1.bf16.msra.mxu1 %v6776_v57  ;;  %v3730_v57 = vld [vmem:[#allocation11 + $0x7c0] sm:$0xff] }
 0x705   :  { %6779 = vmatprep.subr.bf16.mxu1 %v6778_v7  ;;  %v6732_v3 = vpack.c.bf16 %v3734_v58, %v3730_v57  ;;  %v6798_v7 = vpack.c.bf16 %v3936_v5, %v3932_v39 }
 0x706   :  { %6717 = vmatpush1.bf16.msra.mxu0 %v6716_v0  ;;  %v6794_v0 = vpack.c.bf16 %v3737_v60, %v3733_v38 }
 0x707   :  { %6719 = vmatprep.subr.bf16.mxu0 %v6718_v9  ;;  %v6862_v9 = vpack.c.bf16 %v3938_v19, %v3934_v23  ;;  %v8077_v23 = vpop.permute.xlu1 %3290 }
 0x708   :  { %6781 = vmatpush1.bf16.msra.mxu1 %v6780_v8  ;;  %v6796_v8 = vpack.c.bf16 %v3736_v63, %v3732_v2  ;;  %vm3292_vm14 = vcmp.eq.s32.totalorder %v8077_v23, 1 }
 0x709   :  { %6783 = vmatprep.subr.bf16.mxu1 %v6782_v16 }
 0x70a   :  { %6721 = vmatpush1.bf16.msra.mxu0 %v6720_v13 }
 0x70b   :  { %6723 = vmatprep.subr.bf16.mxu0 %v6722_v20 }
 0x70c   :  { %6785 = vmatpush1.bf16.msra.mxu1 %v6784_v17 }
 0x70d   :  { %6787 = vmatprep.subr.bf16.mxu1 %v6786_v41 }
 0x70e   :  { %6725 = vmatpush1.bf16.msra.mxu0 %v6724_v31 }
 0x70f   :  { %6727 = vmatprep.subr.bf16.mxu0 %v6726_v24 }
 0x710   :  { %6789 = vmatpush1.bf16.msra.mxu1 %v6788_v44 }
 0x711   :  { %6791 = vmatprep.subr.bf16.mxu1 %v6790_v50 }
 0x712   :  { %6729 = vmatpush1.bf16.msra.mxu0 %v6728_v49 }
 0x713   :  { %6731 = vmatprep.subr.bf16.mxu0 %v6730_v62 }
 0x714   :  { %6793 = vmatpush1.bf16.msra.mxu1 %v6792_v53 }
 0x715   :  { %6795 = vmatprep.subr.bf16.mxu1 %v6794_v0 }
 0x716   :  { %6733 = vmatpush1.bf16.msra.mxu0 %v6732_v3 }
 0x717   :  { %6799 = vmatprep.subr.bf16.mxu0 %v6798_v7 }
 0x718   :  { %6797 = vmatpush1.bf16.msra.mxu1 %v6796_v8 }
 0x719   :  { %6863 = vmatprep.subr.bf16.mxu1 %v6862_v9 }
 0x76c   :  { %v3178_v10 = vpop.f32.mrb[18].mxu0  ;;  %v3249_v11 = vpop.f32.mrb[18].mxu1 }
 0x76d   :  { %v3179_v12 = vadd.f32 %v3178_v10, %v7857_v33  ;;  %v3180_v13 = vpop.f32.mrb[19].mxu0  ;;  %v3251_v35 = vpop.f32.mrb[19].mxu1  ;;  %v3250_v1 = vadd.f32 %v3249_v11, %v7872_v27  ;;  %v3931_v10 = vld [vmem:[#allocation11] sm:$0xff] }
 0x76e   :  { %v3181_v59 = vadd.f32 %v3180_v13, %v7861_v34  ;;  %v3252_v17 = vadd.f32 %v3251_v35, %v7867_v46  ;;  %v3935_v11 = vld [vmem:[#allocation11 + $0x20] sm:$0xff]  ;;  %v3940_v13 = vld [vmem:[#allocation11 + $0x48] sm:$0xff] }
 0x76f   :  { %v5221_v14 = vmul.f32 -1.442695, %v3179_v12  ;;  %v3944_v35 = vld [vmem:[#allocation11 + $0x68] sm:$0xff] }
 0x770   :  { %v5222_v16 = vmul.f32 -1.442695, %v3181_v59  ;;  %v5223_v18 = vmul.f32 -1.442695, %v3252_v17  ;;  %v3933_v59 = vld [vmem:[#allocation11 + $0x10] sm:$0xff]  ;;  %v6800_v17 = vpack.c.bf16 %v3935_v11, %v3931_v10  ;;  %v3972_v10 = vld [vmem:[#allocation11 + $0x148] sm:$0xff] }
 0x771   :  { %7469 = vpow2.f32 %v5221_v14  ;;  %v3937_v14 = vld [vmem:[#allocation11 + $0x30] sm:$0xff]  ;;  %v3976_v11 = vld [vmem:[#allocation11 + $0x168] sm:$0xff] }
 0x772   :  { %7471 = vpow2.f32 %v5222_v16 }
 0x773   :  { %7473 = vpow2.f32 %v5223_v18  ;;  %v3942_v18 = vld [vmem:[#allocation11 + $0x58] sm:$0xff] }
 0x774   :  { %7475 = vtanh.f32 %v3250_v1  ;;  %v3946_v1 = vld [vmem:[#allocation11 + $0x78] sm:$0xff] }
 0x77b   :  { %v7470_v20 = vpop.eup %7469 }
 0x77c   :  { %v7472_v21 = vpop.eup %7471  ;;  %v3257_v22 = vadd.f32 1.0, %v7470_v20 }
 0x77d   :  { %v3263_v26 = vadd.f32 1.0, %v7472_v21  ;;  %v7474_v31 = vpop.eup %7473  ;;  %v6802_v21 = vpack.c.bf16 %v3944_v35, %v3940_v13  ;;  %v3965_v35 = vld [vmem:[#allocation11 + $0x110] sm:$0xff] }
 0x77e   :  { %7477 = vrcp.f32 %v3257_v22  ;;  %v7476_v32 = vpop.eup %7475  ;;  %v3270_v44 = vadd.f32 1.0, %v7474_v31  ;;  %v3939_v22 = vld [vmem:[#allocation11 + $0x40] sm:$0xff]  ;;  %v3948_v31 = vld [vmem:[#allocation11 + $0x88] sm:$0xff] }
 0x77f   :  { %7479 = vrcp.f32 %v3263_v26  ;;  %v3943_v26 = vld [vmem:[#allocation11 + $0x60] sm:$0xff] }
 0x780   :  { %7481 = vrcp.f32 %v3270_v44  ;;  %v3945_v44 = vld [vmem:[#allocation11 + $0x70] sm:$0xff] }
 0x788   :  { %v7478_v37 = vpop.eup %7477 }
 0x789   :  { %v7480_v40 = vpop.eup %7479  ;;  %v3274_v41 = vmul.f32 %v7478_v37, %v7476_v32  ;;  %v3952_v32 = vld [vmem:[#allocation11 + $0xa8] sm:$0xff]  ;;  %v6864_v37 = vpack.c.bf16 %v3937_v14, %v3933_v59  ;;  %v3969_v59 = vld [vmem:[#allocation11 + $0x130] sm:$0xff] }
 0x78a   :  { %v3273_v45 = vmul.f32 %v7480_v40, %v8016_v4  ;;  %v7482_v24 = vpop.eup %7481  ;;  %v6866_v40 = vpack.c.bf16 %v3946_v1, %v3942_v18  ;;  %v6818_v18 = vpack.c.bf16 %v3976_v11, %v3972_v10  ;;  %v3971_v1 = vld [vmem:[#allocation11 + $0x140] sm:$0xff]  ;;  %v3997_v11 = vld [vmem:[#allocation11 + $0x210] sm:$0xff] }
 0x78c   :  { %v3275_v25 = vadd.f32 %v3274_v41, %v3273_v45  ;;  %v3941_v41 = vld [vmem:[#allocation11 + $0x50] sm:$0xff]  ;;  %v6804_v45 = vpack.c.bf16 %v3943_v26, %v3939_v22  ;;  %v3984_v22 = vld [vmem:[#allocation11 + $0x1a8] sm:$0xff]  ;;  %v6880_v26 = vpack.c.bf16 %v3969_v59, %v3965_v35  ;;  %v4006_v35 = vld [vmem:[#allocation11 + $0x258] sm:$0xff] }
 0x78d   :  { %v4010_v59 = vld [vmem:[#allocation11 + $0x278] sm:$0xff] }
 0x78e   :  { %7483 = vtanh.f32 %v3275_v25  ;;  %v8060_v47 = vsel %vm2662_vm13, %v3275_v25, %v8016_v4  ;;  %v3950_v25 = vld [vmem:[#allocation11 + $0x98] sm:$0xff] }
 0x798   :  { %v7484_v15 = vpop.eup %7483 }
 0x799   :  { %v3277_v48 = vmul.f32 %v7484_v15, %v7482_v24  ;;  %v3954_v24 = vld [vmem:[#allocation11 + $0xb8] sm:$0xff]  ;;  %v6806_v15 = vpack.c.bf16 %v3952_v32, %v3948_v31  ;;  %v3973_v32 = vld [vmem:[#allocation11 + $0x150] sm:$0xff] }
 0x79b   :  { %v8065_v56 = vsel %vm2662_vm13, %v3277_v48, %v8021_v6  ;;  %v3282_v49 = vsel %vm2662_vm13, %v3277_v48, 0.0  ;;  %v3947_v48 = vld [vmem:[#allocation11 + $0x80] sm:$0xff] }
 0x79c   :  { %3284 = vst.msk [vmem:[#allocation14 + $0x20] sm:$0xff] %vm763_vm5, %v3282_v49  ;;  %3806 = vmatprep.mubr.f32.mxu0 %v8065_v56  ;;  %3877 = vmatprep.mubr.f32.mxu1 %v8065_v56  ;;  %v3951_v49 = vld [vmem:[#allocation11 + $0xa0] sm:$0xff] }
 0x7ac   :  { %v3499_v50 = vpop.f32.mrb[20].mxu0 }
 0x7ad   :  { %v3500_v4 = vadd.f32 %v3499_v50, %v7815_v28  ;;  %v3501_v51 = vpop.f32.mrb[21].mxu0  ;;  %v3956_v50 = vld [vmem:[#allocation11 + $0xc8] sm:$0xff] }
 0x7ae   :  { %v3502_v52 = vadd.f32 %v3501_v51, %v7819_v29  ;;  %v3570_v30 = vpop.f32.mrb[20].mxu1  ;;  %v6870_v51 = vpack.c.bf16 %v3954_v24, %v3950_v25  ;;  %v3979_v25 = vld [vmem:[#allocation11 + $0x180] sm:$0xff] }
 0x7af   :  { %v5224_v53 = vmul.f32 -1.442695, %v3500_v4  ;;  %v3572_v55 = vpop.f32.mrb[21].mxu1  ;;  %v3571_v58 = vadd.f32 %v3570_v30, %v7832_v42  ;;  %v3960_v4 = vld [vmem:[#allocation11 + $0xe8] sm:$0xff]  ;;  %v3953_v30 = vld [vmem:[#allocation11 + $0xb0] sm:$0xff]  ;;  %v3983_v24 = vld [vmem:[#allocation11 + $0x1a0] sm:$0xff] }
 0x7b0   :  { %v5225_v6 = vmul.f32 -1.442695, %v3502_v52  ;;  %v3573_v54 = vadd.f32 %v3572_v55, %v7826_v36  ;;  %v3949_v52 = vld [vmem:[#allocation11 + $0x90] sm:$0xff]  ;;  %v3958_v55 = vld [vmem:[#allocation11 + $0xd8] sm:$0xff] }
 0x7b1   :  { %7485 = vpow2.f32 %v5224_v53  ;;  %v6808_v53 = vpack.c.bf16 %v3951_v49, %v3947_v48  ;;  %v3992_v48 = vld [vmem:[#allocation11 + $0x1e8] sm:$0xff] }
 0x7b2   :  { %7487 = vpow2.f32 %v5225_v6  ;;  %v5226_v57 = vmul.f32 -1.442695, %v3573_v54  ;;  %v3962_v6 = vld [vmem:[#allocation11 + $0xf8] sm:$0xff]  ;;  %v6810_v54 = vpack.c.bf16 %v3960_v4, %v3956_v50  ;;  %v3981_v4 = vld [vmem:[#allocation11 + $0x190] sm:$0xff] }
 0x7b4   :  { %7489 = vpow2.f32 %v5226_v57  ;;  %v3955_v57 = vld [vmem:[#allocation11 + $0xc0] sm:$0xff] }
 0x7b5   :  { %7491 = vtanh.f32 %v3571_v58  ;;  %v3959_v58 = vld [vmem:[#allocation11 + $0xe0] sm:$0xff] }
 0x7bb   :  { %v7486_v62 = vpop.eup %7485 }
 0x7bc   :  { %v7488_v38 = vpop.eup %7487  ;;  %v3578_v60 = vadd.f32 1.0, %v7486_v62  ;;  %v3964_v62 = vld [vmem:[#allocation11 + $0x108] sm:$0xff] }
 0x7bd   :  { %v3584_v2 = vadd.f32 1.0, %v7488_v38  ;;  %v3968_v38 = vld [vmem:[#allocation11 + $0x128] sm:$0xff] }
 0x7be   :  { %7493 = vrcp.f32 %v3578_v60  ;;  %v7490_v3 = vpop.eup %7489  ;;  %v6872_v60 = vpack.c.bf16 %v3953_v30, %v3949_v52  ;;  %v3990_v52 = vld [vmem:[#allocation11 + $0x1d8] sm:$0xff] }
 0x7bf   :  { %7495 = vrcp.f32 %v3584_v2  ;;  %v7492_v0 = vpop.eup %7491  ;;  %v3591_v39 = vadd.f32 1.0, %v7490_v3  ;;  %v6874_v2 = vpack.c.bf16 %v3962_v6, %v3958_v55  ;;  %v3957_v3 = vld [vmem:[#allocation11 + $0xd0] sm:$0xff]  ;;  %v3994_v30 = vld [vmem:[#allocation11 + $0x1f8] sm:$0xff]  ;;  %v3987_v55 = vld [vmem:[#allocation11 + $0x1c0] sm:$0xff] }
 0x7c0   :  { %v3991_v6 = vld [vmem:[#allocation11 + $0x1e0] sm:$0xff] }
 0x7c1   :  { %7497 = vrcp.f32 %v3591_v39  ;;  %v3966_v39 = vld [vmem:[#allocation11 + $0x118] sm:$0xff] }
 0x7c8   :  { %v7494_v63 = vpop.eup %7493 }
 0x7c9   :  { %v7496_v5 = vpop.eup %7495  ;;  %v3595_v7 = vmul.f32 %v7494_v63, %v7492_v0  ;;  %v3961_v0 = vld [vmem:[#allocation11 + $0xf0] sm:$0xff]  ;;  %v6812_v63 = vpack.c.bf16 %v3959_v58, %v3955_v57  ;;  %v4000_v57 = vld [vmem:[#allocation11 + $0x228] sm:$0xff] }
 0x7ca   :  { %v3594_v8 = vmul.f32 %v7496_v5, %v8039_v43  ;;  %v3970_v5 = vld [vmem:[#allocation11 + $0x138] sm:$0xff] }
 0x7cb   :  { %v7498_v12 = vpop.eup %7497  ;;  %v6878_v13 = vpack.c.bf16 %v3970_v5, %v3966_v39  ;;  %v3995_v39 = vld [vmem:[#allocation11 + $0x200] sm:$0xff] }
 0x7cc   :  { %v3596_v19 = vadd.f32 %v3595_v7, %v3594_v8  ;;  %v6814_v7 = vpack.c.bf16 %v3968_v38, %v3964_v62  ;;  %v3963_v8 = vld [vmem:[#allocation11 + $0x100] sm:$0xff]  ;;  %v6890_v62 = vpack.c.bf16 %v3994_v30, %v3990_v52  ;;  %v3989_v38 = vld [vmem:[#allocation11 + $0x1d0] sm:$0xff] }
 0x7cd   :  { %v3999_v5 = vld [vmem:[#allocation11 + $0x220] sm:$0xff] }
 0x7ce   :  { %7499 = vtanh.f32 %v3596_v19  ;;  %v8083_v9 = vsel %vm3292_vm14, %v3596_v19, %v8039_v43  ;;  %v3967_v19 = vld [vmem:[#allocation11 + $0x120] sm:$0xff] }
 0x7cf   :  { %v6816_v14 = vpack.c.bf16 %v3967_v19, %v3963_v8  ;;  %v4008_v8 = vld [vmem:[#allocation11 + $0x268] sm:$0xff]  ;;  %v4019_v52 = vld [vmem:[#allocation11 + $0x2c0] sm:$0xff] }
 0x7d0   :  { %v4023_v30 = vld [vmem:[#allocation11 + $0x2e0] sm:$0xff] }
 0x7d8   :  { %v7500_v16 = vpop.eup %7499 }
 0x7d9   :  { %v3598_v20 = vmul.f32 %v7500_v16, %v7498_v12  ;;  %v6876_v12 = vpack.c.bf16 %v3961_v0, %v3957_v3  ;;  %v3974_v16 = vld [vmem:[#allocation11 + $0x158] sm:$0xff] }
 0x7da   :  { %v3998_v3 = vld [vmem:[#allocation11 + $0x218] sm:$0xff] }
 0x7db   :  { %5256 = vmatmul.mubr.msk.f32.vlgmr.msra.gmra.mrb[22].mxu0 %vm3292_vm14, %v3598_v20  ;;  %5257 = vmatmul.mubr.msk.f32.vlgmr.msra.gmra.mrb[22].mxu1 %vm3292_vm14, %v3598_v20  ;;  %v8092_v43 = vsel %vm3292_vm14, %v3598_v20, %v8048_v61  ;;  %v6868_v61 = vpack.c.bf16 %v3945_v44, %v3941_v41  ;;  %v3975_v20 = vld [vmem:[#allocation11 + $0x160] sm:$0xff]  ;;  %v3982_v41 = vld [vmem:[#allocation11 + $0x198] sm:$0xff] }
 0x7dc   :  { %6801 = vmatpush1.bf16.msra.mxu0 %v6800_v17  ;;  %4127 = vmatprep.mubr.f32.mxu0 %v8092_v43  ;;  %v3978_v17 = vld [vmem:[#allocation11 + $0x178] sm:$0xff] }
 0x7dd   :  { %4198 = vmatprep.mubr.f32.mxu1 %v8092_v43  ;;  %6803 = vmatprep.subr.bf16.mxu0 %v6802_v21  ;;  %v3980_v21 = vld [vmem:[#allocation11 + $0x188] sm:$0xff]  ;;  %v6882_v31 = vpack.c.bf16 %v3978_v17, %v3974_v16  ;;  %v3986_v44 = vld [vmem:[#allocation11 + $0x1b8] sm:$0xff]  ;;  %v4003_v16 = vld [vmem:[#allocation11 + $0x240] sm:$0xff] }
 0x7de   :  { %6865 = vmatpush1.bf16.msra.mxu1 %v6864_v37  ;;  %v3977_v37 = vld [vmem:[#allocation11 + $0x170] sm:$0xff]  ;;  %v6886_v50 = vpack.c.bf16 %v3986_v44, %v3982_v41  ;;  %v4002_v0 = vld [vmem:[#allocation11 + $0x238] sm:$0xff]  ;;  %v4007_v17 = vld [vmem:[#allocation11 + $0x260] sm:$0xff] }
 0x7df   :  { %6867 = vmatprep.subr.bf16.mxu1 %v6866_v40  ;;  %v6820_v40 = vpack.c.bf16 %v3975_v20, %v3971_v1  ;;  %v6884_v49 = vpack.c.bf16 %v3977_v37, %v3973_v32  ;;  %v6894_v10 = vpack.c.bf16 %v4002_v0, %v3998_v3  ;;  %v4016_v1 = vld [vmem:[#allocation11 + $0x2a8] sm:$0xff]  ;;  %v4014_v32 = vld [vmem:[#allocation11 + $0x298] sm:$0xff]  ;;  %v4011_v41 = vld [vmem:[#allocation11 + $0x280] sm:$0xff] }
 0x7e0   :  { %6805 = vmatpush1.bf16.msra.mxu0 %v6804_v45  ;;  %v6822_v45 = vpack.c.bf16 %v3984_v22, %v3980_v21  ;;  %v6898_v21 = vpack.c.bf16 %v4010_v59, %v4006_v35  ;;  %v4005_v22 = vld [vmem:[#allocation11 + $0x250] sm:$0xff]  ;;  %v4018_v37 = vld [vmem:[#allocation11 + $0x2b8] sm:$0xff]  ;;  %v4015_v44 = vld [vmem:[#allocation11 + $0x2a0] sm:$0xff] }
 0x7e1   :  { %6807 = vmatprep.subr.bf16.mxu0 %v6806_v15  ;;  %v3988_v15 = vld [vmem:[#allocation11 + $0x1c8] sm:$0xff]  ;;  %v4027_v3 = vld [vmem:[#allocation11 + $0x300] sm:$0xff] }
 0x7e2   :  { %6869 = vmatpush1.bf16.msra.mxu1 %v6868_v61  ;;  %v3985_v61 = vld [vmem:[#allocation11 + $0x1b0] sm:$0xff]  ;;  %v4031_v0 = vld [vmem:[#allocation11 + $0x320] sm:$0xff] }
 0x7e3   :  { %6871 = vmatprep.subr.bf16.mxu1 %v6870_v51  ;;  %v6824_v51 = vpack.c.bf16 %v3983_v24, %v3979_v25  ;;  %v6888_v58 = vpack.c.bf16 %v3985_v61, %v3981_v4  ;;  %v4024_v25 = vld [vmem:[#allocation11 + $0x2e8] sm:$0xff]  ;;  %v4022_v4 = vld [vmem:[#allocation11 + $0x2d8] sm:$0xff]  ;;  %v4035_v35 = vld [vmem:[#allocation11 + $0x340] sm:$0xff] }
 0x7e4   :  { %6809 = vmatpush1.bf16.msra.mxu0 %v6808_v53  ;;  %v6826_v53 = vpack.c.bf16 %v3992_v48, %v3988_v15  ;;  %v6902_v15 = vpack.c.bf16 %v4018_v37, %v4014_v32  ;;  %v4013_v48 = vld [vmem:[#allocation11 + $0x290] sm:$0xff]  ;;  %v4026_v61 = vld [vmem:[#allocation11 + $0x2f8] sm:$0xff]  ;;  %v4039_v59 = vld [vmem:[#allocation11 + $0x360] sm:$0xff] }
 0x7e5   :  { %6811 = vmatprep.subr.bf16.mxu0 %v6810_v54  ;;  %v3996_v54 = vld [vmem:[#allocation11 + $0x208] sm:$0xff]  ;;  %v4043_v32 = vld [vmem:[#allocation11 + $0x380] sm:$0xff] }
 0x7e6   :  { %6873 = vmatpush1.bf16.msra.mxu1 %v6872_v60  ;;  %v3993_v60 = vld [vmem:[#allocation11 + $0x1f0] sm:$0xff]  ;;  %v4047_v37 = vld [vmem:[#allocation11 + $0x3a0] sm:$0xff] }
 0x7e7   :  { %6875 = vmatprep.subr.bf16.mxu1 %v6874_v2  ;;  %v6828_v2 = vpack.c.bf16 %v3991_v6, %v3987_v55  ;;  %v6892_v19 = vpack.c.bf16 %v3993_v60, %v3989_v38  ;;  %v4032_v55 = vld [vmem:[#allocation11 + $0x328] sm:$0xff]  ;;  %v4030_v38 = vld [vmem:[#allocation11 + $0x318] sm:$0xff] }
 0x7e8   :  { %6813 = vmatpush1.bf16.msra.mxu0 %v6812_v63  ;;  %v6830_v63 = vpack.c.bf16 %v4000_v57, %v3996_v54  ;;  %v6906_v54 = vpack.c.bf16 %v4026_v61, %v4022_v4  ;;  %v4021_v57 = vld [vmem:[#allocation11 + $0x2d0] sm:$0xff]  ;;  %v4034_v60 = vld [vmem:[#allocation11 + $0x338] sm:$0xff]  ;;  %v4051_v4 = vld [vmem:[#allocation11 + $0x3c0] sm:$0xff] }
 0x7e9   :  { %6815 = vmatprep.subr.bf16.mxu0 %v6814_v7  ;;  %v4004_v7 = vld [vmem:[#allocation11 + $0x248] sm:$0xff]  ;;  %v4055_v61 = vld [vmem:[#allocation11 + $0x3e0] sm:$0xff] }
 0x7ea   :  { %6877 = vmatpush1.bf16.msra.mxu1 %v6876_v12  ;;  %v4001_v12 = vld [vmem:[#allocation11 + $0x230] sm:$0xff] }
 0x7eb   :  { %6879 = vmatprep.subr.bf16.mxu1 %v6878_v13  ;;  %v6832_v13 = vpack.c.bf16 %v3999_v5, %v3995_v39  ;;  %v6896_v20 = vpack.c.bf16 %v4001_v12, %v3997_v11  ;;  %v4040_v39 = vld [vmem:[#allocation11 + $0x368] sm:$0xff]  ;;  %v4038_v11 = vld [vmem:[#allocation11 + $0x358] sm:$0xff] }
 0x7ec   :  { %6817 = vmatpush1.bf16.msra.mxu0 %v6816_v14  ;;  %v6834_v14 = vpack.c.bf16 %v4008_v8, %v4004_v7  ;;  %v6910_v7 = vpack.c.bf16 %v4034_v60, %v4030_v38  ;;  %v4029_v8 = vld [vmem:[#allocation11 + $0x310] sm:$0xff]  ;;  %v4042_v12 = vld [vmem:[#allocation11 + $0x378] sm:$0xff]  ;;  %v4244_v60 = vld [vmem:[#allocation11 + $0x420] sm:$0xff] }
 0x7ed   :  { %6819 = vmatprep.subr.bf16.mxu0 %v6818_v18  ;;  %v4012_v18 = vld [vmem:[#allocation11 + $0x288] sm:$0xff] }
 0x7ee   :  { %6881 = vmatpush1.bf16.msra.mxu1 %v6880_v26  ;;  %v4009_v26 = vld [vmem:[#allocation11 + $0x270] sm:$0xff] }
 0x7ef   :  { %6883 = vmatprep.subr.bf16.mxu1 %v6882_v31  ;;  %v6836_v31 = vpack.c.bf16 %v4007_v17, %v4003_v16  ;;  %v6900_v24 = vpack.c.bf16 %v4009_v26, %v4005_v22  ;;  %v4048_v16 = vld [vmem:[#allocation11 + $0x3a8] sm:$0xff]  ;;  %v4046_v22 = vld [vmem:[#allocation11 + $0x398] sm:$0xff] }
 0x7f0   :  { %6821 = vmatpush1.bf16.msra.mxu0 %v6820_v40  ;;  %v6838_v40 = vpack.c.bf16 %v4016_v1, %v4012_v18  ;;  %v6914_v18 = vpack.c.bf16 %v4042_v12, %v4038_v11  ;;  %v4037_v1 = vld [vmem:[#allocation11 + $0x350] sm:$0xff]  ;;  %v4050_v26 = vld [vmem:[#allocation11 + $0x3b8] sm:$0xff]  ;;  %v4248_v11 = vld [vmem:[#allocation11 + $0x440] sm:$0xff] }
 0x7f1   :  { %6823 = vmatprep.subr.bf16.mxu0 %v6822_v45  ;;  %v4020_v45 = vld [vmem:[#allocation11 + $0x2c8] sm:$0xff]  ;;  %v4252_v12 = vld [vmem:[#allocation11 + $0x460] sm:$0xff] }
 0x7f2   :  { %6885 = vmatpush1.bf16.msra.mxu1 %v6884_v49  ;;  %v4017_v49 = vld [vmem:[#allocation11 + $0x2b0] sm:$0xff] }
 0x7f3   :  { %6887 = vmatprep.subr.bf16.mxu1 %v6886_v50  ;;  %v6840_v50 = vpack.c.bf16 %v4015_v44, %v4011_v41  ;;  %v6904_v6 = vpack.c.bf16 %v4017_v49, %v4013_v48  ;;  %v4056_v41 = vld [vmem:[#allocation11 + $0x3e8] sm:$0xff]  ;;  %v4054_v48 = vld [vmem:[#allocation11 + $0x3d8] sm:$0xff] }
 0x7f4   :  { %6825 = vmatpush1.bf16.msra.mxu0 %v6824_v51  ;;  %v6842_v51 = vpack.c.bf16 %v4024_v25, %v4020_v45  ;;  %v6918_v45 = vpack.c.bf16 %v4050_v26, %v4046_v22  ;;  %v4045_v25 = vld [vmem:[#allocation11 + $0x390] sm:$0xff]  ;;  %v4058_v49 = vld [vmem:[#allocation11 + $0x3f8] sm:$0xff]  ;;  %v4260_v26 = vld [vmem:[#allocation11 + $0x4a0] sm:$0xff] }
 0x7f5   :  { %6827 = vmatprep.subr.bf16.mxu0 %v6826_v53  ;;  %v4028_v53 = vld [vmem:[#allocation11 + $0x308] sm:$0xff] }
 0x7f6   :  { %6889 = vmatpush1.bf16.msra.mxu1 %v6888_v58  ;;  %v4025_v58 = vld [vmem:[#allocation11 + $0x2f0] sm:$0xff] }
 0x7f7   :  { %6891 = vmatprep.subr.bf16.mxu1 %v6890_v62  ;;  %v6844_v62 = vpack.c.bf16 %v4023_v30, %v4019_v52  ;;  %v6908_v5 = vpack.c.bf16 %v4025_v58, %v4021_v57  ;;  %v6922_v52 = vpack.c.bf16 %v4058_v49, %v4054_v48  ;;  %v4053_v30 = vld [vmem:[#allocation11 + $0x3d0] sm:$0xff]  ;;  %v4241_v57 = vld [vmem:[#allocation11 + $0x408] sm:$0xff]  ;;  %v4268_v48 = vld [vmem:[#allocation11 + $0x4e0] sm:$0xff] }
 0x7f8   :  { %6829 = vmatpush1.bf16.msra.mxu0 %v6828_v2  ;;  %v6846_v2 = vpack.c.bf16 %v4032_v55, %v4028_v53  ;;  %v4057_v53 = vld [vmem:[#allocation11 + $0x3f0] sm:$0xff]  ;;  %v6860_v55 = vpack.c.bf16 %v4055_v61, %v4051_v4  ;;  %v4245_v58 = vld [vmem:[#allocation11 + $0x428] sm:$0xff]  ;;  %v4271_v4 = vld [vmem:[#allocation11 + $0x4f8] sm:$0xff] }
 0x7f9   :  { %6831 = vmatprep.subr.bf16.mxu0 %v6830_v63  ;;  %v4036_v63 = vld [vmem:[#allocation11 + $0x348] sm:$0xff]  ;;  %v6926_v38 = vpack.c.bf16 %v4245_v58, %v4241_v57  ;;  %v4266_v61 = vld [vmem:[#allocation11 + $0x4d0] sm:$0xff]  ;;  %v4276_v57 = vld [vmem:[#allocation11 + $0x520] sm:$0xff] }
 0x7fa   :  { %6893 = vmatpush1.bf16.msra.mxu1 %v6892_v19  ;;  %v4033_v19 = vld [vmem:[#allocation11 + $0x330] sm:$0xff]  ;;  %v4275_v58 = vld [vmem:[#allocation11 + $0x518] sm:$0xff] }
 0x7fb   :  { %6895 = vmatprep.subr.bf16.mxu1 %v6894_v10  ;;  %v6848_v10 = vpack.c.bf16 %v4031_v0, %v4027_v3  ;;  %v6912_v17 = vpack.c.bf16 %v4033_v19, %v4029_v8  ;;  %v4247_v3 = vld [vmem:[#allocation11 + $0x438] sm:$0xff]  ;;  %v4249_v8 = vld [vmem:[#allocation11 + $0x448] sm:$0xff] }
 0x7fc   :  { %6833 = vmatpush1.bf16.msra.mxu0 %v6832_v13  ;;  %v6850_v13 = vpack.c.bf16 %v4040_v39, %v4036_v63  ;;  %v4242_v39 = vld [vmem:[#allocation11 + $0x410] sm:$0xff]  ;;  %v4253_v19 = vld [vmem:[#allocation11 + $0x468] sm:$0xff] }
 0x7fd   :  { %6835 = vmatprep.subr.bf16.mxu0 %v6834_v14  ;;  %v4044_v14 = vld [vmem:[#allocation11 + $0x388] sm:$0xff] }
 0x7fe   :  { %6897 = vmatpush1.bf16.msra.mxu1 %v6896_v20  ;;  %v4041_v20 = vld [vmem:[#allocation11 + $0x370] sm:$0xff] }
 0x7ff   :  { %6899 = vmatprep.subr.bf16.mxu1 %v6898_v21  ;;  %v6852_v21 = vpack.c.bf16 %v4039_v59, %v4035_v35  ;;  %v6916_v44 = vpack.c.bf16 %v4041_v20, %v4037_v1  ;;  %v6932_v35 = vpack.c.bf16 %v4252_v12, %v4248_v11  ;;  %v4255_v59 = vld [vmem:[#allocation11 + $0x478] sm:$0xff]  ;;  %v4257_v1 = vld [vmem:[#allocation11 + $0x488] sm:$0xff] }
 0x800   :  { %6837 = vmatpush1.bf16.msra.mxu0 %v6836_v31  ;;  %v6854_v31 = vpack.c.bf16 %v4048_v16, %v4044_v14  ;;  %v4250_v14 = vld [vmem:[#allocation11 + $0x450] sm:$0xff]  ;;  %v4261_v20 = vld [vmem:[#allocation11 + $0x4a8] sm:$0xff]  ;;  %v4287_v12 = vld [vmem:[#allocation11 + $0x578] sm:$0xff] }
 0x801   :  { %6839 = vmatprep.subr.bf16.mxu0 %v6838_v40  ;;  %v4052_v40 = vld [vmem:[#allocation11 + $0x3c8] sm:$0xff]  ;;  %v4254_v16 = vld [vmem:[#allocation11 + $0x470] sm:$0xff]  ;;  %v6934_v22 = vpack.c.bf16 %v4261_v20, %v4257_v1  ;;  %v4288_v1 = vld [vmem:[#allocation11 + $0x580] sm:$0xff] }
 0x802   :  { %6901 = vmatpush1.bf16.msra.mxu1 %v6900_v24  ;;  %v4049_v24 = vld [vmem:[#allocation11 + $0x3b0] sm:$0xff]  ;;  %v4292_v20 = vld [vmem:[#allocation11 + $0x5a0] sm:$0xff] }
 0x803   :  { %6903 = vmatprep.subr.bf16.mxu1 %v6902_v15  ;;  %v6856_v15 = vpack.c.bf16 %v4047_v37, %v4043_v32  ;;  %v4263_v32 = vld [vmem:[#allocation11 + $0x4b8] sm:$0xff] }
 0x804   :  { %6841 = vmatpush1.bf16.msra.mxu0 %v6840_v50  ;;  %v6858_v50 = vpack.c.bf16 %v4056_v41, %v4052_v40  ;;  %v4258_v41 = vld [vmem:[#allocation11 + $0x490] sm:$0xff] }
 0x805   :  { %6843 = vmatprep.subr.bf16.mxu0 %v6842_v51  ;;  %v6920_v51 = vpack.c.bf16 %v4049_v24, %v4045_v25  ;;  %v4269_v24 = vld [vmem:[#allocation11 + $0x4e8] sm:$0xff] }
 0x806   :  { %6905 = vmatpush1.bf16.msra.mxu1 %v6904_v6  ;;  %v6924_v6 = vpack.c.bf16 %v4057_v53, %v4053_v30  ;;  %v4270_v30 = vld [vmem:[#allocation11 + $0x4f0] sm:$0xff]  ;;  %v4273_v53 = vld [vmem:[#allocation11 + $0x508] sm:$0xff] }
 0x807   :  { %6907 = vmatprep.subr.bf16.mxu1 %v6906_v54  ;;  %v3924_v54 = vld [vmem:[#allocation6 + $0x30] sm:$0xff] }
 0x808   :  { %6845 = vmatpush1.bf16.msra.mxu0 %v6844_v62  ;;  %v4240_v62 = vld [vmem:[#allocation11 + $0x400] sm:$0xff] }
 0x809   :  { %6847 = vmatprep.subr.bf16.mxu0 %v6846_v2  ;;  %v4243_v2 = vld [vmem:[#allocation11 + $0x418] sm:$0xff]  ;;  %v6928_v0 = vpack.c.bf16 %v4244_v60, %v4240_v62  ;;  %v7004_v62 = vpack.c.bf16 %v4270_v30, %v4266_v61  ;;  %v4309_v30 = vld [vmem:[#allocation11 + $0x628] sm:$0xff] }
 0x80a   :  { %6909 = vmatpush1.bf16.msra.mxu1 %v6908_v5  ;;  %v6990_v63 = vpack.c.bf16 %v4247_v3, %v4243_v2  ;;  %v4246_v5 = vld [vmem:[#allocation11 + $0x430] sm:$0xff] }
 0x80b   :  { %6911 = vmatprep.subr.bf16.mxu1 %v6910_v7  ;;  %v6992_v7 = vpack.c.bf16 %v4246_v5, %v4242_v39  ;;  %v4274_v3 = vld [vmem:[#allocation11 + $0x510] sm:$0xff]  ;;  %v4281_v39 = vld [vmem:[#allocation11 + $0x548] sm:$0xff] }
 0x80c   :  { %6849 = vmatpush1.bf16.msra.mxu0 %v6848_v10  ;;  %v6930_v10 = vpack.c.bf16 %v4253_v19, %v4249_v8  ;;  %v4285_v5 = vld [vmem:[#allocation11 + $0x568] sm:$0xff]  ;;  %v4280_v8 = vld [vmem:[#allocation11 + $0x540] sm:$0xff] }
 0x80d   :  { %6851 = vmatprep.subr.bf16.mxu0 %v6850_v13  ;;  %v4251_v13 = vld [vmem:[#allocation11 + $0x458] sm:$0xff]  ;;  %v4284_v19 = vld [vmem:[#allocation11 + $0x560] sm:$0xff] }
 0x80e   :  { %6913 = vmatpush1.bf16.msra.mxu1 %v6912_v17  ;;  %v6994_v17 = vpack.c.bf16 %v4255_v59, %v4251_v13  ;;  %v6948_v11 = vpack.c.bf16 %v4284_v19, %v4280_v8  ;;  %v4282_v13 = vld [vmem:[#allocation11 + $0x550] sm:$0xff]  ;;  %v4319_v19 = vld [vmem:[#allocation11 + $0x678] sm:$0xff] }
 0x80f   :  { %6915 = vmatprep.subr.bf16.mxu1 %v6914_v18  ;;  %v6996_v18 = vpack.c.bf16 %v4254_v16, %v4250_v14  ;;  %v4289_v16 = vld [vmem:[#allocation11 + $0x588] sm:$0xff] }
 0x810   :  { %6853 = vmatpush1.bf16.msra.mxu0 %v6852_v21  ;;  %v4256_v21 = vld [vmem:[#allocation11 + $0x480] sm:$0xff] }
 0x811   :  { %6855 = vmatprep.subr.bf16.mxu0 %v6854_v31  ;;  %v4259_v31 = vld [vmem:[#allocation11 + $0x498] sm:$0xff]  ;;  %v6936_v37 = vpack.c.bf16 %v4260_v26, %v4256_v21 }
 0x812   :  { %6917 = vmatpush1.bf16.msra.mxu1 %v6916_v44  ;;  %v6998_v40 = vpack.c.bf16 %v4263_v32, %v4259_v31  ;;  %v4262_v44 = vld [vmem:[#allocation11 + $0x4b0] sm:$0xff]  ;;  %v4291_v21 = vld [vmem:[#allocation11 + $0x598] sm:$0xff] }
 0x813   :  { %6919 = vmatprep.subr.bf16.mxu1 %v6918_v45  ;;  %v4265_v45 = vld [vmem:[#allocation11 + $0x4c8] sm:$0xff]  ;;  %v7000_v25 = vpack.c.bf16 %v4262_v44, %v4258_v41  ;;  %v4295_v26 = vld [vmem:[#allocation11 + $0x5b8] sm:$0xff]  ;;  %v4290_v31 = vld [vmem:[#allocation11 + $0x590] sm:$0xff] }
 0x814   :  { %6857 = vmatpush1.bf16.msra.mxu0 %v6856_v15  ;;  %v4264_v15 = vld [vmem:[#allocation11 + $0x4c0] sm:$0xff]  ;;  %v6938_v49 = vpack.c.bf16 %v4269_v24, %v4265_v45  ;;  %v4294_v32 = vld [vmem:[#allocation11 + $0x5b0] sm:$0xff]  ;;  %v4297_v41 = vld [vmem:[#allocation11 + $0x5c8] sm:$0xff] }
 0x815   :  { %6859 = vmatprep.subr.bf16.mxu0 %v6858_v50  ;;  %v4267_v50 = vld [vmem:[#allocation11 + $0x4d8] sm:$0xff]  ;;  %v4301_v44 = vld [vmem:[#allocation11 + $0x5e8] sm:$0xff]  ;;  %v4300_v24 = vld [vmem:[#allocation11 + $0x5e0] sm:$0xff] }
 0x816   :  { %6921 = vmatpush1.bf16.msra.mxu1 %v6920_v51  ;;  %v6940_v51 = vpack.c.bf16 %v4268_v48, %v4264_v15  ;;  %v6954_v45 = vpack.c.bf16 %v4301_v44, %v4297_v41  ;;  %v4299_v15 = vld [vmem:[#allocation11 + $0x5d8] sm:$0xff]  ;;  %v4328_v41 = vld [vmem:[#allocation11 + $0x6c0] sm:$0xff] }
 0x817   :  { %6923 = vmatprep.subr.bf16.mxu1 %v6922_v52  ;;  %v7002_v52 = vpack.c.bf16 %v4271_v4, %v4267_v50  ;;  %v4298_v50 = vld [vmem:[#allocation11 + $0x5d0] sm:$0xff]  ;;  %v4332_v44 = vld [vmem:[#allocation11 + $0x6e0] sm:$0xff] }
 0x818   :  { %6861 = vmatpush1.bf16.msra.mxu0 %v6860_v55  ;;  %v4277_v55 = vld [vmem:[#allocation11 + $0x528] sm:$0xff]  ;;  %v4302_v4 = vld [vmem:[#allocation11 + $0x5f0] sm:$0xff] }
 0x819   :  { %6927 = vmatprep.subr.bf16.mxu0 %v6926_v38  ;;  %v4279_v38 = vld [vmem:[#allocation11 + $0x538] sm:$0xff] }
 0x81a   :  { %6925 = vmatpush1.bf16.msra.mxu1 %v6924_v6  ;;  %v6942_v6 = vpack.c.bf16 %v4277_v55, %v4273_v53  ;;  %v7006_v60 = vpack.c.bf16 %v4279_v38, %v4275_v58  ;;  %v4304_v55 = vld [vmem:[#allocation11 + $0x600] sm:$0xff]  ;;  %v4311_v58 = vld [vmem:[#allocation11 + $0x638] sm:$0xff]  ;;  %v4310_v38 = vld [vmem:[#allocation11 + $0x630] sm:$0xff] }
 0x81b   :  { %4128 = vmatmul.mubr.f32.vlgmr.msra.gmra.mrb[24].mxu0 %v3924_v54  ;;  %6991 = vmatprep.subr.bf16.mxu1 %v6990_v63 }
 0x81c   :  { %6929 = vmatpush1.bf16.msra.mxu0 %v6928_v0  ;;  %v4278_v0 = vld [vmem:[#allocation11 + $0x530] sm:$0xff] }
 0x81d   :  { %4199 = vmatmul.mubr.f32.vlgmr.msra.gmra.mrb[24].mxu1 %v3924_v54  ;;  %6931 = vmatprep.subr.bf16.mxu0 %v6930_v10  ;;  %v4272_v54 = vld [vmem:[#allocation11 + $0x500] sm:$0xff]  ;;  %v7008_v63 = vpack.c.bf16 %v4278_v0, %v4274_v3  ;;  %v4283_v10 = vld [vmem:[#allocation11 + $0x558] sm:$0xff]  ;;  %v4313_v3 = vld [vmem:[#allocation11 + $0x648] sm:$0xff] }
 0x81e   :  { %6993 = vmatpush1.bf16.msra.mxu1 %v6992_v7  ;;  %v6944_v2 = vpack.c.bf16 %v4276_v57, %v4272_v54  ;;  %v6946_v7 = vpack.c.bf16 %v4285_v5, %v4281_v39  ;;  %v7010_v59 = vpack.c.bf16 %v4287_v12, %v4283_v10  ;;  %v4307_v54 = vld [vmem:[#allocation11 + $0x618] sm:$0xff]  ;;  %v4317_v0 = vld [vmem:[#allocation11 + $0x668] sm:$0xff]  ;;  %v4312_v39 = vld [vmem:[#allocation11 + $0x640] sm:$0xff] }
 0x81f   :  { %6995 = vmatprep.subr.bf16.mxu1 %v6994_v17  ;;  %v4293_v17 = vld [vmem:[#allocation11 + $0x5a8] sm:$0xff]  ;;  %v4316_v5 = vld [vmem:[#allocation11 + $0x660] sm:$0xff]  ;;  %v4314_v10 = vld [vmem:[#allocation11 + $0x650] sm:$0xff] }
 0x820   :  { %6933 = vmatpush1.bf16.msra.mxu0 %v6932_v35  ;;  %v4286_v35 = vld [vmem:[#allocation11 + $0x570] sm:$0xff]  ;;  %v6964_v8 = vpack.c.bf16 %v4316_v5, %v4312_v39  ;;  %v4351_v5 = vld [vmem:[#allocation11 + $0x778] sm:$0xff] }
 0x821   :  { %6935 = vmatprep.subr.bf16.mxu0 %v6934_v22  ;;  %v7012_v14 = vpack.c.bf16 %v4286_v35, %v4282_v13  ;;  %v6952_v22 = vpack.c.bf16 %v4292_v20, %v4288_v1  ;;  %v4321_v35 = vld [vmem:[#allocation11 + $0x688] sm:$0xff]  ;;  %v4327_v20 = vld [vmem:[#allocation11 + $0x6b8] sm:$0xff] }
 0x822   :  { %6997 = vmatpush1.bf16.msra.mxu1 %v6996_v18  ;;  %v6950_v18 = vpack.c.bf16 %v4293_v17, %v4289_v16  ;;  %v4320_v16 = vld [vmem:[#allocation11 + $0x680] sm:$0xff] }
 0x823   :  { %6999 = vmatprep.subr.bf16.mxu1 %v6998_v40  ;;  %v7016_v40 = vpack.c.bf16 %v4294_v32, %v4290_v31  ;;  %v4324_v17 = vld [vmem:[#allocation11 + $0x6a0] sm:$0xff]  ;;  %v4329_v32 = vld [vmem:[#allocation11 + $0x6c8] sm:$0xff] }
 0x824   :  { %6937 = vmatpush1.bf16.msra.mxu0 %v6936_v37  ;;  %v7014_v37 = vpack.c.bf16 %v4295_v26, %v4291_v21  ;;  %v6968_v1 = vpack.c.bf16 %v4324_v17, %v4320_v16  ;;  %v4322_v21 = vld [vmem:[#allocation11 + $0x690] sm:$0xff]  ;;  %v4359_v16 = vld [vmem:[#allocation11 + $0x7b8] sm:$0xff] }
 0x825   :  { %6939 = vmatprep.subr.bf16.mxu0 %v6938_v49  ;;  %v4303_v49 = vld [vmem:[#allocation11 + $0x5f8] sm:$0xff] }
 0x826   :  { %7001 = vmatpush1.bf16.msra.mxu1 %v7000_v25  ;;  %v4296_v25 = vld [vmem:[#allocation11 + $0x5c0] sm:$0xff]  ;;  %v7018_v61 = vpack.c.bf16 %v4303_v49, %v4299_v15  ;;  %v4330_v15 = vld [vmem:[#allocation11 + $0x6d0] sm:$0xff] }
 0x827   :  { %7003 = vmatprep.subr.bf16.mxu1 %v7002_v52  ;;  %v6956_v48 = vpack.c.bf16 %v4300_v24, %v4296_v25  ;;  %v4305_v52 = vld [vmem:[#allocation11 + $0x608] sm:$0xff]  ;;  %v6972_v25 = vpack.c.bf16 %v4332_v44, %v4328_v41  ;;  %v4335_v24 = vld [vmem:[#allocation11 + $0x6f8] sm:$0xff]  ;;  %v4362_v44 = vld [vmem:[#allocation11 + $0x7d0] sm:$0xff] }
 0x828   :  { %6941 = vmatpush1.bf16.msra.mxu0 %v6940_v51  ;;  %v7020_v51 = vpack.c.bf16 %v4302_v4, %v4298_v50  ;;  %v6958_v53 = vpack.c.bf16 %v4309_v30, %v4305_v52  ;;  %v4337_v4 = vld [vmem:[#allocation11 + $0x708] sm:$0xff]  ;;  %v4336_v52 = vld [vmem:[#allocation11 + $0x700] sm:$0xff]  ;;  %v4367_v41 = vld [vmem:[#allocation11 + $0x7f8] sm:$0xff] }
 0x829   :  { %6943 = vmatprep.subr.bf16.mxu0 %v6942_v6  ;;  %v4308_v6 = vld [vmem:[#allocation11 + $0x620] sm:$0xff] }
 0x82a   :  { %7005 = vmatpush1.bf16.msra.mxu1 %v7004_v62  ;;  %v6960_v57 = vpack.c.bf16 %v4308_v6, %v4304_v55  ;;  %v4306_v62 = vld [vmem:[#allocation11 + $0x610] sm:$0xff]  ;;  %v4340_v30 = vld [vmem:[#allocation11 + $0x720] sm:$0xff]  ;;  %v4343_v6 = vld [vmem:[#allocation11 + $0x738] sm:$0xff] }
 0x82b   :  { %7007 = vmatprep.subr.bf16.mxu1 %v7006_v60  ;;  %v7022_v60 = vpack.c.bf16 %v4311_v58, %v4307_v54  ;;  %v6976_v55 = vpack.c.bf16 %v4340_v30, %v4336_v52  ;;  %v4338_v54 = vld [vmem:[#allocation11 + $0x710] sm:$0xff] }
 0x82c   :  { %6945 = vmatpush1.bf16.msra.mxu0 %v6944_v2  ;;  %v7024_v2 = vpack.c.bf16 %v4310_v38, %v4306_v62  ;;  %v4345_v38 = vld [vmem:[#allocation11 + $0x748] sm:$0xff] }
 0x82d   :  { %6947 = vmatprep.subr.bf16.mxu0 %v6946_v7  ;;  %v4315_v7 = vld [vmem:[#allocation11 + $0x658] sm:$0xff] }
 0x82e   :  { %7009 = vmatpush1.bf16.msra.mxu1 %v7008_v63  ;;  %v6962_v63 = vpack.c.bf16 %v4317_v0, %v4313_v3  ;;  %v7026_v12 = vpack.c.bf16 %v4319_v19, %v4315_v7  ;;  %v4344_v3 = vld [vmem:[#allocation11 + $0x740] sm:$0xff]  ;;  %v4346_v7 = vld [vmem:[#allocation11 + $0x750] sm:$0xff] }
 0x82f   :  { %7011 = vmatprep.subr.bf16.mxu1 %v7010_v59  ;;  %v4325_v59 = vld [vmem:[#allocation11 + $0x6a8] sm:$0xff]  ;;  %v4348_v0 = vld [vmem:[#allocation11 + $0x760] sm:$0xff] }
 0x830   :  { %6949 = vmatpush1.bf16.msra.mxu0 %v6948_v11  ;;  %v4318_v11 = vld [vmem:[#allocation11 + $0x670] sm:$0xff]  ;;  %v6980_v39 = vpack.c.bf16 %v4348_v0, %v4344_v3 }
 0x831   :  { %6951 = vmatprep.subr.bf16.mxu0 %v6950_v18  ;;  %v7028_v13 = vpack.c.bf16 %v4318_v11, %v4314_v10  ;;  %v4323_v18 = vld [vmem:[#allocation11 + $0x698] sm:$0xff]  ;;  %v4353_v11 = vld [vmem:[#allocation11 + $0x788] sm:$0xff] }
 0x832   :  { %7013 = vmatpush1.bf16.msra.mxu1 %v7012_v14  ;;  %v6966_v14 = vpack.c.bf16 %v4325_v59, %v4321_v35  ;;  %v7030_v26 = vpack.c.bf16 %v4327_v20, %v4323_v18  ;;  %v4356_v59 = vld [vmem:[#allocation11 + $0x7a0] sm:$0xff]  ;;  %v4358_v20 = vld [vmem:[#allocation11 + $0x7b0] sm:$0xff] }
 0x833   :  { %7015 = vmatprep.subr.bf16.mxu1 %v7014_v37  ;;  %v4333_v37 = vld [vmem:[#allocation11 + $0x6e8] sm:$0xff] }
 0x834   :  { %6953 = vmatpush1.bf16.msra.mxu0 %v6952_v22  ;;  %v4326_v22 = vld [vmem:[#allocation11 + $0x6b0] sm:$0xff] }
 0x835   :  { %6955 = vmatprep.subr.bf16.mxu0 %v6954_v45  ;;  %v7032_v31 = vpack.c.bf16 %v4326_v22, %v4322_v21  ;;  %v4331_v45 = vld [vmem:[#allocation11 + $0x6d8] sm:$0xff]  ;;  %v4361_v21 = vld [vmem:[#allocation11 + $0x7c8] sm:$0xff] }
 0x836   :  { %7017 = vmatpush1.bf16.msra.mxu1 %v7016_v40  ;;  %v6970_v40 = vpack.c.bf16 %v4333_v37, %v4329_v32  ;;  %v7034_v49 = vpack.c.bf16 %v4335_v24, %v4331_v45  ;;  %v4364_v32 = vld [vmem:[#allocation11 + $0x7e0] sm:$0xff]  ;;  %v4366_v24 = vld [vmem:[#allocation11 + $0x7f0] sm:$0xff] }
 0x837   :  { %7019 = vmatprep.subr.bf16.mxu1 %v7018_v61  ;;  %v4341_v61 = vld [vmem:[#allocation11 + $0x728] sm:$0xff] }
 0x838   :  { %6957 = vmatpush1.bf16.msra.mxu0 %v6956_v48  ;;  %v4334_v48 = vld [vmem:[#allocation11 + $0x6f0] sm:$0xff] }
 0x839   :  { %6959 = vmatprep.subr.bf16.mxu0 %v6958_v53  ;;  %v7036_v50 = vpack.c.bf16 %v4334_v48, %v4330_v15  ;;  %v4339_v53 = vld [vmem:[#allocation11 + $0x718] sm:$0xff]  ;;  %v4562_v15 = vld [vmem:[#allocation11 + $0x8] sm:$0xff] }
 0x83a   :  { %7021 = vmatpush1.bf16.msra.mxu1 %v7020_v51  ;;  %v6974_v51 = vpack.c.bf16 %v4341_v61, %v4337_v4  ;;  %v7038_v58 = vpack.c.bf16 %v4343_v6, %v4339_v53  ;;  %v4566_v48 = vld [vmem:[#allocation11 + $0x28] sm:$0xff]  ;;  %v4564_v4 = vld [vmem:[#allocation11 + $0x18] sm:$0xff] }
 0x83b   :  { %7023 = vmatprep.subr.bf16.mxu1 %v7022_v60  ;;  %v4349_v60 = vld [vmem:[#allocation11 + $0x768] sm:$0xff]  ;;  %v4568_v61 = vld [vmem:[#allocation11 + $0x38] sm:$0xff] }
 0x83c   :  { %6961 = vmatpush1.bf16.msra.mxu0 %v6960_v57  ;;  %v4342_v57 = vld [vmem:[#allocation11 + $0x730] sm:$0xff] }
 0x83d   :  { %6963 = vmatprep.subr.bf16.mxu0 %v6962_v63  ;;  %v7040_v62 = vpack.c.bf16 %v4342_v57, %v4338_v54  ;;  %v4347_v63 = vld [vmem:[#allocation11 + $0x758] sm:$0xff] }
 0x83e   :  { %7025 = vmatpush1.bf16.msra.mxu1 %v7024_v2  ;;  %v6978_v2 = vpack.c.bf16 %v4349_v60, %v4345_v38  ;;  %v7042_v19 = vpack.c.bf16 %v4351_v5, %v4347_v63 }
 0x83f   :  { %7027 = vmatprep.subr.bf16.mxu1 %v7026_v12  ;;  %v4357_v12 = vld [vmem:[#allocation11 + $0x7a8] sm:$0xff] }
 0x840   :  { %6965 = vmatpush1.bf16.msra.mxu0 %v6964_v8  ;;  %v4350_v8 = vld [vmem:[#allocation11 + $0x770] sm:$0xff]  ;;  %v6982_v35 = vpack.c.bf16 %v4357_v12, %v4353_v11 }
 0x841   :  { %6967 = vmatprep.subr.bf16.mxu0 %v6966_v14  ;;  %v7044_v10 = vpack.c.bf16 %v4350_v8, %v4346_v7  ;;  %v4355_v14 = vld [vmem:[#allocation11 + $0x798] sm:$0xff] }
 0x842   :  { %7029 = vmatpush1.bf16.msra.mxu1 %v7028_v13  ;;  %v4352_v13 = vld [vmem:[#allocation11 + $0x780] sm:$0xff]  ;;  %v7046_v18 = vpack.c.bf16 %v4359_v16, %v4355_v14 }
 0x843   :  { %7031 = vmatprep.subr.bf16.mxu1 %v7030_v26  ;;  %v6984_v17 = vpack.c.bf16 %v4356_v59, %v4352_v13  ;;  %v4365_v26 = vld [vmem:[#allocation11 + $0x7e8] sm:$0xff] }
 0x844   :  { %6969 = vmatpush1.bf16.msra.mxu0 %v6968_v1  ;;  %v4354_v1 = vld [vmem:[#allocation11 + $0x790] sm:$0xff]  ;;  %v6986_v37 = vpack.c.bf16 %v4365_v26, %v4361_v21 }
 0x845   :  { %6971 = vmatprep.subr.bf16.mxu0 %v6970_v40  ;;  %v7048_v22 = vpack.c.bf16 %v4358_v20, %v4354_v1  ;;  %v4363_v40 = vld [vmem:[#allocation11 + $0x7d8] sm:$0xff] }
 0x846   :  { %7033 = vmatpush1.bf16.msra.mxu1 %v7032_v31  ;;  %v4360_v31 = vld [vmem:[#allocation11 + $0x7c0] sm:$0xff] }
 0x847   :  { %7035 = vmatprep.subr.bf16.mxu1 %v7034_v49  ;;  %v6988_v45 = vpack.c.bf16 %v4364_v32, %v4360_v31  ;;  %v7054_v49 = vpack.c.bf16 %v4566_v48, %v4562_v15 }
 0x848   :  { %6973 = vmatpush1.bf16.msra.mxu0 %v6972_v25  ;;  %v7050_v25 = vpack.c.bf16 %v4367_v41, %v4363_v40 }
 0x849   :  { %6975 = vmatprep.subr.bf16.mxu0 %v6974_v51  ;;  %v7118_v51 = vpack.c.bf16 %v4568_v61, %v4564_v4 }
 0x84a   :  { %7037 = vmatpush1.bf16.msra.mxu1 %v7036_v50  ;;  %v7052_v50 = vpack.c.bf16 %v4366_v24, %v4362_v44 }
 0x84b   :  { %7039 = vmatprep.subr.bf16.mxu1 %v7038_v58 }
 0x84c   :  { %6977 = vmatpush1.bf16.msra.mxu0 %v6976_v55 }
 0x84d   :  { %6979 = vmatprep.subr.bf16.mxu0 %v6978_v2 }
 0x84e   :  { %7041 = vmatpush1.bf16.msra.mxu1 %v7040_v62 }
 0x84f   :  { %7043 = vmatprep.subr.bf16.mxu1 %v7042_v19 }
 0x850   :  { %6981 = vmatpush1.bf16.msra.mxu0 %v6980_v39 }
 0x851   :  { %6983 = vmatprep.subr.bf16.mxu0 %v6982_v35 }
 0x852   :  { %7045 = vmatpush1.bf16.msra.mxu1 %v7044_v10 }
 0x853   :  { %7047 = vmatprep.subr.bf16.mxu1 %v7046_v18 }
 0x854   :  { %6985 = vmatpush1.bf16.msra.mxu0 %v6984_v17 }
 0x855   :  { %6987 = vmatprep.subr.bf16.mxu0 %v6986_v37 }
 0x856   :  { %7049 = vmatpush1.bf16.msra.mxu1 %v7048_v22 }
 0x857   :  { %7051 = vmatprep.subr.bf16.mxu1 %v7050_v25 }
 0x858   :  { %6989 = vmatpush1.bf16.msra.mxu0 %v6988_v45 }
 0x859   :  { %7055 = vmatprep.subr.bf16.mxu0 %v7054_v49 }
 0x85a   :  { %7053 = vmatpush1.bf16.msra.mxu1 %v7052_v50  ;;  %v8120_v50 = vpop.permute.xlu0 %3920 }
 0x85b   :  { %7119 = vmatprep.subr.bf16.mxu1 %v7118_v51  ;;  %vm3922_vm15 = vcmp.eq.s32.totalorder %v8120_v50, 1 }
 0x8ae   :  { %v3808_v52 = vpop.f32.mrb[22].mxu0  ;;  %v3879_v30 = vpop.f32.mrb[22].mxu1 }
 0x8af   :  { %v3809_v53 = vadd.f32 %v3808_v52, %v7857_v33  ;;  %v3810_v55 = vpop.f32.mrb[23].mxu0  ;;  %v3881_v6 = vpop.f32.mrb[23].mxu1  ;;  %v3880_v60 = vadd.f32 %v3879_v30, %v7872_v27  ;;  %v4561_v52 = vld [vmem:[#allocation11] sm:$0xff] }
 0x8b0   :  { %v3811_v54 = vadd.f32 %v3810_v55, %v7861_v34  ;;  %v3882_v62 = vadd.f32 %v3881_v6, %v7867_v46  ;;  %v4565_v30 = vld [vmem:[#allocation11 + $0x20] sm:$0xff]  ;;  %v4570_v55 = vld [vmem:[#allocation11 + $0x48] sm:$0xff] }
 0x8b1   :  { %v5227_v57 = vmul.f32 -1.442695, %v3809_v53  ;;  %v4574_v6 = vld [vmem:[#allocation11 + $0x68] sm:$0xff] }
 0x8b2   :  { %v5228_v58 = vmul.f32 -1.442695, %v3811_v54  ;;  %v5229_v38 = vmul.f32 -1.442695, %v3882_v62  ;;  %v4563_v54 = vld [vmem:[#allocation11 + $0x10] sm:$0xff]  ;;  %v7056_v62 = vpack.c.bf16 %v4565_v30, %v4561_v52  ;;  %v4602_v52 = vld [vmem:[#allocation11 + $0x148] sm:$0xff] }
 0x8b3   :  { %7501 = vpow2.f32 %v5227_v57  ;;  %v4567_v57 = vld [vmem:[#allocation11 + $0x30] sm:$0xff]  ;;  %v4606_v30 = vld [vmem:[#allocation11 + $0x168] sm:$0xff] }
 0x8b4   :  { %7503 = vpow2.f32 %v5228_v58 }
 0x8b5   :  { %7505 = vpow2.f32 %v5229_v38  ;;  %v4572_v38 = vld [vmem:[#allocation11 + $0x58] sm:$0xff] }
 0x8b6   :  { %7507 = vtanh.f32 %v3880_v60  ;;  %v4576_v60 = vld [vmem:[#allocation11 + $0x78] sm:$0xff] }
 0x8bd   :  { %v7502_v2 = vpop.eup %7501 }
 0x8be   :  { %v7504_v3 = vpop.eup %7503  ;;  %v3887_v0 = vadd.f32 1.0, %v7502_v2 }
 0x8bf   :  { %v3893_v63 = vadd.f32 1.0, %v7504_v3  ;;  %v7506_v39 = vpop.eup %7505  ;;  %v7058_v3 = vpack.c.bf16 %v4574_v6, %v4570_v55  ;;  %v4595_v6 = vld [vmem:[#allocation11 + $0x110] sm:$0xff] }
 0x8c0   :  { %7509 = vrcp.f32 %v3887_v0  ;;  %v7508_v5 = vpop.eup %7507  ;;  %v3900_v10 = vadd.f32 1.0, %v7506_v39  ;;  %v4569_v0 = vld [vmem:[#allocation11 + $0x40] sm:$0xff]  ;;  %v4578_v39 = vld [vmem:[#allocation11 + $0x88] sm:$0xff] }
 0x8c1   :  { %7511 = vrcp.f32 %v3893_v63  ;;  %v4573_v63 = vld [vmem:[#allocation11 + $0x60] sm:$0xff] }
 0x8c2   :  { %7513 = vrcp.f32 %v3900_v10  ;;  %v4575_v10 = vld [vmem:[#allocation11 + $0x70] sm:$0xff] }
 0x8ca   :  { %v7510_v7 = vpop.eup %7509 }
 0x8cb   :  { %v7512_v8 = vpop.eup %7511  ;;  %v3904_v19 = vmul.f32 %v7510_v7, %v7508_v5  ;;  %v4582_v5 = vld [vmem:[#allocation11 + $0xa8] sm:$0xff]  ;;  %v7120_v7 = vpack.c.bf16 %v4567_v57, %v4563_v54  ;;  %v4599_v54 = vld [vmem:[#allocation11 + $0x130] sm:$0xff] }
 0x8cc   :  { %v3903_v11 = vmul.f32 %v7512_v8, %v8060_v47  ;;  %v7514_v35 = vpop.eup %7513  ;;  %v7122_v8 = vpack.c.bf16 %v4576_v60, %v4572_v38  ;;  %v7074_v38 = vpack.c.bf16 %v4606_v30, %v4602_v52  ;;  %v4601_v60 = vld [vmem:[#allocation11 + $0x140] sm:$0xff]  ;;  %v4627_v52 = vld [vmem:[#allocation11 + $0x210] sm:$0xff] }
 0x8cd   :  { %v4631_v30 = vld [vmem:[#allocation11 + $0x230] sm:$0xff] }
 0x8ce   :  { %v3905_v12 = vadd.f32 %v3904_v19, %v3903_v11  ;;  %v4571_v19 = vld [vmem:[#allocation11 + $0x50] sm:$0xff]  ;;  %v7060_v11 = vpack.c.bf16 %v4573_v63, %v4569_v0  ;;  %v4614_v0 = vld [vmem:[#allocation11 + $0x1a8] sm:$0xff]  ;;  %v7136_v63 = vpack.c.bf16 %v4599_v54, %v4595_v6  ;;  %v4640_v6 = vld [vmem:[#allocation11 + $0x278] sm:$0xff] }
 0x8d0   :  { %7515 = vtanh.f32 %v3905_v12  ;;  %v8104_v13 = vsel %vm3292_vm14, %v3905_v12, %v8060_v47  ;;  %v4580_v12 = vld [vmem:[#allocation11 + $0x98] sm:$0xff] }
 0x8da   :  { %v7516_v59 = vpop.eup %7515 }
 0x8db   :  { %v3907_v14 = vmul.f32 %v7516_v59, %v7514_v35  ;;  %v4584_v35 = vld [vmem:[#allocation11 + $0xb8] sm:$0xff]  ;;  %v7062_v59 = vpack.c.bf16 %v4582_v5, %v4578_v39  ;;  %v4603_v5 = vld [vmem:[#allocation11 + $0x150] sm:$0xff] }
 0x8dd   :  { %v8109_v16 = vsel %vm3292_vm14, %v3907_v14, %v8065_v56  ;;  %v3912_v17 = vsel %vm3292_vm14, %v3907_v14, 0.0  ;;  %v4577_v14 = vld [vmem:[#allocation11 + $0x80] sm:$0xff] }
 0x8de   :  { %3914 = vst.msk [vmem:[#allocation14 + $0x28] sm:$0xff] %vm763_vm5, %v3912_v17  ;;  %4436 = vmatprep.mubr.f32.mxu0 %v8109_v16  ;;  %4507 = vmatprep.mubr.f32.mxu1 %v8109_v16  ;;  %v4581_v17 = vld [vmem:[#allocation11 + $0xa0] sm:$0xff] }
 0x8ee   :  { %v4129_v18 = vpop.f32.mrb[24].mxu0 }
 0x8ef   :  { %v4130_v47 = vadd.f32 %v4129_v18, %v7815_v28  ;;  %v4131_v1 = vpop.f32.mrb[25].mxu0  ;;  %v4586_v18 = vld [vmem:[#allocation11 + $0xc8] sm:$0xff] }
 0x8f0   :  { %v4132_v20 = vadd.f32 %v4131_v1, %v7819_v29  ;;  %v4200_v21 = vpop.f32.mrb[24].mxu1  ;;  %v7124_v1 = vpack.c.bf16 %v4575_v10, %v4571_v19  ;;  %v4616_v19 = vld [vmem:[#allocation11 + $0x1b8] sm:$0xff] }
 0x8f1   :  { %v5230_v22 = vmul.f32 -1.442695, %v4130_v47  ;;  %v4202_v26 = vpop.f32.mrb[25].mxu1  ;;  %v4201_v32 = vadd.f32 %v4200_v21, %v7832_v42  ;;  %v4590_v47 = vld [vmem:[#allocation11 + $0xe8] sm:$0xff]  ;;  %v4583_v21 = vld [vmem:[#allocation11 + $0xb0] sm:$0xff] }
 0x8f2   :  { %v5231_v56 = vmul.f32 -1.442695, %v4132_v20  ;;  %v4203_v23 = vadd.f32 %v4202_v26, %v7826_v36  ;;  %v7126_v20 = vpack.c.bf16 %v4584_v35, %v4580_v12  ;;  %v4588_v26 = vld [vmem:[#allocation11 + $0xd8] sm:$0xff]  ;;  %v4613_v12 = vld [vmem:[#allocation11 + $0x1a0] sm:$0xff]  ;;  %v4618_v35 = vld [vmem:[#allocation11 + $0x1c8] sm:$0xff] }
 0x8f3   :  { %7517 = vpow2.f32 %v5230_v22  ;;  %v7064_v22 = vpack.c.bf16 %v4581_v17, %v4577_v14 }
 0x8f4   :  { %7519 = vpow2.f32 %v5231_v56  ;;  %v5232_v31 = vmul.f32 -1.442695, %v4203_v23  ;;  %v4592_v56 = vld [vmem:[#allocation11 + $0xf8] sm:$0xff]  ;;  %v7066_v23 = vpack.c.bf16 %v4590_v47, %v4586_v18  ;;  %v4611_v18 = vld [vmem:[#allocation11 + $0x190] sm:$0xff] }
 0x8f5   :  { %v4615_v47 = vld [vmem:[#allocation11 + $0x1b0] sm:$0xff] }
 0x8f6   :  { %7521 = vpow2.f32 %v5232_v31  ;;  %v4585_v31 = vld [vmem:[#allocation11 + $0xc0] sm:$0xff] }
 0x8f7   :  { %7523 = vtanh.f32 %v4201_v32  ;;  %v4589_v32 = vld [vmem:[#allocation11 + $0xe0] sm:$0xff] }
 0x8fd   :  { %v7518_v37 = vpop.eup %7517 }
 0x8fe   :  { %v7520_v40 = vpop.eup %7519  ;;  %v4208_v41 = vadd.f32 1.0, %v7518_v37  ;;  %v4594_v37 = vld [vmem:[#allocation11 + $0x108] sm:$0xff] }
 0x8ff   :  { %v4214_v44 = vadd.f32 1.0, %v7520_v40  ;;  %v4598_v40 = vld [vmem:[#allocation11 + $0x128] sm:$0xff] }
 0x900   :  { %7525 = vrcp.f32 %v4208_v41  ;;  %v7522_v45 = vpop.eup %7521 }
 0x901   :  { %7527 = vrcp.f32 %v4214_v44  ;;  %v7524_v25 = vpop.eup %7523  ;;  %v4221_v15 = vadd.f32 1.0, %v7522_v45  ;;  %v7130_v44 = vpack.c.bf16 %v4592_v56, %v4588_v26  ;;  %v4587_v45 = vld [vmem:[#allocation11 + $0xd0] sm:$0xff]  ;;  %v4621_v26 = vld [vmem:[#allocation11 + $0x1e0] sm:$0xff]  ;;  %v4626_v56 = vld [vmem:[#allocation11 + $0x208] sm:$0xff] }
 0x903   :  { %7529 = vrcp.f32 %v4221_v15  ;;  %v4596_v15 = vld [vmem:[#allocation11 + $0x118] sm:$0xff] }
 0x90a   :  { %v7526_v24 = vpop.eup %7525 }
 0x90b   :  { %v7528_v48 = vpop.eup %7527  ;;  %v4225_v49 = vmul.f32 %v7526_v24, %v7524_v25  ;;  %v4591_v25 = vld [vmem:[#allocation11 + $0xf0] sm:$0xff]  ;;  %v7068_v24 = vpack.c.bf16 %v4589_v32, %v4585_v31  ;;  %v7144_v31 = vpack.c.bf16 %v4615_v47, %v4611_v18  ;;  %v4656_v18 = vld [vmem:[#allocation11 + $0x2f8] sm:$0xff] }
 0x90c   :  { %v4224_v4 = vmul.f32 %v7528_v48, %v8083_v9  ;;  %v4600_v48 = vld [vmem:[#allocation11 + $0x138] sm:$0xff] }
 0x90d   :  { %v7530_v53 = vpop.eup %7529  ;;  %v7134_v55 = vpack.c.bf16 %v4600_v48, %v4596_v15  ;;  %v4629_v15 = vld [vmem:[#allocation11 + $0x220] sm:$0xff]  ;;  %v4634_v48 = vld [vmem:[#allocation11 + $0x248] sm:$0xff] }
 0x90e   :  { %v4226_v61 = vadd.f32 %v4225_v49, %v4224_v4  ;;  %v7070_v49 = vpack.c.bf16 %v4598_v40, %v4594_v37  ;;  %v4593_v4 = vld [vmem:[#allocation11 + $0x100] sm:$0xff]  ;;  %v4619_v37 = vld [vmem:[#allocation11 + $0x1d0] sm:$0xff] }
 0x90f   :  { %v4623_v40 = vld [vmem:[#allocation11 + $0x1f0] sm:$0xff] }
 0x910   :  { %7531 = vtanh.f32 %v4226_v61  ;;  %v8127_v51 = vsel %vm3922_vm15, %v4226_v61, %v8083_v9  ;;  %v4597_v61 = vld [vmem:[#allocation11 + $0x120] sm:$0xff] }
 0x911   :  { %v7072_v57 = vpack.c.bf16 %v4597_v61, %v4593_v4  ;;  %v7148_v4 = vpack.c.bf16 %v4623_v40, %v4619_v37  ;;  %v4664_v37 = vld [vmem:[#allocation11 + $0x338] sm:$0xff] }
 0x91a   :  { %v7532_v58 = vpop.eup %7531 }
 0x91b   :  { %v4228_v2 = vmul.f32 %v7532_v58, %v7530_v53  ;;  %v7132_v53 = vpack.c.bf16 %v4591_v25, %v4587_v45  ;;  %v4604_v58 = vld [vmem:[#allocation11 + $0x158] sm:$0xff] }
 0x91c   :  { %v4632_v45 = vld [vmem:[#allocation11 + $0x238] sm:$0xff] }
 0x91d   :  { %5258 = vmatmul.mubr.msk.f32.vlgmr.msra.gmra.mrb[26].mxu0 %vm3922_vm15, %v4228_v2  ;;  %5259 = vmatmul.mubr.msk.f32.vlgmr.msra.gmra.mrb[26].mxu1 %vm3922_vm15, %v4228_v2  ;;  %v4231_v9 = vsel %vm3922_vm15, %v4228_v2, %v8092_v43  ;;  %v4579_v43 = vld [vmem:[#allocation11 + $0x90] sm:$0xff]  ;;  %v4605_v2 = vld [vmem:[#allocation11 + $0x160] sm:$0xff] }
 0x91e   :  { %7057 = vmatpush1.bf16.msra.mxu0 %v7056_v62  ;;  %4757 = vmatprep.mubr.f32.mxu0 %v4231_v9  ;;  %v7128_v41 = vpack.c.bf16 %v4583_v21, %v4579_v43  ;;  %v4608_v62 = vld [vmem:[#allocation11 + $0x178] sm:$0xff] }
 0x91f   :  { %4828 = vmatprep.mubr.f32.mxu1 %v4231_v9  ;;  %7059 = vmatprep.subr.bf16.mxu0 %v7058_v3  ;;  %v4610_v3 = vld [vmem:[#allocation11 + $0x188] sm:$0xff]  ;;  %v7138_v39 = vpack.c.bf16 %v4608_v62, %v4604_v58  ;;  %v7076_v9 = vpack.c.bf16 %v4605_v2, %v4601_v60  ;;  %v4624_v43 = vld [vmem:[#allocation11 + $0x1f8] sm:$0xff]  ;;  %v4637_v58 = vld [vmem:[#allocation11 + $0x260] sm:$0xff]  ;;  %v7152_v60 = vpack.c.bf16 %v4631_v30, %v4627_v52 }
 0x920   :  { %7121 = vmatpush1.bf16.msra.mxu1 %v7120_v7  ;;  %v4607_v7 = vld [vmem:[#allocation11 + $0x170] sm:$0xff]  ;;  %v7078_v10 = vpack.c.bf16 %v4614_v0, %v4610_v3  ;;  %v4642_v62 = vld [vmem:[#allocation11 + $0x288] sm:$0xff]  ;;  %v4672_v52 = vld [vmem:[#allocation11 + $0x378] sm:$0xff] }
 0x921   :  { %7123 = vmatprep.subr.bf16.mxu1 %v7122_v8  ;;  %v4612_v8 = vld [vmem:[#allocation11 + $0x198] sm:$0xff]  ;;  %v7140_v14 = vpack.c.bf16 %v4607_v7, %v4603_v5  ;;  %v4635_v3 = vld [vmem:[#allocation11 + $0x250] sm:$0xff] }
 0x922   :  { %7061 = vmatpush1.bf16.msra.mxu0 %v7060_v11  ;;  %v4609_v11 = vld [vmem:[#allocation11 + $0x180] sm:$0xff]  ;;  %v7142_v17 = vpack.c.bf16 %v4616_v19, %v4612_v8  ;;  %v4639_v0 = vld [vmem:[#allocation11 + $0x270] sm:$0xff]  ;;  %v4648_v5 = vld [vmem:[#allocation11 + $0x2b8] sm:$0xff] }
 0x923   :  { %7063 = vmatprep.subr.bf16.mxu0 %v7062_v59  ;;  %v4622_v59 = vld [vmem:[#allocation11 + $0x1e8] sm:$0xff]  ;;  %v4645_v8 = vld [vmem:[#allocation11 + $0x2a0] sm:$0xff] }
 0x924   :  { %7125 = vmatpush1.bf16.msra.mxu1 %v7124_v1  ;;  %v7080_v1 = vpack.c.bf16 %v4613_v12, %v4609_v11  ;;  %v7082_v21 = vpack.c.bf16 %v4622_v59, %v4618_v35  ;;  %v4650_v19 = vld [vmem:[#allocation11 + $0x2c8] sm:$0xff]  ;;  %v7156_v11 = vpack.c.bf16 %v4639_v0, %v4635_v3  ;;  %v4643_v35 = vld [vmem:[#allocation11 + $0x290] sm:$0xff]  ;;  %v4680_v3 = vld [vmem:[#allocation11 + $0x3b8] sm:$0xff] }
 0x925   :  { %7127 = vmatprep.subr.bf16.mxu1 %v7126_v20  ;;  %v4620_v20 = vld [vmem:[#allocation11 + $0x1d8] sm:$0xff]  ;;  %v4647_v59 = vld [vmem:[#allocation11 + $0x2b0] sm:$0xff] }
 0x926   :  { %7065 = vmatpush1.bf16.msra.mxu0 %v7064_v22  ;;  %v4617_v22 = vld [vmem:[#allocation11 + $0x1c0] sm:$0xff]  ;;  %v7146_v32 = vpack.c.bf16 %v4624_v43, %v4620_v20  ;;  %v4658_v43 = vld [vmem:[#allocation11 + $0x308] sm:$0xff] }
 0x927   :  { %7067 = vmatprep.subr.bf16.mxu0 %v7066_v23  ;;  %v4630_v23 = vld [vmem:[#allocation11 + $0x228] sm:$0xff]  ;;  %v4653_v20 = vld [vmem:[#allocation11 + $0x2e0] sm:$0xff] }
 0x928   :  { %7129 = vmatpush1.bf16.msra.mxu1 %v7128_v41  ;;  %v7084_v41 = vpack.c.bf16 %v4621_v26, %v4617_v22  ;;  %v7086_v25 = vpack.c.bf16 %v4630_v23, %v4626_v56  ;;  %v7160_v22 = vpack.c.bf16 %v4647_v59, %v4643_v35  ;;  %v4651_v56 = vld [vmem:[#allocation11 + $0x2d0] sm:$0xff]  ;;  %v4688_v35 = vld [vmem:[#allocation11 + $0x3f8] sm:$0xff] }
 0x929   :  { %7131 = vmatprep.subr.bf16.mxu1 %v7130_v44  ;;  %v4628_v44 = vld [vmem:[#allocation11 + $0x218] sm:$0xff]  ;;  %v4655_v23 = vld [vmem:[#allocation11 + $0x2f0] sm:$0xff] }
 0x92a   :  { %7069 = vmatpush1.bf16.msra.mxu0 %v7068_v24  ;;  %v4625_v24 = vld [vmem:[#allocation11 + $0x200] sm:$0xff]  ;;  %v7150_v61 = vpack.c.bf16 %v4632_v45, %v4628_v44  ;;  %v4666_v45 = vld [vmem:[#allocation11 + $0x348] sm:$0xff] }
 0x92b   :  { %7071 = vmatprep.subr.bf16.mxu0 %v7070_v49  ;;  %v4638_v49 = vld [vmem:[#allocation11 + $0x268] sm:$0xff]  ;;  %v4661_v44 = vld [vmem:[#allocation11 + $0x320] sm:$0xff] }
 0x92c   :  { %7133 = vmatpush1.bf16.msra.mxu1 %v7132_v53  ;;  %v7088_v53 = vpack.c.bf16 %v4629_v15, %v4625_v24  ;;  %v7090_v54 = vpack.c.bf16 %v4638_v49, %v4634_v48  ;;  %v7164_v24 = vpack.c.bf16 %v4655_v23, %v4651_v56  ;;  %v4659_v48 = vld [vmem:[#allocation11 + $0x310] sm:$0xff]  ;;  %v4875_v56 = vld [vmem:[#allocation11 + $0x428] sm:$0xff]  ;;  %v4873_v23 = vld [vmem:[#allocation11 + $0x418] sm:$0xff] }
 0x92d   :  { %7135 = vmatprep.subr.bf16.mxu1 %v7134_v55  ;;  %v4636_v55 = vld [vmem:[#allocation11 + $0x258] sm:$0xff]  ;;  %v4663_v49 = vld [vmem:[#allocation11 + $0x330] sm:$0xff] }
 0x92e   :  { %7073 = vmatpush1.bf16.msra.mxu0 %v7072_v57  ;;  %v4633_v57 = vld [vmem:[#allocation11 + $0x240] sm:$0xff]  ;;  %v7154_v2 = vpack.c.bf16 %v4640_v6, %v4636_v55  ;;  %v4674_v6 = vld [vmem:[#allocation11 + $0x388] sm:$0xff] }
 0x92f   :  { %7075 = vmatprep.subr.bf16.mxu0 %v7074_v38  ;;  %v4646_v38 = vld [vmem:[#allocation11 + $0x2a8] sm:$0xff]  ;;  %v4669_v55 = vld [vmem:[#allocation11 + $0x360] sm:$0xff] }
 0x930   :  { %7137 = vmatpush1.bf16.msra.mxu1 %v7136_v63  ;;  %v7092_v63 = vpack.c.bf16 %v4637_v58, %v4633_v57  ;;  %v7094_v7 = vpack.c.bf16 %v4646_v38, %v4642_v62  ;;  %v7168_v57 = vpack.c.bf16 %v4663_v49, %v4659_v48  ;;  %v4667_v62 = vld [vmem:[#allocation11 + $0x350] sm:$0xff]  ;;  %v4883_v48 = vld [vmem:[#allocation11 + $0x468] sm:$0xff]  ;;  %v4881_v49 = vld [vmem:[#allocation11 + $0x458] sm:$0xff] }
 0x931   :  { %7139 = vmatprep.subr.bf16.mxu1 %v7138_v39  ;;  %v4644_v39 = vld [vmem:[#allocation11 + $0x298] sm:$0xff]  ;;  %v4671_v38 = vld [vmem:[#allocation11 + $0x370] sm:$0xff] }
 0x932   :  { %7077 = vmatpush1.bf16.msra.mxu0 %v7076_v9  ;;  %v4641_v9 = vld [vmem:[#allocation11 + $0x280] sm:$0xff]  ;;  %v7158_v12 = vpack.c.bf16 %v4648_v5, %v4644_v39  ;;  %v4682_v5 = vld [vmem:[#allocation11 + $0x3c8] sm:$0xff] }
 0x933   :  { %7079 = vmatprep.subr.bf16.mxu0 %v7078_v10  ;;  %v4654_v10 = vld [vmem:[#allocation11 + $0x2e8] sm:$0xff]  ;;  %v4677_v39 = vld [vmem:[#allocation11 + $0x3a0] sm:$0xff] }
 0x934   :  { %7141 = vmatpush1.bf16.msra.mxu1 %v7140_v14  ;;  %v7096_v14 = vpack.c.bf16 %v4645_v8, %v4641_v9  ;;  %v7098_v47 = vpack.c.bf16 %v4654_v10, %v4650_v19  ;;  %v7172_v9 = vpack.c.bf16 %v4671_v38, %v4667_v62  ;;  %v4675_v19 = vld [vmem:[#allocation11 + $0x390] sm:$0xff]  ;;  %v4891_v62 = vld [vmem:[#allocation11 + $0x4a8] sm:$0xff]  ;;  %v4889_v38 = vld [vmem:[#allocation11 + $0x498] sm:$0xff] }
 0x935   :  { %7143 = vmatprep.subr.bf16.mxu1 %v7142_v17  ;;  %v4652_v17 = vld [vmem:[#allocation11 + $0x2d8] sm:$0xff]  ;;  %v4679_v10 = vld [vmem:[#allocation11 + $0x3b0] sm:$0xff] }
 0x936   :  { %7081 = vmatpush1.bf16.msra.mxu0 %v7080_v1  ;;  %v4649_v1 = vld [vmem:[#allocation11 + $0x2c0] sm:$0xff]  ;;  %v7162_v26 = vpack.c.bf16 %v4656_v18, %v4652_v17  ;;  %v7176_v18 = vpack.c.bf16 %v4679_v10, %v4675_v19 }
 0x937   :  { %7083 = vmatprep.subr.bf16.mxu0 %v7082_v21  ;;  %v4662_v21 = vld [vmem:[#allocation11 + $0x328] sm:$0xff]  ;;  %v4685_v17 = vld [vmem:[#allocation11 + $0x3e0] sm:$0xff] }
 0x938   :  { %7145 = vmatpush1.bf16.msra.mxu1 %v7144_v31  ;;  %v7100_v31 = vpack.c.bf16 %v4653_v20, %v4649_v1  ;;  %v7102_v40 = vpack.c.bf16 %v4662_v21, %v4658_v43  ;;  %v4683_v1 = vld [vmem:[#allocation11 + $0x3d0] sm:$0xff] }
 0x939   :  { %7147 = vmatprep.subr.bf16.mxu1 %v7146_v32  ;;  %v4660_v32 = vld [vmem:[#allocation11 + $0x318] sm:$0xff]  ;;  %v4687_v20 = vld [vmem:[#allocation11 + $0x3f0] sm:$0xff] }
 0x93a   :  { %7085 = vmatpush1.bf16.msra.mxu0 %v7084_v41  ;;  %v4657_v41 = vld [vmem:[#allocation11 + $0x300] sm:$0xff]  ;;  %v7166_v15 = vpack.c.bf16 %v4664_v37, %v4660_v32  ;;  %v7180_v21 = vpack.c.bf16 %v4687_v20, %v4683_v1  ;;  %v4877_v32 = vld [vmem:[#allocation11 + $0x438] sm:$0xff]  ;;  %v4903_v1 = vld [vmem:[#allocation11 + $0x508] sm:$0xff] }
 0x93b   :  { %7087 = vmatprep.subr.bf16.mxu0 %v7086_v25  ;;  %v4670_v25 = vld [vmem:[#allocation11 + $0x368] sm:$0xff]  ;;  %v4870_v37 = vld [vmem:[#allocation11 + $0x400] sm:$0xff] }
 0x93c   :  { %7149 = vmatpush1.bf16.msra.mxu1 %v7148_v4  ;;  %v7104_v4 = vpack.c.bf16 %v4661_v44, %v4657_v41  ;;  %v7106_v30 = vpack.c.bf16 %v4670_v25, %v4666_v45  ;;  %v7246_v41 = vpack.c.bf16 %v4877_v32, %v4873_v23  ;;  %v4872_v45 = vld [vmem:[#allocation11 + $0x410] sm:$0xff]  ;;  %v4907_v20 = vld [vmem:[#allocation11 + $0x528] sm:$0xff]  ;;  %v4902_v23 = vld [vmem:[#allocation11 + $0x500] sm:$0xff] }
 0x93d   :  { %7151 = vmatprep.subr.bf16.mxu1 %v7150_v61  ;;  %v4668_v61 = vld [vmem:[#allocation11 + $0x358] sm:$0xff]  ;;  %v4876_v25 = vld [vmem:[#allocation11 + $0x430] sm:$0xff] }
 0x93e   :  { %7089 = vmatpush1.bf16.msra.mxu0 %v7088_v53  ;;  %v4665_v53 = vld [vmem:[#allocation11 + $0x340] sm:$0xff]  ;;  %v7170_v58 = vpack.c.bf16 %v4672_v52, %v4668_v61  ;;  %v4885_v61 = vld [vmem:[#allocation11 + $0x478] sm:$0xff]  ;;  %v4904_v32 = vld [vmem:[#allocation11 + $0x510] sm:$0xff] }
 0x93f   :  { %7091 = vmatprep.subr.bf16.mxu0 %v7090_v54  ;;  %v4678_v54 = vld [vmem:[#allocation11 + $0x3a8] sm:$0xff]  ;;  %v4878_v52 = vld [vmem:[#allocation11 + $0x440] sm:$0xff] }
 0x940   :  { %7153 = vmatpush1.bf16.msra.mxu1 %v7152_v60  ;;  %v7108_v60 = vpack.c.bf16 %v4669_v55, %v4665_v53  ;;  %v7110_v0 = vpack.c.bf16 %v4678_v54, %v4674_v6  ;;  %v7250_v53 = vpack.c.bf16 %v4885_v61, %v4881_v49  ;;  %v4880_v6 = vld [vmem:[#allocation11 + $0x450] sm:$0xff]  ;;  %v4914_v49 = vld [vmem:[#allocation11 + $0x560] sm:$0xff] }
 0x941   :  { %7155 = vmatprep.subr.bf16.mxu1 %v7154_v2  ;;  %v4676_v2 = vld [vmem:[#allocation11 + $0x398] sm:$0xff]  ;;  %v4884_v54 = vld [vmem:[#allocation11 + $0x470] sm:$0xff] }
 0x942   :  { %7093 = vmatpush1.bf16.msra.mxu0 %v7092_v63  ;;  %v4673_v63 = vld [vmem:[#allocation11 + $0x380] sm:$0xff]  ;;  %v7174_v8 = vpack.c.bf16 %v4680_v3, %v4676_v2 }
 0x943   :  { %7095 = vmatprep.subr.bf16.mxu0 %v7094_v7  ;;  %v4686_v7 = vld [vmem:[#allocation11 + $0x3e8] sm:$0xff] }
 0x944   :  { %7157 = vmatpush1.bf16.msra.mxu1 %v7156_v11  ;;  %v7112_v11 = vpack.c.bf16 %v4677_v39, %v4673_v63  ;;  %v7114_v59 = vpack.c.bf16 %v4686_v7, %v4682_v5  ;;  %v4890_v63 = vld [vmem:[#allocation11 + $0x4a0] sm:$0xff]  ;;  %v4888_v39 = vld [vmem:[#allocation11 + $0x490] sm:$0xff] }
 0x945   :  { %7159 = vmatprep.subr.bf16.mxu1 %v7158_v12  ;;  %v4684_v12 = vld [vmem:[#allocation11 + $0x3d8] sm:$0xff]  ;;  %v4892_v7 = vld [vmem:[#allocation11 + $0x4b0] sm:$0xff] }
 0x946   :  { %7097 = vmatpush1.bf16.msra.mxu0 %v7096_v14  ;;  %v4681_v14 = vld [vmem:[#allocation11 + $0x3c0] sm:$0xff]  ;;  %v7256_v19 = vpack.c.bf16 %v4892_v7, %v4888_v39  ;;  %v4927_v39 = vld [vmem:[#allocation11 + $0x5c8] sm:$0xff]  ;;  %v4929_v7 = vld [vmem:[#allocation11 + $0x5d8] sm:$0xff] }
 0x947   :  { %7099 = vmatprep.subr.bf16.mxu0 %v7098_v47  ;;  %v7178_v47 = vpack.c.bf16 %v4688_v35, %v4684_v12  ;;  %v7116_v43 = vpack.c.bf16 %v4685_v17, %v4681_v14  ;;  %v4901_v12 = vld [vmem:[#allocation11 + $0x4f8] sm:$0xff]  ;;  %v4894_v35 = vld [vmem:[#allocation11 + $0x4c0] sm:$0xff]  ;;  %v4896_v17 = vld [vmem:[#allocation11 + $0x4d0] sm:$0xff] }
 0x948   :  { %7161 = vmatpush1.bf16.msra.mxu1 %v7160_v22  ;;  %v4554_v22 = vld [vmem:[#allocation6 + $0x38] sm:$0xff]  ;;  %v4898_v14 = vld [vmem:[#allocation11 + $0x4e0] sm:$0xff] }
 0x949   :  { %7163 = vmatprep.subr.bf16.mxu1 %v7162_v26  ;;  %v4871_v26 = vld [vmem:[#allocation11 + $0x408] sm:$0xff] }
 0x94a   :  { %7101 = vmatpush1.bf16.msra.mxu0 %v7100_v31  ;;  %v7182_v31 = vpack.c.bf16 %v4875_v56, %v4871_v26  ;;  %v4909_v26 = vld [vmem:[#allocation11 + $0x538] sm:$0xff] }
 0x94b   :  { %7103 = vmatprep.subr.bf16.mxu0 %v7102_v40  ;;  %v4874_v40 = vld [vmem:[#allocation11 + $0x420] sm:$0xff] }
 0x94c   :  { %7165 = vmatpush1.bf16.msra.mxu1 %v7164_v24  ;;  %v7184_v44 = vpack.c.bf16 %v4874_v40, %v4870_v37  ;;  %v7248_v24 = vpack.c.bf16 %v4876_v25, %v4872_v45  ;;  %v4908_v40 = vld [vmem:[#allocation11 + $0x530] sm:$0xff]  ;;  %v4915_v45 = vld [vmem:[#allocation11 + $0x568] sm:$0xff]  ;;  %v4913_v25 = vld [vmem:[#allocation11 + $0x558] sm:$0xff] }
 0x94d   :  { %7167 = vmatprep.subr.bf16.mxu1 %v7166_v15  ;;  %v4879_v15 = vld [vmem:[#allocation11 + $0x448] sm:$0xff] }
 0x94e   :  { %7105 = vmatpush1.bf16.msra.mxu0 %v7104_v4  ;;  %v7186_v4 = vpack.c.bf16 %v4883_v48, %v4879_v15  ;;  %v4917_v15 = vld [vmem:[#allocation11 + $0x578] sm:$0xff]  ;;  %v4910_v48 = vld [vmem:[#allocation11 + $0x540] sm:$0xff] }
 0x94f   :  { %7107 = vmatprep.subr.bf16.mxu0 %v7106_v30  ;;  %v4882_v30 = vld [vmem:[#allocation11 + $0x460] sm:$0xff]  ;;  %v7204_v61 = vpack.c.bf16 %v4914_v49, %v4910_v48  ;;  %v4944_v48 = vld [vmem:[#allocation11 + $0x650] sm:$0xff] }
 0x950   :  { %7169 = vmatpush1.bf16.msra.mxu1 %v7168_v57  ;;  %v7188_v55 = vpack.c.bf16 %v4882_v30, %v4878_v52  ;;  %v4887_v57 = vld [vmem:[#allocation11 + $0x488] sm:$0xff]  ;;  %v4912_v52 = vld [vmem:[#allocation11 + $0x550] sm:$0xff] }
 0x951   :  { %7171 = vmatprep.subr.bf16.mxu1 %v7170_v58  ;;  %v7252_v58 = vpack.c.bf16 %v4884_v54, %v4880_v6  ;;  %v7190_v2 = vpack.c.bf16 %v4891_v62, %v4887_v57  ;;  %v4916_v30 = vld [vmem:[#allocation11 + $0x570] sm:$0xff]  ;;  %v4923_v6 = vld [vmem:[#allocation11 + $0x5a8] sm:$0xff]  ;;  %v4921_v54 = vld [vmem:[#allocation11 + $0x598] sm:$0xff] }
 0x952   :  { %7109 = vmatpush1.bf16.msra.mxu0 %v7108_v60  ;;  %v4893_v60 = vld [vmem:[#allocation11 + $0x4b8] sm:$0xff]  ;;  %v4918_v62 = vld [vmem:[#allocation11 + $0x580] sm:$0xff]  ;;  %v4948_v49 = vld [vmem:[#allocation11 + $0x670] sm:$0xff] }
 0x953   :  { %7111 = vmatprep.subr.bf16.mxu0 %v7110_v0  ;;  %v7254_v3 = vpack.c.bf16 %v4893_v60, %v4889_v38  ;;  %v4886_v0 = vld [vmem:[#allocation11 + $0x480] sm:$0xff] }
 0x954   :  { %7173 = vmatpush1.bf16.msra.mxu1 %v7172_v9  ;;  %v7192_v5 = vpack.c.bf16 %v4890_v63, %v4886_v0  ;;  %v4895_v9 = vld [vmem:[#allocation11 + $0x4c8] sm:$0xff]  ;;  %v4922_v38 = vld [vmem:[#allocation11 + $0x5a0] sm:$0xff]  ;;  %v4924_v0 = vld [vmem:[#allocation11 + $0x5b0] sm:$0xff] }
 0x955   :  { %7175 = vmatprep.subr.bf16.mxu1 %v7174_v8  ;;  %v4899_v8 = vld [vmem:[#allocation11 + $0x4e8] sm:$0xff] }
 0x956   :  { %7113 = vmatpush1.bf16.msra.mxu0 %v7112_v11  ;;  %v7194_v10 = vpack.c.bf16 %v4899_v8, %v4895_v9  ;;  %v4897_v11 = vld [vmem:[#allocation11 + $0x4d8] sm:$0xff] }
 0x957   :  { %7115 = vmatprep.subr.bf16.mxu0 %v7114_v59  ;;  %v7258_v59 = vpack.c.bf16 %v4901_v12, %v4897_v11  ;;  %v4933_v8 = vld [vmem:[#allocation11 + $0x5f8] sm:$0xff] }
 0x958   :  { %7177 = vmatpush1.bf16.msra.mxu1 %v7176_v18  ;;  %v4900_v18 = vld [vmem:[#allocation11 + $0x4f0] sm:$0xff]  ;;  %v7274_v11 = vpack.c.bf16 %v4933_v8, %v4929_v7  ;;  %v4962_v7 = vld [vmem:[#allocation11 + $0x6e0] sm:$0xff] }
 0x959   :  { %7179 = vmatprep.subr.bf16.mxu1 %v7178_v47  ;;  %v7196_v47 = vpack.c.bf16 %v4898_v14, %v4894_v35  ;;  %v4928_v35 = vld [vmem:[#allocation11 + $0x5d0] sm:$0xff] }
 0x95a   :  { %7117 = vmatpush1.bf16.msra.mxu0 %v7116_v43  ;;  %v4905_v43 = vld [vmem:[#allocation11 + $0x518] sm:$0xff] }
 0x95b   :  { %7183 = vmatprep.subr.bf16.mxu0 %v7182_v31  ;;  %v7262_v56 = vpack.c.bf16 %v4909_v26, %v4905_v43  ;;  %v4906_v31 = vld [vmem:[#allocation11 + $0x520] sm:$0xff] }
 0x95c   :  { %7181 = vmatpush1.bf16.msra.mxu1 %v7180_v21  ;;  %v7260_v21 = vpack.c.bf16 %v4900_v18, %v4896_v17  ;;  %v7200_v37 = vpack.c.bf16 %v4906_v31, %v4902_v23  ;;  %v4935_v17 = vld [vmem:[#allocation11 + $0x608] sm:$0xff]  ;;  %v4934_v43 = vld [vmem:[#allocation11 + $0x600] sm:$0xff]  ;;  %v4940_v23 = vld [vmem:[#allocation11 + $0x630] sm:$0xff] }
 0x95d   :  { %4758 = vmatmul.mubr.f32.vlgmr.msra.gmra.mrb[28].mxu0 %v4554_v22  ;;  %7247 = vmatprep.subr.bf16.mxu1 %v7246_v41  ;;  %v7264_v41 = vpack.c.bf16 %v4908_v40, %v4904_v32  ;;  %v4939_v18 = vld [vmem:[#allocation11 + $0x628] sm:$0xff]  ;;  %v4945_v40 = vld [vmem:[#allocation11 + $0x658] sm:$0xff] }
 0x95e   :  { %7185 = vmatpush1.bf16.msra.mxu0 %v7184_v44  ;;  %v4911_v44 = vld [vmem:[#allocation11 + $0x548] sm:$0xff] }
 0x95f   :  { %4829 = vmatmul.mubr.f32.vlgmr.msra.gmra.mrb[28].mxu1 %v4554_v22  ;;  %7187 = vmatprep.subr.bf16.mxu0 %v7186_v4  ;;  %v7198_v22 = vpack.c.bf16 %v4907_v20, %v4903_v1  ;;  %v7266_v4 = vpack.c.bf16 %v4917_v15, %v4913_v25  ;;  %v7214_v1 = vpack.c.bf16 %v4939_v18, %v4935_v17  ;;  %v4941_v20 = vld [vmem:[#allocation11 + $0x638] sm:$0xff]  ;;  %v4943_v32 = vld [vmem:[#allocation11 + $0x648] sm:$0xff]  ;;  %v4946_v25 = vld [vmem:[#allocation11 + $0x660] sm:$0xff] }
 0x960   :  { %7249 = vmatpush1.bf16.msra.mxu1 %v7248_v24  ;;  %v7202_v24 = vpack.c.bf16 %v4915_v45, %v4911_v44  ;;  %v4949_v44 = vld [vmem:[#allocation11 + $0x678] sm:$0xff]  ;;  %v4942_v45 = vld [vmem:[#allocation11 + $0x640] sm:$0xff] }
 0x961   :  { %7251 = vmatprep.subr.bf16.mxu1 %v7250_v53  ;;  %v7268_v53 = vpack.c.bf16 %v4916_v30, %v4912_v52  ;;  %v7220_v15 = vpack.c.bf16 %v4946_v25, %v4942_v45  ;;  %v4955_v52 = vld [vmem:[#allocation11 + $0x6a8] sm:$0xff]  ;;  %v4953_v30 = vld [vmem:[#allocation11 + $0x698] sm:$0xff]  ;;  %v4966_v18 = vld [vmem:[#allocation11 + $0x700] sm:$0xff] }
 0x962   :  { %7189 = vmatpush1.bf16.msra.mxu0 %v7188_v55  ;;  %v4919_v55 = vld [vmem:[#allocation11 + $0x588] sm:$0xff]  ;;  %v4973_v17 = vld [vmem:[#allocation11 + $0x738] sm:$0xff]  ;;  %v4976_v45 = vld [vmem:[#allocation11 + $0x750] sm:$0xff] }
 0x963   :  { %7191 = vmatprep.subr.bf16.mxu0 %v7190_v2  ;;  %v7206_v57 = vpack.c.bf16 %v4923_v6, %v4919_v55  ;;  %v7208_v2 = vpack.c.bf16 %v4922_v38, %v4918_v62  ;;  %v4957_v55 = vld [vmem:[#allocation11 + $0x6b8] sm:$0xff]  ;;  %v4950_v6 = vld [vmem:[#allocation11 + $0x680] sm:$0xff]  ;;  %v4952_v62 = vld [vmem:[#allocation11 + $0x690] sm:$0xff] }
 0x964   :  { %7253 = vmatpush1.bf16.msra.mxu1 %v7252_v58  ;;  %v4925_v58 = vld [vmem:[#allocation11 + $0x5b8] sm:$0xff]  ;;  %v4956_v38 = vld [vmem:[#allocation11 + $0x6b0] sm:$0xff] }
 0x965   :  { %7255 = vmatprep.subr.bf16.mxu1 %v7254_v3  ;;  %v7270_v60 = vpack.c.bf16 %v4925_v58, %v4921_v54  ;;  %v4920_v3 = vld [vmem:[#allocation11 + $0x590] sm:$0xff]  ;;  %v4954_v54 = vld [vmem:[#allocation11 + $0x6a0] sm:$0xff] }
 0x966   :  { %7193 = vmatpush1.bf16.msra.mxu0 %v7192_v5  ;;  %v7272_v63 = vpack.c.bf16 %v4924_v0, %v4920_v3  ;;  %v4931_v5 = vld [vmem:[#allocation11 + $0x5e8] sm:$0xff]  ;;  %v7224_v58 = vpack.c.bf16 %v4954_v54, %v4950_v6  ;;  %v4961_v0 = vld [vmem:[#allocation11 + $0x6d8] sm:$0xff]  ;;  %v4980_v25 = vld [vmem:[#allocation11 + $0x770] sm:$0xff] }
 0x967   :  { %7195 = vmatprep.subr.bf16.mxu0 %v7194_v10  ;;  %v7210_v9 = vpack.c.bf16 %v4931_v5, %v4927_v39  ;;  %v4930_v10 = vld [vmem:[#allocation11 + $0x5e0] sm:$0xff]  ;;  %v4963_v3 = vld [vmem:[#allocation11 + $0x6e8] sm:$0xff]  ;;  %v4965_v39 = vld [vmem:[#allocation11 + $0x6f8] sm:$0xff] }
 0x968   :  { %7257 = vmatpush1.bf16.msra.mxu1 %v7256_v19  ;;  %v4926_v19 = vld [vmem:[#allocation11 + $0x5c0] sm:$0xff]  ;;  %v4988_v54 = vld [vmem:[#allocation11 + $0x7b0] sm:$0xff] }
 0x969   :  { %7259 = vmatprep.subr.bf16.mxu1 %v7258_v59  ;;  %v7212_v12 = vpack.c.bf16 %v4930_v10, %v4926_v19  ;;  %v4932_v59 = vld [vmem:[#allocation11 + $0x5f0] sm:$0xff]  ;;  %v4958_v5 = vld [vmem:[#allocation11 + $0x6c0] sm:$0xff] }
 0x96a   :  { %7197 = vmatpush1.bf16.msra.mxu0 %v7196_v47  ;;  %v7276_v14 = vpack.c.bf16 %v4932_v59, %v4928_v35  ;;  %v4937_v47 = vld [vmem:[#allocation11 + $0x618] sm:$0xff]  ;;  %v7228_v8 = vpack.c.bf16 %v4962_v7, %v4958_v5  ;;  %v4960_v19 = vld [vmem:[#allocation11 + $0x6d0] sm:$0xff]  ;;  %v4971_v35 = vld [vmem:[#allocation11 + $0x728] sm:$0xff] }
 0x96b   :  { %7199 = vmatprep.subr.bf16.mxu0 %v7198_v22  ;;  %v7278_v22 = vpack.c.bf16 %v4941_v20, %v4937_v47  ;;  %v4964_v10 = vld [vmem:[#allocation11 + $0x6f0] sm:$0xff]  ;;  %v4969_v59 = vld [vmem:[#allocation11 + $0x718] sm:$0xff]  ;;  %v4970_v47 = vld [vmem:[#allocation11 + $0x720] sm:$0xff] }
 0x96c   :  { %7261 = vmatpush1.bf16.msra.mxu1 %v7260_v21  ;;  %v4938_v21 = vld [vmem:[#allocation11 + $0x620] sm:$0xff]  ;;  %v7232_v20 = vpack.c.bf16 %v4970_v47, %v4966_v18  ;;  %v4996_v5 = vld [vmem:[#allocation11 + $0x7f0] sm:$0xff] }
 0x96d   :  { %7263 = vmatprep.subr.bf16.mxu1 %v7262_v56  ;;  %v7216_v26 = vpack.c.bf16 %v4938_v21, %v4934_v43  ;;  %v4936_v56 = vld [vmem:[#allocation11 + $0x610] sm:$0xff] }
 0x96e   :  { %7201 = vmatpush1.bf16.msra.mxu0 %v7200_v37  ;;  %v7280_v31 = vpack.c.bf16 %v4940_v23, %v4936_v56  ;;  %v4947_v37 = vld [vmem:[#allocation11 + $0x668] sm:$0xff]  ;;  %v4968_v43 = vld [vmem:[#allocation11 + $0x710] sm:$0xff]  ;;  %v4977_v23 = vld [vmem:[#allocation11 + $0x758] sm:$0xff] }
 0x96f   :  { %7203 = vmatprep.subr.bf16.mxu0 %v7202_v24  ;;  %v7282_v24 = vpack.c.bf16 %v4949_v44, %v4945_v40  ;;  %v4972_v21 = vld [vmem:[#allocation11 + $0x730] sm:$0xff]  ;;  %v4979_v56 = vld [vmem:[#allocation11 + $0x768] sm:$0xff]  ;;  %v4978_v40 = vld [vmem:[#allocation11 + $0x760] sm:$0xff] }
 0x970   :  { %7265 = vmatpush1.bf16.msra.mxu1 %v7264_v41  ;;  %v7218_v41 = vpack.c.bf16 %v4947_v37, %v4943_v32  ;;  %v4981_v32 = vld [vmem:[#allocation11 + $0x778] sm:$0xff]  ;;  %v4974_v37 = vld [vmem:[#allocation11 + $0x740] sm:$0xff] }
 0x971   :  { %7267 = vmatprep.subr.bf16.mxu1 %v7266_v4  ;;  %v7284_v4 = vpack.c.bf16 %v4948_v49, %v4944_v48  ;;  %v7236_v44 = vpack.c.bf16 %v4978_v40, %v4974_v37  ;;  %v4987_v48 = vld [vmem:[#allocation11 + $0x7a8] sm:$0xff]  ;;  %v4985_v49 = vld [vmem:[#allocation11 + $0x798] sm:$0xff] }
 0x972   :  { %7205 = vmatpush1.bf16.msra.mxu0 %v7204_v61  ;;  %v4951_v61 = vld [vmem:[#allocation11 + $0x688] sm:$0xff] }
 0x973   :  { %7207 = vmatprep.subr.bf16.mxu0 %v7206_v57  ;;  %v7286_v57 = vpack.c.bf16 %v4957_v55, %v4953_v30  ;;  %v4982_v30 = vld [vmem:[#allocation11 + $0x780] sm:$0xff]  ;;  %v4984_v55 = vld [vmem:[#allocation11 + $0x790] sm:$0xff] }
 0x974   :  { %7269 = vmatpush1.bf16.msra.mxu1 %v7268_v53  ;;  %v7222_v53 = vpack.c.bf16 %v4955_v52, %v4951_v61 }
 0x975   :  { %7271 = vmatprep.subr.bf16.mxu1 %v7270_v60  ;;  %v7288_v60 = vpack.c.bf16 %v4956_v38, %v4952_v62  ;;  %v7304_v62 = vpack.c.bf16 %v4988_v54, %v4984_v55 }
 0x976   :  { %7209 = vmatpush1.bf16.msra.mxu0 %v7208_v2  ;;  %v4959_v2 = vld [vmem:[#allocation11 + $0x6c8] sm:$0xff] }
 0x977   :  { %7211 = vmatprep.subr.bf16.mxu0 %v7210_v9  ;;  %v7290_v9 = vpack.c.bf16 %v4965_v39, %v4961_v0  ;;  %v4992_v39 = vld [vmem:[#allocation11 + $0x7d0] sm:$0xff] }
 0x978   :  { %7273 = vmatpush1.bf16.msra.mxu1 %v7272_v63  ;;  %v7226_v63 = vpack.c.bf16 %v4963_v3, %v4959_v2  ;;  %v4997_v2 = vld [vmem:[#allocation11 + $0x7f8] sm:$0xff]  ;;  %v4990_v3 = vld [vmem:[#allocation11 + $0x7c0] sm:$0xff] }
 0x979   :  { %7275 = vmatprep.subr.bf16.mxu1 %v7274_v11  ;;  %v7292_v11 = vpack.c.bf16 %v4964_v10, %v4960_v19 }
 0x97a   :  { %7213 = vmatpush1.bf16.msra.mxu0 %v7212_v12  ;;  %v4967_v12 = vld [vmem:[#allocation11 + $0x708] sm:$0xff] }
 0x97b   :  { %7215 = vmatprep.subr.bf16.mxu0 %v7214_v1  ;;  %v7294_v1 = vpack.c.bf16 %v4973_v17, %v4969_v59 }
 0x97c   :  { %7277 = vmatpush1.bf16.msra.mxu1 %v7276_v14  ;;  %v7230_v14 = vpack.c.bf16 %v4971_v35, %v4967_v12 }
 0x97d   :  { %7279 = vmatprep.subr.bf16.mxu1 %v7278_v22  ;;  %v7296_v22 = vpack.c.bf16 %v4972_v21, %v4968_v43 }
 0x97e   :  { %7217 = vmatpush1.bf16.msra.mxu0 %v7216_v26  ;;  %v4975_v26 = vld [vmem:[#allocation11 + $0x748] sm:$0xff] }
 0x97f   :  { %7219 = vmatprep.subr.bf16.mxu0 %v7218_v41  ;;  %v7298_v41 = vpack.c.bf16 %v4981_v32, %v4977_v23 }
 0x980   :  { %7281 = vmatpush1.bf16.msra.mxu1 %v7280_v31  ;;  %v7234_v31 = vpack.c.bf16 %v4979_v56, %v4975_v26 }
 0x981   :  { %7283 = vmatprep.subr.bf16.mxu1 %v7282_v24  ;;  %v4983_v24 = vld [vmem:[#allocation11 + $0x788] sm:$0xff] }
 0x982   :  { %7221 = vmatpush1.bf16.msra.mxu0 %v7220_v15  ;;  %v7300_v15 = vpack.c.bf16 %v4980_v25, %v4976_v45  ;;  %v7238_v61 = vpack.c.bf16 %v4987_v48, %v4983_v24 }
 0x983   :  { %7223 = vmatprep.subr.bf16.mxu0 %v7222_v53  ;;  %v4986_v53 = vld [vmem:[#allocation11 + $0x7a0] sm:$0xff] }
 0x984   :  { %7285 = vmatpush1.bf16.msra.mxu1 %v7284_v4  ;;  %v4989_v4 = vld [vmem:[#allocation11 + $0x7b8] sm:$0xff]  ;;  %v7240_v6 = vpack.c.bf16 %v4986_v53, %v4982_v30 }
 0x985   :  { %7287 = vmatprep.subr.bf16.mxu1 %v7286_v57  ;;  %v7302_v52 = vpack.c.bf16 %v4989_v4, %v4985_v49  ;;  %v4991_v57 = vld [vmem:[#allocation11 + $0x7c8] sm:$0xff] }
 0x986   :  { %7225 = vmatpush1.bf16.msra.mxu0 %v7224_v58  ;;  %v4995_v58 = vld [vmem:[#allocation11 + $0x7e8] sm:$0xff] }
 0x987   :  { %7227 = vmatprep.subr.bf16.mxu0 %v7226_v63  ;;  %v7242_v38 = vpack.c.bf16 %v4995_v58, %v4991_v57  ;;  %v4994_v63 = vld [vmem:[#allocation11 + $0x7e0] sm:$0xff] }
 0x988   :  { %7289 = vmatpush1.bf16.msra.mxu1 %v7288_v60  ;;  %v4993_v60 = vld [vmem:[#allocation11 + $0x7d8] sm:$0xff]  ;;  %v7244_v7 = vpack.c.bf16 %v4994_v63, %v4990_v3 }
 0x989   :  { %7291 = vmatprep.subr.bf16.mxu1 %v7290_v9  ;;  %v7306_v0 = vpack.c.bf16 %v4997_v2, %v4993_v60  ;;  %v7308_v9 = vpack.c.bf16 %v4996_v5, %v4992_v39 }
 0x98a   :  { %7229 = vmatpush1.bf16.msra.mxu0 %v7228_v8 }
 0x98b   :  { %7231 = vmatprep.subr.bf16.mxu0 %v7230_v14 }
 0x98c   :  { %7293 = vmatpush1.bf16.msra.mxu1 %v7292_v11 }
 0x98d   :  { %7295 = vmatprep.subr.bf16.mxu1 %v7294_v1 }
 0x98e   :  { %7233 = vmatpush1.bf16.msra.mxu0 %v7232_v20 }
 0x98f   :  { %7235 = vmatprep.subr.bf16.mxu0 %v7234_v31 }
 0x990   :  { %7297 = vmatpush1.bf16.msra.mxu1 %v7296_v22 }
 0x991   :  { %7299 = vmatprep.subr.bf16.mxu1 %v7298_v41 }
 0x992   :  { %7237 = vmatpush1.bf16.msra.mxu0 %v7236_v44 }
 0x993   :  { %7239 = vmatprep.subr.bf16.mxu0 %v7238_v61 }
 0x994   :  { %7301 = vmatpush1.bf16.msra.mxu1 %v7300_v15 }
 0x995   :  { %7303 = vmatprep.subr.bf16.mxu1 %v7302_v52 }
 0x996   :  { %7241 = vmatpush1.bf16.msra.mxu0 %v7240_v6 }
 0x997   :  { %7243 = vmatprep.subr.bf16.mxu0 %v7242_v38 }
 0x998   :  { %7305 = vmatpush1.bf16.msra.mxu1 %v7304_v62 }
 0x999   :  { %7307 = vmatprep.subr.bf16.mxu1 %v7306_v0  ;;  %v4551_v0 = vpop.permute.xlu1 %4550 }
 0x99a   :  { %7245 = vmatpush1.bf16.msra.mxu0 %v7244_v7  ;;  %vm4552_vm0 = vcmp.eq.s32.totalorder %v4551_v0, 1 }
 0x99c   :  { %7309 = vmatpush1.bf16.msra.mxu1 %v7308_v9 }
 0x9f0   :  { %v4438_v8 = vpop.f32.mrb[26].mxu0  ;;  %v4509_v19 = vpop.f32.mrb[26].mxu1 }
 0x9f1   :  { %v4439_v10 = vadd.f32 %v4438_v8, %v7857_v33  ;;  %v4440_v11 = vpop.f32.mrb[27].mxu0  ;;  %v4511_v12 = vpop.f32.mrb[27].mxu1  ;;  %v4510_v47 = vadd.f32 %v4509_v19, %v7872_v27 }
 0x9f2   :  { %v4441_v35 = vadd.f32 %v4440_v11, %v7861_v34  ;;  %v4512_v17 = vadd.f32 %v4511_v12, %v7867_v46 }
 0x9f3   :  { %v5233_v59 = vmul.f32 -1.442695, %v4439_v10 }
 0x9f4   :  { %v5234_v14 = vmul.f32 -1.442695, %v4441_v35  ;;  %v5235_v18 = vmul.f32 -1.442695, %v4512_v17 }
 0x9f5   :  { %7533 = vpow2.f32 %v5233_v59 }
 0x9f6   :  { %7535 = vpow2.f32 %v5234_v14 }
 0x9f7   :  { %7537 = vpow2.f32 %v5235_v18 }
 0x9f8   :  { %7539 = vtanh.f32 %v4510_v47 }
 0x9ff   :  { %v7534_v1 = vpop.eup %7533 }
 0xa00   :  { %v7536_v20 = vpop.eup %7535  ;;  %v4517_v43 = vadd.f32 1.0, %v7534_v1 }
 0xa01   :  { %v4523_v21 = vadd.f32 1.0, %v7536_v20  ;;  %v7538_v22 = vpop.eup %7537 }
 0xa02   :  { %7541 = vrcp.f32 %v4517_v43  ;;  %v7540_v26 = vpop.eup %7539  ;;  %v4530_v32 = vadd.f32 1.0, %v7538_v22 }
 0xa03   :  { %7543 = vrcp.f32 %v4523_v21 }
 0xa04   :  { %7545 = vrcp.f32 %v4530_v32 }
 0xa0c   :  { %v7542_v56 = vpop.eup %7541 }
 0xa0d   :  { %v7544_v23 = vpop.eup %7543  ;;  %v4534_v31 = vmul.f32 %v7542_v56, %v7540_v26 }
 0xa0e   :  { %v4533_v37 = vmul.f32 %v7544_v23, %v8104_v13  ;;  %v7546_v44 = vpop.eup %7545 }
 0xa10   :  { %v4535_v40 = vadd.f32 %v4534_v31, %v4533_v37 }
 0xa12   :  { %7547 = vtanh.f32 %v4535_v40  ;;  %v8144_v41 = vsel %vm3922_vm15, %v4535_v40, %v8104_v13 }
 0xa1c   :  { %v7548_v45 = vpop.eup %7547 }
 0xa1d   :  { %v4537_v25 = vmul.f32 %v7548_v45, %v7546_v44 }
 0xa1f   :  { %v4540_v24 = vsel %vm3922_vm15, %v4537_v25, %v8109_v16  ;;  %v4542_v15 = vsel %vm3922_vm15, %v4537_v25, 0.0 }
 0xa20   :  { %4544 = vst.msk [vmem:[#allocation14 + $0x30] sm:$0xff] %vm763_vm5, %v4542_v15  ;;  %5066 = vmatprep.mubr.f32.mxu0 %v4540_v24  ;;  %5137 = vmatprep.mubr.f32.mxu1 %v4540_v24 }
 0xa30   :  { %v4759_v48 = vpop.f32.mrb[28].mxu0 }
 0xa31   :  { %v4760_v49 = vadd.f32 %v4759_v48, %v7815_v28  ;;  %v4761_v4 = vpop.f32.mrb[29].mxu0 }
 0xa32   :  { %v4762_v13 = vadd.f32 %v4761_v4, %v7819_v29  ;;  %v4830_v61 = vpop.f32.mrb[28].mxu1 }
 0xa33   :  { %v5236_v52 = vmul.f32 -1.442695, %v4760_v49  ;;  %v4832_v30 = vpop.f32.mrb[29].mxu1  ;;  %v4831_v55 = vadd.f32 %v4830_v61, %v7832_v42 }
 0xa34   :  { %v5237_v53 = vmul.f32 -1.442695, %v4762_v13  ;;  %v4833_v16 = vadd.f32 %v4832_v30, %v7826_v36 }
 0xa35   :  { %7549 = vpow2.f32 %v5236_v52 }
 0xa36   :  { %7551 = vpow2.f32 %v5237_v53  ;;  %v5238_v50 = vmul.f32 -1.442695, %v4833_v16 }
 0xa38   :  { %7553 = vpow2.f32 %v5238_v50 }
 0xa39   :  { %7555 = vtanh.f32 %v4831_v55 }
 0xa3f   :  { %v7550_v6 = vpop.eup %7549 }
 0xa40   :  { %v7552_v54 = vpop.eup %7551  ;;  %v4838_v57 = vadd.f32 1.0, %v7550_v6 }
 0xa41   :  { %v4844_v28 = vadd.f32 1.0, %v7552_v54 }
 0xa42   :  { %7557 = vrcp.f32 %v4838_v57  ;;  %v7554_v29 = vpop.eup %7553 }
 0xa43   :  { %7559 = vrcp.f32 %v4844_v28  ;;  %v7556_v58 = vpop.eup %7555  ;;  %v4851_v38 = vadd.f32 1.0, %v7554_v29 }
 0xa45   :  { %7561 = vrcp.f32 %v4851_v38 }
 0xa4c   :  { %v7558_v62 = vpop.eup %7557 }
 0xa4d   :  { %v7560_v60 = vpop.eup %7559  ;;  %v4855_v2 = vmul.f32 %v7558_v62, %v7556_v58 }
 0xa4e   :  { %v4854_v3 = vmul.f32 %v7560_v60, %v8127_v51 }
 0xa4f   :  { %v7562_v42 = vpop.eup %7561 }
 0xa50   :  { %v4856_v36 = vadd.f32 %v4855_v2, %v4854_v3 }
 0xa52   :  { %7563 = vtanh.f32 %v4856_v36 }
 0xa5c   :  { %v7564_v63 = vpop.eup %7563 }
 0xa5d   :  { %v4858_v39 = vmul.f32 %v7564_v63, %v7562_v42 }
 0xa5f   :  { %5260 = vmatmul.mubr.msk.f32.vlgmr.msra.gmra.mrb[30].mxu0 %vm4552_vm0, %v4858_v39  ;;  %5261 = vmatmul.mubr.msk.f32.vlgmr.msra.gmra.mrb[30].mxu1 %vm4552_vm0, %v4858_v39 }
 0xb32   :  { %v5068_v5 = vpop.f32.mrb[30].mxu0  ;;  %v5139_v7 = vpop.f32.mrb[30].mxu1 }
 0xb33   :  { %v5069_v9 = vadd.f32 %v5068_v5, %v7857_v33  ;;  %v5070_v8 = vpop.f32.mrb[31].mxu0  ;;  %v5141_v19 = vpop.f32.mrb[31].mxu1  ;;  %v5140_v59 = vadd.f32 %v5139_v7, %v7872_v27 }
 0xb34   :  { %v5071_v51 = vadd.f32 %v5070_v8, %v7861_v34  ;;  %v5142_v12 = vadd.f32 %v5141_v19, %v7867_v46 }
 0xb35   :  { %v5239_v10 = vmul.f32 -1.442695, %v5069_v9 }
 0xb36   :  { %v5240_v11 = vmul.f32 -1.442695, %v5071_v51  ;;  %v5241_v35 = vmul.f32 -1.442695, %v5142_v12 }
 0xb37   :  { %7565 = vpow2.f32 %v5239_v10 }
 0xb38   :  { %7567 = vpow2.f32 %v5240_v11 }
 0xb39   :  { %7569 = vpow2.f32 %v5241_v35 }
 0xb3a   :  { %7571 = vtanh.f32 %v5140_v59 }
 0xb41   :  { %v7566_v14 = vpop.eup %7565 }
 0xb42   :  { %v7568_v17 = vpop.eup %7567  ;;  %v5147_v18 = vadd.f32 1.0, %v7566_v14 }
 0xb43   :  { %v5153_v47 = vadd.f32 1.0, %v7568_v17  ;;  %v7570_v33 = vpop.eup %7569 }
 0xb44   :  { %7573 = vrcp.f32 %v5147_v18  ;;  %v7572_v1 = vpop.eup %7571  ;;  %v5160_v21 = vadd.f32 1.0, %v7570_v33 }
 0xb45   :  { %7575 = vrcp.f32 %v5153_v47 }
 0xb46   :  { %7577 = vrcp.f32 %v5160_v21 }
 0xb4e   :  { %v7574_v34 = vpop.eup %7573 }
 0xb4f   :  { %v7576_v20 = vpop.eup %7575  ;;  %v5164_v43 = vmul.f32 %v7574_v34, %v7572_v1 }
 0xb50   :  { %v5163_v22 = vmul.f32 %v7576_v20, %v8144_v41  ;;  %v7578_v27 = vpop.eup %7577 }
 0xb52   :  { %v5165_v46 = vadd.f32 %v5164_v43, %v5163_v22 }
 0xb54   :  { %7579 = vtanh.f32 %v5165_v46 }
 0xb5e   :  { %v7580_v26 = vpop.eup %7579 }
 0xb5f   :  { %v5167_v56 = vmul.f32 %v7580_v26, %v7578_v27 }
 0xb61   :  { %v5172_v23 = vsel %vm4552_vm0, %v5167_v56, 0.0 }
 0xb62   :  { %5174 = vst.msk [vmem:[#allocation14 + $0x38] sm:$0xff] %vm763_vm5, %v5172_v23 }
 0xb63   :  { %7681 = shalt.err (!%p7678_p8)
}
 0xb64   :  { %s7682_s20 = scalar_lea.hbm %s8185_s4, 1024 }
 0xb65   :  { %p7683_p9 = scmp.ne.s32.totalorder %s8185_s4, %s7682_s20  ;;  %p7686_p10 = scmp.lt.u32.totalorder %s7682_s20, %s8185_s4 }
 0xb67   :  { %p7688_p11 = pnand %p7686_p10, %p7683_p9 }
 0xb69   :  { %7691 = shalt.err (!%p7688_p11)
}
 0xb6a   :  { %5186 = dma.vmem_to_hbm [thread:$0]  %s5181_s15, 1024, %s8185_s4, [#allocation8], %s7702_s1, %s7702_s1, %s7703_s11  }
 0xb6b   :  { %7698 = dma.done.wait [#allocation8], 1024  }
 0xb6c   :  { %7699 = vsyncadd [#allocation8], 4294966272 }
 0xb6d   :  { %5190 = vsyncpa [#allocation7], 1 }
 0xb6e   :  { %5191 = vsyncpa [#allocation10], 1 }
 0xb6f   :  { %5192 = vsyncpa [#allocation13], 1 }
 0xb70   :  { %5193 = vsyncpa [#allocation8], 1 }

</bundles_post_ra>
